<compile_context>
chip_gen: v6e
topology: v6e:2x2x1
jax: 0.10.0
libtpu: 0.0.40
codegen_flags: <defaults>
</compile_context>

<pallas_src>
import functools

import jax
import jax.numpy as jnp
from jax.experimental import pallas as pl
from jax.experimental.pallas import tpu as pltpu

EPS = 1e-5  # nn.LayerNorm default


def _layernorm(v, w, b):
    mu = jnp.mean(v, axis=-1, keepdims=True)
    var = jnp.mean((v - mu) ** 2, axis=-1, keepdims=True)
    return (v - mu) * jax.lax.rsqrt(var + EPS) * w + b


def mb_transformer_kernel(
    x_ref,
    ln1w_ref, ln1b_ref, wqkv_ref, wo_ref, bo_ref,
    ln2w_ref, ln2b_ref, w1_ref, b1_ref, w2_ref, b2_ref,
    o_ref,
    *, heads, dim_head, n_tokens, tile_bp, compute_dtype,
):
    layer = pl.program_id(1)
    inner = heads * dim_head
    scale = dim_head ** (-0.5)
    M = tile_bp * n_tokens                    # MXU M-dimension for projections

    # The output block's index does not change along the (innermost,
    # "arbitrary") layer axis, so it stays VMEM-resident: use it directly as
    # the f32 activation accumulator (no extra scratch buffer / copy).
    @pl.when(layer == 0)
    def _():
        o_ref[...] = x_ref[...]

    x = o_ref[...]                            # (M, D) float32

    def mm(a, w):
        return jnp.dot(a.astype(compute_dtype), w.astype(compute_dtype),
                       preferred_element_type=jnp.float32)

    # ------------------- pre-norm multi-head attention + residual -----------
    xn = _layernorm(x, ln1w_ref[layer], ln1b_ref[layer])
    qkv = mm(xn, wqkv_ref[layer])             # (M, 3*inner), one big matmul
    q = qkv[:, 0 * inner:1 * inner]
    k = qkv[:, 1 * inner:2 * inner]
    v = qkv[:, 2 * inner:3 * inner]

    # Fold heads into the einsum batch axis using leading-dim concats only
    # (cheap, no minor-dim reshapes / transposes), so QK, softmax and PV each
    # run as ONE pass instead of `heads` passes.
    def head_batched(t):
        return jnp.concatenate(
            [t[:, h * dim_head:(h + 1) * dim_head]
             .reshape(tile_bp, n_tokens, dim_head) for h in range(heads)],
            axis=0)                           # (heads*tile_bp, N, dh)

    qh, kh, vh = head_batched(q), head_batched(k), head_batched(v)

    s = jnp.einsum('bqd,bkd->bqk',
                   qh.astype(compute_dtype), kh.astype(compute_dtype),
                   preferred_element_type=jnp.float32) * scale
    s = s - jnp.max(s, axis=-1, keepdims=True)
    p = jnp.exp(s)
    # Exact reciprocal (multiply form) keeps the 1e-4 tolerance;
    # pl.reciprocal(..., approx=True) is a further EUP-slot option.
    p = p * (1.0 / jnp.sum(p, axis=-1, keepdims=True))
    oh = jnp.einsum('bqk,bkd->bqd',
                    p.astype(compute_dtype), vh.astype(compute_dtype),
                    preferred_element_type=jnp.float32)

    # Gather head outputs into one (M, inner) slab -> a single K=inner output
    # projection instead of `heads` K=dim_head matmuls.
    attn_out = jnp.concatenate(
        [oh[h * tile_bp:(h + 1) * tile_bp].reshape(M, dim_head)
         for h in range(heads)], axis=-1)     # (M, inner)
    x = x + mm(attn_out, wo_ref[layer]) + bo_ref[layer]

    # ----------------------- pre-norm feed-forward + residual ---------------
    xn2 = _layernorm(x, ln2w_ref[layer], ln2b_ref[layer])
    h1 = mm(xn2, w1_ref[layer]) + b1_ref[layer]
    h1 = h1 * jax.nn.sigmoid(h1)              # SiLU
    x = x + mm(h1, w2_ref[layer]) + b2_ref[layer]

    o_ref[...] = x.astype(o_ref.dtype)


def _num_tensorcores_per_chip():
    """Best-effort TensorCore-per-chip count (v7x has 2; v5e/v6e have 1)."""
    try:
        kind = jax.devices()[0].device_kind.lower()
    except Exception:
        return 1
    return 2 if "v7" in kind else 1


def _vmem_cap_bytes():
    """~85% of physical per-core VMEM; conservative 64 MiB basis on failure."""
    try:
        cap = int(pltpu.get_tpu_info().vmem_capacity_bytes)
    except Exception:
        cap = 64 * 1024 * 1024
    return int(cap * 0.85)


def _choose_tile_bp(BP, N, num_cores):
    """Pick how many (B,P) patches to process per grid step."""
    divisors = [t for t in range(1, BP + 1) if BP % t == 0]
    # (tile_bp*N, D) block: second-minor dim must be a multiple of 8 or full.
    aligned = [t for t in divisors if (t * N) % 8 == 0] or [BP]
    if num_cores > 1:
        # v7x: keep an even (>= num_cores) number of tiles on the "parallel"
        # axis so both TensorCores get balanced work.
        max_rows = 512
        cand = [t for t in aligned
                if t * N <= max_rows and (BP // t) % num_cores == 0]
    else:
        # Single TensorCore (v5e/v6e): one big tile amortizes per-step
        # overhead and MXU drains; activations are tiny at MobileViT dims.
        max_rows = 2048
        cand = [t for t in aligned if t * N <= max_rows]
    if not cand:
        cand = [t for t in aligned if t * N <= max_rows] or aligned
    return max(cand)


def mb_transformer(x, params, heads, dim_head, *, tile_bp=None,
                   compute_dtype=jnp.float32):
    """x: (B, P, N, D); params: dict of layer-stacked weights (see __main__)."""
    B, P, N, D = x.shape
    BP = B * P
    depth = params["wqkv"].shape[0]
    inner = heads * dim_head
    mlp_dim = params["w1"].shape[-1]

    num_cores = _num_tensorcores_per_chip()
    if tile_bp is None:
        tile_bp = _choose_tile_bp(BP, N, num_cores)
    assert BP % tile_bp == 0
    num_tiles = BP // tile_bp
    M = tile_bp * N

    # f32 activation slab (the output block doubles as the resident f32
    # accumulator). Free layout plumbing on the host side.
    x2 = x.reshape(BP * N, D).astype(jnp.float32)

    kernel = functools.partial(
        mb_transformer_kernel, heads=heads, dim_head=dim_head,
        n_tokens=N, tile_bp=tile_bp, compute_dtype=compute_dtype)

    xmap = lambda i, l: (i, 0)      # activation/output: indexed by patch tile
    wmap = lambda i, l: (0, 0, 0)   # weights: full stack resident, DMA'd once

    in_specs = [
        pl.BlockSpec((M, D), xmap),                     # x
        pl.BlockSpec((depth, 1, D), wmap),              # ln1_w
        pl.BlockSpec((depth, 1, D), wmap),              # ln1_b
        pl.BlockSpec((depth, D, 3 * inner), wmap),      # Wqkv^T
        pl.BlockSpec((depth, inner, D), wmap),          # Wo^T
        pl.BlockSpec((depth, 1, D), wmap),              # bo
        pl.BlockSpec((depth, 1, D), wmap),              # ln2_w
        pl.BlockSpec((depth, 1, D), wmap),              # ln2_b
        pl.BlockSpec((depth, D, mlp_dim), wmap),        # W1^T
        pl.BlockSpec((depth, 1, mlp_dim), wmap),        # b1
        pl.BlockSpec((depth, mlp_dim, D), wmap),        # W2^T
        pl.BlockSpec((depth, 1, D), wmap),              # b2
    ]
    out_specs = pl.BlockSpec((M, D), xmap)

    # VMEM budget: double-buffered activation in/out blocks + the resident
    # weight stack (counted twice for safety). Only raise the scoped limit if
    # the footprint exceeds the conservative default, and never above ~85% of
    # physical VMEM (v7x = 64 MiB per TensorCore).
    w_bytes = sum(int(v.size) * v.dtype.itemsize for v in params.values())
    x_block_bytes = M * D * 4
    est = 4 * x_block_bytes + 2 * w_bytes
    cp_kwargs = {}
    if est > 12 * 1024 * 1024:
        cp_kwargs["vmem_limit_bytes"] = min(int(est * 1.5), _vmem_cap_bytes())

    out2 = pl.pallas_call(
        kernel,
        out_shape=jax.ShapeDtypeStruct((BP * N, D), jnp.float32),
        grid=(num_tiles, depth),
        in_specs=in_specs,
        out_specs=out_specs,
        compiler_params=pltpu.CompilerParams(
            # TODO(synk): evaluate pltpu.CORE_PARALLEL on the tile axis (v7x).
            dimension_semantics=("parallel", "arbitrary"), **cp_kwargs),
    )(
        x2,
        params["ln1_w"], params["ln1_b"], params["wqkv"],
        params["wo"], params["bo"],
        params["ln2_w"], params["ln2_b"],
        params["w1"], params["b1"], params["w2"], params["b2"],
    )
    return out2.reshape(B, P, N, D).astype(x.dtype)


# ----------------------------- pure-JAX reference -----------------------------
def reference(x, params, heads, dim_head):
    B, P, N, D = x.shape
    depth = params["wqkv"].shape[0]
    inner = heads * dim_head
    scale = dim_head ** (-0.5)
    for l in range(depth):
        xn = _layernorm(x, params["ln1_w"][l, 0], params["ln1_b"][l, 0])
        qkv = xn @ params["wqkv"][l]
        q, k, v = jnp.split(qkv, 3, axis=-1)

        def split_heads(t):
            return t.reshape(B, P, N, heads, dim_head).transpose(0, 1, 3, 2, 4)

        q, k, v = map(split_heads, (q, k, v))
        dots = jnp.einsum("bphnd,bphmd->bphnm", q, k) * scale
        attn = jax.nn.softmax(dots, axis=-1)
        out = jnp.einsum("bphnm,bphmd->bphnd", attn, v)
        out = out.transpose(0, 1, 3, 2, 4).reshape(B, P, N, inner)
        out = out @ params["wo"][l] + params["bo"][l, 0]
        x = x + out
        xn2 = _layernorm(x, params["ln2_w"][l, 0], params["ln2_b"][l, 0])
        h1 = jax.nn.silu(xn2 @ params["w1"][l] + params["b1"][l, 0])
        x = x + (h1 @ params["w2"][l] + params["b2"][l, 0])
    return x


# --------------------------------- main ---------------------------------------
if __name__ == "__main__":
    # Small, forward-consistent shapes: (B, P, N, D).
    B, P, N = 2, 16, 8
    dim, depth, heads, dim_head, mlp_dim = 32, 2, 4, 8, 64
    inner = heads * dim_head

    key = jax.random.PRNGKey(0)
    key, xkey = jax.random.split(key)
    x = jax.random.normal(xkey, (B, P, N, dim), dtype=jnp.float32)

    ks = jax.random.split(key, 11)
    params = {
        # LayerNorm params (depth, 1, D)
        "ln1_w": 1.0 + 0.1 * jax.random.normal(ks[0], (depth, 1, dim), jnp.float32),
        "ln1_b": 0.05 * jax.random.normal(ks[1], (depth, 1, dim), jnp.float32),
        # Weights stored pre-transposed (in_features, out_features), stacked by layer.
        "wqkv":  0.05 * jax.random.normal(ks[2], (depth, dim, 3 * inner), jnp.float32),
        "wo":    0.05 * jax.random.normal(ks[3], (depth, inner, dim), jnp.float32),
        "bo":    0.05 * jax.random.normal(ks[4], (depth, 1, dim), jnp.float32),
        "ln2_w": 1.0 + 0.1 * jax.random.normal(ks[5], (depth, 1, dim), jnp.float32),
        "ln2_b": 0.05 * jax.random.normal(ks[6], (depth, 1, dim), jnp.float32),
        "w1":    0.05 * jax.random.normal(ks[7], (depth, dim, mlp_dim), jnp.float32),
        "b1":    0.05 * jax.random.normal(ks[8], (depth, 1, mlp_dim), jnp.float32),
        "w2":    0.05 * jax.random.normal(ks[9], (depth, mlp_dim, dim), jnp.float32),
        "b2":    0.05 * jax.random.normal(ks[10], (depth, 1, dim), jnp.float32),
    }

    # f32 MXU path: must match the reference to 1e-4.
    out = mb_transformer(x, params, heads, dim_head)
    out = jax.block_until_ready(out)

    ref = reference(x, params, heads, dim_head)
    assert out.shape == (B, P, N, dim)
    assert jnp.allclose(out, ref, rtol=1e-4, atol=1e-4), (
        float(jnp.max(jnp.abs(out - ref))))

    # bf16 MXU-input path (f32 statistics / accumulation): expected small
    # precision loss only, checked with a loose tolerance.
    out_bf16 = mb_transformer(x, params, heads, dim_head,
                              compute_dtype=jnp.bfloat16)
    out_bf16 = jax.block_until_ready(out_bf16)
    assert float(jnp.max(jnp.abs(out_bf16 - ref))) < 1e-1

    print("KERNEL_OK")
</pallas_src>

<mosaic_0001>
module attributes {stable_mosaic.version = 11 : i64} {
  func.func @mb_transformer_kernel(%arg0: i32, %arg1: i32, %arg2: memref<256x32xf32, #tpu.memory_space<vmem>>, %arg3: memref<2x1x32xf32, #tpu.memory_space<vmem>>, %arg4: memref<2x1x32xf32, #tpu.memory_space<vmem>>, %arg5: memref<2x32x96xf32, #tpu.memory_space<vmem>>, %arg6: memref<2x32x32xf32, #tpu.memory_space<vmem>>, %arg7: memref<2x1x32xf32, #tpu.memory_space<vmem>>, %arg8: memref<2x1x32xf32, #tpu.memory_space<vmem>>, %arg9: memref<2x1x32xf32, #tpu.memory_space<vmem>>, %arg10: memref<2x32x64xf32, #tpu.memory_space<vmem>>, %arg11: memref<2x1x64xf32, #tpu.memory_space<vmem>>, %arg12: memref<2x64x32xf32, #tpu.memory_space<vmem>>, %arg13: memref<2x1x32xf32, #tpu.memory_space<vmem>>, %arg14: memref<256x32xf32, #tpu.memory_space<vmem>>) attributes {dimension_semantics = [#tpu.dimension_semantics<parallel>, #tpu.dimension_semantics<arbitrary>], iteration_bounds = array<i64: 1, 2>, scalar_prefetch = 0 : i64, scratch_operands = 0 : i64, tpu.core_type = #tpu.core_type<tc>, window_params = [{transform_indices = @transform_0, window_bounds = array<i64: 256, 32>}, {pipeline_mode = #tpu.pipeline_mode<synchronous>, transform_indices = @transform_1, window_bounds = array<i64: 2, 1, 32>}, {pipeline_mode = #tpu.pipeline_mode<synchronous>, transform_indices = @transform_2, window_bounds = array<i64: 2, 1, 32>}, {pipeline_mode = #tpu.pipeline_mode<synchronous>, transform_indices = @transform_3, window_bounds = array<i64: 2, 32, 96>}, {pipeline_mode = #tpu.pipeline_mode<synchronous>, transform_indices = @transform_4, window_bounds = array<i64: 2, 32, 32>}, {pipeline_mode = #tpu.pipeline_mode<synchronous>, transform_indices = @transform_5, window_bounds = array<i64: 2, 1, 32>}, {pipeline_mode = #tpu.pipeline_mode<synchronous>, transform_indices = @transform_6, window_bounds = array<i64: 2, 1, 32>}, {pipeline_mode = #tpu.pipeline_mode<synchronous>, transform_indices = @transform_7, window_bounds = array<i64: 2, 1, 32>}, {pipeline_mode = #tpu.pipeline_mode<synchronous>, transform_indices = @transform_8, window_bounds = array<i64: 2, 32, 64>}, {pipeline_mode = #tpu.pipeline_mode<synchronous>, transform_indices = @transform_9, window_bounds = array<i64: 2, 1, 64>}, {pipeline_mode = #tpu.pipeline_mode<synchronous>, transform_indices = @transform_10, window_bounds = array<i64: 2, 64, 32>}, {pipeline_mode = #tpu.pipeline_mode<synchronous>, transform_indices = @transform_11, window_bounds = array<i64: 2, 1, 32>}, {transform_indices = @transform_12, window_bounds = array<i64: 256, 32>}]} {
    %c0_i32 = arith.constant 0 : i32
    %0 = arith.cmpi eq, %arg1, %c0_i32 : i32
    %1 = arith.extui %0 : i1 to i32
    %c0_i32_0 = arith.constant 0 : i32
    %2 = arith.cmpi ne, %1, %c0_i32_0 : i32
    scf.if %2 {
      %c0_46 = arith.constant 0 : index
      %c0_47 = arith.constant 0 : index
      %154 = vector.load %arg2[%c0_46, %c0_47] : memref<256x32xf32, #tpu.memory_space<vmem>>, vector<256x32xf32>
      %c0_48 = arith.constant 0 : index
      %c0_49 = arith.constant 0 : index
      %155 = vector.load %arg14[%c0_48, %c0_49] : memref<256x32xf32, #tpu.memory_space<vmem>>, vector<256x32xf32>
      tpu.vector_store %arg14[%c0_48, %c0_49], %154 {strides = array<i32>} : memref<256x32xf32, #tpu.memory_space<vmem>>, vector<256x32xf32>,
    } else {
    }
    %c0 = arith.constant 0 : index
    %c0_1 = arith.constant 0 : index
    %3 = vector.load %arg14[%c0, %c0_1] : memref<256x32xf32, #tpu.memory_space<vmem>>, vector<256x32xf32>
    %4 = arith.index_cast %arg1 : i32 to index
    %c0_2 = arith.constant 0 : index
    %c0_3 = arith.constant 0 : index
    %5 = vector.load %arg3[%4, %c0_2, %c0_3] : memref<2x1x32xf32, #tpu.memory_space<vmem>>, vector<1x1x32xf32>
    %6 = vector.shape_cast %5 : vector<1x1x32xf32> to vector<1x32xf32>
    %7 = arith.index_cast %arg1 : i32 to index
    %c0_4 = arith.constant 0 : index
    %c0_5 = arith.constant 0 : index
    %8 = vector.load %arg4[%7, %c0_4, %c0_5] : memref<2x1x32xf32, #tpu.memory_space<vmem>>, vector<1x1x32xf32>
    %9 = vector.shape_cast %8 : vector<1x1x32xf32> to vector<1x32xf32>
    %cst = arith.constant dense<0.000000e+00> : vector<256xf32>
    %10 = vector.multi_reduction <add>, %3, %cst [1] : vector<256x32xf32> to vector<256xf32>
    %11 = vector.shape_cast %10 : vector<256xf32> to vector<256x1xf32>
    %cst_6 = arith.constant 3.200000e+01 : f32
    %12 = vector.broadcast %cst_6 : f32 to vector<256x1xf32>
    %13 = arith.divf %11, %12 : vector<256x1xf32>
    %14 = vector.broadcast %13 : vector<256x1xf32> to vector<256x32xf32>
    %15 = arith.subf %3, %14 : vector<256x32xf32>
    %16 = arith.mulf %15, %15 : vector<256x32xf32>
    %cst_7 = arith.constant dense<0.000000e+00> : vector<256xf32>
    %17 = vector.multi_reduction <add>, %16, %cst_7 [1] : vector<256x32xf32> to vector<256xf32>
    %18 = vector.shape_cast %17 : vector<256xf32> to vector<256x1xf32>
    %cst_8 = arith.constant 3.200000e+01 : f32
    %19 = vector.broadcast %cst_8 : f32 to vector<256x1xf32>
    %20 = arith.divf %18, %19 : vector<256x1xf32>
    %21 = vector.broadcast %13 : vector<256x1xf32> to vector<256x32xf32>
    %22 = arith.subf %3, %21 : vector<256x32xf32>
    %cst_9 = arith.constant 9.99999974E-6 : f32
    %23 = vector.broadcast %cst_9 : f32 to vector<256x1xf32>
    %24 = arith.addf %20, %23 : vector<256x1xf32>
    %25 = math.rsqrt %24 : vector<256x1xf32>
    %26 = vector.broadcast %25 : vector<256x1xf32> to vector<256x32xf32>
    %27 = arith.mulf %22, %26 : vector<256x32xf32>
    %28 = vector.broadcast %6 : vector<1x32xf32> to vector<256x32xf32>
    %29 = arith.mulf %27, %28 : vector<256x32xf32>
    %30 = vector.broadcast %9 : vector<1x32xf32> to vector<256x32xf32>
    %31 = arith.addf %29, %30 : vector<256x32xf32>
    %32 = arith.index_cast %arg1 : i32 to index
    %c0_10 = arith.constant 0 : index
    %c0_11 = arith.constant 0 : index
    %33 = vector.load %arg5[%32, %c0_10, %c0_11] : memref<2x32x96xf32, #tpu.memory_space<vmem>>, vector<1x32x96xf32>
    %34 = vector.shape_cast %33 : vector<1x32x96xf32> to vector<32x96xf32>
    %cst_12 = arith.constant dense<0.000000e+00> : vector<256x96xf32>
    %35 = tpu.matmul %31, %34, %cst_12 {dimension_numbers = #tpu.dot_dimension_numbers<[1], [0], [0], [1], [0, 0, 1, 1], [], []>} : vector<256x32xf32>, vector<32x96xf32>, vector<256x96xf32> -> vector<256x96xf32>
    %36 = vector.extract_strided_slice %35 {offsets = [0, 0], sizes = [256, 32], strides = [1, 1]} : vector<256x96xf32> to vector<256x32xf32>
    %37 = vector.extract_strided_slice %35 {offsets = [0, 32], sizes = [256, 32], strides = [1, 1]} : vector<256x96xf32> to vector<256x32xf32>
    %38 = vector.extract_strided_slice %35 {offsets = [0, 64], sizes = [256, 32], strides = [1, 1]} : vector<256x96xf32> to vector<256x32xf32>
    %39 = vector.extract_strided_slice %36 {offsets = [0, 0], sizes = [256, 8], strides = [1, 1]} : vector<256x32xf32> to vector<256x8xf32>
    %40 = vector.shape_cast %39 : vector<256x8xf32> to vector<32x8x8xf32>
    %41 = vector.extract_strided_slice %36 {offsets = [0, 8], sizes = [256, 8], strides = [1, 1]} : vector<256x32xf32> to vector<256x8xf32>
    %42 = vector.shape_cast %41 : vector<256x8xf32> to vector<32x8x8xf32>
    %43 = vector.extract_strided_slice %36 {offsets = [0, 16], sizes = [256, 8], strides = [1, 1]} : vector<256x32xf32> to vector<256x8xf32>
    %44 = vector.shape_cast %43 : vector<256x8xf32> to vector<32x8x8xf32>
    %45 = vector.extract_strided_slice %36 {offsets = [0, 24], sizes = [256, 8], strides = [1, 1]} : vector<256x32xf32> to vector<256x8xf32>
    %46 = vector.shape_cast %45 : vector<256x8xf32> to vector<32x8x8xf32>
    %47 = tpu.concatenate %40, %42, %44, %46 in 0 : vector<32x8x8xf32>, vector<32x8x8xf32>, vector<32x8x8xf32>, vector<32x8x8xf32> -> vector<128x8x8xf32>
    %48 = vector.extract_strided_slice %37 {offsets = [0, 0], sizes = [256, 8], strides = [1, 1]} : vector<256x32xf32> to vector<256x8xf32>
    %49 = vector.shape_cast %48 : vector<256x8xf32> to vector<32x8x8xf32>
    %50 = vector.extract_strided_slice %37 {offsets = [0, 8], sizes = [256, 8], strides = [1, 1]} : vector<256x32xf32> to vector<256x8xf32>
    %51 = vector.shape_cast %50 : vector<256x8xf32> to vector<32x8x8xf32>
    %52 = vector.extract_strided_slice %37 {offsets = [0, 16], sizes = [256, 8], strides = [1, 1]} : vector<256x32xf32> to vector<256x8xf32>
    %53 = vector.shape_cast %52 : vector<256x8xf32> to vector<32x8x8xf32>
    %54 = vector.extract_strided_slice %37 {offsets = [0, 24], sizes = [256, 8], strides = [1, 1]} : vector<256x32xf32> to vector<256x8xf32>
    %55 = vector.shape_cast %54 : vector<256x8xf32> to vector<32x8x8xf32>
    %56 = tpu.concatenate %49, %51, %53, %55 in 0 : vector<32x8x8xf32>, vector<32x8x8xf32>, vector<32x8x8xf32>, vector<32x8x8xf32> -> vector<128x8x8xf32>
    %57 = vector.extract_strided_slice %38 {offsets = [0, 0], sizes = [256, 8], strides = [1, 1]} : vector<256x32xf32> to vector<256x8xf32>
    %58 = vector.shape_cast %57 : vector<256x8xf32> to vector<32x8x8xf32>
    %59 = vector.extract_strided_slice %38 {offsets = [0, 8], sizes = [256, 8], strides = [1, 1]} : vector<256x32xf32> to vector<256x8xf32>
    %60 = vector.shape_cast %59 : vector<256x8xf32> to vector<32x8x8xf32>
    %61 = vector.extract_strided_slice %38 {offsets = [0, 16], sizes = [256, 8], strides = [1, 1]} : vector<256x32xf32> to vector<256x8xf32>
    %62 = vector.shape_cast %61 : vector<256x8xf32> to vector<32x8x8xf32>
    %63 = vector.extract_strided_slice %38 {offsets = [0, 24], sizes = [256, 8], strides = [1, 1]} : vector<256x32xf32> to vector<256x8xf32>
    %64 = vector.shape_cast %63 : vector<256x8xf32> to vector<32x8x8xf32>
    %65 = tpu.concatenate %58, %60, %62, %64 in 0 : vector<32x8x8xf32>, vector<32x8x8xf32>, vector<32x8x8xf32>, vector<32x8x8xf32> -> vector<128x8x8xf32>
    "tpu.trace_start"() <{level = 10 : i32, message = "bqd,bkd->bqk"}> : () -> ()
    %cst_13 = arith.constant dense<0.000000e+00> : vector<128x8x8xf32>
    %66 = tpu.matmul %47, %56, %cst_13 {dimension_numbers = #tpu.dot_dimension_numbers<[2], [2], [1], [1], [0, 0, 0, 1, 1, 1], [0], [0]>} : vector<128x8x8xf32>, vector<128x8x8xf32>, vector<128x8x8xf32> -> vector<128x8x8xf32>
    "tpu.trace_stop"() : () -> ()
    %cst_14 = arith.constant 0.353553385 : f32
    %67 = vector.broadcast %cst_14 : f32 to vector<128x8x8xf32>
    %68 = arith.mulf %66, %67 : vector<128x8x8xf32>
    %cst_15 = arith.constant dense<0xFF800000> : vector<128x8xf32>
    %69 = vector.multi_reduction <maximumf>, %68, %cst_15 [2] : vector<128x8x8xf32> to vector<128x8xf32>
    %70 = vector.shape_cast %69 : vector<128x8xf32> to vector<128x8x1xf32>
    %71 = vector.broadcast %70 : vector<128x8x1xf32> to vector<128x8x8xf32>
    %72 = arith.subf %68, %71 : vector<128x8x8xf32>
    %73 = math.exp %72 : vector<128x8x8xf32>
    %cst_16 = arith.constant dense<0.000000e+00> : vector<128x8xf32>
    %74 = vector.multi_reduction <add>, %73, %cst_16 [2] : vector<128x8x8xf32> to vector<128x8xf32>
    %75 = vector.shape_cast %74 : vector<128x8xf32> to vector<128x8x1xf32>
    %cst_17 = arith.constant 1.000000e+00 : f32
    %76 = vector.broadcast %cst_17 : f32 to vector<128x8x1xf32>
    %77 = arith.divf %76, %75 : vector<128x8x1xf32>
    %78 = vector.broadcast %77 : vector<128x8x1xf32> to vector<128x8x8xf32>
    %79 = arith.mulf %73, %78 : vector<128x8x8xf32>
    "tpu.trace_start"() <{level = 10 : i32, message = "bqk,bkd->bqd"}> : () -> ()
    %cst_18 = arith.constant dense<0.000000e+00> : vector<128x8x8xf32>
    %80 = tpu.matmul %79, %65, %cst_18 {dimension_numbers = #tpu.dot_dimension_numbers<[2], [1], [1], [2], [0, 0, 0, 1, 1, 2], [0], [0]>} : vector<128x8x8xf32>, vector<128x8x8xf32>, vector<128x8x8xf32> -> vector<128x8x8xf32>
    "tpu.trace_stop"() : () -> ()
    %81 = vector.extract_strided_slice %80 {offsets = [0, 0, 0], sizes = [32, 8, 8], strides = [1, 1, 1]} : vector<128x8x8xf32> to vector<32x8x8xf32>
    %82 = vector.shape_cast %81 : vector<32x8x8xf32> to vector<256x8xf32>
    %83 = vector.extract_strided_slice %80 {offsets = [32, 0, 0], sizes = [32, 8, 8], strides = [1, 1, 1]} : vector<128x8x8xf32> to vector<32x8x8xf32>
    %84 = vector.shape_cast %83 : vector<32x8x8xf32> to vector<256x8xf32>
    %85 = vector.extract_strided_slice %80 {offsets = [64, 0, 0], sizes = [32, 8, 8], strides = [1, 1, 1]} : vector<128x8x8xf32> to vector<32x8x8xf32>
    %86 = vector.shape_cast %85 : vector<32x8x8xf32> to vector<256x8xf32>
    %87 = vector.extract_strided_slice %80 {offsets = [96, 0, 0], sizes = [32, 8, 8], strides = [1, 1, 1]} : vector<128x8x8xf32> to vector<32x8x8xf32>
    %88 = vector.shape_cast %87 : vector<32x8x8xf32> to vector<256x8xf32>
    %89 = tpu.concatenate %82, %84, %86, %88 in 1 : vector<256x8xf32>, vector<256x8xf32>, vector<256x8xf32>, vector<256x8xf32> -> vector<256x32xf32>
    %90 = arith.index_cast %arg1 : i32 to index
    %c0_19 = arith.constant 0 : index
    %c0_20 = arith.constant 0 : index
    %91 = vector.load %arg6[%90, %c0_19, %c0_20] : memref<2x32x32xf32, #tpu.memory_space<vmem>>, vector<1x32x32xf32>
    %92 = vector.shape_cast %91 : vector<1x32x32xf32> to vector<32x32xf32>
    %cst_21 = arith.constant dense<0.000000e+00> : vector<256x32xf32>
    %93 = tpu.matmul %89, %92, %cst_21 {dimension_numbers = #tpu.dot_dimension_numbers<[1], [0], [0], [1], [0, 0, 1, 1], [], []>} : vector<256x32xf32>, vector<32x32xf32>, vector<256x32xf32> -> vector<256x32xf32>
    %94 = arith.addf %3, %93 : vector<256x32xf32>
    %95 = arith.index_cast %arg1 : i32 to index
    %c0_22 = arith.constant 0 : index
    %c0_23 = arith.constant 0 : index
    %96 = vector.load %arg7[%95, %c0_22, %c0_23] : memref<2x1x32xf32, #tpu.memory_space<vmem>>, vector<1x1x32xf32>
    %97 = vector.shape_cast %96 : vector<1x1x32xf32> to vector<1x32xf32>
    %98 = vector.broadcast %97 : vector<1x32xf32> to vector<256x32xf32>
    %99 = arith.addf %94, %98 : vector<256x32xf32>
    %100 = arith.index_cast %arg1 : i32 to index
    %c0_24 = arith.constant 0 : index
    %c0_25 = arith.constant 0 : index
    %101 = vector.load %arg8[%100, %c0_24, %c0_25] : memref<2x1x32xf32, #tpu.memory_space<vmem>>, vector<1x1x32xf32>
    %102 = vector.shape_cast %101 : vector<1x1x32xf32> to vector<1x32xf32>
    %103 = arith.index_cast %arg1 : i32 to index
    %c0_26 = arith.constant 0 : index
    %c0_27 = arith.constant 0 : index
    %104 = vector.load %arg9[%103, %c0_26, %c0_27] : memref<2x1x32xf32, #tpu.memory_space<vmem>>, vector<1x1x32xf32>
    %105 = vector.shape_cast %104 : vector<1x1x32xf32> to vector<1x32xf32>
    %cst_28 = arith.constant dense<0.000000e+00> : vector<256xf32>
    %106 = vector.multi_reduction <add>, %99, %cst_28 [1] : vector<256x32xf32> to vector<256xf32>
    %107 = vector.shape_cast %106 : vector<256xf32> to vector<256x1xf32>
    %cst_29 = arith.constant 3.200000e+01 : f32
    %108 = vector.broadcast %cst_29 : f32 to vector<256x1xf32>
    %109 = arith.divf %107, %108 : vector<256x1xf32>
    %110 = vector.broadcast %109 : vector<256x1xf32> to vector<256x32xf32>
    %111 = arith.subf %99, %110 : vector<256x32xf32>
    %112 = arith.mulf %111, %111 : vector<256x32xf32>
    %cst_30 = arith.constant dense<0.000000e+00> : vector<256xf32>
    %113 = vector.multi_reduction <add>, %112, %cst_30 [1] : vector<256x32xf32> to vector<256xf32>
    %114 = vector.shape_cast %113 : vector<256xf32> to vector<256x1xf32>
    %cst_31 = arith.constant 3.200000e+01 : f32
    %115 = vector.broadcast %cst_31 : f32 to vector<256x1xf32>
    %116 = arith.divf %114, %115 : vector<256x1xf32>
    %117 = vector.broadcast %109 : vector<256x1xf32> to vector<256x32xf32>
    %118 = arith.subf %99, %117 : vector<256x32xf32>
    %cst_32 = arith.constant 9.99999974E-6 : f32
    %119 = vector.broadcast %cst_32 : f32 to vector<256x1xf32>
    %120 = arith.addf %116, %119 : vector<256x1xf32>
    %121 = math.rsqrt %120 : vector<256x1xf32>
    %122 = vector.broadcast %121 : vector<256x1xf32> to vector<256x32xf32>
    %123 = arith.mulf %118, %122 : vector<256x32xf32>
    %124 = vector.broadcast %102 : vector<1x32xf32> to vector<256x32xf32>
    %125 = arith.mulf %123, %124 : vector<256x32xf32>
    %126 = vector.broadcast %105 : vector<1x32xf32> to vector<256x32xf32>
    %127 = arith.addf %125, %126 : vector<256x32xf32>
    %128 = arith.index_cast %arg1 : i32 to index
    %c0_33 = arith.constant 0 : index
    %c0_34 = arith.constant 0 : index
    %129 = vector.load %arg10[%128, %c0_33, %c0_34] : memref<2x32x64xf32, #tpu.memory_space<vmem>>, vector<1x32x64xf32>
    %130 = vector.shape_cast %129 : vector<1x32x64xf32> to vector<32x64xf32>
    %cst_35 = arith.constant dense<0.000000e+00> : vector<256x64xf32>
    %131 = tpu.matmul %127, %130, %cst_35 {dimension_numbers = #tpu.dot_dimension_numbers<[1], [0], [0], [1], [0, 0, 1, 1], [], []>} : vector<256x32xf32>, vector<32x64xf32>, vector<256x64xf32> -> vector<256x64xf32>
    %132 = arith.index_cast %arg1 : i32 to index
    %c0_36 = arith.constant 0 : index
    %c0_37 = arith.constant 0 : index
    %133 = vector.load %arg11[%132, %c0_36, %c0_37] : memref<2x1x64xf32, #tpu.memory_space<vmem>>, vector<1x1x64xf32>
    %134 = vector.shape_cast %133 : vector<1x1x64xf32> to vector<1x64xf32>
    %135 = vector.broadcast %134 : vector<1x64xf32> to vector<256x64xf32>
    %136 = arith.addf %131, %135 : vector<256x64xf32>
    %137 = arith.negf %136 : vector<256x64xf32>
    %138 = math.exp %137 : vector<256x64xf32>
    %cst_38 = arith.constant 1.000000e+00 : f32
    %139 = vector.broadcast %cst_38 : f32 to vector<256x64xf32>
    %140 = arith.addf %139, %138 : vector<256x64xf32>
    %141 = arith.divf %139, %140 : vector<256x64xf32>
    %142 = arith.mulf %136, %141 : vector<256x64xf32>
    %143 = arith.index_cast %arg1 : i32 to index
    %c0_39 = arith.constant 0 : index
    %c0_40 = arith.constant 0 : index
    %144 = vector.load %arg12[%143, %c0_39, %c0_40] : memref<2x64x32xf32, #tpu.memory_space<vmem>>, vector<1x64x32xf32>
    %145 = vector.shape_cast %144 : vector<1x64x32xf32> to vector<64x32xf32>
    %cst_41 = arith.constant dense<0.000000e+00> : vector<256x32xf32>
    %146 = tpu.matmul %142, %145, %cst_41 {dimension_numbers = #tpu.dot_dimension_numbers<[1], [0], [0], [1], [0, 0, 1, 1], [], []>} : vector<256x64xf32>, vector<64x32xf32>, vector<256x32xf32> -> vector<256x32xf32>
    %147 = arith.addf %99, %146 : vector<256x32xf32>
    %148 = arith.index_cast %arg1 : i32 to index
    %c0_42 = arith.constant 0 : index
    %c0_43 = arith.constant 0 : index
    %149 = vector.load %arg13[%148, %c0_42, %c0_43] : memref<2x1x32xf32, #tpu.memory_space<vmem>>, vector<1x1x32xf32>
    %150 = vector.shape_cast %149 : vector<1x1x32xf32> to vector<1x32xf32>
    %151 = vector.broadcast %150 : vector<1x32xf32> to vector<256x32xf32>
    %152 = arith.addf %147, %151 : vector<256x32xf32>
    %c0_44 = arith.constant 0 : index
    %c0_45 = arith.constant 0 : index
    %153 = vector.load %arg14[%c0_44, %c0_45] : memref<256x32xf32, #tpu.memory_space<vmem>>, vector<256x32xf32>
    tpu.vector_store %arg14[%c0_44, %c0_45], %152 {strides = array<i32>} : memref<256x32xf32, #tpu.memory_space<vmem>>, vector<256x32xf32>,
    return
  }
  func.func @transform_0(%arg0: i32, %arg1: i32) -> (i32, i32) {
    %c0_i32 = arith.constant 0 : i32
    %c0_i32_0 = arith.constant 0 : i32
    return %arg0, %c0_i32 : i32, i32
  }
  func.func @transform_1(%arg0: i32, %arg1: i32) -> (i32, i32, i32) {
    %c0_i32 = arith.constant 0 : i32
    %c0_i32_0 = arith.constant 0 : i32
    %c0_i32_1 = arith.constant 0 : i32
    %c0_i32_2 = arith.constant 0 : i32
    return %c0_i32, %c0_i32_0, %c0_i32_1 : i32, i32, i32
  }
  func.func @transform_2(%arg0: i32, %arg1: i32) -> (i32, i32, i32) {
    %c0_i32 = arith.constant 0 : i32
    %c0_i32_0 = arith.constant 0 : i32
    %c0_i32_1 = arith.constant 0 : i32
    %c0_i32_2 = arith.constant 0 : i32
    return %c0_i32, %c0_i32_0, %c0_i32_1 : i32, i32, i32
  }
  func.func @transform_3(%arg0: i32, %arg1: i32) -> (i32, i32, i32) {
    %c0_i32 = arith.constant 0 : i32
    %c0_i32_0 = arith.constant 0 : i32
    %c0_i32_1 = arith.constant 0 : i32
    %c0_i32_2 = arith.constant 0 : i32
    return %c0_i32, %c0_i32_0, %c0_i32_1 : i32, i32, i32
  }
  func.func @transform_4(%arg0: i32, %arg1: i32) -> (i32, i32, i32) {
    %c0_i32 = arith.constant 0 : i32
    %c0_i32_0 = arith.constant 0 : i32
    %c0_i32_1 = arith.constant 0 : i32
    %c0_i32_2 = arith.constant 0 : i32
    return %c0_i32, %c0_i32_0, %c0_i32_1 : i32, i32, i32
  }
  func.func @transform_5(%arg0: i32, %arg1: i32) -> (i32, i32, i32) {
    %c0_i32 = arith.constant 0 : i32
    %c0_i32_0 = arith.constant 0 : i32
    %c0_i32_1 = arith.constant 0 : i32
    %c0_i32_2 = arith.constant 0 : i32
    return %c0_i32, %c0_i32_0, %c0_i32_1 : i32, i32, i32
  }
  func.func @transform_6(%arg0: i32, %arg1: i32) -> (i32, i32, i32) {
    %c0_i32 = arith.constant 0 : i32
    %c0_i32_0 = arith.constant 0 : i32
    %c0_i32_1 = arith.constant 0 : i32
    %c0_i32_2 = arith.constant 0 : i32
    return %c0_i32, %c0_i32_0, %c0_i32_1 : i32, i32, i32
  }
  func.func @transform_7(%arg0: i32, %arg1: i32) -> (i32, i32, i32) {
    %c0_i32 = arith.constant 0 : i32
    %c0_i32_0 = arith.constant 0 : i32
    %c0_i32_1 = arith.constant 0 : i32
    %c0_i32_2 = arith.constant 0 : i32
    return %c0_i32, %c0_i32_0, %c0_i32_1 : i32, i32, i32
  }
  func.func @transform_8(%arg0: i32, %arg1: i32) -> (i32, i32, i32) {
    %c0_i32 = arith.constant 0 : i32
    %c0_i32_0 = arith.constant 0 : i32
    %c0_i32_1 = arith.constant 0 : i32
    %c0_i32_2 = arith.constant 0 : i32
    return %c0_i32, %c0_i32_0, %c0_i32_1 : i32, i32, i32
  }
  func.func @transform_9(%arg0: i32, %arg1: i32) -> (i32, i32, i32) {
    %c0_i32 = arith.constant 0 : i32
    %c0_i32_0 = arith.constant 0 : i32
    %c0_i32_1 = arith.constant 0 : i32
    %c0_i32_2 = arith.constant 0 : i32
    return %c0_i32, %c0_i32_0, %c0_i32_1 : i32, i32, i32
  }
  func.func @transform_10(%arg0: i32, %arg1: i32) -> (i32, i32, i32) {
    %c0_i32 = arith.constant 0 : i32
    %c0_i32_0 = arith.constant 0 : i32
    %c0_i32_1 = arith.constant 0 : i32
    %c0_i32_2 = arith.constant 0 : i32
    return %c0_i32, %c0_i32_0, %c0_i32_1 : i32, i32, i32
  }
  func.func @transform_11(%arg0: i32, %arg1: i32) -> (i32, i32, i32) {
    %c0_i32 = arith.constant 0 : i32
    %c0_i32_0 = arith.constant 0 : i32
    %c0_i32_1 = arith.constant 0 : i32
    %c0_i32_2 = arith.constant 0 : i32
    return %c0_i32, %c0_i32_0, %c0_i32_1 : i32, i32, i32
  }
  func.func @transform_12(%arg0: i32, %arg1: i32) -> (i32, i32) {
    %c0_i32 = arith.constant 0 : i32
    %c0_i32_0 = arith.constant 0 : i32
    return %arg0, %c0_i32 : i32, i32
  }
}

</mosaic_0001>

<bundles_post_ra>
// kernel: tpu_custom_call.1
= control target key start
LH: loop header
LB: loop body
LE: loop exit
PB: predicated region body
PF: predicated region fallthrough
CT: control target
= control target key end

     0   :  { %s28825_s21 = smov 0   ;;  %s28827_s22 = smov 0   ;;  %s35682_s0 = inlined_call_operand.vmem [shape: f32[256,32], index: 0, kind: input, shape index: {}]   ;;  %s35683_s1 = inlined_call_operand.vmem [shape: f32[2,1,32], index: 1, kind: input, shape index: {}]   ;;  %s35684_s2 = inlined_call_operand.vmem [shape: f32[2,1,32], index: 2, kind: input, shape index: {}]   ;;  %s35685_s3 = inlined_call_operand.vmem [shape: f32[2,32,96], index: 3, kind: input, shape index: {}]   ;;  %s35686_s4 = inlined_call_operand.vmem [shape: f32[2,32,32], index: 4, kind: input, shape index: {}]   ;;  %s35687_s5 = inlined_call_operand.vmem [shape: f32[2,1,32], index: 5, kind: input, shape index: {}]   ;;  %s35688_s6 = inlined_call_operand.vmem [shape: f32[2,1,32], index: 6, kind: input, shape index: {}]   ;;  %s35689_s7 = inlined_call_operand.vmem [shape: f32[2,1,32], index: 7, kind: input, shape index: {}]   ;;  %s35690_s8 = inlined_call_operand.vmem [shape: f32[2,32,64], index: 8, kind: input, shape index: {}]   ;;  %s35691_s9 = inlined_call_operand.vmem [shape: f32[2,1,64], index: 9, kind: input, shape index: {}]   ;;  %s35692_s10 = inlined_call_operand.vmem [shape: f32[2,64,32], index: 10, kind: input, shape index: {}]   ;;  %s35693_s11 = inlined_call_operand.vmem [shape: f32[2,1,32], index: 11, kind: input, shape index: {}]   ;;  %s35694_s12 = inlined_call_operand.vmem [shape: f32[256,32], index: 12, kind: output, shape index: {}]  }
   0x1   :  { %s28829_s23 = smov 0  }
   0x2 LB: > { %s31_s24 = sadd.s32 1, %s28744_s22  ;;  %p25153_p0 = scmp.ge.s32.totalorder %s28748_s23, 1  ;;  %s28748_s23 = sphi %s28829_s23, %s22_s23   ;;  %s28744_s22 = sphi %s28827_s22, %s36991_s22   ;;  %s28740_s21 = sphi %s28825_s21, %s36990_s21  }
   0x3   : > { %p32_p1 = scmp.ge.s32.totalorder %s31_s24, 2  ;;  %p375_p2 = scmp.lt.s32.totalorder %s28748_s23, 3 }
   0x5   : > { %s36993_s24 = smov (%p32_p1, %s31_s24), 0  ;;  %p376_p3 = pnand %p25153_p0, %p375_p2 }
   0x7   : > { %379 = sbr.rel (%p376_p3) target bundleno = 4720 (0x1270), region = 68 }
   0xc   : > { %p25154_p4 = scmp.ne.s32.totalorder %s28740_s21, 0 }
   0xe   : > { %432 = sbr.rel (%p25154_p4) target bundleno = 36 (0x24), region = 72 }
  0x13   : > { %v433_v0 = vld [vmem:[%s35682_s0] sm:$0xff]  ;;  %vm465_vm0 = vcmask 261120   ;;  %v434_v1 = vld [vmem:[%s35682_s0 + $0x8] sm:$0xff]  ;;  %v435_v2 = vld [vmem:[%s35682_s0 + $0x10] sm:$0xff] }
  0x14   : > { %466 = vst.msk [vmem:[%s35694_s12] sm:$0xff] %vm465_vm0, %v433_v0  ;;  %467 = vst.msk [vmem:[%s35694_s12 + $0x8] sm:$0xff] %vm465_vm0, %v434_v1  ;;  %v436_v3 = vld [vmem:[%s35682_s0 + $0x18] sm:$0xff]  ;;  %v437_v4 = vld [vmem:[%s35682_s0 + $0x20] sm:$0xff] }
  0x15   : > { %468 = vst.msk [vmem:[%s35694_s12 + $0x10] sm:$0xff] %vm465_vm0, %v435_v2  ;;  %v438_v5 = vld [vmem:[%s35682_s0 + $0x28] sm:$0xff]  ;;  %469 = vst.msk [vmem:[%s35694_s12 + $0x18] sm:$0xff] %vm465_vm0, %v436_v3  ;;  %v439_v6 = vld [vmem:[%s35682_s0 + $0x30] sm:$0xff] }
  0x16   : > { %470 = vst.msk [vmem:[%s35694_s12 + $0x20] sm:$0xff] %vm465_vm0, %v437_v4  ;;  %471 = vst.msk [vmem:[%s35694_s12 + $0x28] sm:$0xff] %vm465_vm0, %v438_v5  ;;  %v440_v7 = vld [vmem:[%s35682_s0 + $0x38] sm:$0xff]  ;;  %v441_v8 = vld [vmem:[%s35682_s0 + $0x40] sm:$0xff] }
  0x17   : > { %472 = vst.msk [vmem:[%s35694_s12 + $0x30] sm:$0xff] %vm465_vm0, %v439_v6  ;;  %473 = vst.msk [vmem:[%s35694_s12 + $0x38] sm:$0xff] %vm465_vm0, %v440_v7  ;;  %v442_v9 = vld [vmem:[%s35682_s0 + $0x48] sm:$0xff]  ;;  %v443_v10 = vld [vmem:[%s35682_s0 + $0x50] sm:$0xff] }
  0x18   : > { %474 = vst.msk [vmem:[%s35694_s12 + $0x40] sm:$0xff] %vm465_vm0, %v441_v8  ;;  %v444_v11 = vld [vmem:[%s35682_s0 + $0x58] sm:$0xff]  ;;  %475 = vst.msk [vmem:[%s35694_s12 + $0x48] sm:$0xff] %vm465_vm0, %v442_v9  ;;  %v445_v12 = vld [vmem:[%s35682_s0 + $0x60] sm:$0xff] }
  0x19   : > { %476 = vst.msk [vmem:[%s35694_s12 + $0x50] sm:$0xff] %vm465_vm0, %v443_v10  ;;  %477 = vst.msk [vmem:[%s35694_s12 + $0x58] sm:$0xff] %vm465_vm0, %v444_v11  ;;  %v446_v13 = vld [vmem:[%s35682_s0 + $0x68] sm:$0xff]  ;;  %v447_v14 = vld [vmem:[%s35682_s0 + $0x70] sm:$0xff] }
  0x1a   : > { %478 = vst.msk [vmem:[%s35694_s12 + $0x60] sm:$0xff] %vm465_vm0, %v445_v12  ;;  %479 = vst.msk [vmem:[%s35694_s12 + $0x68] sm:$0xff] %vm465_vm0, %v446_v13  ;;  %v448_v15 = vld [vmem:[%s35682_s0 + $0x78] sm:$0xff]  ;;  %v449_v16 = vld [vmem:[%s35682_s0 + $0x80] sm:$0xff] }
  0x1b   : > { %480 = vst.msk [vmem:[%s35694_s12 + $0x70] sm:$0xff] %vm465_vm0, %v447_v14  ;;  %v450_v17 = vld [vmem:[%s35682_s0 + $0x88] sm:$0xff]  ;;  %481 = vst.msk [vmem:[%s35694_s12 + $0x78] sm:$0xff] %vm465_vm0, %v448_v15  ;;  %v451_v18 = vld [vmem:[%s35682_s0 + $0x90] sm:$0xff] }
  0x1c   : > { %482 = vst.msk [vmem:[%s35694_s12 + $0x80] sm:$0xff] %vm465_vm0, %v449_v16  ;;  %483 = vst.msk [vmem:[%s35694_s12 + $0x88] sm:$0xff] %vm465_vm0, %v450_v17  ;;  %v452_v19 = vld [vmem:[%s35682_s0 + $0x98] sm:$0xff]  ;;  %v453_v20 = vld [vmem:[%s35682_s0 + $0xa0] sm:$0xff] }
  0x1d   : > { %484 = vst.msk [vmem:[%s35694_s12 + $0x90] sm:$0xff] %vm465_vm0, %v451_v18  ;;  %485 = vst.msk [vmem:[%s35694_s12 + $0x98] sm:$0xff] %vm465_vm0, %v452_v19  ;;  %v454_v21 = vld [vmem:[%s35682_s0 + $0xa8] sm:$0xff]  ;;  %v455_v22 = vld [vmem:[%s35682_s0 + $0xb0] sm:$0xff] }
  0x1e   : > { %486 = vst.msk [vmem:[%s35694_s12 + $0xa0] sm:$0xff] %vm465_vm0, %v453_v20  ;;  %v456_v23 = vld [vmem:[%s35682_s0 + $0xb8] sm:$0xff]  ;;  %487 = vst.msk [vmem:[%s35694_s12 + $0xa8] sm:$0xff] %vm465_vm0, %v454_v21  ;;  %v457_v24 = vld [vmem:[%s35682_s0 + $0xc0] sm:$0xff] }
  0x1f   : > { %488 = vst.msk [vmem:[%s35694_s12 + $0xb0] sm:$0xff] %vm465_vm0, %v455_v22  ;;  %489 = vst.msk [vmem:[%s35694_s12 + $0xb8] sm:$0xff] %vm465_vm0, %v456_v23  ;;  %v458_v25 = vld [vmem:[%s35682_s0 + $0xc8] sm:$0xff]  ;;  %v459_v26 = vld [vmem:[%s35682_s0 + $0xd0] sm:$0xff] }
  0x20   : > { %490 = vst.msk [vmem:[%s35694_s12 + $0xc0] sm:$0xff] %vm465_vm0, %v457_v24  ;;  %491 = vst.msk [vmem:[%s35694_s12 + $0xc8] sm:$0xff] %vm465_vm0, %v458_v25  ;;  %v460_v27 = vld [vmem:[%s35682_s0 + $0xd8] sm:$0xff]  ;;  %v461_v28 = vld [vmem:[%s35682_s0 + $0xe0] sm:$0xff] }
  0x21   : > { %492 = vst.msk [vmem:[%s35694_s12 + $0xd0] sm:$0xff] %vm465_vm0, %v459_v26  ;;  %v462_v29 = vld [vmem:[%s35682_s0 + $0xe8] sm:$0xff]  ;;  %493 = vst.msk [vmem:[%s35694_s12 + $0xd8] sm:$0xff] %vm465_vm0, %v460_v27  ;;  %v463_v30 = vld [vmem:[%s35682_s0 + $0xf0] sm:$0xff] }
  0x22   : > { %494 = vst.msk [vmem:[%s35694_s12 + $0xe0] sm:$0xff] %vm465_vm0, %v461_v28  ;;  %495 = vst.msk [vmem:[%s35694_s12 + $0xe8] sm:$0xff] %vm465_vm0, %v462_v29  ;;  %v464_v31 = vld [vmem:[%s35682_s0 + $0xf8] sm:$0xff] }
  0x23   : > { %496 = vst.msk [vmem:[%s35694_s12 + $0xf0] sm:$0xff] %vm465_vm0, %v463_v30  ;;  %497 = vst.msk [vmem:[%s35694_s12 + $0xf8] sm:$0xff] %vm465_vm0, %v464_v31 }
  0x24 PF: > { %v29073_v32 = vld [vmem:[%s35694_s12] sm:$0xff]  ;;  %vm534_vm1 = vcmask 261120   ;;  %v29078_v33 = vld [vmem:[%s35694_s12 + $0x10] sm:$0xff]  ;;  %v29083_v34 = vld [vmem:[%s35694_s12 + $0x8] sm:$0xff]  ;;  %s29397_s17 = sshll.u32 %s28740_s21, 5  ;;  %s530_s27 = scalar_lea.vmem %s35683_s1, %s28740_s21  ;;  %vm28751_vm2 = vmmov 0  }
  0x25   : > { %v535_v35 = vsel %vm534_vm1, %v29073_v32, 0.0  ;;  %v541_v36 = vsel %vm534_vm1, %v29078_v33, 0.0  ;;  %v29092_v37 = vld [vmem:[%s35694_s12 + $0x18] sm:$0xff]  ;;  %v538_v38 = vsel %vm534_vm1, %v29083_v34, 0.0  ;;  %v29101_v40 = vld [vmem:[%s35694_s12 + $0x20] sm:$0xff]  ;;  %v29106_v41 = vld [vmem:[%s35694_s12 + $0x28] sm:$0xff]  ;;  %s1029_s20 = scalar_lea.vmem %s35685_s3, %s29397_s17  ;;  %s532_s30 = scalar_lea.vmem %s35684_s2, %s28740_s21 }
  0x26   : > { %536 = vadd.xlane.f32.xlu0 %v535_v35  ;;  %542 = vadd.xlane.f32.xlu1 %v541_v36  ;;  %v544_v39 = vsel %vm534_vm1, %v29092_v37, 0.0  ;;  %v547_v42 = vsel %vm534_vm1, %v29101_v40, 0.0  ;;  %v550_v43 = vsel %vm534_vm1, %v29106_v41, 0.0  ;;  %v29115_v44 = vld [vmem:[%s35694_s12 + $0x30] sm:$0xff]  ;;  %v29120_v45 = vld [vmem:[%s35694_s12 + $0x38] sm:$0xff]  ;;  %v29129_v48 = vld [vmem:[%s35694_s12 + $0x40] sm:$0xff]  ;;  %s23582_s25 = scalar_lea.vmem %s35689_s7, %s28740_s21 }
  0x27   : > { %v553_v46 = vsel %vm534_vm1, %v29115_v44, 0.0  ;;  %v556_v47 = vsel %vm534_vm1, %v29120_v45, 0.0  ;;  %v29134_v49 = vld [vmem:[%s35694_s12 + $0x48] sm:$0xff]  ;;  %v559_v50 = vsel %vm534_vm1, %v29129_v48, 0.0  ;;  %v29143_v52 = vld [vmem:[%s35694_s12 + $0x50] sm:$0xff]  ;;  %v29148_v53 = vld [vmem:[%s35694_s12 + $0x58] sm:$0xff] }
  0x28   : > { %v562_v51 = vsel %vm534_vm1, %v29134_v49, 0.0  ;;  %v565_v54 = vsel %vm534_vm1, %v29143_v52, 0.0  ;;  %v568_v55 = vsel %vm534_vm1, %v29148_v53, 0.0  ;;  %v29157_v56 = vld [vmem:[%s35694_s12 + $0x60] sm:$0xff]  ;;  %v29162_v57 = vld [vmem:[%s35694_s12 + $0x68] sm:$0xff]  ;;  %v29171_v60 = vld [vmem:[%s35694_s12 + $0x70] sm:$0xff] }
  0x29   : > { %v571_v58 = vsel %vm534_vm1, %v29157_v56, 0.0  ;;  %v574_v59 = vsel %vm534_vm1, %v29162_v57, 0.0  ;;  %v29176_v61 = vld [vmem:[%s35694_s12 + $0x78] sm:$0xff]  ;;  %v577_v62 = vsel %vm534_vm1, %v29171_v60, 0.0  ;;  %v29185_v0 = vld [vmem:[%s35694_s12 + $0x80] sm:$0xff]  ;;  %v29190_v1 = vld [vmem:[%s35694_s12 + $0x88] sm:$0xff] }
  0x2a   : > { %539 = vadd.xlane.f32.xlu0 %v538_v38  ;;  %545 = vadd.xlane.f32.xlu1 %v544_v39  ;;  %v580_v63 = vsel %vm534_vm1, %v29176_v61, 0.0  ;;  %v583_v2 = vsel %vm534_vm1, %v29185_v0, 0.0  ;;  %v586_v3 = vsel %vm534_vm1, %v29190_v1, 0.0  ;;  %v29199_v4 = vld [vmem:[%s35694_s12 + $0x90] sm:$0xff]  ;;  %v29204_v5 = vld [vmem:[%s35694_s12 + $0x98] sm:$0xff]  ;;  %v29213_v8 = vld [vmem:[%s35694_s12 + $0xa0] sm:$0xff] }
  0x2b   : > { %v589_v6 = vsel %vm534_vm1, %v29199_v4, 0.0  ;;  %v592_v7 = vsel %vm534_vm1, %v29204_v5, 0.0  ;;  %v29218_v9 = vld [vmem:[%s35694_s12 + $0xa8] sm:$0xff]  ;;  %v595_v10 = vsel %vm534_vm1, %v29213_v8, 0.0  ;;  %v29227_v12 = vld [vmem:[%s35694_s12 + $0xb0] sm:$0xff]  ;;  %v29232_v13 = vld [vmem:[%s35694_s12 + $0xb8] sm:$0xff] }
  0x2c   : > { %v598_v11 = vsel %vm534_vm1, %v29218_v9, 0.0  ;;  %v601_v14 = vsel %vm534_vm1, %v29227_v12, 0.0  ;;  %v604_v15 = vsel %vm534_vm1, %v29232_v13, 0.0  ;;  %v29241_v16 = vld [vmem:[%s35694_s12 + $0xc0] sm:$0xff]  ;;  %v29246_v17 = vld [vmem:[%s35694_s12 + $0xc8] sm:$0xff]  ;;  %v29255_v20 = vld [vmem:[%s35694_s12 + $0xd0] sm:$0xff] }
  0x2d   : > { %v607_v18 = vsel %vm534_vm1, %v29241_v16, 0.0  ;;  %v610_v19 = vsel %vm534_vm1, %v29246_v17, 0.0  ;;  %v29260_v21 = vld [vmem:[%s35694_s12 + $0xd8] sm:$0xff]  ;;  %v613_v22 = vsel %vm534_vm1, %v29255_v20, 0.0  ;;  %v29269_v24 = vld [vmem:[%s35694_s12 + $0xe0] sm:$0xff]  ;;  %v29274_v25 = vld [vmem:[%s35694_s12 + $0xe8] sm:$0xff] }
  0x2e   : > { %548 = vadd.xlane.f32.xlu0 %v547_v42  ;;  %551 = vadd.xlane.f32.xlu1 %v550_v43  ;;  %v616_v23 = vsel %vm534_vm1, %v29260_v21, 0.0  ;;  %v619_v26 = vsel %vm534_vm1, %v29269_v24, 0.0  ;;  %v622_v27 = vsel %vm534_vm1, %v29274_v25, 0.0  ;;  %v29283_v28 = vld [vmem:[%s35694_s12 + $0xf0] sm:$0xff]  ;;  %v29288_v29 = vld [vmem:[%s35694_s12 + $0xf8] sm:$0xff]  ;;  %s28752_s13 = smov 64  }
  0x2f   : > { %v625_v30 = vsel %vm534_vm1, %v29283_v28, 0.0  ;;  %v628_v31 = vsel %vm534_vm1, %v29288_v29, 0.0  ;;  %s28753_s14 = smov 96   ;;  %s28754_s15 = smov 120   ;;  %vm1581_vm3 = vcmask 64512   ;;  %vm23149_vm4 = vcmask 195584  }
  0x30   : > { %s28755_s16 = smov 112   ;;  %s28756_s18 = smov 104   ;;  %vm23116_vm5 = vcmask 130048   ;;  %vm24644_vm6 = vcmask 523264  }
  0x31   : > { %s28757_s19 = smov 8   ;;  %s28759_s28 = smov 24  }
  0x32   : > { %554 = vadd.xlane.f32.xlu0 %v553_v46  ;;  %557 = vadd.xlane.f32.xlu1 %v556_v47  ;;  %s25674_s26 = sshll.u32 %s28740_s21, 6 }
  0x33   : > { %s35295_s29 = scalar_lea.vmem %s35692_s10, %s25674_s26 }
  0x36   : > { %560 = vadd.xlane.f32.xlu0 %v559_v50  ;;  %563 = vadd.xlane.f32.xlu1 %v562_v51 }
  0x3a   : > { %566 = vadd.xlane.f32.xlu0 %v565_v54  ;;  %569 = vadd.xlane.f32.xlu1 %v568_v55 }
  0x3e   : > { %572 = vadd.xlane.f32.xlu0 %v571_v58  ;;  %575 = vadd.xlane.f32.xlu1 %v574_v59 }
  0x42   : > { %578 = vadd.xlane.f32.xlu0 %v577_v62  ;;  %581 = vadd.xlane.f32.xlu1 %v580_v63 }
  0x46   : > { %584 = vadd.xlane.f32.xlu0 %v583_v2  ;;  %587 = vadd.xlane.f32.xlu1 %v586_v3 }
  0x4a   : > { %590 = vadd.xlane.f32.xlu0 %v589_v6  ;;  %593 = vadd.xlane.f32.xlu1 %v592_v7 }
  0x4e   : > { %596 = vadd.xlane.f32.xlu0 %v595_v10  ;;  %599 = vadd.xlane.f32.xlu1 %v598_v11 }
  0x52   : > { %602 = vadd.xlane.f32.xlu0 %v601_v14  ;;  %605 = vadd.xlane.f32.xlu1 %v604_v15 }
  0x56   : > { %608 = vadd.xlane.f32.xlu0 %v607_v18  ;;  %611 = vadd.xlane.f32.xlu1 %v610_v19 }
  0x5a   : > { %614 = vadd.xlane.f32.xlu0 %v613_v22  ;;  %617 = vadd.xlane.f32.xlu1 %v616_v23 }
  0x5e   : > { %620 = vadd.xlane.f32.xlu0 %v619_v26  ;;  %623 = vadd.xlane.f32.xlu1 %v622_v27 }
  0x62   : > { %626 = vadd.xlane.f32.xlu0 %v625_v30  ;;  %629 = vadd.xlane.f32.xlu1 %v628_v31 }
  0xaf   : > { %v537_v35 = vpop.xlane.xlu0 %536  ;;  %v543_v36 = vpop.xlane.xlu1 %542 }
  0xb0   : > { %v632_v38 = vmul.f32 0.03125, %v537_v35  ;;  %v634_v39 = vmul.f32 0.03125, %v543_v36 }
  0xb2   : > { %v29295_v42 = vsub.f32 %v29073_v32, %v632_v38  ;;  %v29298_v43 = vsub.f32 %v29078_v33, %v634_v39 }
  0xb3   : > { %v540_v46 = vpop.xlane.xlu0 %539  ;;  %v546_v47 = vpop.xlane.xlu1 %545 }
  0xb4   : > { %v633_v50 = vmul.f32 0.03125, %v540_v46  ;;  %v635_v51 = vmul.f32 0.03125, %v546_v47  ;;  %v696_v54 = vmul.f32 %v29295_v42, %v29295_v42  ;;  %v698_v55 = vmul.f32 %v29298_v43, %v29298_v43 }
  0xb6   : > { %v29305_v58 = vsub.f32 %v29083_v34, %v633_v50  ;;  %v29308_v59 = vsub.f32 %v29092_v37, %v635_v51  ;;  %v728_v32 = vsel %vm534_vm1, %v696_v54, 0.0  ;;  %v734_v63 = vsel %vm534_vm1, %v698_v55, 0.0 }
  0xb7   : > { %729 = vadd.xlane.f32.xlu0 %v728_v32  ;;  %v549_v33 = vpop.xlane.xlu0 %548  ;;  %v552_v62 = vpop.xlane.xlu1 %551 }
  0xb8   : > { %v636_v2 = vmul.f32 0.03125, %v549_v33  ;;  %v637_v3 = vmul.f32 0.03125, %v552_v62  ;;  %v697_v6 = vmul.f32 %v29305_v58, %v29305_v58  ;;  %v699_v7 = vmul.f32 %v29308_v59, %v29308_v59 }
  0xba   : > { %v29317_v34 = vsub.f32 %v29101_v40, %v636_v2  ;;  %v29320_v37 = vsub.f32 %v29106_v41, %v637_v3  ;;  %v731_v10 = vsel %vm534_vm1, %v697_v6, 0.0  ;;  %v737_v15 = vsel %vm534_vm1, %v699_v7, 0.0 }
  0xbb   : > { %735 = vadd.xlane.f32.xlu0 %v734_v63  ;;  %732 = vadd.xlane.f32.xlu1 %v731_v10  ;;  %v555_v11 = vpop.xlane.xlu0 %554  ;;  %v558_v14 = vpop.xlane.xlu1 %557 }
  0xbc   : > { %v638_v18 = vmul.f32 0.03125, %v555_v11  ;;  %v639_v19 = vmul.f32 0.03125, %v558_v14  ;;  %v700_v22 = vmul.f32 %v29317_v34, %v29317_v34  ;;  %v701_v40 = vmul.f32 %v29320_v37, %v29320_v37 }
  0xbe   : > { %v29329_v23 = vsub.f32 %v29115_v44, %v638_v18  ;;  %v29332_v41 = vsub.f32 %v29120_v45, %v639_v19  ;;  %v740_v26 = vsel %vm534_vm1, %v700_v22, 0.0  ;;  %v743_v31 = vsel %vm534_vm1, %v701_v40, 0.0 }
  0xbf   : > { %738 = vadd.xlane.f32.xlu1 %v737_v15  ;;  %741 = vadd.xlane.f32.xlu0 %v740_v26  ;;  %v561_v27 = vpop.xlane.xlu0 %560  ;;  %v564_v30 = vpop.xlane.xlu1 %563 }
  0xc0   : > { %v640_v35 = vmul.f32 0.03125, %v561_v27  ;;  %v641_v36 = vmul.f32 0.03125, %v564_v30  ;;  %v702_v38 = vmul.f32 %v29329_v23, %v29329_v23  ;;  %v703_v44 = vmul.f32 %v29332_v41, %v29332_v41 }
  0xc2   : > { %v29341_v39 = vsub.f32 %v29129_v48, %v640_v35  ;;  %v29344_v45 = vsub.f32 %v29134_v49, %v641_v36  ;;  %v746_v46 = vsel %vm534_vm1, %v702_v38, 0.0  ;;  %v749_v51 = vsel %vm534_vm1, %v703_v44, 0.0 }
  0xc3   : > { %744 = vadd.xlane.f32.xlu1 %v743_v31  ;;  %747 = vadd.xlane.f32.xlu0 %v746_v46  ;;  %v567_v47 = vpop.xlane.xlu0 %566  ;;  %v570_v50 = vpop.xlane.xlu1 %569 }
  0xc4   : > { %v642_v54 = vmul.f32 0.03125, %v567_v47  ;;  %v643_v55 = vmul.f32 0.03125, %v570_v50  ;;  %v704_v32 = vmul.f32 %v29341_v39, %v29341_v39  ;;  %v705_v48 = vmul.f32 %v29344_v45, %v29344_v45 }
  0xc6   : > { %v29353_v33 = vsub.f32 %v29143_v52, %v642_v54  ;;  %v29356_v49 = vsub.f32 %v29148_v53, %v643_v55  ;;  %v752_v62 = vsel %vm534_vm1, %v704_v32, 0.0  ;;  %v755_v3 = vsel %vm534_vm1, %v705_v48, 0.0 }
  0xc7   : > { %750 = vadd.xlane.f32.xlu1 %v749_v51  ;;  %753 = vadd.xlane.f32.xlu0 %v752_v62  ;;  %v573_v63 = vpop.xlane.xlu0 %572  ;;  %v576_v2 = vpop.xlane.xlu1 %575  ;;  %v1033_v62 = vld [vmem:[%s1029_s20 + $0x18] sm:$0xff] }
  0xc8   : > { %v644_v6 = vmul.f32 0.03125, %v573_v63  ;;  %v645_v7 = vmul.f32 0.03125, %v576_v2  ;;  %v706_v10 = vmul.f32 %v29353_v33, %v29353_v33  ;;  %v707_v52 = vmul.f32 %v29356_v49, %v29356_v49  ;;  %26372 = vmatprep.subr.mxu0 %v1033_v62 }
  0xc9   : > { %26373 = vmatpush3.msra.mxu0 %v1033_v62 }
  0xca   : > { %v29365_v11 = vsub.f32 %v29157_v56, %v644_v6  ;;  %v29368_v53 = vsub.f32 %v29162_v57, %v645_v7  ;;  %v758_v14 = vsel %vm534_vm1, %v706_v10, 0.0  ;;  %v761_v19 = vsel %vm534_vm1, %v707_v52, 0.0  ;;  %v1032_v52 = vld [vmem:[%s1029_s20 + $0x10] sm:$0xff] }
  0xcb   : > { %756 = vadd.xlane.f32.xlu1 %v755_v3  ;;  %759 = vadd.xlane.f32.xlu0 %v758_v14  ;;  %v579_v15 = vpop.xlane.xlu0 %578  ;;  %v582_v18 = vpop.xlane.xlu1 %581 }
  0xcc   : > { %v646_v22 = vmul.f32 0.03125, %v579_v15  ;;  %v647_v40 = vmul.f32 0.03125, %v582_v18  ;;  %v708_v26 = vmul.f32 %v29365_v11, %v29365_v11  ;;  %v709_v56 = vmul.f32 %v29368_v53, %v29368_v53  ;;  %26374 = vmatprep.subr.mxu0 %v1032_v52 }
  0xcd   : > { %26375 = vmatpush3.msra.mxu0 %v1032_v52 }
  0xce   : > { %v29377_v27 = vsub.f32 %v29171_v60, %v646_v22  ;;  %v29380_v57 = vsub.f32 %v29176_v61, %v647_v40  ;;  %v764_v30 = vsel %vm534_vm1, %v708_v26, 0.0  ;;  %v767_v36 = vsel %vm534_vm1, %v709_v56, 0.0 }
  0xcf   : > { %762 = vadd.xlane.f32.xlu1 %v761_v19  ;;  %765 = vadd.xlane.f32.xlu0 %v764_v30  ;;  %v585_v31 = vpop.xlane.xlu0 %584  ;;  %v588_v35 = vpop.xlane.xlu1 %587 }
  0xd0   : > { %v648_v38 = vmul.f32 0.03125, %v585_v31  ;;  %v649_v44 = vmul.f32 0.03125, %v588_v35  ;;  %v710_v46 = vmul.f32 %v29377_v27, %v29377_v27  ;;  %v711_v60 = vmul.f32 %v29380_v57, %v29380_v57  ;;  %v1030_v31 = vld [vmem:[%s1029_s20] sm:$0xff] }
  0xd2   : > { %v29389_v61 = vsub.f32 %v29185_v0, %v648_v38  ;;  %v29392_v47 = vsub.f32 %v29190_v1, %v649_v44  ;;  %v770_v50 = vsel %vm534_vm1, %v710_v46, 0.0  ;;  %v773_v55 = vsel %vm534_vm1, %v711_v60, 0.0 }
  0xd3   : > { %768 = vadd.xlane.f32.xlu1 %v767_v36  ;;  %771 = vadd.xlane.f32.xlu0 %v770_v50  ;;  %v591_v51 = vpop.xlane.xlu0 %590  ;;  %v594_v54 = vpop.xlane.xlu1 %593 }
  0xd4   : > { %v650_v32 = vmul.f32 0.03125, %v591_v51  ;;  %v651_v48 = vmul.f32 0.03125, %v594_v54  ;;  %v712_v0 = vmul.f32 %v29389_v61, %v29389_v61  ;;  %v713_v1 = vmul.f32 %v29392_v47, %v29392_v47 }
  0xd6   : > { %v29408_v63 = vsub.f32 %v29199_v4, %v650_v32  ;;  %v29411_v2 = vsub.f32 %v29204_v5, %v651_v48  ;;  %v776_v3 = vsel %vm534_vm1, %v712_v0, 0.0  ;;  %v779_v10 = vsel %vm534_vm1, %v713_v1, 0.0  ;;  %v1031_v5 = vld [vmem:[%s1029_s20 + $0x8] sm:$0xff]  ;;  %s28758_s20 = smov 16  }
  0xd7   : > { %774 = vadd.xlane.f32.xlu1 %v773_v55  ;;  %777 = vadd.xlane.f32.xlu0 %v776_v3  ;;  %v597_v6 = vpop.xlane.xlu0 %596  ;;  %v600_v7 = vpop.xlane.xlu1 %599 }
  0xd8   : > { %v652_v14 = vmul.f32 0.03125, %v597_v6  ;;  %v653_v15 = vmul.f32 0.03125, %v600_v7  ;;  %v714_v18 = vmul.f32 %v29408_v63, %v29408_v63  ;;  %v715_v4 = vmul.f32 %v29411_v2, %v29411_v2  ;;  %26376 = vmatprep.subr.mxu0 %v1031_v5 }
  0xd9   : > { %26377 = vmatpush3.msra.mxu0 %v1031_v5 }
  0xda   : > { %v29420_v19 = vsub.f32 %v29213_v8, %v652_v14  ;;  %v29423_v22 = vsub.f32 %v29218_v9, %v653_v15  ;;  %v782_v40 = vsel %vm534_vm1, %v714_v18, 0.0  ;;  %v785_v30 = vsel %vm534_vm1, %v715_v4, 0.0  ;;  %26378 = vmatprep.subr.mxu0 %v1030_v31 }
  0xdb   : > { %780 = vadd.xlane.f32.xlu1 %v779_v10  ;;  %783 = vadd.xlane.f32.xlu0 %v782_v40  ;;  %v603_v26 = vpop.xlane.xlu0 %602  ;;  %v606_v56 = vpop.xlane.xlu1 %605 }
  0xdc   : > { %v654_v35 = vmul.f32 0.03125, %v603_v26  ;;  %v655_v36 = vmul.f32 0.03125, %v606_v56  ;;  %v716_v38 = vmul.f32 %v29420_v19, %v29420_v19  ;;  %v717_v8 = vmul.f32 %v29423_v22, %v29423_v22  ;;  %26379 = vmatpush3.msra.mxu0 %v1030_v31 }
  0xde   : > { %v29432_v9 = vsub.f32 %v29227_v12, %v654_v35  ;;  %v29435_v44 = vsub.f32 %v29232_v13, %v655_v36  ;;  %v788_v46 = vsel %vm534_vm1, %v716_v38, 0.0  ;;  %v791_v51 = vsel %vm534_vm1, %v717_v8, 0.0 }
  0xdf   : > { %786 = vadd.xlane.f32.xlu1 %v785_v30  ;;  %789 = vadd.xlane.f32.xlu0 %v788_v46  ;;  %v609_v60 = vpop.xlane.xlu0 %608  ;;  %v612_v50 = vpop.xlane.xlu1 %611 }
  0xe0   : > { %v656_v54 = vmul.f32 0.03125, %v609_v60  ;;  %v657_v55 = vmul.f32 0.03125, %v612_v50  ;;  %v718_v32 = vmul.f32 %v29432_v9, %v29432_v9  ;;  %v719_v12 = vmul.f32 %v29435_v44, %v29435_v44 }
  0xe2   : > { %v29444_v13 = vsub.f32 %v29241_v16, %v656_v54  ;;  %v29447_v48 = vsub.f32 %v29246_v17, %v657_v55  ;;  %v794_v0 = vsel %vm534_vm1, %v718_v32, 0.0  ;;  %v797_v3 = vsel %vm534_vm1, %v719_v12, 0.0 }
  0xe3   : > { %792 = vadd.xlane.f32.xlu1 %v791_v51  ;;  %795 = vadd.xlane.f32.xlu0 %v794_v0  ;;  %v615_v1 = vpop.xlane.xlu0 %614  ;;  %v618_v62 = vpop.xlane.xlu1 %617 }
  0xe4   : > { %v658_v6 = vmul.f32 0.03125, %v615_v1  ;;  %v659_v7 = vmul.f32 0.03125, %v618_v62  ;;  %v720_v10 = vmul.f32 %v29444_v13, %v29444_v13  ;;  %v721_v16 = vmul.f32 %v29447_v48, %v29447_v48 }
  0xe6   : > { %v29456_v52 = vsub.f32 %v29255_v20, %v658_v6  ;;  %v29459_v17 = vsub.f32 %v29260_v21, %v659_v7  ;;  %v800_v14 = vsel %vm534_vm1, %v720_v10, 0.0  ;;  %v803_v4 = vsel %vm534_vm1, %v721_v16, 0.0 }
  0xe7   : > { %798 = vadd.xlane.f32.xlu1 %v797_v3  ;;  %801 = vadd.xlane.f32.xlu0 %v800_v14  ;;  %v621_v15 = vpop.xlane.xlu0 %620  ;;  %v624_v18 = vpop.xlane.xlu1 %623 }
  0xe8   : > { %v660_v5 = vmul.f32 0.03125, %v621_v15  ;;  %v661_v40 = vmul.f32 0.03125, %v624_v18  ;;  %v722_v26 = vmul.f32 %v29456_v52, %v29456_v52  ;;  %v723_v20 = vmul.f32 %v29459_v17, %v29459_v17 }
  0xea   : > { %v29468_v56 = vsub.f32 %v29269_v24, %v660_v5  ;;  %v29471_v21 = vsub.f32 %v29274_v25, %v661_v40  ;;  %v806_v30 = vsel %vm534_vm1, %v722_v26, 0.0  ;;  %v809_v36 = vsel %vm534_vm1, %v723_v20, 0.0 }
  0xeb   : > { %804 = vadd.xlane.f32.xlu1 %v803_v4  ;;  %807 = vadd.xlane.f32.xlu0 %v806_v30  ;;  %v627_v31 = vpop.xlane.xlu0 %626  ;;  %v630_v35 = vpop.xlane.xlu1 %629 }
  0xec   : > { %v662_v38 = vmul.f32 0.03125, %v627_v31  ;;  %v663_v8 = vmul.f32 0.03125, %v630_v35  ;;  %v724_v46 = vmul.f32 %v29468_v56, %v29468_v56  ;;  %v725_v24 = vmul.f32 %v29471_v21, %v29471_v21 }
  0xee   : > { %v29480_v60 = vsub.f32 %v29283_v28, %v662_v38  ;;  %v29483_v25 = vsub.f32 %v29288_v29, %v663_v8  ;;  %v812_v50 = vsel %vm534_vm1, %v724_v46, 0.0  ;;  %v815_v51 = vsel %vm534_vm1, %v725_v24, 0.0 }
  0xef   : > { %810 = vadd.xlane.f32.xlu1 %v809_v36  ;;  %813 = vadd.xlane.f32.xlu0 %v812_v50  ;;  %v29501_v50 = vld [vmem:[%s530_s27] ss:$0 sm:$0xff]  ;;  %s23182_s27 = scalar_lea.vmem %s35686_s4, %s29397_s17 }
  0xf0   : > { %v726_v54 = vmul.f32 %v29480_v60, %v29480_v60  ;;  %v727_v55 = vmul.f32 %v29483_v25, %v29483_v25 }
  0xf2   : > { %v818_v32 = vsel %vm534_vm1, %v726_v54, 0.0  ;;  %v821_v28 = vsel %vm534_vm1, %v727_v55, 0.0 }
  0xf3   : > { %816 = vadd.xlane.f32.xlu1 %v815_v51  ;;  %819 = vadd.xlane.f32.xlu0 %v818_v32 }
  0xf7   : > { %822 = vadd.xlane.f32.xlu1 %v821_v28 }
 0x140   : > { %v730_v29 = vpop.xlane.xlu0 %729 }
 0x141   : > { %v824_v12 = vmul.f32 0.03125, %v730_v29  ;;  %v29504_v29 = vld [vmem:[%s532_s30] ss:$0 sm:$0xff] }
 0x143   : > { %v856_v0 = vadd.f32 1e-05, %v824_v12 }
 0x144   : > { %v733_v1 = vpop.xlane.xlu1 %732  ;;  %v736_v62 = vpop.xlane.xlu0 %735 }
 0x145   : > { %27926 = vrsqrt.f32 %v856_v0  ;;  %v825_v3 = vmul.f32 0.03125, %v733_v1  ;;  %v826_v6 = vmul.f32 0.03125, %v736_v62 }
 0x147   : > { %v857_v7 = vadd.f32 1e-05, %v825_v3  ;;  %v858_v10 = vadd.f32 1e-05, %v826_v6 }
 0x148   : > { %v739_v16 = vpop.xlane.xlu1 %738  ;;  %v742_v14 = vpop.xlane.xlu0 %741 }
 0x149   : > { %27928 = vrsqrt.f32 %v857_v7  ;;  %v827_v15 = vmul.f32 0.03125, %v739_v16  ;;  %v828_v18 = vmul.f32 0.03125, %v742_v14 }
 0x14a   : > { %27930 = vrsqrt.f32 %v858_v10 }
 0x14b   : > { %v859_v4 = vadd.f32 1e-05, %v827_v15  ;;  %v860_v5 = vadd.f32 1e-05, %v828_v18 }
 0x14c   : > { %v745_v40 = vpop.xlane.xlu1 %744  ;;  %v748_v26 = vpop.xlane.xlu0 %747 }
 0x14d   : > { %27932 = vrsqrt.f32 %v859_v4  ;;  %v829_v20 = vmul.f32 0.03125, %v745_v40  ;;  %v830_v30 = vmul.f32 0.03125, %v748_v26 }
 0x14e   : > { %27934 = vrsqrt.f32 %v860_v5 }
 0x14f   : > { %v861_v31 = vadd.f32 1e-05, %v829_v20  ;;  %v862_v35 = vadd.f32 1e-05, %v830_v30 }
 0x150   : > { %v751_v36 = vpop.xlane.xlu1 %750  ;;  %v754_v38 = vpop.xlane.xlu0 %753 }
 0x151   : > { %27936 = vrsqrt.f32 %v861_v31  ;;  %v831_v8 = vmul.f32 0.03125, %v751_v36  ;;  %v832_v46 = vmul.f32 0.03125, %v754_v38 }
 0x152   : > { %v27927_v24 = vpop.eup %27926  ;;  %27938 = vrsqrt.f32 %v862_v35 }
 0x153   : > { %v863_v51 = vadd.f32 1e-05, %v831_v8  ;;  %v864_v54 = vadd.f32 1e-05, %v832_v46  ;;  %v920_v55 = vmul.f32 %v27927_v24, %v29295_v42 }
 0x154   : > { %v757_v32 = vpop.xlane.xlu1 %756  ;;  %v760_v28 = vpop.xlane.xlu0 %759 }
 0x155   : > { %27940 = vrsqrt.f32 %v863_v51  ;;  %v833_v12 = vmul.f32 0.03125, %v757_v32  ;;  %v834_v0 = vmul.f32 0.03125, %v760_v28  ;;  %v958_v1 = vmul.f32 %v29501_v50, %v920_v55 }
 0x156   : > { %v27929_v62 = vpop.eup %27928  ;;  %27942 = vrsqrt.f32 %v864_v54 }
 0x157   : > { %v27931_v3 = vpop.eup %27930  ;;  %v865_v6 = vadd.f32 1e-05, %v833_v12  ;;  %v866_v7 = vadd.f32 1e-05, %v834_v0  ;;  %v996_v10 = vadd.f32 %v29504_v29, %v958_v1  ;;  %v921_v16 = vmul.f32 %v27929_v62, %v29305_v58 }
 0x158   : > { %v763_v14 = vpop.xlane.xlu1 %762  ;;  %v766_v42 = vpop.xlane.xlu0 %765  ;;  %v922_v15 = vmul.f32 %v27931_v3, %v29298_v43 }
 0x159   : > { %27944 = vrsqrt.f32 %v865_v6  ;;  %v835_v18 = vmul.f32 0.03125, %v763_v14  ;;  %v836_v4 = vmul.f32 0.03125, %v766_v42  ;;  %26380 = vmatprep.mubr.msk.f32.mxu0 %vm534_vm1, %v996_v10  ;;  %v959_v5 = vmul.f32 %v29501_v50, %v921_v16 }
 0x15a   : > { %v27933_v40 = vpop.eup %27932  ;;  %27946 = vrsqrt.f32 %v866_v7  ;;  %v960_v26 = vmul.f32 %v29501_v50, %v922_v15 }
 0x15b   : > { %v27935_v20 = vpop.eup %27934  ;;  %v867_v30 = vadd.f32 1e-05, %v835_v18  ;;  %v868_v31 = vadd.f32 1e-05, %v836_v4  ;;  %v997_v58 = vadd.f32 %v29504_v29, %v959_v5  ;;  %v923_v35 = vmul.f32 %v27933_v40, %v29308_v59 }
 0x15c   : > { %v769_v36 = vpop.xlane.xlu1 %768  ;;  %v772_v43 = vpop.xlane.xlu0 %771  ;;  %v998_v38 = vadd.f32 %v29504_v29, %v960_v26  ;;  %v924_v8 = vmul.f32 %v27935_v20, %v29317_v34 }
 0x15d   : > { %27948 = vrsqrt.f32 %v867_v30  ;;  %v837_v46 = vmul.f32 0.03125, %v769_v36  ;;  %v838_v24 = vmul.f32 0.03125, %v772_v43  ;;  %26381 = vmatmul.mubr.msk.f32.vlgmr.msra.gmra.mxu0 %vm534_vm1, %v997_v58  ;;  %v961_v51 = vmul.f32 %v29501_v50, %v923_v35 }
 0x15e   : > { %v27937_v54 = vpop.eup %27936  ;;  %27950 = vrsqrt.f32 %v868_v31  ;;  %26383 = vmatprep.mubr.msk.f32.mxu0 %vm534_vm1, %v998_v38  ;;  %v962_v55 = vmul.f32 %v29501_v50, %v924_v8 }
 0x15f   : > { %v27939_v59 = vpop.eup %27938  ;;  %v869_v32 = vadd.f32 1e-05, %v837_v46  ;;  %v870_v28 = vadd.f32 1e-05, %v838_v24  ;;  %v999_v12 = vadd.f32 %v29504_v29, %v961_v51  ;;  %v925_v34 = vmul.f32 %v27937_v54, %v29320_v37 }
 0x160   : > { %v775_v0 = vpop.xlane.xlu1 %774  ;;  %v778_v1 = vpop.xlane.xlu0 %777  ;;  %v1000_v62 = vadd.f32 %v29504_v29, %v962_v55  ;;  %v926_v3 = vmul.f32 %v27939_v59, %v29329_v23 }
 0x161   : > { %27952 = vrsqrt.f32 %v869_v32  ;;  %v839_v6 = vmul.f32 0.03125, %v775_v0  ;;  %v840_v7 = vmul.f32 0.03125, %v778_v1  ;;  %26384 = vmatmul.mubr.msk.f32.gmra.mxu0 %vm534_vm1, %v999_v12  ;;  %v963_v10 = vmul.f32 %v29501_v50, %v925_v34 }
 0x162   : > { %v27941_v16 = vpop.eup %27940  ;;  %27954 = vrsqrt.f32 %v870_v28  ;;  %26386 = vmatprep.mubr.msk.f32.mxu0 %vm534_vm1, %v1000_v62  ;;  %v964_v14 = vmul.f32 %v29501_v50, %v926_v3 }
 0x163   : > { %v27943_v37 = vpop.eup %27942  ;;  %v871_v42 = vadd.f32 1e-05, %v839_v6  ;;  %v872_v15 = vadd.f32 1e-05, %v840_v7  ;;  %v1001_v18 = vadd.f32 %v29504_v29, %v963_v10  ;;  %v927_v23 = vmul.f32 %v27941_v16, %v29332_v41 }
 0x164   : > { %v781_v4 = vpop.xlane.xlu1 %780  ;;  %v784_v5 = vpop.xlane.xlu0 %783  ;;  %v1002_v40 = vadd.f32 %v29504_v29, %v964_v14  ;;  %v928_v26 = vmul.f32 %v27943_v37, %v29341_v39 }
 0x165   : > { %27956 = vrsqrt.f32 %v871_v42  ;;  %v841_v20 = vmul.f32 0.03125, %v781_v4  ;;  %v842_v30 = vmul.f32 0.03125, %v784_v5  ;;  %26387 = vmatmul.mubr.msk.f32.gmra.mxu0 %vm534_vm1, %v1001_v18  ;;  %v965_v31 = vmul.f32 %v29501_v50, %v927_v23 }
 0x166   : > { %v27945_v58 = vpop.eup %27944  ;;  %27958 = vrsqrt.f32 %v872_v15  ;;  %26389 = vmatprep.mubr.msk.f32.mxu0 %vm534_vm1, %v1002_v40  ;;  %v966_v35 = vmul.f32 %v29501_v50, %v928_v26 }
 0x167   : > { %v27947_v41 = vpop.eup %27946  ;;  %v873_v36 = vadd.f32 1e-05, %v841_v20  ;;  %v874_v43 = vadd.f32 1e-05, %v842_v30  ;;  %v1003_v38 = vadd.f32 %v29504_v29, %v965_v31  ;;  %v929_v39 = vmul.f32 %v27945_v58, %v29344_v45 }
 0x168   : > { %v787_v8 = vpop.xlane.xlu1 %786  ;;  %v790_v46 = vpop.xlane.xlu0 %789  ;;  %v1004_v24 = vadd.f32 %v29504_v29, %v966_v35  ;;  %v930_v51 = vmul.f32 %v27947_v41, %v29353_v33 }
 0x169   : > { %27960 = vrsqrt.f32 %v873_v36  ;;  %v843_v54 = vmul.f32 0.03125, %v787_v8  ;;  %v844_v55 = vmul.f32 0.03125, %v790_v46  ;;  %26390 = vmatmul.mubr.msk.f32.gmra.mxu0 %vm534_vm1, %v1003_v38  ;;  %v967_v59 = vmul.f32 %v29501_v50, %v929_v39 }
 0x16a   : > { %v27949_v32 = vpop.eup %27948  ;;  %27962 = vrsqrt.f32 %v874_v43  ;;  %26392 = vmatprep.mubr.msk.f32.mxu0 %vm534_vm1, %v1004_v24  ;;  %v968_v28 = vmul.f32 %v29501_v50, %v930_v51 }
 0x16b   : > { %v27951_v45 = vpop.eup %27950  ;;  %v875_v12 = vadd.f32 1e-05, %v843_v54  ;;  %v876_v34 = vadd.f32 1e-05, %v844_v55  ;;  %v1005_v0 = vadd.f32 %v29504_v29, %v967_v59  ;;  %v931_v33 = vmul.f32 %v27949_v32, %v29356_v49 }
 0x16c   : > { %v793_v1 = vpop.xlane.xlu1 %792  ;;  %v796_v62 = vpop.xlane.xlu0 %795  ;;  %v1006_v3 = vadd.f32 %v29504_v29, %v968_v28  ;;  %v932_v6 = vmul.f32 %v27951_v45, %v29365_v11 }
 0x16d   : > { %27964 = vrsqrt.f32 %v875_v12  ;;  %v845_v7 = vmul.f32 0.03125, %v793_v1  ;;  %v846_v10 = vmul.f32 0.03125, %v796_v62  ;;  %26393 = vmatmul.mubr.msk.f32.gmra.mxu0 %vm534_vm1, %v1005_v0  ;;  %v969_v16 = vmul.f32 %v29501_v50, %v931_v33 }
 0x16e   : > { %v27953_v14 = vpop.eup %27952  ;;  %27966 = vrsqrt.f32 %v876_v34  ;;  %26395 = vmatprep.mubr.msk.f32.mxu0 %vm534_vm1, %v1006_v3  ;;  %v970_v37 = vmul.f32 %v29501_v50, %v932_v6 }
 0x16f   : > { %v27955_v49 = vpop.eup %27954  ;;  %v877_v42 = vadd.f32 1e-05, %v845_v7  ;;  %v878_v15 = vadd.f32 1e-05, %v846_v10  ;;  %v1007_v18 = vadd.f32 %v29504_v29, %v969_v16  ;;  %v933_v11 = vmul.f32 %v27953_v14, %v29368_v53 }
 0x170   : > { %v799_v23 = vpop.xlane.xlu1 %798  ;;  %v802_v4 = vpop.xlane.xlu0 %801  ;;  %v1008_v5 = vadd.f32 %v29504_v29, %v970_v37  ;;  %v934_v40 = vmul.f32 %v27955_v49, %v29377_v27 }
 0x171   : > { %27968 = vrsqrt.f32 %v877_v42  ;;  %v847_v26 = vmul.f32 0.03125, %v799_v23  ;;  %v848_v20 = vmul.f32 0.03125, %v802_v4  ;;  %26396 = vmatmul.mubr.msk.f32.gmra.mxu0 %vm534_vm1, %v1007_v18  ;;  %v971_v30 = vmul.f32 %v29501_v50, %v933_v11 }
 0x172   : > { %v27957_v31 = vpop.eup %27956  ;;  %27970 = vrsqrt.f32 %v878_v15  ;;  %26398 = vmatprep.mubr.msk.f32.mxu0 %vm534_vm1, %v1008_v5  ;;  %v972_v58 = vmul.f32 %v29501_v50, %v934_v40 }
 0x173   : > { %v27959_v53 = vpop.eup %27958  ;;  %v879_v35 = vadd.f32 1e-05, %v847_v26  ;;  %v880_v41 = vadd.f32 1e-05, %v848_v20  ;;  %v1009_v36 = vadd.f32 %v29504_v29, %v971_v30  ;;  %v935_v27 = vmul.f32 %v27957_v31, %v29380_v57 }
 0x174   : > { %v805_v43 = vpop.xlane.xlu1 %804  ;;  %v808_v38 = vpop.xlane.xlu0 %807  ;;  %v1010_v39 = vadd.f32 %v29504_v29, %v972_v58  ;;  %v936_v8 = vmul.f32 %v27959_v53, %v29389_v61 }
 0x175   : > { %27972 = vrsqrt.f32 %v879_v35  ;;  %v849_v46 = vmul.f32 0.03125, %v805_v43  ;;  %v850_v24 = vmul.f32 0.03125, %v808_v38  ;;  %26399 = vmatmul.mubr.msk.f32.gmra.mxu0 %vm534_vm1, %v1009_v36  ;;  %v973_v51 = vmul.f32 %v29501_v50, %v935_v27 }
 0x176   : > { %v27961_v54 = vpop.eup %27960  ;;  %27974 = vrsqrt.f32 %v880_v41  ;;  %26401 = vmatprep.mubr.msk.f32.mxu0 %vm534_vm1, %v1010_v39  ;;  %v974_v55 = vmul.f32 %v29501_v50, %v936_v8 }
 0x177   : > { %v27963_v57 = vpop.eup %27962  ;;  %v881_v59 = vadd.f32 1e-05, %v849_v46  ;;  %v882_v32 = vadd.f32 1e-05, %v850_v24  ;;  %v1011_v28 = vadd.f32 %v29504_v29, %v973_v51  ;;  %v937_v61 = vmul.f32 %v27961_v54, %v29392_v47 }
 0x178   : > { %v811_v45 = vpop.xlane.xlu1 %810  ;;  %v814_v12 = vpop.xlane.xlu0 %813  ;;  %v1012_v34 = vadd.f32 %v29504_v29, %v974_v55  ;;  %v938_v0 = vmul.f32 %v27963_v57, %v29408_v63 }
 0x179   : > { %27976 = vrsqrt.f32 %v881_v59  ;;  %v851_v33 = vmul.f32 0.03125, %v811_v45  ;;  %v852_v1 = vmul.f32 0.03125, %v814_v12  ;;  %26402 = vmatmul.mubr.msk.f32.gmra.mxu0 %vm534_vm1, %v1011_v28  ;;  %v975_v62 = vmul.f32 %v29501_v50, %v937_v61 }
 0x17a   : > { %v27965_v3 = vpop.eup %27964  ;;  %27978 = vrsqrt.f32 %v882_v32  ;;  %26404 = vmatprep.mubr.msk.f32.mxu0 %vm534_vm1, %v1012_v34  ;;  %v976_v6 = vmul.f32 %v29501_v50, %v938_v0 }
 0x17b   : > { %v27967_v47 = vpop.eup %27966  ;;  %v883_v7 = vadd.f32 1e-05, %v851_v33  ;;  %v884_v10 = vadd.f32 1e-05, %v852_v1  ;;  %v1013_v16 = vadd.f32 %v29504_v29, %v975_v62  ;;  %v939_v63 = vmul.f32 %v27965_v3, %v29411_v2 }
 0x17c   : > { %v817_v14 = vpop.xlane.xlu1 %816  ;;  %v820_v37 = vpop.xlane.xlu0 %819  ;;  %v1014_v49 = vadd.f32 %v29504_v29, %v976_v6  ;;  %v940_v42 = vmul.f32 %v27967_v47, %v29420_v19 }
 0x17d   : > { %27980 = vrsqrt.f32 %v883_v7  ;;  %v853_v15 = vmul.f32 0.03125, %v817_v14  ;;  %v854_v18 = vmul.f32 0.03125, %v820_v37  ;;  %26405 = vmatmul.mubr.msk.f32.gmra.mxu0 %vm534_vm1, %v1013_v16  ;;  %v977_v11 = vmul.f32 %v29501_v50, %v939_v63 }
 0x17e   : > { %v27969_v23 = vpop.eup %27968  ;;  %27982 = vrsqrt.f32 %v884_v10  ;;  %26407 = vmatprep.mubr.msk.f32.mxu0 %vm534_vm1, %v1014_v49  ;;  %v978_v4 = vmul.f32 %v29501_v50, %v940_v42  ;;  %v35696_v16 = vmov 0.0  }
 0x17f   : > { %v27971_v2 = vpop.eup %27970  ;;  %v885_v5 = vadd.f32 1e-05, %v853_v15  ;;  %v886_v40 = vadd.f32 1e-05, %v854_v18  ;;  %v1015_v26 = vadd.f32 %v29504_v29, %v977_v11  ;;  %v941_v19 = vmul.f32 %v27969_v23, %v29423_v22  ;;  %26428 = vmatprep.subr.mxu1 %v35696_v16  ;;  %26513 = vmatprep.subr.mxu0 %v35696_v16 }
 0x180   : > { %v823_v20 = vpop.xlane.xlu1 %822  ;;  %v1016_v30 = vadd.f32 %v29504_v29, %v978_v4  ;;  %v942_v31 = vmul.f32 %v27971_v2, %v29432_v9  ;;  %26430 = vmatprep.mubr.msk.f32.mxu1 %vm28751_vm2, %v35696_v16 }
 0x181   : > { %27984 = vrsqrt.f32 %v885_v5  ;;  %v855_v58 = vmul.f32 0.03125, %v823_v20  ;;  %26408 = vmatmul.mubr.msk.f32.gmra.mxu0 %vm534_vm1, %v1015_v26  ;;  %v979_v53 = vmul.f32 %v29501_v50, %v941_v19 }
 0x182   : > { %v27973_v35 = vpop.eup %27972  ;;  %27986 = vrsqrt.f32 %v886_v40  ;;  %26410 = vmatprep.mubr.msk.f32.mxu0 %vm534_vm1, %v1016_v30  ;;  %v980_v41 = vmul.f32 %v29501_v50, %v942_v31 }
 0x183   : > { %v27975_v36 = vpop.eup %27974  ;;  %v887_v27 = vadd.f32 1e-05, %v855_v58  ;;  %v1017_v22 = vadd.f32 %v29504_v29, %v979_v53  ;;  %v943_v43 = vmul.f32 %v27973_v35, %v29435_v44 }
 0x184   : > { %v1018_v9 = vadd.f32 %v29504_v29, %v980_v41  ;;  %v944_v38 = vmul.f32 %v27975_v36, %v29444_v13 }
 0x185   : > { %27988 = vrsqrt.f32 %v887_v27  ;;  %26411 = vmatmul.mubr.msk.f32.gmra.mxu0 %vm534_vm1, %v1017_v22  ;;  %v981_v39 = vmul.f32 %v29501_v50, %v943_v43 }
 0x186   : > { %v27977_v8 = vpop.eup %27976  ;;  %26413 = vmatprep.mubr.msk.f32.mxu0 %vm534_vm1, %v1018_v9  ;;  %v982_v46 = vmul.f32 %v29501_v50, %v944_v38 }
 0x187   : > { %v27979_v24 = vpop.eup %27978  ;;  %v1019_v51 = vadd.f32 %v29504_v29, %v981_v39  ;;  %v945_v54 = vmul.f32 %v27977_v8, %v29447_v48 }
 0x188   : > { %v1020_v44 = vadd.f32 %v29504_v29, %v982_v46  ;;  %v946_v55 = vmul.f32 %v27979_v24, %v29456_v52 }
 0x189   : > { %26414 = vmatmul.mubr.msk.f32.gmra.mxu0 %vm534_vm1, %v1019_v51  ;;  %v983_v13 = vmul.f32 %v29501_v50, %v945_v54 }
 0x18a   : > { %v27981_v57 = vpop.eup %27980  ;;  %26416 = vmatprep.mubr.msk.f32.mxu0 %vm534_vm1, %v1020_v44  ;;  %v984_v59 = vmul.f32 %v29501_v50, %v946_v55 }
 0x18b   : > { %v27983_v32 = vpop.eup %27982  ;;  %v1021_v28 = vadd.f32 %v29504_v29, %v983_v13  ;;  %v947_v61 = vmul.f32 %v27981_v57, %v29459_v17 }
 0x18c   : > { %v1022_v48 = vadd.f32 %v29504_v29, %v984_v59  ;;  %v948_v45 = vmul.f32 %v27983_v32, %v29468_v56 }
 0x18d   : > { %26417 = vmatmul.mubr.msk.f32.gmra.mxu0 %vm534_vm1, %v1021_v28  ;;  %v985_v52 = vmul.f32 %v29501_v50, %v947_v61 }
 0x18e   : > { %v27985_v12 = vpop.eup %27984  ;;  %26419 = vmatprep.mubr.msk.f32.mxu0 %vm534_vm1, %v1022_v48  ;;  %v986_v34 = vmul.f32 %v29501_v50, %v948_v45 }
 0x18f   : > { %v27987_v0 = vpop.eup %27986  ;;  %v1023_v33 = vadd.f32 %v29504_v29, %v985_v52  ;;  %v949_v1 = vmul.f32 %v27985_v12, %v29471_v21 }
 0x190   : > { %v1024_v17 = vadd.f32 %v29504_v29, %v986_v34  ;;  %v950_v62 = vmul.f32 %v27987_v0, %v29480_v60 }
 0x191   : > { %26420 = vmatmul.mubr.msk.f32.gmra.mxu0 %vm534_vm1, %v1023_v33  ;;  %v987_v56 = vmul.f32 %v29501_v50, %v949_v1 }
 0x192   : > { %v27989_v3 = vpop.eup %27988  ;;  %26422 = vmatprep.mubr.msk.f32.mxu0 %vm534_vm1, %v1024_v17  ;;  %v988_v6 = vmul.f32 %v29501_v50, %v950_v62 }
 0x193   : > { %v1025_v47 = vadd.f32 %v29504_v29, %v987_v56  ;;  %v951_v7 = vmul.f32 %v27989_v3, %v29483_v25 }
 0x194   : > { %v1026_v10 = vadd.f32 %v29504_v29, %v988_v6 }
 0x195   : > { %26423 = vmatmul.mubr.msk.f32.gmra.mxu0 %vm534_vm1, %v1025_v47  ;;  %v989_v21 = vmul.f32 %v29501_v50, %v951_v7 }
 0x196   : > { %26425 = vmatprep.mubr.msk.f32.mxu0 %vm534_vm1, %v1026_v10 }
 0x197   : > { %v1027_v60 = vadd.f32 %v29504_v29, %v989_v21 }
 0x199   : > { %26426 = vmatmul.mubr.msk.f32.gmra.mxu0 %vm534_vm1, %v1027_v60 }
 0x19a   : > { %26515 = vmatprep.mubr.msk.f32.mxu0 %vm28751_vm2, %v35696_v16 }
 0x21d   : > { %v29639_v25 = vpop.f32.mrf.mxu0 }
 0x21e   : > { %13048 = vrot.lane.b32.xlu0 %v29639_v25, %s28752_s13  ;;  %1656 = vrot.lane.b32.xlu1 %v29639_v25, %s28753_s14 }
 0x21f   : > { %v29645_v50 = vpop.f32.mrf.mxu0 }
 0x221   : > { %v29663_v29 = vpop.f32.mrf.mxu0 }
 0x222   : > { %1389 = vrot.lane.b32.xlu1 %v29639_v25, %s28754_s15  ;;  %1579 = vrot.lane.b32.xlu0 %v29645_v50, %s28753_s14 }
 0x223   : > { %v29669_v63 = vpop.f32.mrf.mxu0 }
 0x225   : > { %v29675_v14 = vpop.f32.mrf.mxu0 }
 0x226   : > { %1453 = vrot.lane.b32.xlu1 %v29639_v25, %s28755_s16  ;;  %1387 = vrot.lane.b32.xlu0 %v29645_v50, %s28754_s15 }
 0x227   : > { %v29681_v37 = vpop.f32.mrf.mxu0 }
 0x229   : > { %v29703_v49 = vpop.f32.mrf.mxu0 }
 0x22a   : > { %1517 = vrot.lane.b32.xlu1 %v29639_v25, %s28756_s18  ;;  %1451 = vrot.lane.b32.xlu0 %v29645_v50, %s28755_s16 }
 0x22b   : > { %v29709_v42 = vpop.f32.mrf.mxu0 }
 0x22d   : > { %v29723_v15 = vpop.f32.mrf.mxu0 }
 0x22e   : > { %12972 = vrot.lane.b32.xlu1 %v29645_v50, %s28752_s13  ;;  %1515 = vrot.lane.b32.xlu0 %v29645_v50, %s28756_s18 }
 0x22f   : > { %v29729_v18 = vpop.f32.mrf.mxu0 }
 0x231   : > { %v29751_v11 = vpop.f32.mrf.mxu0 }
 0x232   : > { %1393 = vrot.lane.b32.xlu0 %v29663_v29, %s28754_s15  ;;  %1808 = vrot.lane.b32.xlu1 %v29663_v29, %s28753_s14  ;;  %36015 = vst [vmem:[#allocation2_spill] sm:$0xff] %v29751_v11 }
 0x233   : > { %v29757_v23 = vpop.f32.mrf.mxu0 }
 0x234   : > { %36016 = vst [vmem:[#allocation3_spill] sm:$0xff] %v29757_v23 }
 0x235   : > { %v29767_v4 = vpop.f32.mrf.mxu0 }
 0x236   : > { %1457 = vrot.lane.b32.xlu1 %v29663_v29, %s28755_s16  ;;  %1455 = vrot.lane.b32.xlu0 %v29669_v63, %s28755_s16  ;;  %36017 = vst [vmem:[#allocation4_spill] sm:$0xff] %v29767_v4 }
 0x237   : > { %v29773_v2 = vpop.f32.mrf.mxu0 }
 0x238   : > { %36018 = vst [vmem:[#allocation5_spill] sm:$0xff] %v29773_v2 }
 0x239   : > { %v29791_v20 = vpop.f32.mrf.mxu0 }
 0x23a   : > { %1521 = vrot.lane.b32.xlu1 %v29663_v29, %s28756_s18  ;;  %1519 = vrot.lane.b32.xlu0 %v29669_v63, %s28756_s18  ;;  %36021 = vst [vmem:[#allocation8_spill] sm:$0xff] %v29791_v20 }
 0x23b   : > { %v29805_v58 = vpop.f32.mrf.mxu0 }
 0x23c   : > { %36024 = vst [vmem:[#allocation11_spill] sm:$0xff] %v29805_v58 }
 0x23d   : > { %v29837_v43 = vpop.f32.mrf.mxu0 }
 0x23e   : > { %13200 = vrot.lane.b32.xlu1 %v29663_v29, %s28752_s13  ;;  %1884 = vrot.lane.b32.xlu0 %v29681_v37, %s28753_s14  ;;  %36030 = vst [vmem:[#allocation17_spill] sm:$0xff] %v29837_v43 }
 0x23f   : > { %v29847_v39 = vpop.f32.mrf.mxu0 }
 0x240   : > { %36033 = vst [vmem:[#allocation20_spill] sm:$0xff] %v29847_v39 }
 0x241   : > { %v29869_v55 = vpop.f32.mrf.mxu0 }
 0x242   : > { %1732 = vrot.lane.b32.xlu1 %v29669_v63, %s28753_s14  ;;  %1395 = vrot.lane.b32.xlu0 %v29681_v37, %s28754_s15  ;;  %36038 = vst [vmem:[#allocation25_spill] sm:$0xff] %v29869_v55 }
 0x243   : > { %v29883_v59 = vpop.f32.mrf.mxu0 }
 0x244   : > { %36041 = vst [vmem:[#allocation28_spill] sm:$0xff] %v29883_v59 }
 0x245   : > { %v29925_v12 = vpop.f32.mrf.mxu0 }
 0x246   : > { %1391 = vrot.lane.b32.xlu1 %v29669_v63, %s28754_s15  ;;  %1459 = vrot.lane.b32.xlu0 %v29681_v37, %s28755_s16  ;;  %36047 = vst [vmem:[#allocation34_spill] sm:$0xff] %v29925_v12 }
 0x247   : > { %v29935_v33 = vpop.f32.mrf.mxu0 }
 0x248   : > { %36049 = vst [vmem:[#allocation36_spill] sm:$0xff] %v29935_v33 }
 0x249   : > { %v29965_v47 = vpop.f32.mrf.mxu0 }
 0x24a   : > { %13124 = vrot.lane.b32.xlu1 %v29669_v63, %s28752_s13  ;;  %1523 = vrot.lane.b32.xlu0 %v29681_v37, %s28756_s18  ;;  %36055 = vst [vmem:[#allocation42_spill] sm:$0xff] %v29965_v47 }
 0x24b   : > { %v29977_v21 = vpop.f32.mrf.mxu0 }
 0x24c   : > { %36057 = vst [vmem:[#allocation44_spill] sm:$0xff] %v29977_v21 }
 0x24e   : > { %1960 = vrot.lane.b32.xlu1 %v29675_v14, %s28753_s14  ;;  %13276 = vrot.lane.b32.xlu0 %v29681_v37, %s28752_s13 }
 0x252   : > { %1397 = vrot.lane.b32.xlu1 %v29675_v14, %s28754_s15  ;;  %1401 = vrot.lane.b32.xlu0 %v29703_v49, %s28754_s15 }
 0x256   : > { %1461 = vrot.lane.b32.xlu1 %v29675_v14, %s28755_s16  ;;  %2036 = vrot.lane.b32.xlu0 %v29709_v42, %s28753_s14 }
 0x25a   : > { %1525 = vrot.lane.b32.xlu1 %v29675_v14, %s28756_s18  ;;  %1463 = vrot.lane.b32.xlu0 %v29709_v42, %s28755_s16 }
 0x25e   : > { %13352 = vrot.lane.b32.xlu1 %v29675_v14, %s28752_s13  ;;  %1527 = vrot.lane.b32.xlu0 %v29709_v42, %s28756_s18 }
 0x262   : > { %2112 = vrot.lane.b32.xlu1 %v29703_v49, %s28753_s14  ;;  %13428 = vrot.lane.b32.xlu0 %v29709_v42, %s28752_s13 }
 0x266   : > { %1465 = vrot.lane.b32.xlu1 %v29703_v49, %s28755_s16  ;;  %2188 = vrot.lane.b32.xlu0 %v29729_v18, %s28753_s14 }
 0x26a   : > { %1529 = vrot.lane.b32.xlu1 %v29703_v49, %s28756_s18  ;;  %1403 = vrot.lane.b32.xlu0 %v29729_v18, %s28754_s15 }
 0x26e   : > { %13504 = vrot.lane.b32.xlu1 %v29703_v49, %s28752_s13  ;;  %1467 = vrot.lane.b32.xlu0 %v29729_v18, %s28755_s16 }
 0x272   : > { %1399 = vrot.lane.b32.xlu1 %v29709_v42, %s28754_s15  ;;  %1531 = vrot.lane.b32.xlu0 %v29729_v18, %s28756_s18 }
 0x276   : > { %2264 = vrot.lane.b32.xlu1 %v29723_v15, %s28753_s14  ;;  %13580 = vrot.lane.b32.xlu0 %v29729_v18, %s28752_s13 }
 0x27a   : > { %1405 = vrot.lane.b32.xlu1 %v29723_v15, %s28754_s15  ;;  %1409 = vrot.lane.b32.xlu0 %v29751_v11, %s28754_s15 }
 0x27e   : > { %1469 = vrot.lane.b32.xlu1 %v29723_v15, %s28755_s16  ;;  %2340 = vrot.lane.b32.xlu0 %v29757_v23, %s28753_s14 }
 0x282   : > { %1533 = vrot.lane.b32.xlu1 %v29723_v15, %s28756_s18  ;;  %1471 = vrot.lane.b32.xlu0 %v29757_v23, %s28755_s16 }
 0x286   : > { %13656 = vrot.lane.b32.xlu1 %v29723_v15, %s28752_s13  ;;  %1535 = vrot.lane.b32.xlu0 %v29757_v23, %s28756_s18 }
 0x28a   : > { %2416 = vrot.lane.b32.xlu1 %v29751_v11, %s28753_s14  ;;  %2492 = vrot.lane.b32.xlu0 %v29773_v2, %s28753_s14 }
 0x28e   : > { %1473 = vrot.lane.b32.xlu1 %v29751_v11, %s28755_s16  ;;  %1411 = vrot.lane.b32.xlu0 %v29773_v2, %s28754_s15 }
 0x290   : > { %v1657_v5 = vpop.permute.xlu1 %1656  ;;  %v29783_v40 = vpop.permute.xlu0 %13048 }
 0x291   : > { %36019 = vst [vmem:[#allocation6_spill] sm:$0xff] %v29783_v40 }
 0x292   : > { %1537 = vrot.lane.b32.xlu1 %v29751_v11, %s28756_s18  ;;  %1475 = vrot.lane.b32.xlu0 %v29773_v2, %s28755_s16 }
 0x294   : > { %v29789_v26 = vpop.permute.xlu1 %1389  ;;  %v1580_v19 = vpop.permute.xlu0 %1579 }
 0x295   : > { %36020 = vst [vmem:[#allocation7_spill] sm:$0xff] %v29789_v26  ;;  %26429 = vmatpush3.xpose.msk.msra.mxu1 %vm1581_vm3, %v1580_v19 }
 0x296   : > { %1407 = vrot.lane.b32.xlu1 %v29757_v23, %s28754_s15  ;;  %1539 = vrot.lane.b32.xlu0 %v29773_v2, %s28756_s18 }
 0x297   : > { %26433 = vmatprep.subr.mxu1 %v35696_v16 }
 0x298   : > { %v29799_v30 = vpop.permute.xlu1 %1453  ;;  %26431 = vmatmul.mubr.msk.f32.vlgmr.msra.gmra.mxu1 %vm1581_vm3, %v29645_v50  ;;  %v29803_v31 = vpop.permute.xlu0 %1387 }
 0x299   : > { %36022 = vst [vmem:[#allocation9_spill] sm:$0xff] %v29799_v30  ;;  %36023 = vst [vmem:[#allocation10_spill] sm:$0xff] %v29803_v31  ;;  %26434 = vmatpush3.xpose.msk.msra.mxu1 %vm1581_vm3, %v1657_v5  ;;  %26435 = vmatprep.mubr.msk.f32.mxu1 %vm28751_vm2, %v35696_v16 }
 0x29a   : > { %2568 = vrot.lane.b32.xlu1 %v29767_v4, %s28753_s14  ;;  %2644 = vrot.lane.b32.xlu0 %v29805_v58, %s28753_s14 }
 0x29b   : > { %26438 = vmatprep.subr.mxu1 %v35696_v16 }
 0x29c   : > { %v29815_v53 = vpop.permute.xlu1 %1517  ;;  %26436 = vmatmul.mubr.msk.f32.vlgmr.msra.gmra.mxu1 %vm1581_vm3, %v29639_v25  ;;  %v29819_v35 = vpop.permute.xlu0 %1451 }
 0x29d   : > { %36025 = vst [vmem:[#allocation12_spill] sm:$0xff] %v29815_v53  ;;  %36026 = vst [vmem:[#allocation13_spill] sm:$0xff] %v29819_v35  ;;  %26440 = vmatprep.mubr.msk.f32.mxu1 %vm28751_vm2, %v35696_v16 }
 0x29e   : > { %1413 = vrot.lane.b32.xlu1 %v29767_v4, %s28754_s15  ;;  %1415 = vrot.lane.b32.xlu0 %v29805_v58, %s28754_s15 }
 0x2a0   : > { %v29827_v41 = vpop.permute.xlu1 %12972  ;;  %v29829_v36 = vpop.permute.xlu0 %1515 }
 0x2a1   : > { %36027 = vst [vmem:[#allocation14_spill] sm:$0xff] %v29827_v41  ;;  %36028 = vst [vmem:[#allocation15_spill] sm:$0xff] %v29829_v36 }
 0x2a2   : > { %1477 = vrot.lane.b32.xlu1 %v29767_v4, %s28755_s16  ;;  %1479 = vrot.lane.b32.xlu0 %v29805_v58, %s28755_s16 }
 0x2a4   : > { %v1809_v27 = vpop.permute.xlu1 %1808  ;;  %v29835_v22 = vpop.permute.xlu0 %1393 }
 0x2a5   : > { %36029 = vst [vmem:[#allocation16_spill] sm:$0xff] %v29835_v22 }
 0x2a6   : > { %1541 = vrot.lane.b32.xlu1 %v29767_v4, %s28756_s18  ;;  %1543 = vrot.lane.b32.xlu0 %v29805_v58, %s28756_s18 }
 0x2a8   : > { %v29843_v9 = vpop.permute.xlu1 %1457  ;;  %v29845_v38 = vpop.permute.xlu0 %1455 }
 0x2a9   : > { %36031 = vst [vmem:[#allocation18_spill] sm:$0xff] %v29843_v9  ;;  %36032 = vst [vmem:[#allocation19_spill] sm:$0xff] %v29845_v38 }
 0x2aa   : > { %2720 = vrot.lane.b32.xlu1 %v29791_v20, %s28753_s14  ;;  %2796 = vrot.lane.b32.xlu0 %v29847_v39, %s28753_s14 }
 0x2ac   : > { %v29853_v8 = vpop.permute.xlu1 %1521  ;;  %v29855_v46 = vpop.permute.xlu0 %1519 }
 0x2ad   : > { %36034 = vst [vmem:[#allocation21_spill] sm:$0xff] %v29853_v8  ;;  %36035 = vst [vmem:[#allocation22_spill] sm:$0xff] %v29855_v46 }
 0x2ae   : > { %1417 = vrot.lane.b32.xlu1 %v29791_v20, %s28754_s15  ;;  %1419 = vrot.lane.b32.xlu0 %v29847_v39, %s28754_s15 }
 0x2b0   : > { %v29861_v24 = vpop.permute.xlu1 %13200  ;;  %v1885_v51 = vpop.permute.xlu0 %1884 }
 0x2b1   : > { %36036 = vst [vmem:[#allocation23_spill] sm:$0xff] %v29861_v24 }
 0x2b2   : > { %1481 = vrot.lane.b32.xlu1 %v29791_v20, %s28755_s16  ;;  %1483 = vrot.lane.b32.xlu0 %v29847_v39, %s28755_s16 }
 0x2b4   : > { %v1733_v54 = vpop.permute.xlu1 %1732  ;;  %v29867_v44 = vpop.permute.xlu0 %1395 }
 0x2b5   : > { %36037 = vst [vmem:[#allocation24_spill] sm:$0xff] %v29867_v44  ;;  %26439 = vmatpush3.xpose.msk.msra.mxu1 %vm1581_vm3, %v1733_v54 }
 0x2b6   : > { %1545 = vrot.lane.b32.xlu1 %v29791_v20, %s28756_s18  ;;  %1547 = vrot.lane.b32.xlu0 %v29847_v39, %s28756_s18 }
 0x2b7   : > { %26443 = vmatprep.subr.mxu1 %v35696_v16 }
 0x2b8   : > { %v29877_v13 = vpop.permute.xlu1 %1391  ;;  %26441 = vmatmul.mubr.msk.f32.vlgmr.msra.gmra.mxu1 %vm1581_vm3, %v29669_v63  ;;  %v29881_v57 = vpop.permute.xlu0 %1459 }
 0x2b9   : > { %36039 = vst [vmem:[#allocation26_spill] sm:$0xff] %v29877_v13  ;;  %36040 = vst [vmem:[#allocation27_spill] sm:$0xff] %v29881_v57  ;;  %26444 = vmatpush3.xpose.msk.msra.mxu1 %vm1581_vm3, %v1809_v27  ;;  %26445 = vmatprep.mubr.msk.f32.mxu1 %vm28751_vm2, %v35696_v16 }
 0x2ba   : > { %2872 = vrot.lane.b32.xlu1 %v29837_v43, %s28753_s14  ;;  %2948 = vrot.lane.b32.xlu0 %v29883_v59, %s28753_s14 }
 0x2bb   : > { %26448 = vmatprep.subr.mxu1 %v35696_v16 }
 0x2bc   : > { %v29893_v32 = vpop.permute.xlu1 %13124  ;;  %26446 = vmatmul.mubr.msk.f32.vlgmr.msra.gmra.mxu1 %vm1581_vm3, %v29663_v29  ;;  %v29897_v28 = vpop.permute.xlu0 %1523 }
 0x2bd   : > { %36042 = vst [vmem:[#allocation29_spill] sm:$0xff] %v29893_v32  ;;  %36043 = vst [vmem:[#allocation30_spill] sm:$0xff] %v29897_v28  ;;  %26449 = vmatpush3.xpose.msk.msra.mxu1 %vm1581_vm3, %v1885_v51  ;;  %26450 = vmatprep.mubr.msk.f32.mxu1 %vm28751_vm2, %v35696_v16 }
 0x2be   : > { %1421 = vrot.lane.b32.xlu1 %v29837_v43, %s28754_s15  ;;  %1423 = vrot.lane.b32.xlu0 %v29883_v59, %s28754_s15 }
 0x2bf   : > { %26453 = vmatprep.subr.mxu1 %v35696_v16 }
 0x2c0   : > { %v1961_v61 = vpop.permute.xlu1 %1960  ;;  %26451 = vmatmul.mubr.msk.f32.vlgmr.msra.gmra.mxu1 %vm1581_vm3, %v29681_v37  ;;  %v29909_v48 = vpop.permute.xlu0 %13276 }
 0x2c1   : > { %36044 = vst [vmem:[#allocation31_spill] sm:$0xff] %v29909_v48  ;;  %26454 = vmatpush3.xpose.msk.msra.mxu1 %vm1581_vm3, %v1961_v61  ;;  %26455 = vmatprep.mubr.msk.f32.mxu1 %vm28751_vm2, %v35696_v16  ;;  %v30011_v37 = vpop.f32.mrf.mxu0  ;;  %v36084_v48 = vmov 0.0  }
 0x2c2   : > { %1485 = vrot.lane.b32.xlu1 %v29837_v43, %s28755_s16  ;;  %1487 = vrot.lane.b32.xlu0 %v29883_v59, %s28755_s16  ;;  %36064 = vst [vmem:[#allocation51_spill] sm:$0xff] %v30011_v37 }
 0x2c3   : > { %26458 = vmatprep.subr.mxu1 %v35696_v16 }
 0x2c4   : > { %v29919_v45 = vpop.permute.xlu1 %1397  ;;  %26456 = vmatmul.mubr.msk.f32.vlgmr.msra.gmra.mxu1 %vm1581_vm3, %v29675_v14  ;;  %v29923_v52 = vpop.permute.xlu0 %1401 }
 0x2c5   : > { %36045 = vst [vmem:[#allocation32_spill] sm:$0xff] %v29919_v45  ;;  %36046 = vst [vmem:[#allocation33_spill] sm:$0xff] %v29923_v52  ;;  %26460 = vmatprep.mubr.msk.f32.mxu1 %vm28751_vm2, %v35696_v16 }
 0x2c6   : > { %1549 = vrot.lane.b32.xlu1 %v29837_v43, %s28756_s18  ;;  %1551 = vrot.lane.b32.xlu0 %v29883_v59, %s28756_s18 }
 0x2c8   : > { %v29933_v34 = vpop.permute.xlu1 %1461  ;;  %v2037_v0 = vpop.permute.xlu0 %2036 }
 0x2c9   : > { %36048 = vst [vmem:[#allocation35_spill] sm:$0xff] %v29933_v34  ;;  %26459 = vmatpush3.xpose.msk.msra.mxu1 %vm1581_vm3, %v2037_v0 }
 0x2ca   : > { %3024 = vrot.lane.b32.xlu1 %v29869_v55, %s28753_s14  ;;  %3100 = vrot.lane.b32.xlu0 %v29935_v33, %s28753_s14 }
 0x2cb   : > { %26463 = vmatprep.subr.mxu1 %v35696_v16 }
 0x2cc   : > { %v29943_v1 = vpop.permute.xlu1 %1525  ;;  %26461 = vmatmul.mubr.msk.f32.vlgmr.msra.gmra.mxu1 %vm1581_vm3, %v29709_v42  ;;  %v29947_v17 = vpop.permute.xlu0 %1463 }
 0x2cd   : > { %36050 = vst [vmem:[#allocation37_spill] sm:$0xff] %v29943_v1  ;;  %36051 = vst [vmem:[#allocation38_spill] sm:$0xff] %v29947_v17  ;;  %26465 = vmatprep.mubr.msk.f32.mxu1 %vm28751_vm2, %v35696_v16 }
 0x2ce   : > { %1425 = vrot.lane.b32.xlu1 %v29869_v55, %s28754_s15  ;;  %1427 = vrot.lane.b32.xlu0 %v29935_v33, %s28754_s15 }
 0x2d0   : > { %v29955_v62 = vpop.permute.xlu1 %13352  ;;  %v29957_v56 = vpop.permute.xlu0 %1527 }
 0x2d1   : > { %36052 = vst [vmem:[#allocation39_spill] sm:$0xff] %v29955_v62  ;;  %36053 = vst [vmem:[#allocation40_spill] sm:$0xff] %v29957_v56 }
 0x2d2   : > { %1489 = vrot.lane.b32.xlu1 %v29869_v55, %s28755_s16  ;;  %1491 = vrot.lane.b32.xlu0 %v29935_v33, %s28755_s16 }
 0x2d4   : > { %v2113_v3 = vpop.permute.xlu1 %2112  ;;  %v29963_v6 = vpop.permute.xlu0 %13428 }
 0x2d5   : > { %36054 = vst [vmem:[#allocation41_spill] sm:$0xff] %v29963_v6  ;;  %26464 = vmatpush3.xpose.msk.msra.mxu1 %vm1581_vm3, %v2113_v3 }
 0x2d6   : > { %1553 = vrot.lane.b32.xlu1 %v29869_v55, %s28756_s18  ;;  %1555 = vrot.lane.b32.xlu0 %v29935_v33, %s28756_s18 }
 0x2d7   : > { %26468 = vmatprep.subr.mxu1 %v35696_v16 }
 0x2d8   : > { %v29973_v7 = vpop.permute.xlu1 %1465  ;;  %26466 = vmatmul.mubr.msk.f32.vlgmr.msra.gmra.mxu1 %vm1581_vm3, %v29703_v49  ;;  %v2189_v10 = vpop.permute.xlu0 %2188 }
 0x2d9   : > { %36056 = vst [vmem:[#allocation43_spill] sm:$0xff] %v29973_v7  ;;  %26469 = vmatpush3.xpose.msk.msra.mxu1 %vm1581_vm3, %v2189_v10  ;;  %26470 = vmatprep.mubr.msk.f32.mxu1 %vm28751_vm2, %v35696_v16 }
 0x2da   : > { %3176 = vrot.lane.b32.xlu1 %v29925_v12, %s28753_s14  ;;  %3252 = vrot.lane.b32.xlu0 %v29977_v21, %s28753_s14 }
 0x2db   : > { %26473 = vmatprep.subr.mxu1 %v35696_v16 }
 0x2dc   : > { %v29987_v60 = vpop.permute.xlu1 %1529  ;;  %26471 = vmatmul.mubr.msk.f32.vlgmr.msra.gmra.mxu1 %vm1581_vm3, %v29729_v18  ;;  %v29991_v25 = vpop.permute.xlu0 %1403 }
 0x2dd   : > { %36058 = vst [vmem:[#allocation45_spill] sm:$0xff] %v29987_v60  ;;  %36059 = vst [vmem:[#allocation46_spill] sm:$0xff] %v29991_v25  ;;  %26475 = vmatprep.mubr.msk.f32.mxu1 %vm28751_vm2, %v35696_v16  ;;  %v30019_v18 = vpop.f32.mrf.mxu0 }
 0x2de   : > { %1429 = vrot.lane.b32.xlu1 %v29925_v12, %s28754_s15  ;;  %1431 = vrot.lane.b32.xlu0 %v29977_v21, %s28754_s15  ;;  %36066 = vst [vmem:[#allocation53_spill] sm:$0xff] %v30019_v18 }
 0x2df   : > { %v30053_v61 = vpop.f32.mrf.mxu0 }
 0x2e0   : > { %v29999_v50 = vpop.permute.xlu1 %13504  ;;  %v30001_v29 = vpop.permute.xlu0 %1467  ;;  %36072 = vst [vmem:[#allocation59_spill] sm:$0xff] %v30053_v61 }
 0x2e1   : > { %36060 = vst [vmem:[#allocation47_spill] sm:$0xff] %v29999_v50  ;;  %36061 = vst [vmem:[#allocation48_spill] sm:$0xff] %v30001_v29  ;;  %v30065_v10 = vpop.f32.mrf.mxu0 }
 0x2e2   : > { %1493 = vrot.lane.b32.xlu1 %v29925_v12, %s28755_s16  ;;  %1495 = vrot.lane.b32.xlu0 %v29977_v21, %s28755_s16  ;;  %36075 = vst [vmem:[#allocation62_spill] sm:$0xff] %v30065_v10 }
 0x2e3   : > { %v30097_v50 = vpop.f32.mrf.mxu0 }
 0x2e4   : > { %v30007_v63 = vpop.permute.xlu1 %1399  ;;  %v30009_v14 = vpop.permute.xlu0 %1531  ;;  %36080 = vst [vmem:[#allocation67_spill] sm:$0xff] %v30097_v50 }
 0x2e5   : > { %36062 = vst [vmem:[#allocation49_spill] sm:$0xff] %v30007_v63  ;;  %36063 = vst [vmem:[#allocation50_spill] sm:$0xff] %v30009_v14  ;;  %v30109_v24 = vpop.f32.mrf.mxu0 }
 0x2e6   : > { %1557 = vrot.lane.b32.xlu1 %v29925_v12, %s28756_s18  ;;  %1559 = vrot.lane.b32.xlu0 %v29977_v21, %s28756_s18  ;;  %36083 = vst [vmem:[#allocation70_spill] sm:$0xff] %v30109_v24 }
 0x2e8   : > { %v2265_v49 = vpop.permute.xlu1 %2264  ;;  %v30017_v42 = vpop.permute.xlu0 %13580 }
 0x2e9   : > { %36065 = vst [vmem:[#allocation52_spill] sm:$0xff] %v30017_v42  ;;  %26474 = vmatpush3.xpose.msk.msra.mxu1 %vm1581_vm3, %v2265_v49 }
 0x2ea   : > { %3328 = vrot.lane.b32.xlu1 %v29965_v47, %s28753_s14  ;;  %3404 = vrot.lane.b32.xlu0 %v30019_v18, %s28753_s14 }
 0x2eb   : > { %26478 = vmatprep.subr.mxu1 %v35696_v16 }
 0x2ec   : > { %v30027_v5 = vpop.permute.xlu1 %1405  ;;  %26476 = vmatmul.mubr.msk.f32.vlgmr.msra.gmra.mxu1 %vm1581_vm3, %v29723_v15  ;;  %v30031_v19 = vpop.permute.xlu0 %1409 }
 0x2ed   : > { %36067 = vst [vmem:[#allocation54_spill] sm:$0xff] %v30027_v5  ;;  %36068 = vst [vmem:[#allocation55_spill] sm:$0xff] %v30031_v19  ;;  %26480 = vmatprep.mubr.msk.f32.mxu1 %vm28751_vm2, %v35696_v16 }
 0x2ee   : > { %1433 = vrot.lane.b32.xlu1 %v29965_v47, %s28754_s15  ;;  %1435 = vrot.lane.b32.xlu0 %v30019_v18, %s28754_s15 }
 0x2f0   : > { %v30039_v27 = vpop.permute.xlu1 %1469  ;;  %v2341_v51 = vpop.permute.xlu0 %2340 }
 0x2f1   : > { %36069 = vst [vmem:[#allocation56_spill] sm:$0xff] %v30039_v27  ;;  %26479 = vmatpush3.xpose.msk.msra.mxu1 %vm1581_vm3, %v2341_v51 }
 0x2f2   : > { %1497 = vrot.lane.b32.xlu1 %v29965_v47, %s28755_s16  ;;  %1499 = vrot.lane.b32.xlu0 %v30019_v18, %s28755_s16 }
 0x2f3   : > { %26483 = vmatprep.subr.mxu1 %v35696_v16 }
 0x2f4   : > { %v30047_v15 = vpop.permute.xlu1 %1533  ;;  %26481 = vmatmul.mubr.msk.f32.vlgmr.msra.gmra.mxu1 %vm1581_vm3, %v29757_v23  ;;  %v30051_v54 = vpop.permute.xlu0 %1471 }
 0x2f5   : > { %36070 = vst [vmem:[#allocation57_spill] sm:$0xff] %v30047_v15  ;;  %36071 = vst [vmem:[#allocation58_spill] sm:$0xff] %v30051_v54  ;;  %26485 = vmatprep.mubr.msk.f32.mxu1 %vm28751_vm2, %v35696_v16 }
 0x2f6   : > { %1561 = vrot.lane.b32.xlu1 %v29965_v47, %s28756_s18  ;;  %1563 = vrot.lane.b32.xlu0 %v30019_v18, %s28756_s18 }
 0x2f8   : > { %v30061_v0 = vpop.permute.xlu1 %13656  ;;  %v30063_v3 = vpop.permute.xlu0 %1535 }
 0x2f9   : > { %36073 = vst [vmem:[#allocation60_spill] sm:$0xff] %v30061_v0  ;;  %36074 = vst [vmem:[#allocation61_spill] sm:$0xff] %v30063_v3 }
 0x2fa   : > { %3480 = vrot.lane.b32.xlu1 %v30011_v37, %s28753_s14  ;;  %3556 = vrot.lane.b32.xlu0 %v30065_v10, %s28753_s14 }
 0x2fc   : > { %v2417_v49 = vpop.permute.xlu1 %2416  ;;  %v2493_v51 = vpop.permute.xlu0 %2492 }
 0x2fd   : > { %26484 = vmatpush3.xpose.msk.msra.mxu1 %vm1581_vm3, %v2417_v49 }
 0x2fe   : > { %1437 = vrot.lane.b32.xlu1 %v30011_v37, %s28754_s15  ;;  %1439 = vrot.lane.b32.xlu0 %v30065_v10, %s28754_s15 }
 0x2ff   : > { %26488 = vmatprep.subr.mxu1 %v35696_v16 }
 0x300   : > { %v30077_v42 = vpop.permute.xlu1 %1473  ;;  %26486 = vmatmul.mubr.msk.f32.vlgmr.msra.gmra.mxu1 %vm1581_vm3, %v29751_v11  ;;  %v30081_v0 = vpop.permute.xlu0 %1411 }
 0x301   : > { %36076 = vst [vmem:[#allocation63_spill] sm:$0xff] %v30077_v42  ;;  %36077 = vst [vmem:[#allocation64_spill] sm:$0xff] %v30081_v0  ;;  %26489 = vmatpush3.xpose.msk.msra.mxu1 %vm1581_vm3, %v2493_v51  ;;  %26490 = vmatprep.mubr.msk.f32.mxu1 %vm28751_vm2, %v35696_v16  ;;  %v30141_v11 = vpop.f32.mrf.mxu0 }
 0x302   : > { %1501 = vrot.lane.b32.xlu1 %v30011_v37, %s28755_s16  ;;  %1503 = vrot.lane.b32.xlu0 %v30065_v10, %s28755_s16  ;;  %36089 = vst [vmem:[#allocation75_spill] sm:$0xff] %v30141_v11 }
 0x303   : > { %26493 = vmatprep.subr.mxu1 %v35696_v16  ;;  %v30153_v41 = vpop.f32.mrf.mxu0 }
 0x304   : > { %v30091_v49 = vpop.permute.xlu1 %1537  ;;  %26491 = vmatmul.mubr.msk.f32.vlgmr.msra.gmra.mxu1 %vm1581_vm3, %v29773_v2  ;;  %v30095_v6 = vpop.permute.xlu0 %1475  ;;  %36092 = vst [vmem:[#allocation78_spill] sm:$0xff] %v30153_v41 }
 0x305   : > { %36078 = vst [vmem:[#allocation65_spill] sm:$0xff] %v30091_v49  ;;  %36079 = vst [vmem:[#allocation66_spill] sm:$0xff] %v30095_v6  ;;  %26495 = vmatprep.mubr.msk.f32.mxu1 %vm28751_vm2, %v35696_v16 }
 0x306   : > { %1565 = vrot.lane.b32.xlu1 %v30011_v37, %s28756_s18  ;;  %1567 = vrot.lane.b32.xlu0 %v30065_v10, %s28756_s18 }
 0x308   : > { %v30105_v51 = vpop.permute.xlu1 %1407  ;;  %v30107_v62 = vpop.permute.xlu0 %1539 }
 0x309   : > { %36081 = vst [vmem:[#allocation68_spill] sm:$0xff] %v30105_v51  ;;  %36082 = vst [vmem:[#allocation69_spill] sm:$0xff] %v30107_v62 }
 0x30a   : > { %3632 = vrot.lane.b32.xlu1 %v30053_v61, %s28753_s14  ;;  %3708 = vrot.lane.b32.xlu0 %v30109_v24, %s28753_s14 }
 0x30c   : > { %v2569_v2 = vpop.permute.xlu1 %2568  ;;  %v2645_v16 = vpop.permute.xlu0 %2644 }
 0x30d   : > { %26494 = vmatpush3.xpose.msk.msra.mxu1 %vm1581_vm3, %v2569_v2 }
 0x30e   : > { %1441 = vrot.lane.b32.xlu1 %v30053_v61, %s28754_s15  ;;  %1443 = vrot.lane.b32.xlu0 %v30109_v24, %s28754_s15 }
 0x30f   : > { %26498 = vmatprep.subr.mxu1 %v36084_v48 }
 0x310   : > { %v30121_v32 = vpop.permute.xlu1 %1413  ;;  %26496 = vmatmul.mubr.msk.f32.vlgmr.msra.gmra.mxu1 %vm1581_vm3, %v29767_v4  ;;  %v30125_v23 = vpop.permute.xlu0 %1415 }
 0x311   : > { %36085 = vst [vmem:[#allocation71_spill] sm:$0xff] %v30121_v32  ;;  %36086 = vst [vmem:[#allocation72_spill] sm:$0xff] %v30125_v23  ;;  %26499 = vmatpush3.xpose.msk.msra.mxu1 %vm1581_vm3, %v2645_v16  ;;  %26500 = vmatprep.mubr.msk.f32.mxu1 %vm28751_vm2, %v36084_v48 }
 0x312   : > { %1505 = vrot.lane.b32.xlu1 %v30053_v61, %s28755_s16  ;;  %1507 = vrot.lane.b32.xlu0 %v30109_v24, %s28755_s16 }
 0x313   : > { %26503 = vmatprep.subr.mxu1 %v36084_v48 }
 0x314   : > { %v30135_v2 = vpop.permute.xlu1 %1477  ;;  %26501 = vmatmul.mubr.msk.f32.vlgmr.msra.gmra.mxu1 %vm1581_vm3, %v29805_v58  ;;  %v30139_v4 = vpop.permute.xlu0 %1479 }
 0x315   : > { %36087 = vst [vmem:[#allocation73_spill] sm:$0xff] %v30135_v2  ;;  %36088 = vst [vmem:[#allocation74_spill] sm:$0xff] %v30139_v4  ;;  %26505 = vmatprep.mubr.msk.f32.mxu1 %vm28751_vm2, %v36084_v48 }
 0x316   : > { %1569 = vrot.lane.b32.xlu1 %v30053_v61, %s28756_s18  ;;  %1571 = vrot.lane.b32.xlu0 %v30109_v24, %s28756_s18 }
 0x318   : > { %v30149_v16 = vpop.permute.xlu1 %1541  ;;  %v30151_v40 = vpop.permute.xlu0 %1543 }
 0x319   : > { %36090 = vst [vmem:[#allocation76_spill] sm:$0xff] %v30149_v16  ;;  %36091 = vst [vmem:[#allocation77_spill] sm:$0xff] %v30151_v40 }
 0x31a   : > { %3784 = vrot.lane.b32.xlu1 %v30097_v50, %s28753_s14  ;;  %3860 = vrot.lane.b32.xlu0 %v30153_v41, %s28753_s14 }
 0x31c   : > { %v2721_v58 = vpop.permute.xlu1 %2720  ;;  %v2797_v2 = vpop.permute.xlu0 %2796 }
 0x31d   : > { %26504 = vmatpush3.xpose.msk.msra.mxu1 %vm1581_vm3, %v2721_v58 }
 0x31e   : > { %1445 = vrot.lane.b32.xlu1 %v30097_v50, %s28754_s15  ;;  %1447 = vrot.lane.b32.xlu0 %v30153_v41, %s28754_s15 }
 0x31f   : > { %26508 = vmatprep.subr.mxu1 %v36084_v48 }
 0x320   : > { %v30165_v16 = vpop.permute.xlu1 %1417  ;;  %26506 = vmatmul.mubr.msk.f32.vlgmr.msra.gmra.mxu1 %vm1581_vm3, %v29791_v20  ;;  %v30169_v40 = vpop.permute.xlu0 %1419 }
 0x321   : > { %36093 = vst [vmem:[#allocation79_spill] sm:$0xff] %v30165_v16  ;;  %36094 = vst [vmem:[#allocation80_spill] sm:$0xff] %v30169_v40  ;;  %26509 = vmatpush3.xpose.msk.msra.mxu1 %vm1581_vm3, %v2797_v2  ;;  %26510 = vmatprep.mubr.msk.f32.mxu1 %vm28751_vm2, %v36084_v48 }
 0x322   : > { %1509 = vrot.lane.b32.xlu1 %v30097_v50, %s28755_s16  ;;  %1511 = vrot.lane.b32.xlu0 %v30153_v41, %s28755_s16 }
 0x323   : > { %26518 = vmatprep.subr.mxu1 %v36084_v48 }
 0x324   : > { %v30179_v58 = vpop.permute.xlu1 %1481  ;;  %26511 = vmatmul.mubr.msk.f32.vlgmr.msra.gmra.mxu1 %vm1581_vm3, %v29847_v39  ;;  %v30183_v20 = vpop.permute.xlu0 %1483 }
 0x325   : > { %36095 = vst [vmem:[#allocation81_spill] sm:$0xff] %v30179_v58  ;;  %36096 = vst [vmem:[#allocation82_spill] sm:$0xff] %v30183_v20  ;;  %26520 = vmatprep.mubr.msk.f32.mxu1 %vm28751_vm2, %v36084_v48 }
 0x326   : > { %1573 = vrot.lane.b32.xlu1 %v30097_v50, %s28756_s18  ;;  %1575 = vrot.lane.b32.xlu0 %v30153_v41, %s28756_s18 }
 0x328   : > { %v30191_v2 = vpop.permute.xlu1 %1545  ;;  %v30193_v16 = vpop.permute.xlu0 %1547 }
 0x329   : > { %36097 = vst [vmem:[#allocation83_spill] sm:$0xff] %v30191_v2  ;;  %36098 = vst [vmem:[#allocation84_spill] sm:$0xff] %v30193_v16 }
 0x32a   : > { %3936 = vrot.lane.b32.xlu1 %v30141_v11, %s28753_s14  ;;  %4012 = vrot.lane.b32.xlu0 %v29803_v31, %s28753_s14 }
 0x32c   : > { %v2873_v39 = vpop.permute.xlu1 %2872  ;;  %v2949_v58 = vpop.permute.xlu0 %2948 }
 0x32d   : > { %26514 = vmatpush3.xpose.msk.msra.mxu0 %vm1581_vm3, %v2873_v39  ;;  %26519 = vmatpush3.xpose.msk.msra.mxu1 %vm1581_vm3, %v2949_v58 }
 0x32e   : > { %1449 = vrot.lane.b32.xlu1 %v30141_v11, %s28754_s15  ;;  %6444 = vrot.lane.b32.xlu0 %v29819_v35, %s28753_s14  ;;  %s24076_s15 = scalar_lea.vmem %s35690_s8, %s29397_s17 }
 0x32f   : > { %26523 = vmatprep.subr.mxu0 %v36084_v48  ;;  %26528 = vmatprep.subr.mxu1 %v36084_v48 }
 0x330   : > { %v30207_v2 = vpop.permute.xlu1 %1421  ;;  %26516 = vmatmul.mubr.msk.f32.vlgmr.msra.gmra.mxu0 %vm1581_vm3, %v29837_v43  ;;  %26521 = vmatmul.mubr.msk.f32.vlgmr.msra.gmra.mxu1 %vm1581_vm3, %v29883_v59  ;;  %v30213_v39 = vpop.permute.xlu0 %1423 }
 0x331   : > { %36099 = vst [vmem:[#allocation85_spill] sm:$0xff] %v30207_v2  ;;  %36100 = vst [vmem:[#allocation86_spill] sm:$0xff] %v30213_v39  ;;  %26525 = vmatprep.mubr.msk.f32.mxu0 %vm28751_vm2, %v36084_v48  ;;  %26530 = vmatprep.mubr.msk.f32.mxu1 %vm28751_vm2, %v36084_v48 }
 0x332   : > { %1513 = vrot.lane.b32.xlu1 %v30141_v11, %s28755_s16  ;;  %8876 = vrot.lane.b32.xlu0 %v29829_v36, %s28753_s14  ;;  %s24998_s16 = scalar_lea.vmem %s35693_s11, %s28740_s21 }
 0x334   : > { %v30223_v58 = vpop.permute.xlu1 %1485  ;;  %v30225_v43 = vpop.permute.xlu0 %1487 }
 0x335   : > { %36101 = vst [vmem:[#allocation87_spill] sm:$0xff] %v30223_v58  ;;  %36102 = vst [vmem:[#allocation88_spill] sm:$0xff] %v30225_v43 }
 0x336   : > { %1577 = vrot.lane.b32.xlu1 %v30141_v11, %s28756_s18  ;;  %4164 = vrot.lane.b32.xlu0 %v29877_v13, %s28753_s14  ;;  %s23580_s18 = scalar_lea.vmem %s35688_s6, %s28740_s21 }
 0x338   : > { %v30231_v59 = vpop.permute.xlu1 %1549  ;;  %v30233_v35 = vpop.permute.xlu0 %1551 }
 0x339   : > { %36103 = vst [vmem:[#allocation89_spill] sm:$0xff] %v30231_v59  ;;  %36104 = vst [vmem:[#allocation90_spill] sm:$0xff] %v30233_v35 }
 0x33a   : > { %4088 = vrot.lane.b32.xlu1 %v29789_v26, %s28753_s14  ;;  %6596 = vrot.lane.b32.xlu0 %v29845_v38, %s28753_s14 }
 0x33c   : > { %v3025_v36 = vpop.permute.xlu1 %3024  ;;  %v3101_v31 = vpop.permute.xlu0 %3100 }
 0x33d   : > { %26524 = vmatpush3.xpose.msk.msra.mxu0 %vm1581_vm3, %v3025_v36  ;;  %26529 = vmatpush3.xpose.msk.msra.mxu1 %vm1581_vm3, %v3101_v31 }
 0x33e   : > { %6520 = vrot.lane.b32.xlu1 %v29799_v30, %s28753_s14  ;;  %9028 = vrot.lane.b32.xlu0 %v29855_v46, %s28753_s14 }
 0x33f   : > { %26533 = vmatprep.subr.mxu0 %v36084_v48  ;;  %26538 = vmatprep.subr.mxu1 %v36084_v48 }
 0x340   : > { %v30247_v26 = vpop.permute.xlu1 %1425  ;;  %26526 = vmatmul.mubr.msk.f32.vlgmr.msra.gmra.mxu0 %vm1581_vm3, %v29869_v55  ;;  %26531 = vmatmul.mubr.msk.f32.vlgmr.msra.gmra.mxu1 %vm1581_vm3, %v29935_v33  ;;  %v30253_v36 = vpop.permute.xlu0 %1427 }
 0x341   : > { %36105 = vst [vmem:[#allocation91_spill] sm:$0xff] %v30247_v26  ;;  %36106 = vst [vmem:[#allocation92_spill] sm:$0xff] %v30253_v36  ;;  %26535 = vmatprep.mubr.msk.f32.mxu0 %vm28751_vm2, %v36084_v48  ;;  %26540 = vmatprep.mubr.msk.f32.mxu1 %vm28751_vm2, %v36084_v48 }
 0x342   : > { %8952 = vrot.lane.b32.xlu1 %v29815_v53, %s28753_s14  ;;  %4316 = vrot.lane.b32.xlu0 %v29867_v44, %s28753_s14 }
 0x344   : > { %v30263_v31 = vpop.permute.xlu1 %1489  ;;  %v30265_v55 = vpop.permute.xlu0 %1491 }
 0x345   : > { %36107 = vst [vmem:[#allocation93_spill] sm:$0xff] %v30263_v31  ;;  %36108 = vst [vmem:[#allocation94_spill] sm:$0xff] %v30265_v55 }
 0x346   : > { %4240 = vrot.lane.b32.xlu1 %v29835_v22, %s28753_s14  ;;  %6748 = vrot.lane.b32.xlu0 %v29881_v57, %s28753_s14 }
 0x348   : > { %v30271_v33 = vpop.permute.xlu1 %1553  ;;  %v30273_v46 = vpop.permute.xlu0 %1555 }
 0x349   : > { %36109 = vst [vmem:[#allocation95_spill] sm:$0xff] %v30271_v33  ;;  %36110 = vst [vmem:[#allocation96_spill] sm:$0xff] %v30273_v46 }
 0x34a   : > { %6672 = vrot.lane.b32.xlu1 %v29843_v9, %s28753_s14  ;;  %9180 = vrot.lane.b32.xlu0 %v29897_v28, %s28753_s14 }
 0x34c   : > { %v3177_v53 = vpop.permute.xlu1 %3176  ;;  %v3253_v30 = vpop.permute.xlu0 %3252 }
 0x34d   : > { %26534 = vmatpush3.xpose.msk.msra.mxu0 %vm1581_vm3, %v3177_v53  ;;  %26539 = vmatpush3.xpose.msk.msra.mxu1 %vm1581_vm3, %v3253_v30 }
 0x34e   : > { %9104 = vrot.lane.b32.xlu1 %v29853_v8, %s28753_s14  ;;  %4468 = vrot.lane.b32.xlu0 %v30007_v63, %s28753_s14 }
 0x34f   : > { %26543 = vmatprep.subr.mxu0 %v36084_v48  ;;  %26548 = vmatprep.subr.mxu1 %v36084_v48 }
 0x350   : > { %v30287_v9 = vpop.permute.xlu1 %1429  ;;  %26536 = vmatmul.mubr.msk.f32.vlgmr.msra.gmra.mxu0 %vm1581_vm3, %v29925_v12  ;;  %26541 = vmatmul.mubr.msk.f32.vlgmr.msra.gmra.mxu1 %vm1581_vm3, %v29977_v21  ;;  %v30293_v53 = vpop.permute.xlu0 %1431 }
 0x351   : > { %36111 = vst [vmem:[#allocation97_spill] sm:$0xff] %v30287_v9  ;;  %36112 = vst [vmem:[#allocation98_spill] sm:$0xff] %v30293_v53  ;;  %26545 = vmatprep.mubr.msk.f32.mxu0 %vm28751_vm2, %v36084_v48  ;;  %26550 = vmatprep.mubr.msk.f32.mxu1 %vm28751_vm2, %v36084_v48 }
 0x352   : > { %4392 = vrot.lane.b32.xlu1 %v29919_v45, %s28753_s14  ;;  %6900 = vrot.lane.b32.xlu0 %v29947_v17, %s28753_s14 }
 0x354   : > { %v30303_v30 = vpop.permute.xlu1 %1493  ;;  %v30305_v12 = vpop.permute.xlu0 %1495 }
 0x355   : > { %36113 = vst [vmem:[#allocation99_spill] sm:$0xff] %v30303_v30  ;;  %36114 = vst [vmem:[#allocation100_spill] sm:$0xff] %v30305_v12 }
 0x356   : > { %6824 = vrot.lane.b32.xlu1 %v29933_v34, %s28753_s14  ;;  %9332 = vrot.lane.b32.xlu0 %v29957_v56, %s28753_s14 }
 0x358   : > { %v30311_v21 = vpop.permute.xlu1 %1557  ;;  %v30313_v8 = vpop.f32.mrf.mxu1 }
 0x359   : > { %36115 = vst [vmem:[#allocation101_spill] sm:$0xff] %v30311_v21  ;;  %v30315_v28 = vpop.permute.xlu0 %1559 }
 0x35a   : > { %36116 = vst [vmem:[#allocation102_spill] sm:$0xff] %v30315_v28  ;;  %v26432_v57 = vpop.f32.mrf.mxu1  ;;  %9256 = vrot.lane.b32.xlu1 %v29943_v1, %s28753_s14  ;;  %4620 = vrot.lane.b32.xlu0 %v29991_v25, %s28753_s14 }
 0x35c   : > { %v3329_v17 = vpop.permute.xlu1 %3328  ;;  %v30321_v38 = vpop.f32.mrf.mxu1 }
 0x35d   : > { %36117 = vst [vmem:[#allocation103_spill] sm:$0xff] %v30321_v38  ;;  %v3405_v34 = vpop.permute.xlu0 %3404  ;;  %26544 = vmatpush3.xpose.msk.msra.mxu0 %vm1581_vm3, %v3329_v17 }
 0x35e   : > { %26549 = vmatpush3.xpose.msk.msra.mxu1 %vm1581_vm3, %v3405_v34  ;;  %v26437_v56 = vpop.f32.mrf.mxu1  ;;  %4544 = vrot.lane.b32.xlu1 %v29923_v52, %s28753_s14 }
 0x35f   : > { %7052 = vrot.lane.b32.xlu0 %v30001_v29, %s28753_s14  ;;  %26553 = vmatprep.subr.mxu0 %v36084_v48 }
 0x360   : > { %v30330_v57 = vpop.permute.xlu1 %1433  ;;  %26546 = vmatmul.mubr.msk.f32.vlgmr.msra.gmra.mxu0 %vm1581_vm3, %v29965_v47  ;;  %26558 = vmatprep.subr.mxu1 %v36084_v48 }
 0x361   : > { %36118 = vst [vmem:[#allocation104_spill] sm:$0xff] %v30330_v57  ;;  %26551 = vmatmul.mubr.msk.f32.vlgmr.msra.gmra.mxu1 %vm1581_vm3, %v30019_v18  ;;  %v30337_v34 = vpop.permute.xlu0 %1435  ;;  %26555 = vmatprep.mubr.msk.f32.mxu0 %vm28751_vm2, %v36084_v48 }
 0x362   : > { %36119 = vst [vmem:[#allocation105_spill] sm:$0xff] %v30337_v34  ;;  %6976 = vrot.lane.b32.xlu1 %v29973_v7, %s28753_s14  ;;  %26560 = vmatprep.mubr.msk.f32.mxu1 %vm28751_vm2, %v36084_v48 }
 0x363   : > { %9484 = vrot.lane.b32.xlu0 %v30009_v14, %s28753_s14 }
 0x364   : > { %v30347_v17 = vpop.permute.xlu1 %1497 }
 0x365   : > { %36120 = vst [vmem:[#allocation106_spill] sm:$0xff] %v30347_v17  ;;  %v30349_v56 = vpop.permute.xlu0 %1499 }
 0x366   : > { %36121 = vst [vmem:[#allocation107_spill] sm:$0xff] %v30349_v56  ;;  %9408 = vrot.lane.b32.xlu1 %v29987_v60, %s28753_s14 }
 0x367   : > { %4772 = vrot.lane.b32.xlu0 %v30105_v51, %s28753_s14 }
 0x368   : > { %v30355_v18 = vpop.permute.xlu1 %1561 }
 0x369   : > { %36122 = vst [vmem:[#allocation108_spill] sm:$0xff] %v30355_v18  ;;  %v30357_v47 = vpop.permute.xlu0 %1563 }
 0x36a   : > { %36123 = vst [vmem:[#allocation109_spill] sm:$0xff] %v30357_v47  ;;  %4696 = vrot.lane.b32.xlu1 %v30027_v5, %s28753_s14 }
 0x36b   : > { %7204 = vrot.lane.b32.xlu0 %v30051_v54, %s28753_s14 }
 0x36c   : > { %v3481_v1 = vpop.permute.xlu1 %3480 }
 0x36d   : > { %v3557_v14 = vpop.permute.xlu0 %3556  ;;  %26554 = vmatpush3.xpose.msk.msra.mxu0 %vm1581_vm3, %v3481_v1 }
 0x36e   : > { %26559 = vmatpush3.xpose.msk.msra.mxu1 %vm1581_vm3, %v3557_v14  ;;  %7128 = vrot.lane.b32.xlu1 %v30039_v27, %s28753_s14 }
 0x36f   : > { %9636 = vrot.lane.b32.xlu0 %v30063_v3, %s28753_s14  ;;  %26563 = vmatprep.subr.mxu0 %v36084_v48 }
 0x370   : > { %v30370_v60 = vpop.permute.xlu1 %1437  ;;  %26556 = vmatmul.mubr.msk.f32.vlgmr.msra.gmra.mxu0 %vm1581_vm3, %v30011_v37  ;;  %26568 = vmatprep.subr.mxu1 %v36084_v48 }
 0x371   : > { %36124 = vst [vmem:[#allocation110_spill] sm:$0xff] %v30370_v60  ;;  %26561 = vmatmul.mubr.msk.f32.vlgmr.msra.gmra.mxu1 %vm1581_vm3, %v30065_v10  ;;  %v30377_v1 = vpop.permute.xlu0 %1439  ;;  %26565 = vmatprep.mubr.msk.f32.mxu0 %vm28751_vm2, %v36084_v48 }
 0x372   : > { %36125 = vst [vmem:[#allocation111_spill] sm:$0xff] %v30377_v1  ;;  %9560 = vrot.lane.b32.xlu1 %v30047_v15, %s28753_s14  ;;  %26570 = vmatprep.mubr.msk.f32.mxu1 %vm28751_vm2, %v36084_v48 }
 0x373   : > { %4924 = vrot.lane.b32.xlu0 %v30081_v0, %s28753_s14 }
 0x374   : > { %v30387_v14 = vpop.permute.xlu1 %1501 }
 0x375   : > { %36126 = vst [vmem:[#allocation112_spill] sm:$0xff] %v30387_v14  ;;  %v30389_v37 = vpop.permute.xlu0 %1503 }
 0x376   : > { %36127 = vst [vmem:[#allocation113_spill] sm:$0xff] %v30389_v37  ;;  %4848 = vrot.lane.b32.xlu1 %v30031_v19, %s28753_s14 }
 0x377   : > { %7356 = vrot.lane.b32.xlu0 %v30095_v6, %s28753_s14 }
 0x378   : > { %v30395_v10 = vpop.permute.xlu1 %1565  ;;  %v30397_v3 = vpop.f32.mrf.mxu1 }
 0x379   : > { %36128 = vst [vmem:[#allocation114_spill] sm:$0xff] %v30395_v10  ;;  %36129 = vst [vmem:[#allocation115_spill] sm:$0xff] %v30397_v3  ;;  %v30399_v15 = vpop.permute.xlu0 %1567 }
 0x37a   : > { %36130 = vst [vmem:[#allocation116_spill] sm:$0xff] %v30399_v15  ;;  %v26442_v27 = vpop.f32.mrf.mxu1  ;;  %7280 = vrot.lane.b32.xlu1 %v30077_v42, %s28753_s14  ;;  %v36138_v42 = vld [vmem:[#allocation73_spill] sm:$0xff] }
 0x37b   : > { %9788 = vrot.lane.b32.xlu0 %v30107_v62, %s28753_s14 }
 0x37c   : > { %v3633_v7 = vpop.permute.xlu1 %3632  ;;  %v30405_v54 = vpop.f32.mrf.mxu1 }
 0x37d   : > { %36131 = vst [vmem:[#allocation117_spill] sm:$0xff] %v30405_v54  ;;  %v3709_v29 = vpop.permute.xlu0 %3708  ;;  %26564 = vmatpush3.xpose.msk.msra.mxu0 %vm1581_vm3, %v3633_v7  ;;  %v36142_v54 = vld [vmem:[#allocation76_spill] sm:$0xff] }
 0x37e   : > { %26569 = vmatpush3.xpose.msk.msra.mxu1 %vm1581_vm3, %v3709_v29  ;;  %v26447_v6 = vpop.f32.mrf.mxu1  ;;  %9712 = vrot.lane.b32.xlu1 %v30091_v49, %s28753_s14 }
 0x37f   : > { %5076 = vrot.lane.b32.xlu0 %v30125_v23, %s28753_s14  ;;  %26573 = vmatprep.subr.mxu0 %v36084_v48 }
 0x380   : > { %v30414_v27 = vpop.permute.xlu1 %1441  ;;  %v30416_v62 = vpop.f32.mrf.mxu1  ;;  %26566 = vmatmul.mubr.msk.f32.vlgmr.msra.gmra.mxu0 %vm1581_vm3, %v30053_v61  ;;  %26578 = vmatprep.subr.mxu1 %v36084_v48 }
 0x381   : > { %36132 = vst [vmem:[#allocation118_spill] sm:$0xff] %v30414_v27  ;;  %36133 = vst [vmem:[#allocation119_spill] sm:$0xff] %v30416_v62  ;;  %26571 = vmatmul.mubr.msk.f32.vlgmr.msra.gmra.mxu1 %vm1581_vm3, %v30109_v24  ;;  %v30423_v6 = vpop.permute.xlu0 %1443  ;;  %26575 = vmatprep.mubr.msk.f32.mxu0 %vm28751_vm2, %v36084_v48 }
 0x382   : > { %36134 = vst [vmem:[#allocation120_spill] sm:$0xff] %v30423_v6  ;;  %v26452_v7 = vpop.f32.mrf.mxu1  ;;  %5000 = vrot.lane.b32.xlu1 %v30121_v32, %s28753_s14  ;;  %26580 = vmatprep.mubr.msk.f32.mxu1 %vm28751_vm2, %v36084_v48 }
 0x383   : > { %7508 = vrot.lane.b32.xlu0 %v30139_v4, %s28753_s14  ;;  %v36139_v7 = vld [vmem:[#allocation77_spill] sm:$0xff] }
 0x384   : > { %v30433_v29 = vpop.permute.xlu1 %1505  ;;  %v30435_v61 = vpop.f32.mrf.mxu1 }
 0x385   : > { %36135 = vst [vmem:[#allocation121_spill] sm:$0xff] %v30433_v29  ;;  %36136 = vst [vmem:[#allocation122_spill] sm:$0xff] %v30435_v61  ;;  %v30437_v24 = vpop.permute.xlu0 %1507 }
 0x386   : > { %36137 = vst [vmem:[#allocation123_spill] sm:$0xff] %v30437_v24  ;;  %v26457_v49 = vpop.f32.mrf.mxu1  ;;  %7432 = vrot.lane.b32.xlu1 %v36138_v42, %s28753_s14 }
 0x387   : > { %9940 = vrot.lane.b32.xlu0 %v36139_v7, %s28753_s14  ;;  %v36144_v7 = vld [vmem:[#allocation79_spill] sm:$0xff] }
 0x388   : > { %v30443_v38 = vpop.permute.xlu1 %1569 }
 0x389   : > { %36140 = vst [vmem:[#allocation124_spill] sm:$0xff] %v30443_v38  ;;  %v30445_v62 = vpop.permute.xlu0 %1571 }
 0x38a   : > { %36141 = vst [vmem:[#allocation125_spill] sm:$0xff] %v30445_v62  ;;  %9864 = vrot.lane.b32.xlu1 %v36142_v54, %s28753_s14 }
 0x38b   : > { %5228 = vrot.lane.b32.xlu0 %v30169_v40, %s28753_s14 }
 0x38c   : > { %v3785_v4 = vpop.permute.xlu1 %3784  ;;  %v30451_v61 = vpop.f32.mrf.mxu1 }
 0x38d   : > { %36143 = vst [vmem:[#allocation126_spill] sm:$0xff] %v30451_v61  ;;  %v3861_v49 = vpop.permute.xlu0 %3860  ;;  %26574 = vmatpush3.xpose.msk.msra.mxu0 %vm1581_vm3, %v3785_v4 }
 0x38e   : > { %26579 = vmatpush3.xpose.msk.msra.mxu1 %vm1581_vm3, %v3861_v49  ;;  %v26462_v42 = vpop.f32.mrf.mxu1  ;;  %5152 = vrot.lane.b32.xlu1 %v36144_v7, %s28753_s14 }
 0x38f   : > { %7660 = vrot.lane.b32.xlu0 %v30183_v20, %s28753_s14  ;;  %26583 = vmatprep.subr.mxu0 %v36084_v48  ;;  %v36147_v42 = vld [vmem:[#allocation81_spill] sm:$0xff] }
 0x390   : > { %v30460_v54 = vpop.permute.xlu1 %1445  ;;  %26576 = vmatmul.mubr.msk.f32.vlgmr.msra.gmra.mxu0 %vm1581_vm3, %v30097_v50  ;;  %26588 = vmatprep.subr.mxu1 %v36084_v48 }
 0x391   : > { %36145 = vst [vmem:[#allocation127_spill] sm:$0xff] %v30460_v54  ;;  %26581 = vmatmul.mubr.msk.f32.vlgmr.msra.gmra.mxu1 %vm1581_vm3, %v30153_v41  ;;  %v30467_v4 = vpop.permute.xlu0 %1447  ;;  %26585 = vmatprep.mubr.msk.f32.mxu0 %vm28751_vm2, %v36084_v48  ;;  %v36150_v41 = vld [vmem:[#allocation83_spill] sm:$0xff] }
 0x392   : > { %36146 = vst [vmem:[#allocation128_spill] sm:$0xff] %v30467_v4  ;;  %7584 = vrot.lane.b32.xlu1 %v36147_v42, %s28753_s14  ;;  %26590 = vmatprep.mubr.msk.f32.mxu1 %vm28751_vm2, %v36084_v48 }
 0x393   : > { %10092 = vrot.lane.b32.xlu0 %v30193_v16, %s28753_s14 }
 0x394   : > { %v30477_v49 = vpop.permute.xlu1 %1509 }
 0x395   : > { %36148 = vst [vmem:[#allocation129_spill] sm:$0xff] %v30477_v49  ;;  %v30479_v50 = vpop.permute.xlu0 %1511 }
 0x396   : > { %36149 = vst [vmem:[#allocation130_spill] sm:$0xff] %v30479_v50  ;;  %10016 = vrot.lane.b32.xlu1 %v36150_v41, %s28753_s14 }
 0x397   : > { %5380 = vrot.lane.b32.xlu0 %v30213_v39, %s28753_s14 }
 0x398   : > { %v30485_v20 = vpop.permute.xlu1 %1573  ;;  %v30487_v61 = vpop.f32.mrf.mxu1 }
 0x399   : > { %36151 = vst [vmem:[#allocation131_spill] sm:$0xff] %v30485_v20  ;;  %v30489_v42 = vpop.permute.xlu0 %1575 }
 0x39a   : > { %36152 = vst [vmem:[#allocation132_spill] sm:$0xff] %v30489_v42  ;;  %v26467_v3 = vpop.f32.mrf.mxu1  ;;  %5304 = vrot.lane.b32.xlu1 %v30207_v2, %s28753_s14 }
 0x39b   : > { %7812 = vrot.lane.b32.xlu0 %v30225_v43, %s28753_s14  ;;  %v36154_v43 = vld [vmem:[#allocation10_spill] sm:$0xff] }
 0x39c   : > { %v3937_v16 = vpop.permute.xlu1 %3936  ;;  %v30495_v7 = vpop.f32.mrf.mxu1 }
 0x39d   : > { %v4013_v41 = vpop.permute.xlu0 %4012  ;;  %26584 = vmatpush3.xpose.msk.msra.mxu0 %vm1581_vm3, %v3937_v16 }
 0x39e   : > { %26589 = vmatpush3.xpose.msk.msra.mxu1 %vm1581_vm3, %v4013_v41  ;;  %v26472_v39 = vpop.f32.mrf.mxu1  ;;  %7736 = vrot.lane.b32.xlu1 %v30223_v58, %s28753_s14 }
 0x39f   : > { %10244 = vrot.lane.b32.xlu0 %v30233_v35, %s28753_s14  ;;  %26598 = vmatprep.subr.mxu1 %v36084_v48 }
 0x3a0   : > { %26586 = vmatmul.mubr.msk.f32.vlgmr.msra.gmra.mxu0 %vm1581_vm3, %v30141_v11  ;;  %v30506_v3 = vpop.permute.xlu1 %1449  ;;  %26593 = vmatprep.subr.mxu0 %v36084_v48 }
 0x3a1   : > { %36153 = vst [vmem:[#allocation133_spill] sm:$0xff] %v30506_v3  ;;  %26591 = vmatmul.mubr.msk.f32.vlgmr.msra.gmra.mxu1 %vm1581_vm3, %v36154_v43  ;;  %v30511_v41 = vpop.permute.xlu0 %6444  ;;  %26595 = vmatprep.mubr.msk.f32.mxu0 %vm28751_vm2, %v36084_v48 }
 0x3a2   : > { %10168 = vrot.lane.b32.xlu1 %v30231_v59, %s28753_s14  ;;  %26600 = vmatprep.mubr.msk.f32.mxu1 %vm28751_vm2, %v36084_v48 }
 0x3a3   : > { %5532 = vrot.lane.b32.xlu0 %v30253_v36, %s28753_s14 }
 0x3a4   : > { %v30521_v16 = vpop.permute.xlu1 %1513 }
 0x3a5   : > { %36155 = vst [vmem:[#allocation134_spill] sm:$0xff] %v30521_v16  ;;  %v30523_v39 = vpop.permute.xlu0 %8876 }
 0x3a6   : > { %36156 = vst [vmem:[#allocation135_spill] sm:$0xff] %v30523_v39  ;;  %5456 = vrot.lane.b32.xlu1 %v30247_v26, %s28753_s14 }
 0x3a7   : > { %7964 = vrot.lane.b32.xlu0 %v30265_v55, %s28753_s14 }
 0x3a8   : > { %v30529_v43 = vpop.permute.xlu1 %1577 }
 0x3a9   : > { %36157 = vst [vmem:[#allocation136_spill] sm:$0xff] %v30529_v43  ;;  %v4165_v11 = vpop.permute.xlu0 %4164 }
 0x3aa   : > { %26599 = vmatpush3.xpose.msk.msra.mxu1 %vm1581_vm3, %v4165_v11  ;;  %7888 = vrot.lane.b32.xlu1 %v30263_v31, %s28753_s14  ;;  %v36158_v11 = vld [vmem:[#allocation7_spill] sm:$0xff] }
 0x3ab   : > { %10396 = vrot.lane.b32.xlu0 %v30273_v46, %s28753_s14  ;;  %26608 = vmatprep.subr.mxu1 %v36084_v48 }
 0x3ac   : > { %v4089_v59 = vpop.permute.xlu1 %4088  ;;  %v30537_v35 = vpop.f32.mrf.mxu1 }
 0x3ad   : > { %26601 = vmatmul.mubr.msk.f32.vlgmr.msra.gmra.mxu1 %vm1581_vm3, %v29877_v13  ;;  %v30541_v39 = vpop.permute.xlu0 %6596  ;;  %26594 = vmatpush3.xpose.msk.msra.mxu0 %vm1581_vm3, %v4089_v59 }
 0x3ae   : > { %v26477_v58 = vpop.f32.mrf.mxu1  ;;  %10320 = vrot.lane.b32.xlu1 %v30271_v33, %s28753_s14  ;;  %26610 = vmatprep.mubr.msk.f32.mxu1 %vm28751_vm2, %v36084_v48 }
 0x3af   : > { %5684 = vrot.lane.b32.xlu0 %v30293_v53, %s28753_s14  ;;  %26603 = vmatprep.subr.mxu0 %v36084_v48 }
 0x3b0   : > { %26596 = vmatmul.mubr.msk.f32.vlgmr.msra.gmra.mxu0 %vm1581_vm3, %v36158_v11  ;;  %v30553_v13 = vpop.permute.xlu1 %6520 }
 0x3b1   : > { %v30555_v46 = vpop.permute.xlu0 %9028  ;;  %26605 = vmatprep.mubr.msk.f32.mxu0 %vm28751_vm2, %v36084_v48 }
 0x3b2   : > { %36159 = vst [vmem:[#allocation137_spill] sm:$0xff] %v30555_v46  ;;  %5608 = vrot.lane.b32.xlu1 %v30287_v9, %s28753_s14 }
 0x3b3   : > { %8116 = vrot.lane.b32.xlu0 %v30305_v12, %s28753_s14 }
 0x3b4   : > { %v30563_v59 = vpop.permute.xlu1 %8952  ;;  %v30565_v58 = vpop.f32.mrf.mxu1 }
 0x3b5   : > { %36160 = vst [vmem:[#allocation138_spill] sm:$0xff] %v30563_v59  ;;  %v4317_v33 = vpop.permute.xlu0 %4316 }
 0x3b6   : > { %26609 = vmatpush3.xpose.msk.msra.mxu1 %vm1581_vm3, %v4317_v33  ;;  %8040 = vrot.lane.b32.xlu1 %v30303_v30, %s28753_s14  ;;  %v26482_v11 = vpop.f32.mrf.mxu1 }
 0x3b7   : > { %10548 = vrot.lane.b32.xlu0 %v30315_v28, %s28753_s14  ;;  %26618 = vmatprep.subr.mxu1 %v36084_v48 }
 0x3b8   : > { %v4241_v46 = vpop.permute.xlu1 %4240 }
 0x3b9   : > { %26611 = vmatmul.mubr.msk.f32.vlgmr.msra.gmra.mxu1 %vm1581_vm3, %v29867_v44  ;;  %v30575_v31 = vpop.permute.xlu0 %6748  ;;  %26604 = vmatpush3.xpose.msk.msra.mxu0 %vm1581_vm3, %v4241_v46 }
 0x3ba   : > { %10472 = vrot.lane.b32.xlu1 %v30311_v21, %s28753_s14  ;;  %26620 = vmatprep.mubr.msk.f32.mxu1 %vm28751_vm2, %v36084_v48 }
 0x3bb   : > { %5836 = vrot.lane.b32.xlu0 %v30337_v34, %s28753_s14  ;;  %26613 = vmatprep.subr.mxu0 %v36084_v48 }
 0x3bc   : > { %26606 = vmatmul.mubr.msk.f32.vlgmr.msra.gmra.mxu0 %vm1581_vm3, %v29835_v22  ;;  %v30587_v33 = vpop.permute.xlu1 %6672 }
 0x3bd   : > { %v30589_v11 = vpop.permute.xlu0 %9180  ;;  %26615 = vmatprep.mubr.msk.f32.mxu0 %vm28751_vm2, %v36084_v48 }
 0x3be   : > { %36161 = vst [vmem:[#allocation139_spill] sm:$0xff] %v30589_v11  ;;  %5760 = vrot.lane.b32.xlu1 %v30330_v57, %s28753_s14 }
 0x3bf   : > { %8268 = vrot.lane.b32.xlu0 %v30349_v56, %s28753_s14 }
 0x3c0   : > { %v30597_v46 = vpop.permute.xlu1 %9104  ;;  %v30599_v44 = vpop.f32.mrf.mxu1 }
 0x3c1   : > { %36162 = vst [vmem:[#allocation140_spill] sm:$0xff] %v30597_v46  ;;  %v4469_v21 = vpop.permute.xlu0 %4468 }
 0x3c2   : > { %26619 = vmatpush3.xpose.msk.msra.mxu1 %vm1581_vm3, %v4469_v21  ;;  %8192 = vrot.lane.b32.xlu1 %v30347_v17, %s28753_s14  ;;  %v26487_v22 = vpop.f32.mrf.mxu1 }
 0x3c3   : > { %10700 = vrot.lane.b32.xlu0 %v30357_v47, %s28753_s14  ;;  %26628 = vmatprep.subr.mxu1 %v36084_v48 }
 0x3c4   : > { %v4393_v28 = vpop.permute.xlu1 %4392  ;;  %v30607_v59 = vpop.f32.mrf.mxu1 }
 0x3c5   : > { %26621 = vmatmul.mubr.msk.f32.vlgmr.msra.gmra.mxu1 %vm1581_vm3, %v30007_v63  ;;  %v30611_v46 = vpop.permute.xlu0 %6900  ;;  %26614 = vmatpush3.xpose.msk.msra.mxu0 %vm1581_vm3, %v4393_v28 }
 0x3c6   : > { %10624 = vrot.lane.b32.xlu1 %v30355_v18, %s28753_s14  ;;  %v26492_v21 = vpop.f32.mrf.mxu1  ;;  %26630 = vmatprep.mubr.msk.f32.mxu1 %vm28751_vm2, %v36084_v48 }
 0x3c7   : > { %5988 = vrot.lane.b32.xlu0 %v30377_v1, %s28753_s14  ;;  %26623 = vmatprep.subr.mxu0 %v36084_v48 }
 0x3c8   : > { %26616 = vmatmul.mubr.msk.f32.vlgmr.msra.gmra.mxu0 %vm1581_vm3, %v29919_v45  ;;  %v30623_v22 = vpop.permute.xlu1 %6824 }
 0x3c9   : > { %v30625_v63 = vpop.permute.xlu0 %9332  ;;  %26625 = vmatprep.mubr.msk.f32.mxu0 %vm28751_vm2, %v36084_v48 }
 0x3ca   : > { %36163 = vst [vmem:[#allocation141_spill] sm:$0xff] %v30625_v63  ;;  %5912 = vrot.lane.b32.xlu1 %v30370_v60, %s28753_s14 }
 0x3cb   : > { %8420 = vrot.lane.b32.xlu0 %v30389_v37, %s28753_s14 }
 0x3cc   : > { %v30633_v28 = vpop.permute.xlu1 %9256 }
 0x3cd   : > { %36164 = vst [vmem:[#allocation142_spill] sm:$0xff] %v30633_v28  ;;  %v4621_v21 = vpop.permute.xlu0 %4620 }
 0x3ce   : > { %26629 = vmatpush3.xpose.msk.msra.mxu1 %vm1581_vm3, %v4621_v21  ;;  %8344 = vrot.lane.b32.xlu1 %v30387_v14, %s28753_s14 }
 0x3cf   : > { %10852 = vrot.lane.b32.xlu0 %v30399_v15, %s28753_s14  ;;  %26638 = vmatprep.subr.mxu1 %v36084_v48 }
 0x3d0   : > { %v4545_v45 = vpop.permute.xlu1 %4544  ;;  %v30641_v18 = vpop.f32.mrf.mxu1 }
 0x3d1   : > { %26631 = vmatmul.mubr.msk.f32.vlgmr.msra.gmra.mxu1 %vm1581_vm3, %v29991_v25  ;;  %v30645_v47 = vpop.permute.xlu0 %7052  ;;  %26624 = vmatpush3.xpose.msk.msra.mxu0 %vm1581_vm3, %v4545_v45 }
 0x3d2   : > { %10776 = vrot.lane.b32.xlu1 %v30395_v10, %s28753_s14  ;;  %v26497_v21 = vpop.f32.mrf.mxu1  ;;  %26640 = vmatprep.mubr.msk.f32.mxu1 %vm28751_vm2, %v36084_v48 }
 0x3d3   : > { %6140 = vrot.lane.b32.xlu0 %v30423_v6, %s28753_s14  ;;  %26633 = vmatprep.subr.mxu0 %v36084_v48 }
 0x3d4   : > { %26626 = vmatmul.mubr.msk.f32.vlgmr.msra.gmra.mxu0 %vm1581_vm3, %v29923_v52  ;;  %v30657_v25 = vpop.permute.xlu1 %6976  ;;  %v30659_v15 = vpop.f32.mrf.mxu1 }
 0x3d5   : > { %v30661_v45 = vpop.permute.xlu0 %9484  ;;  %26635 = vmatprep.mubr.msk.f32.mxu0 %vm28751_vm2, %v36084_v48 }
 0x3d6   : > { %36165 = vst [vmem:[#allocation143_spill] sm:$0xff] %v30661_v45  ;;  %6064 = vrot.lane.b32.xlu1 %v30414_v27, %s28753_s14  ;;  %v26502_v21 = vpop.f32.mrf.mxu1 }
 0x3d7   : > { %8572 = vrot.lane.b32.xlu0 %v30437_v24, %s28753_s14 }
 0x3d8   : > { %v30669_v10 = vpop.permute.xlu1 %9408 }
 0x3d9   : > { %36166 = vst [vmem:[#allocation144_spill] sm:$0xff] %v30669_v10  ;;  %v4773_v28 = vpop.permute.xlu0 %4772 }
 0x3da   : > { %26639 = vmatpush3.xpose.msk.msra.mxu1 %vm1581_vm3, %v4773_v28  ;;  %8496 = vrot.lane.b32.xlu1 %v30433_v29, %s28753_s14 }
 0x3db   : > { %11004 = vrot.lane.b32.xlu0 %v30445_v62, %s28753_s14  ;;  %26648 = vmatprep.subr.mxu1 %v36084_v48 }
 0x3dc   : > { %v4697_v52 = vpop.permute.xlu1 %4696 }
 0x3dd   : > { %26641 = vmatmul.mubr.msk.f32.vlgmr.msra.gmra.mxu1 %vm1581_vm3, %v30105_v51  ;;  %v30679_v21 = vpop.permute.xlu0 %7204  ;;  %26634 = vmatpush3.xpose.msk.msra.mxu0 %vm1581_vm3, %v4697_v52 }
 0x3de   : > { %10928 = vrot.lane.b32.xlu1 %v30443_v38, %s28753_s14  ;;  %26650 = vmatprep.mubr.msk.f32.mxu1 %vm28751_vm2, %v36084_v48 }
 0x3df   : > { %6292 = vrot.lane.b32.xlu0 %v30467_v4, %s28753_s14  ;;  %26643 = vmatprep.subr.mxu0 %v36084_v48 }
 0x3e0   : > { %26636 = vmatmul.mubr.msk.f32.vlgmr.msra.gmra.mxu0 %vm1581_vm3, %v30027_v5  ;;  %v30691_v28 = vpop.permute.xlu1 %7128  ;;  %v30693_v51 = vpop.f32.mrf.mxu1 }
 0x3e1   : > { %v30695_v62 = vpop.permute.xlu0 %9636  ;;  %26645 = vmatprep.mubr.msk.f32.mxu0 %vm28751_vm2, %v36084_v48 }
 0x3e2   : > { %36167 = vst [vmem:[#allocation145_spill] sm:$0xff] %v30695_v62  ;;  %6216 = vrot.lane.b32.xlu1 %v30460_v54, %s28753_s14  ;;  %v26507_v52 = vpop.f32.mrf.mxu1 }
 0x3e3   : > { %8724 = vrot.lane.b32.xlu0 %v30479_v50, %s28753_s14  ;;  %v36183_v50 = vld [vmem:[#allocation86_spill] sm:$0xff] }
 0x3e4   : > { %v30703_v38 = vpop.permute.xlu1 %9560  ;;  %v30705_v10 = vpop.f32.mrf.mxu1 }
 0x3e5   : > { %36168 = vst [vmem:[#allocation146_spill] sm:$0xff] %v30703_v38  ;;  %v4925_v5 = vpop.permute.xlu0 %4924 }
 0x3e6   : > { %26649 = vmatpush3.xpose.msk.msra.mxu1 %vm1581_vm3, %v4925_v5  ;;  %8648 = vrot.lane.b32.xlu1 %v30477_v49, %s28753_s14  ;;  %v26512_v62 = vpop.f32.mrf.mxu1  ;;  %v36175_v49 = vld [vmem:[#allocation115_spill] sm:$0xff] }
 0x3e7   : > { %11156 = vrot.lane.b32.xlu0 %v30489_v42, %s28753_s14  ;;  %26658 = vmatprep.subr.mxu1 %v36084_v48  ;;  %v30785_v11 = vmul.f32 0.35355338, %v36175_v49 }
 0x3e8   : > { %v4849_v52 = vpop.permute.xlu1 %4848 }
 0x3e9   : > { %26651 = vmatmul.mubr.msk.f32.vlgmr.msra.gmra.mxu1 %vm1581_vm3, %v30081_v0  ;;  %v30715_v45 = vpop.permute.xlu0 %7356  ;;  %26644 = vmatpush3.xpose.msk.msra.mxu0 %vm1581_vm3, %v4849_v52  ;;  %36176 = vst [vmem:[#allocation115_spill] sm:$0xff] %v30785_v11  ;;  %v11442_v14 = vsel %vm1581_vm3, %v30785_v11, -inf }
 0x3ea   : > { %11080 = vrot.lane.b32.xlu1 %v30485_v20, %s28753_s14  ;;  %26660 = vmatprep.mubr.msk.f32.mxu1 %vm28751_vm2, %v36084_v48 }
 0x3eb   : > { %26653 = vmatprep.subr.mxu0 %v36084_v48 }
 0x3ec   : > { %26646 = vmatmul.mubr.msk.f32.vlgmr.msra.gmra.mxu0 %vm1581_vm3, %v30031_v19  ;;  %v30725_v62 = vpop.permute.xlu1 %7280 }
 0x3ed   : > { %v30727_v5 = vpop.permute.xlu0 %9788  ;;  %26655 = vmatprep.mubr.msk.f32.mxu0 %vm28751_vm2, %v36084_v48 }
 0x3ee   : > { %36169 = vst [vmem:[#allocation147_spill] sm:$0xff] %v30727_v5  ;;  %6368 = vrot.lane.b32.xlu1 %v30506_v3, %s28753_s14 }
 0x3f0   : > { %v30733_v52 = vpop.f32.mrf.mxu0  ;;  %v30735_v0 = vpop.permute.xlu1 %9712 }
 0x3f1   : > { %36170 = vst [vmem:[#allocation148_spill] sm:$0xff] %v30735_v0  ;;  %v30737_v20 = vpop.f32.mrf.mxu1  ;;  %v5077_v42 = vpop.permute.xlu0 %5076  ;;  %v30768_v0 = vmul.f32 0.35355338, %v30313_v8 }
 0x3f2   : > { %26659 = vmatpush3.xpose.msk.msra.mxu1 %vm1581_vm3, %v5077_v42  ;;  %v26517_v19 = vpop.f32.mrf.mxu0  ;;  %8800 = vrot.lane.b32.xlu1 %v30521_v16, %s28753_s14  ;;  %v36174_v16 = vld [vmem:[#allocation79_spill] sm:$0xff] }
 0x3f3   : > { %v26522_v38 = vpop.f32.mrf.mxu1  ;;  %26668 = vmatprep.subr.mxu1 %v36084_v48  ;;  %36173 = vst [vmem:[#allocation151_spill] sm:$0xff] %v30768_v0 }
 0x3f4   : > { %v5001_v5 = vpop.permute.xlu1 %5000 }
 0x3f5   : > { %26661 = vmatmul.mubr.msk.f32.vlgmr.msra.gmra.mxu1 %vm1581_vm3, %v30125_v23  ;;  %v30745_v63 = vpop.permute.xlu0 %7508  ;;  %26654 = vmatpush3.xpose.msk.msra.mxu0 %vm1581_vm3, %v5001_v5 }
 0x3f6   : > { %11232 = vrot.lane.b32.xlu1 %v30529_v43, %s28753_s14  ;;  %26670 = vmatprep.mubr.msk.f32.mxu1 %vm28751_vm2, %v36084_v48  ;;  %s24081_s14 = scalar_lea.vmem %s35691_s9, %s28740_s21 }
 0x3f7   : > { %26663 = vmatprep.subr.mxu0 %v36084_v48 }
 0x3f8   : > { %26656 = vmatmul.mubr.msk.f32.vlgmr.msra.gmra.mxu0 %vm1581_vm3, %v30121_v32  ;;  %v30755_v38 = vpop.permute.xlu1 %7432 }
 0x3f9   : > { %v30757_v19 = vpop.permute.xlu0 %9940  ;;  %26665 = vmatprep.mubr.msk.f32.mxu0 %vm28751_vm2, %v36084_v48 }
 0x3fa   : > { %36171 = vst [vmem:[#allocation149_spill] sm:$0xff] %v30757_v19 }
 0x3fc   : > { %v30761_v42 = vpop.permute.xlu1 %9864 }
 0x3fd   : > { %36172 = vst [vmem:[#allocation150_spill] sm:$0xff] %v30761_v42  ;;  %v5229_v5 = vpop.permute.xlu0 %5228 }
 0x3fe   : > { %26669 = vmatpush3.xpose.msk.msra.mxu1 %vm1581_vm3, %v5229_v5 }
 0x3ff   : > { %26678 = vmatprep.subr.mxu1 %v36084_v48 }
 0x400   : > { %v30765_v23 = vpop.f32.mrf.mxu0  ;;  %v5153_v43 = vpop.permute.xlu1 %5152 }
 0x401   : > { %v30770_v32 = vpop.f32.mrf.mxu1  ;;  %26671 = vmatmul.mubr.msk.f32.vlgmr.msra.gmra.mxu1 %vm1581_vm3, %v30169_v40  ;;  %v30774_v19 = vpop.permute.xlu0 %7660  ;;  %26664 = vmatpush3.xpose.msk.msra.mxu0 %vm1581_vm3, %v5153_v43  ;;  %v11436_v43 = vsel %vm1581_vm3, %v30768_v0, -inf  ;;  %v36181_v0 = vld [vmem:[#allocation119_spill] sm:$0xff] }
 0x402   : > { %v26527_v42 = vpop.f32.mrf.mxu0  ;;  %26680 = vmatprep.mubr.msk.f32.mxu1 %vm28751_vm2, %v36084_v48  ;;  %26673 = vmatprep.subr.mxu0 %v36084_v48 }
 0x403   : > { %v26532_v5 = vpop.f32.mrf.mxu1 }
 0x404   : > { %26666 = vmatmul.mubr.msk.f32.vlgmr.msra.gmra.mxu0 %vm1581_vm3, %v36174_v16  ;;  %v30782_v8 = vpop.permute.xlu1 %7584  ;;  %v36179_v5 = vld [vmem:[#allocation117_spill] sm:$0xff] }
 0x405   : > { %v30787_v40 = vpop.permute.xlu0 %10092  ;;  %26675 = vmatprep.mubr.msk.f32.mxu0 %vm28751_vm2, %v36084_v48  ;;  %v30796_v29 = vmul.f32 0.35355338, %v36179_v5 }
 0x406   : > { %36177 = vst [vmem:[#allocation152_spill] sm:$0xff] %v30787_v40  ;;  %11437 = vmax.xlane.f32.xlu0 %v11436_v43  ;;  %v30803_v40 = vmul.f32 0.35355338, %v36181_v0 }
 0x407   : > { %36180 = vst [vmem:[#allocation117_spill] sm:$0xff] %v30796_v29  ;;  %v11445_v5 = vsel %vm1581_vm3, %v30796_v29, -inf }
 0x408   : > { %v30793_v42 = vpop.permute.xlu1 %10016  ;;  %36182 = vst [vmem:[#allocation119_spill] sm:$0xff] %v30803_v40 }
 0x409   : > { %36178 = vst [vmem:[#allocation153_spill] sm:$0xff] %v30793_v42  ;;  %v5381_v16 = vpop.permute.xlu0 %5380 }
 0x40a   : > { %11443 = vmax.xlane.f32.xlu0 %v11442_v14  ;;  %26679 = vmatpush3.xpose.msk.msra.mxu1 %vm1581_vm3, %v5381_v16  ;;  %v36184_v16 = vld [vmem:[#allocation126_spill] sm:$0xff] }
 0x40b   : > { %26688 = vmatprep.subr.mxu1 %v36084_v48 }
 0x40c   : > { %v5305_v49 = vpop.permute.xlu1 %5304 }
 0x40d   : > { %26681 = vmatmul.mubr.msk.f32.vlgmr.msra.gmra.mxu1 %vm1581_vm3, %v36183_v50  ;;  %v30807_v43 = vpop.permute.xlu0 %7812  ;;  %26674 = vmatpush3.xpose.msk.msra.mxu0 %vm1581_vm3, %v5305_v49  ;;  %v30822_v50 = vmul.f32 0.35355338, %v36184_v16  ;;  %v30838_v16 = vmul.f32 0.35355338, %v30495_v7 }
 0x40e   : > { %11446 = vmax.xlane.f32.xlu0 %v11445_v5  ;;  %26690 = vmatprep.mubr.msk.f32.mxu1 %vm28751_vm2, %v36084_v48  ;;  %v11448_v5 = vsel %vm1581_vm3, %v30803_v40, -inf  ;;  %v30848_v40 = vmul.f32 0.35355338, %v30565_v58 }
 0x40f   : > { %26683 = vmatprep.subr.mxu0 %v36084_v48  ;;  %36185 = vst [vmem:[#allocation126_spill] sm:$0xff] %v30822_v50  ;;  %36189 = vst [vmem:[#allocation155_spill] sm:$0xff] %v30838_v16  ;;  %v11460_v7 = vsel %vm1581_vm3, %v30838_v16, -inf }
 0x410   : > { %v30815_v14 = vpop.f32.mrf.mxu0  ;;  %26676 = vmatmul.mubr.msk.f32.vlgmr.msra.gmra.mxu0 %vm1581_vm3, %v30207_v2  ;;  %v30819_v0 = vpop.permute.xlu1 %7736  ;;  %v36187_v2 = vld [vmem:[#allocation103_spill] sm:$0xff]  ;;  %36192 = vst [vmem:[#allocation156_spill] sm:$0xff] %v30848_v40 }
 0x411   : > { %v30824_v49 = vpop.f32.mrf.mxu1  ;;  %v30826_v11 = vpop.permute.xlu0 %10244  ;;  %26685 = vmatprep.mubr.msk.f32.mxu0 %vm28751_vm2, %v36084_v48  ;;  %v30835_v24 = vmul.f32 0.35355338, %v36187_v2 }
 0x412   : > { %36186 = vst [vmem:[#allocation154_spill] sm:$0xff] %v30826_v11  ;;  %11449 = vmax.xlane.f32.xlu0 %v11448_v5  ;;  %v26537_v29 = vpop.f32.mrf.mxu0  ;;  %v11454_v11 = vsel %vm1581_vm3, %v30822_v50, -inf }
 0x413   : > { %v26542_v42 = vpop.f32.mrf.mxu1  ;;  %36188 = vst [vmem:[#allocation103_spill] sm:$0xff] %v30835_v24  ;;  %v36190_v29 = vld [vmem:[#allocation122_spill] sm:$0xff] }
 0x414   : > { %v30832_v17 = vpop.permute.xlu1 %10168  ;;  %v30845_v42 = vmul.f32 0.35355338, %v36190_v29  ;;  %v11466_v29 = vsel %vm1581_vm3, %v30848_v40, -inf }
 0x415   : > { %v5533_v30 = vpop.permute.xlu0 %5532 }
 0x416   : > { %11455 = vmax.xlane.f32.xlu0 %v11454_v11  ;;  %26689 = vmatpush3.xpose.msk.msra.mxu1 %vm1581_vm3, %v5533_v30  ;;  %36191 = vst [vmem:[#allocation122_spill] sm:$0xff] %v30845_v42  ;;  %v11439_v30 = vsel %vm1581_vm3, %v30835_v24, -inf  ;;  %v30867_v11 = vmul.f32 0.35355338, %v30607_v59  ;;  %v30883_v59 = vmul.f32 0.35355338, %v30659_v15 }
 0x417   : > { %26698 = vmatprep.subr.mxu1 %v36084_v48  ;;  %v30895_v24 = vmul.f32 0.35355338, %v30705_v10 }
 0x418   : > { %v5457_v5 = vpop.permute.xlu1 %5456  ;;  %36193 = vst [vmem:[#allocation157_spill] sm:$0xff] %v30867_v11  ;;  %36194 = vst [vmem:[#allocation158_spill] sm:$0xff] %v30883_v59  ;;  %v11472_v40 = vsel %vm1581_vm3, %v30867_v11, -inf }
 0x419   : > { %26691 = vmatmul.mubr.msk.f32.vlgmr.msra.gmra.mxu1 %vm1581_vm3, %v30253_v36  ;;  %v30852_v2 = vpop.permute.xlu0 %7964  ;;  %26684 = vmatpush3.xpose.msk.msra.mxu0 %vm1581_vm3, %v5457_v5  ;;  %36195 = vst [vmem:[#allocation159_spill] sm:$0xff] %v30895_v24 }
 0x41a   : > { %11461 = vmax.xlane.f32.xlu0 %v11460_v7  ;;  %11440 = vmax.xlane.f32.xlu1 %v11439_v30  ;;  %v11451_v7 = vsel %vm1581_vm3, %v30845_v42, -inf  ;;  %v30878_v30 = vmul.f32 0.35355338, %v30487_v61  ;;  %v30888_v42 = vmul.f32 0.35355338, %v30733_v52 }
 0x41b   : > { %26700 = vmatprep.mubr.msk.f32.mxu1 %vm28751_vm2, %v36084_v48  ;;  %26693 = vmatprep.subr.mxu0 %v36084_v48 }
 0x41c   : > { %26686 = vmatmul.mubr.msk.f32.vlgmr.msra.gmra.mxu0 %vm1581_vm3, %v30247_v26  ;;  %v30864_v58 = vpop.permute.xlu1 %7888 }
 0x41d   : > { %v30869_v5 = vpop.permute.xlu0 %10396  ;;  %26695 = vmatprep.mubr.msk.f32.mxu0 %vm28751_vm2, %v36084_v48 }
 0x41e   : > { %11467 = vmax.xlane.f32.xlu0 %v11466_v29  ;;  %11452 = vmax.xlane.f32.xlu1 %v11451_v7  ;;  %v11457_v29 = vsel %vm1581_vm3, %v30878_v30, -inf }
 0x420   : > { %v3400_v36 = vpop.f32.mrf.mxu0  ;;  %v30880_v26 = vpop.permute.xlu1 %10320 }
 0x421   : > { %v3476_v16 = vpop.f32.mrf.mxu1  ;;  %v5685_v50 = vpop.permute.xlu0 %5684 }
 0x422   : > { %11473 = vmax.xlane.f32.xlu0 %v11472_v40  ;;  %26699 = vmatpush3.xpose.msk.msra.mxu1 %vm1581_vm3, %v5685_v50  ;;  %v26547_v61 = vpop.f32.mrf.mxu0  ;;  %v11478_v40 = vsel %vm1581_vm3, %v30883_v59, -inf  ;;  %v30905_v50 = vmul.f32 0.35355338, %v30765_v23 }
 0x423   : > { %11458 = vmax.xlane.f32.xlu1 %v11457_v29  ;;  %v26552_v7 = vpop.f32.mrf.mxu1  ;;  %26708 = vmatprep.subr.mxu1 %v36084_v48  ;;  %v11487_v61 = vsel %vm1581_vm3, %v30888_v42, -inf  ;;  %v30917_v29 = vmul.f32 0.35355338, %v30737_v20  ;;  %v30933_v20 = vmul.f32 0.35355338, %v30770_v32 }
 0x424   : > { %v5609_v15 = vpop.permute.xlu1 %5608  ;;  %36196 = vst [vmem:[#allocation160_spill] sm:$0xff] %v30905_v50  ;;  %v11484_v7 = vsel %vm1581_vm3, %v30895_v24, -inf  ;;  %v30938_v24 = vmul.f32 0.35355338, %v30815_v14  ;;  %v30945_v32 = vmul.f32 0.35355338, %v30824_v49 }
 0x425   : > { %26701 = vmatmul.mubr.msk.f32.vlgmr.msra.gmra.mxu1 %vm1581_vm3, %v30293_v53  ;;  %v30899_v52 = vpop.permute.xlu0 %8116  ;;  %26694 = vmatpush3.xpose.msk.msra.mxu0 %vm1581_vm3, %v5609_v15  ;;  %36197 = vst [vmem:[#allocation161_spill] sm:$0xff] %v30917_v29  ;;  %v30926_v15 = vmul.f32 0.35355338, %v30537_v35  ;;  %36198 = vst [vmem:[#allocation162_spill] sm:$0xff] %v30933_v20 }
 0x426   : > { %11479 = vmax.xlane.f32.xlu0 %v11478_v40  ;;  %26710 = vmatprep.mubr.msk.f32.mxu1 %vm28751_vm2, %v36084_v48  ;;  %v11493_v40 = vsel %vm1581_vm3, %v30905_v50, -inf  ;;  %36199 = vst [vmem:[#allocation163_spill] sm:$0xff] %v30938_v24  ;;  %36200 = vst [vmem:[#allocation164_spill] sm:$0xff] %v30945_v32  ;;  %v11499_v11 = vsel %vm1581_vm3, %v30938_v24, -inf }
 0x427   : > { %11488 = vmax.xlane.f32.xlu1 %v11487_v61  ;;  %26703 = vmatprep.subr.mxu0 %v36084_v48  ;;  %v11463_v35 = vsel %vm1581_vm3, %v30926_v15, -inf }
 0x428   : > { %26696 = vmatmul.mubr.msk.f32.vlgmr.msra.gmra.mxu0 %vm1581_vm3, %v30287_v9  ;;  %v30914_v10 = vpop.permute.xlu1 %8040  ;;  %v11490_v9 = vsel %vm1581_vm3, %v30917_v29, -inf }
 0x429   : > { %v30919_v23 = vpop.permute.xlu0 %10548  ;;  %26705 = vmatprep.mubr.msk.f32.mxu0 %vm28751_vm2, %v36084_v48 }
 0x42a   : > { %11485 = vmax.xlane.f32.xlu0 %v11484_v7 }
 0x42b   : > { %11494 = vmax.xlane.f32.xlu1 %v11493_v40 }
 0x42c   : > { %v30930_v61 = vpop.permute.xlu1 %10472 }
 0x42d   : > { %v5837_v53 = vpop.permute.xlu0 %5836 }
 0x42e   : > { %11491 = vmax.xlane.f32.xlu0 %v11490_v9  ;;  %26709 = vmatpush3.xpose.msk.msra.mxu1 %vm1581_vm3, %v5837_v53  ;;  %v11496_v9 = vsel %vm1581_vm3, %v30933_v20, -inf  ;;  %v30954_v53 = vmul.f32 0.35355338, %v3400_v36 }
 0x42f   : > { %11464 = vmax.xlane.f32.xlu1 %v11463_v35  ;;  %26718 = vmatprep.subr.mxu1 %v36084_v48 }
 0x430   : > { %v3552_v7 = vpop.f32.mrf.mxu0  ;;  %v5761_v40 = vpop.permute.xlu1 %5760  ;;  %36201 = vst [vmem:[#allocation165_spill] sm:$0xff] %v30954_v53 }
 0x431   : > { %v3628_v59 = vpop.f32.mrf.mxu1  ;;  %26711 = vmatmul.mubr.msk.f32.vlgmr.msra.gmra.mxu1 %vm1581_vm3, %v30337_v34  ;;  %v30949_v14 = vpop.permute.xlu0 %8268  ;;  %26704 = vmatpush3.xpose.msk.msra.mxu0 %vm1581_vm3, %v5761_v40  ;;  %v30965_v34 = vmul.f32 0.35355338, %v3476_v16 }
 0x432   : > { %11497 = vmax.xlane.f32.xlu0 %v11496_v9  ;;  %v26557_v35 = vpop.f32.mrf.mxu0  ;;  %26720 = vmatprep.mubr.msk.f32.mxu1 %vm28751_vm2, %v36084_v48  ;;  %v11502_v9 = vsel %vm1581_vm3, %v30945_v32, -inf  ;;  %v30980_v16 = vmul.f32 0.35355338, %v3628_v59  ;;  %v30984_v32 = vmul.f32 0.35355338, %v3552_v7 }
 0x433   : > { %11500 = vmax.xlane.f32.xlu1 %v11499_v11  ;;  %v26562_v49 = vpop.f32.mrf.mxu1  ;;  %26713 = vmatprep.subr.mxu0 %v36084_v48  ;;  %36202 = vst [vmem:[#allocation166_spill] sm:$0xff] %v30965_v34  ;;  %v30974_v11 = vmul.f32 0.35355338, %v30599_v44  ;;  %v11505_v35 = vsel %vm1581_vm3, %v30954_v53, -inf  ;;  %v11508_v24 = vsel %vm1581_vm3, %v30965_v34, -inf }
 0x434   : > { %26706 = vmatmul.mubr.msk.f32.vlgmr.msra.gmra.mxu0 %vm1581_vm3, %v30330_v57  ;;  %v30963_v40 = vpop.permute.xlu1 %8192  ;;  %36203 = vst [vmem:[#allocation167_spill] sm:$0xff] %v30980_v16  ;;  %36204 = vst [vmem:[#allocation168_spill] sm:$0xff] %v30984_v32  ;;  %v11514_v7 = vsel %vm1581_vm3, %v30980_v16, -inf }
 0x435   : > { %v30967_v36 = vpop.permute.xlu0 %10700  ;;  %26715 = vmatprep.mubr.msk.f32.mxu0 %vm28751_vm2, %v36084_v48  ;;  %v11469_v44 = vsel %vm1581_vm3, %v30974_v11, -inf }
 0x436   : > { %11503 = vmax.xlane.f32.xlu0 %v11502_v9 }
 0x437   : > { %11506 = vmax.xlane.f32.xlu1 %v11505_v35 }
 0x438   : > { %v30978_v49 = vpop.permute.xlu1 %10624 }
 0x439   : > { %v5989_v57 = vpop.permute.xlu0 %5988 }
 0x43a   : > { %11509 = vmax.xlane.f32.xlu0 %v11508_v24  ;;  %26719 = vmatpush3.xpose.msk.msra.mxu1 %vm1581_vm3, %v5989_v57  ;;  %v11511_v24 = vsel %vm1581_vm3, %v30984_v32, -inf }
 0x43b   : > { %11470 = vmax.xlane.f32.xlu1 %v11469_v44  ;;  %26728 = vmatprep.subr.mxu1 %v36084_v48 }
 0x43c   : > { %v5913_v9 = vpop.permute.xlu1 %5912 }
 0x43d   : > { %26721 = vmatmul.mubr.msk.f32.vlgmr.msra.gmra.mxu1 %vm1581_vm3, %v30377_v1  ;;  %v30992_v59 = vpop.permute.xlu0 %8420  ;;  %26714 = vmatpush3.xpose.msk.msra.mxu0 %vm1581_vm3, %v5913_v9 }
 0x43e   : > { %11515 = vmax.xlane.f32.xlu0 %v11514_v7  ;;  %26730 = vmatprep.mubr.msk.f32.mxu1 %vm28751_vm2, %v36084_v48 }
 0x43f   : > { %11512 = vmax.xlane.f32.xlu1 %v11511_v24  ;;  %26723 = vmatprep.subr.mxu0 %v36084_v48  ;;  %v31015_v24 = vmul.f32 0.35355338, %v30641_v18 }
 0x440   : > { %v3704_v57 = vpop.f32.mrf.mxu0  ;;  %26716 = vmatmul.mubr.msk.f32.vlgmr.msra.gmra.mxu0 %vm1581_vm3, %v30370_v60  ;;  %v31004_v35 = vpop.permute.xlu1 %8344 }
 0x441   : > { %v31006_v44 = vmul.f32 0.35355338, %v3704_v57  ;;  %v3780_v9 = vpop.f32.mrf.mxu1  ;;  %v31008_v1 = vpop.permute.xlu0 %10852  ;;  %26725 = vmatprep.mubr.msk.f32.mxu0 %vm28751_vm2, %v36084_v48 }
 0x442   : > { %v31012_v7 = vmul.f32 0.35355338, %v3780_v9  ;;  %v26567_v32 = vpop.f32.mrf.mxu0 }
 0x443   : > { %36205 = vst [vmem:[#allocation169_spill] sm:$0xff] %v31006_v44  ;;  %v26572_v16 = vpop.f32.mrf.mxu1  ;;  %v11517_v60 = vsel %vm1581_vm3, %v31006_v44, -inf  ;;  %v11475_v32 = vsel %vm1581_vm3, %v31015_v24, -inf }
 0x444   : > { %36206 = vst [vmem:[#allocation170_spill] sm:$0xff] %v31012_v7  ;;  %v31019_v34 = vpop.permute.xlu1 %10776  ;;  %11518 = vmax.xlane.f32.xlu1 %v11517_v60  ;;  %v11520_v57 = vsel %vm1581_vm3, %v31012_v7, -inf }
 0x445   : > { %11521 = vmax.xlane.f32.xlu0 %v11520_v57  ;;  %v6141_v53 = vpop.permute.xlu0 %6140 }
 0x446   : > { %26729 = vmatpush3.xpose.msk.msra.mxu1 %vm1581_vm3, %v6141_v53 }
 0x447   : > { %26738 = vmatprep.subr.mxu1 %v36084_v48 }
 0x448   : > { %v6065_v18 = vpop.permute.xlu1 %6064  ;;  %11476 = vmax.xlane.f32.xlu1 %v11475_v32 }
 0x449   : > { %26731 = vmatmul.mubr.msk.f32.vlgmr.msra.gmra.mxu1 %vm1581_vm3, %v30423_v6  ;;  %v31029_v16 = vpop.permute.xlu0 %8572  ;;  %26724 = vmatpush3.xpose.msk.msra.mxu0 %vm1581_vm3, %v6065_v18 }
 0x44a   : > { %26740 = vmatprep.mubr.msk.f32.mxu1 %vm28751_vm2, %v36084_v48  ;;  %26733 = vmatprep.subr.mxu0 %v36084_v48 }
 0x44c   : > { %26726 = vmatmul.mubr.msk.f32.vlgmr.msra.gmra.mxu0 %vm1581_vm3, %v30414_v27  ;;  %v31037_v60 = vpop.permute.xlu1 %8496 }
 0x44d   : > { %v31039_v53 = vpop.permute.xlu0 %11004  ;;  %26735 = vmatprep.mubr.msk.f32.mxu0 %vm28751_vm2, %v36084_v48 }
 0x450   : > { %v3856_v9 = vpop.f32.mrf.mxu0  ;;  %v31043_v57 = vpop.permute.xlu1 %10928 }
 0x451   : > { %v31045_v32 = vmul.f32 0.35355338, %v3856_v9  ;;  %v3932_v18 = vpop.f32.mrf.mxu1  ;;  %v6293_v6 = vpop.permute.xlu0 %6292  ;;  %v36209_v9 = vld [vmem:[#allocation27_spill] sm:$0xff] }
 0x452   : > { %v31047_v44 = vmul.f32 0.35355338, %v3932_v18  ;;  %26739 = vmatpush3.xpose.msk.msra.mxu1 %vm1581_vm3, %v6293_v6  ;;  %v26577_v7 = vpop.f32.mrf.mxu0  ;;  %v36207_v6 = vld [vmem:[#allocation13_spill] sm:$0xff] }
 0x453   : > { %v26582_v27 = vpop.f32.mrf.mxu1  ;;  %v11523_v20 = vsel %vm1581_vm3, %v31045_v32, -inf  ;;  %26748 = vmatprep.subr.mxu1 %v36084_v48 }
 0x454   : > { %v6217_v29 = vpop.permute.xlu1 %6216  ;;  %11524 = vmax.xlane.f32.xlu1 %v11523_v20  ;;  %v11526_v50 = vsel %vm1581_vm3, %v31047_v44, -inf }
 0x455   : > { %11527 = vmax.xlane.f32.xlu0 %v11526_v50  ;;  %26741 = vmatmul.mubr.msk.f32.vlgmr.msra.gmra.mxu1 %vm1581_vm3, %v30467_v4  ;;  %v36208_v50 = vld [vmem:[#allocation19_spill] sm:$0xff] }
 0x456   : > { %26734 = vmatpush3.xpose.msk.msra.mxu0 %vm1581_vm3, %v6217_v29  ;;  %26749 = vmatpush3.xpose.msk.msra.mxu1 %vm1581_vm3, %v30511_v41 }
 0x457   : > { %26750 = vmatprep.mubr.msk.f32.mxu1 %vm28751_vm2, %v36084_v48  ;;  %26758 = vmatprep.subr.mxu1 %v36084_v48 }
 0x458   : > { %v31063_v27 = vpop.permute.xlu1 %8648  ;;  %26743 = vmatprep.subr.mxu0 %v36084_v48 }
 0x459   : > { %26736 = vmatmul.mubr.msk.f32.vlgmr.msra.gmra.mxu0 %vm1581_vm3, %v30460_v54  ;;  %26751 = vmatmul.mubr.msk.f32.vlgmr.msra.gmra.mxu1 %vm1581_vm3, %v36207_v6 }
 0x45a   : > { %26759 = vmatpush3.xpose.msk.msra.mxu1 %vm1581_vm3, %v30541_v39  ;;  %26760 = vmatprep.mubr.msk.f32.mxu1 %vm28751_vm2, %v36084_v48 }
 0x45b   : > { %26768 = vmatprep.subr.mxu1 %v36084_v48  ;;  %26745 = vmatprep.mubr.msk.f32.mxu0 %vm28751_vm2, %v36084_v48 }
 0x45c   : > { %v31077_v41 = vpop.permute.xlu1 %11080 }
 0x45d   : > { %26761 = vmatmul.mubr.msk.f32.vlgmr.msra.gmra.mxu1 %vm1581_vm3, %v36208_v50  ;;  %v31098_v50 = vmul.f32 0.35355338, %v30693_v51 }
 0x45e   : > { %26769 = vmatpush3.xpose.msk.msra.mxu1 %vm1581_vm3, %v30575_v31  ;;  %26770 = vmatprep.mubr.msk.f32.mxu1 %vm28751_vm2, %v36084_v48 }
 0x45f   : > { %26778 = vmatprep.subr.mxu1 %v36084_v48  ;;  %v11481_v51 = vsel %vm1581_vm3, %v31098_v50, -inf }
 0x460   : > { %v4008_v39 = vpop.f32.mrf.mxu0  ;;  %v6369_v29 = vpop.permute.xlu1 %6368 }
 0x461   : > { %v31086_v20 = vmul.f32 0.35355338, %v4008_v39  ;;  %v4084_v7 = vpop.f32.mrf.mxu1  ;;  %26771 = vmatmul.mubr.msk.f32.vlgmr.msra.gmra.mxu1 %vm1581_vm3, %v36209_v9  ;;  %26744 = vmatpush3.xpose.msk.msra.mxu0 %vm1581_vm3, %v6369_v29  ;;  %v36210_v29 = vld [vmem:[#allocation38_spill] sm:$0xff] }
 0x462   : > { %v31091_v18 = vmul.f32 0.35355338, %v4084_v7  ;;  %26779 = vmatpush3.xpose.msk.msra.mxu1 %vm1581_vm3, %v30611_v46  ;;  %v26587_v31 = vpop.f32.mrf.mxu0  ;;  %26780 = vmatprep.mubr.msk.f32.mxu1 %vm28751_vm2, %v36084_v48  ;;  %v36211_v7 = vld [vmem:[#allocation9_spill] sm:$0xff] }
 0x463   : > { %v26592_v39 = vpop.f32.mrf.mxu1  ;;  %26753 = vmatprep.subr.mxu0 %v36084_v48  ;;  %v11529_v9 = vsel %vm1581_vm3, %v31086_v20, -inf  ;;  %26788 = vmatprep.subr.mxu1 %v36084_v48 }
 0x464   : > { %26746 = vmatmul.mubr.msk.f32.vlgmr.msra.gmra.mxu0 %vm1581_vm3, %v30506_v3  ;;  %11530 = vmax.xlane.f32.xlu1 %v11529_v9  ;;  %v11532_v46 = vsel %vm1581_vm3, %v31091_v18, -inf  ;;  %v36212_v9 = vld [vmem:[#allocation48_spill] sm:$0xff] }
 0x465   : > { %11533 = vmax.xlane.f32.xlu0 %v11532_v46  ;;  %26781 = vmatmul.mubr.msk.f32.vlgmr.msra.gmra.mxu1 %vm1581_vm3, %v36210_v29 }
 0x466   : > { %26754 = vmatpush3.xpose.msk.msra.mxu0 %vm1581_vm3, %v30553_v13  ;;  %26789 = vmatpush3.xpose.msk.msra.mxu1 %vm1581_vm3, %v30645_v47  ;;  %v36213_v47 = vld [vmem:[#allocation18_spill] sm:$0xff] }
 0x467   : > { %26755 = vmatprep.mubr.msk.f32.mxu0 %vm28751_vm2, %v36084_v48  ;;  %26790 = vmatprep.mubr.msk.f32.mxu1 %vm28751_vm2, %v36084_v48 }
 0x468   : > { %26763 = vmatprep.subr.mxu0 %v36084_v48  ;;  %11482 = vmax.xlane.f32.xlu1 %v11481_v51 }
 0x469   : > { %26756 = vmatmul.mubr.msk.f32.vlgmr.msra.gmra.mxu0 %vm1581_vm3, %v36211_v7  ;;  %26791 = vmatmul.mubr.msk.f32.vlgmr.msra.gmra.mxu1 %vm1581_vm3, %v36212_v9 }
 0x46a   : > { %26798 = vmatprep.subr.mxu1 %v36084_v48  ;;  %26764 = vmatpush3.xpose.msk.msra.mxu0 %vm1581_vm3, %v30587_v33  ;;  %v36214_v33 = vld [vmem:[#allocation58_spill] sm:$0xff] }
 0x46b   : > { %26799 = vmatpush3.xpose.msk.msra.mxu1 %vm1581_vm3, %v30679_v21  ;;  %26765 = vmatprep.mubr.msk.f32.mxu0 %vm28751_vm2, %v36084_v48 }
 0x46c   : > { %26800 = vmatprep.mubr.msk.f32.mxu1 %vm28751_vm2, %v36084_v48  ;;  %26773 = vmatprep.subr.mxu0 %v36084_v48 }
 0x46d   : > { %v4236_v13 = vpop.f32.mrf.mxu1  ;;  %26766 = vmatmul.mubr.msk.f32.vlgmr.msra.gmra.mxu0 %vm1581_vm3, %v36213_v47  ;;  %26808 = vmatprep.subr.mxu1 %v36084_v48  ;;  %v36312_v47 = vld [vmem:[#allocation122_spill] sm:$0xff] }
 0x46e   : > { %v31138_v31 = vmul.f32 0.35355338, %v4236_v13  ;;  %26801 = vmatmul.mubr.msk.f32.vlgmr.msra.gmra.mxu1 %vm1581_vm3, %v36214_v33  ;;  %26774 = vmatpush3.xpose.msk.msra.mxu0 %vm1581_vm3, %v30623_v22  ;;  %v36215_v13 = vld [vmem:[#allocation35_spill] sm:$0xff]  ;;  %v36216_v22 = vld [vmem:[#allocation66_spill] sm:$0xff] }
 0x46f   : > { %26809 = vmatpush3.xpose.msk.msra.mxu1 %vm1581_vm3, %v30715_v45  ;;  %v26602_v21 = vpop.f32.mrf.mxu1  ;;  %26775 = vmatprep.mubr.msk.f32.mxu0 %vm28751_vm2, %v36084_v48 }
 0x470   : > { %26810 = vmatprep.mubr.msk.f32.mxu1 %vm28751_vm2, %v36084_v48  ;;  %v4160_v39 = vpop.f32.mrf.mxu0  ;;  %26783 = vmatprep.subr.mxu0 %v36084_v48  ;;  %v11538_v46 = vsel %vm1581_vm3, %v31138_v31, -inf }
 0x471   : > { %v31153_v51 = vmul.f32 0.35355338, %v4160_v39  ;;  %26776 = vmatmul.mubr.msk.f32.vlgmr.msra.gmra.mxu0 %vm1581_vm3, %v36215_v13  ;;  %11539 = vmax.xlane.f32.xlu0 %v11538_v46  ;;  %v36217_v39 = vld [vmem:[#allocation43_spill] sm:$0xff]  ;;  %v36218_v46 = vld [vmem:[#allocation74_spill] sm:$0xff] }
 0x472   : > { %26811 = vmatmul.mubr.msk.f32.vlgmr.msra.gmra.mxu1 %vm1581_vm3, %v36216_v22  ;;  %26818 = vmatprep.subr.mxu1 %v36084_v48  ;;  %v26597_v45 = vpop.f32.mrf.mxu0 }
 0x473   : > { %26784 = vmatpush3.xpose.msk.msra.mxu0 %vm1581_vm3, %v30657_v25  ;;  %26819 = vmatpush3.xpose.msk.msra.mxu1 %vm1581_vm3, %v30745_v63  ;;  %v11535_v21 = vsel %vm1581_vm3, %v31153_v51, -inf  ;;  %v36219_v45 = vld [vmem:[#allocation56_spill] sm:$0xff] }
 0x474   : > { %26785 = vmatprep.mubr.msk.f32.mxu0 %vm28751_vm2, %v36084_v48  ;;  %26820 = vmatprep.mubr.msk.f32.mxu1 %vm28751_vm2, %v36084_v48 }
 0x475   : > { %26793 = vmatprep.subr.mxu0 %v36084_v48  ;;  %11536 = vmax.xlane.f32.xlu1 %v11535_v21 }
 0x476   : > { %26786 = vmatmul.mubr.msk.f32.vlgmr.msra.gmra.mxu0 %vm1581_vm3, %v36217_v39  ;;  %26821 = vmatmul.mubr.msk.f32.vlgmr.msra.gmra.mxu1 %vm1581_vm3, %v36218_v46 }
 0x477   : > { %26828 = vmatprep.subr.mxu1 %v36084_v48  ;;  %26794 = vmatpush3.xpose.msk.msra.mxu0 %vm1581_vm3, %v30691_v28  ;;  %v36220_v28 = vld [vmem:[#allocation82_spill] sm:$0xff] }
 0x478   : > { %26829 = vmatpush3.xpose.msk.msra.mxu1 %vm1581_vm3, %v30774_v19  ;;  %26795 = vmatprep.mubr.msk.f32.mxu0 %vm28751_vm2, %v36084_v48 }
 0x479   : > { %26830 = vmatprep.mubr.msk.f32.mxu1 %vm28751_vm2, %v36084_v48  ;;  %v4388_v25 = vpop.f32.mrf.mxu1  ;;  %26803 = vmatprep.subr.mxu0 %v36084_v48 }
 0x47a   : > { %v31185_v63 = vmul.f32 0.35355338, %v4388_v25  ;;  %26796 = vmatmul.mubr.msk.f32.vlgmr.msra.gmra.mxu0 %vm1581_vm3, %v36219_v45  ;;  %26838 = vmatprep.subr.mxu1 %v36084_v48 }
 0x47b   : > { %26831 = vmatmul.mubr.msk.f32.vlgmr.msra.gmra.mxu1 %vm1581_vm3, %v36220_v28  ;;  %26804 = vmatpush3.xpose.msk.msra.mxu0 %vm1581_vm3, %v30725_v62  ;;  %v26612_v19 = vpop.f32.mrf.mxu1  ;;  %v36221_v28 = vld [vmem:[#allocation63_spill] sm:$0xff] }
 0x47c   : > { %26839 = vmatpush3.xpose.msk.msra.mxu1 %vm1581_vm3, %v30807_v43  ;;  %26805 = vmatprep.mubr.msk.f32.mxu0 %vm28751_vm2, %v36084_v48  ;;  %v4312_v21 = vpop.f32.mrf.mxu0  ;;  %v11544_v25 = vsel %vm1581_vm3, %v31185_v63, -inf  ;;  %v36222_v43 = vld [vmem:[#allocation88_spill] sm:$0xff] }
 0x47d   : > { %26840 = vmatprep.mubr.msk.f32.mxu1 %vm28751_vm2, %v36084_v48  ;;  %v31202_v46 = vmul.f32 0.35355338, %v4312_v21  ;;  %26813 = vmatprep.subr.mxu0 %v36084_v48  ;;  %v36223_v21 = vld [vmem:[#allocation73_spill] sm:$0xff] }
 0x47e   : > { %26806 = vmatmul.mubr.msk.f32.vlgmr.msra.gmra.mxu0 %vm1581_vm3, %v36221_v28  ;;  %11545 = vmax.xlane.f32.xlu0 %v11544_v25  ;;  %v26607_v62 = vpop.f32.mrf.mxu0  ;;  %v36225_v25 = vld [vmem:[#allocation81_spill] sm:$0xff] }
 0x47f   : > { %26841 = vmatmul.mubr.msk.f32.vlgmr.msra.gmra.mxu1 %vm1581_vm3, %v36222_v43  ;;  %26848 = vmatprep.subr.mxu1 %v36084_v48  ;;  %v11541_v19 = vsel %vm1581_vm3, %v31202_v46, -inf }
 0x480   : > { %26814 = vmatpush3.xpose.msk.msra.mxu0 %vm1581_vm3, %v30755_v38  ;;  %26849 = vmatpush3.xpose.msk.msra.mxu1 %vm1581_vm3, %v30852_v2 }
 0x481   : > { %26815 = vmatprep.mubr.msk.f32.mxu0 %vm28751_vm2, %v36084_v48  ;;  %26850 = vmatprep.mubr.msk.f32.mxu1 %vm28751_vm2, %v36084_v48 }
 0x482   : > { %26823 = vmatprep.subr.mxu0 %v36084_v48  ;;  %11542 = vmax.xlane.f32.xlu1 %v11541_v19 }
 0x483   : > { %26816 = vmatmul.mubr.msk.f32.vlgmr.msra.gmra.mxu0 %vm1581_vm3, %v36223_v21  ;;  %26851 = vmatmul.mubr.msk.f32.vlgmr.msra.gmra.mxu1 %vm1581_vm3, %v30265_v55 }
 0x484   : > { %26858 = vmatprep.subr.mxu1 %v36084_v48  ;;  %26824 = vmatpush3.xpose.msk.msra.mxu0 %vm1581_vm3, %v30782_v8 }
 0x485   : > { %26859 = vmatpush3.xpose.msk.msra.mxu1 %vm1581_vm3, %v30899_v52  ;;  %26825 = vmatprep.mubr.msk.f32.mxu0 %vm28751_vm2, %v36084_v48  ;;  %v4540_v38 = vpop.f32.mrf.mxu1 }
 0x486   : > { %26860 = vmatprep.mubr.msk.f32.mxu1 %vm28751_vm2, %v36084_v48  ;;  %v31234_v2 = vmul.f32 0.35355338, %v4540_v38  ;;  %26833 = vmatprep.subr.mxu0 %v36084_v48 }
 0x487   : > { %26826 = vmatmul.mubr.msk.f32.vlgmr.msra.gmra.mxu0 %vm1581_vm3, %v36225_v25  ;;  %26868 = vmatprep.subr.mxu1 %v36084_v48  ;;  %v26622_v8 = vpop.f32.mrf.mxu1 }
 0x488   : > { %36224 = vst [vmem:[#allocation171_spill] sm:$0xff] %v31234_v2  ;;  %26861 = vmatmul.mubr.msk.f32.vlgmr.msra.gmra.mxu1 %vm1581_vm3, %v30305_v12  ;;  %26834 = vmatpush3.xpose.msk.msra.mxu0 %vm1581_vm3, %v30819_v0  ;;  %v4464_v52 = vpop.f32.mrf.mxu0  ;;  %v11550_v62 = vsel %vm1581_vm3, %v31234_v2, -inf  ;;  %v36227_v8 = vld [vmem:[#allocation87_spill] sm:$0xff] }
 0x489   : > { %26869 = vmatpush3.xpose.msk.msra.mxu1 %vm1581_vm3, %v30949_v14  ;;  %26835 = vmatprep.mubr.msk.f32.mxu0 %vm28751_vm2, %v36084_v48  ;;  %v31250_v19 = vmul.f32 0.35355338, %v4464_v52  ;;  %v36228_v14 = vld [vmem:[#allocation93_spill] sm:$0xff] }
 0x48a   : > { %26870 = vmatprep.mubr.msk.f32.mxu1 %vm28751_vm2, %v36084_v48  ;;  %26843 = vmatprep.subr.mxu0 %v36084_v48  ;;  %v26617_v38 = vpop.f32.mrf.mxu0 }
 0x48b   : > { %36226 = vst [vmem:[#allocation172_spill] sm:$0xff] %v31250_v19  ;;  %26836 = vmatmul.mubr.msk.f32.vlgmr.msra.gmra.mxu0 %vm1581_vm3, %v36227_v8  ;;  %11551 = vmax.xlane.f32.xlu0 %v11550_v62  ;;  %v11547_v0 = vsel %vm1581_vm3, %v31250_v19, -inf  ;;  %v36230_v62 = vld [vmem:[#allocation99_spill] sm:$0xff]  ;;  %v8725_v38 = vpop.permute.xlu0 %8724 }
 0x48c   : > { %26871 = vmatmul.mubr.msk.f32.vlgmr.msra.gmra.mxu1 %vm1581_vm3, %v30349_v56  ;;  %26878 = vmatprep.subr.mxu1 %v36084_v48  ;;  %v36251_v56 = vld [vmem:[#allocation143_spill] sm:$0xff] }
 0x48d   : > { %26844 = vmatpush3.xpose.msk.msra.mxu0 %vm1581_vm3, %v30864_v58  ;;  %26879 = vmatpush3.xpose.msk.msra.mxu1 %vm1581_vm3, %v30992_v59 }
 0x48e   : > { %26845 = vmatprep.mubr.msk.f32.mxu0 %vm28751_vm2, %v36084_v48  ;;  %26880 = vmatprep.mubr.msk.f32.mxu1 %vm28751_vm2, %v36084_v48 }
 0x48f   : > { %26853 = vmatprep.subr.mxu0 %v36084_v48  ;;  %11548 = vmax.xlane.f32.xlu1 %v11547_v0  ;;  %v36231_v0 = vld [vmem:[#allocation123_spill] sm:$0xff]  ;;  %v31473_v55 = vpop.permute.xlu0 %11156 }
 0x490   : > { %26846 = vmatmul.mubr.msk.f32.vlgmr.msra.gmra.mxu0 %vm1581_vm3, %v36228_v14  ;;  %26881 = vmatmul.mubr.msk.f32.vlgmr.msra.gmra.mxu1 %vm1581_vm3, %v30389_v37  ;;  %v36240_v37 = vld [vmem:[#allocation121_spill] sm:$0xff] }
 0x491   : > { %26888 = vmatprep.subr.mxu1 %v36084_v48  ;;  %26854 = vmatpush3.xpose.msk.msra.mxu0 %vm1581_vm3, %v30914_v10  ;;  %v4692_v58 = vpop.f32.mrf.mxu1 }
 0x492   : > { %26889 = vmatpush3.xpose.msk.msra.mxu1 %vm1581_vm3, %v31029_v16  ;;  %26855 = vmatprep.mubr.msk.f32.mxu0 %vm28751_vm2, %v36084_v48  ;;  %v31282_v59 = vmul.f32 0.35355338, %v4692_v58 }
 0x493   : > { %26890 = vmatprep.mubr.msk.f32.mxu1 %vm28751_vm2, %v36084_v48  ;;  %26863 = vmatprep.subr.mxu0 %v36084_v48  ;;  %v26632_v52 = vpop.f32.mrf.mxu1 }
 0x494   : > { %36229 = vst [vmem:[#allocation173_spill] sm:$0xff] %v31282_v59  ;;  %26856 = vmatmul.mubr.msk.f32.vlgmr.msra.gmra.mxu0 %vm1581_vm3, %v36230_v62  ;;  %26898 = vmatprep.subr.mxu1 %v36084_v48  ;;  %v4616_v10 = vpop.f32.mrf.mxu0  ;;  %v11556_v58 = vsel %vm1581_vm3, %v31282_v59, -inf  ;;  %v36265_v62 = vld [vmem:[#allocation149_spill] sm:$0xff] }
 0x495   : > { %26891 = vmatmul.mubr.msk.f32.vlgmr.msra.gmra.mxu1 %vm1581_vm3, %v36231_v0  ;;  %26864 = vmatpush3.xpose.msk.msra.mxu0 %vm1581_vm3, %v30963_v40  ;;  %v31294_v16 = vmul.f32 0.35355338, %v4616_v10  ;;  %v36233_v0 = vld [vmem:[#allocation106_spill] sm:$0xff] }
 0x496   : > { %26899 = vmatpush3.xpose.msk.msra.mxu1 %vm1581_vm3, %v8725_v38  ;;  %26865 = vmatprep.mubr.msk.f32.mxu0 %vm28751_vm2, %v36084_v48  ;;  %v26627_v52 = vpop.f32.mrf.mxu0  ;;  %v36234_v40 = vld [vmem:[#allocation130_spill] sm:$0xff]  ;;  %v36235_v38 = vld [vmem:[#allocation135_spill] sm:$0xff] }
 0x497   : > { %36232 = vst [vmem:[#allocation174_spill] sm:$0xff] %v31294_v16  ;;  %26900 = vmatprep.mubr.msk.f32.mxu1 %vm28751_vm2, %v36084_v48  ;;  %26873 = vmatprep.subr.mxu0 %v36084_v48  ;;  %v11553_v10 = vsel %vm1581_vm3, %v31294_v16, -inf  ;;  %v36237_v52 = vld [vmem:[#allocation15_spill] sm:$0xff] }
 0x498   : > { %26866 = vmatmul.mubr.msk.f32.vlgmr.msra.gmra.mxu0 %vm1581_vm3, %v36233_v0  ;;  %11557 = vmax.xlane.f32.xlu0 %v11556_v58  ;;  %v36236_v58 = vld [vmem:[#allocation112_spill] sm:$0xff]  ;;  %v36256_v0 = vld [vmem:[#allocation145_spill] sm:$0xff] }
 0x499   : > { %26901 = vmatmul.mubr.msk.f32.vlgmr.msra.gmra.mxu1 %vm1581_vm3, %v36234_v40  ;;  %26908 = vmatprep.subr.mxu1 %v36084_v48 }
 0x49a   : > { %26874 = vmatpush3.xpose.msk.msra.mxu0 %vm1581_vm3, %v31004_v35  ;;  %26909 = vmatpush3.xpose.msk.msra.mxu1 %vm1581_vm3, %v36235_v38  ;;  %v36239_v38 = vld [vmem:[#allocation137_spill] sm:$0xff] }
 0x49b   : > { %26875 = vmatprep.mubr.msk.f32.mxu0 %vm28751_vm2, %v36084_v48  ;;  %26910 = vmatprep.mubr.msk.f32.mxu1 %vm28751_vm2, %v36084_v48 }
 0x49c   : > { %26883 = vmatprep.subr.mxu0 %v36084_v48  ;;  %11554 = vmax.xlane.f32.xlu1 %v11553_v10 }
 0x49d   : > { %26876 = vmatmul.mubr.msk.f32.vlgmr.msra.gmra.mxu0 %vm1581_vm3, %v36236_v58  ;;  %26911 = vmatmul.mubr.msk.f32.vlgmr.msra.gmra.mxu1 %vm1581_vm3, %v36237_v52  ;;  %v4844_v40 = vpop.f32.mrf.mxu1  ;;  %v36243_v58 = vld [vmem:[#allocation139_spill] sm:$0xff] }
 0x49e   : > { %26918 = vmatprep.subr.mxu1 %v36084_v48  ;;  %26884 = vmatpush3.xpose.msk.msra.mxu0 %vm1581_vm3, %v31037_v60  ;;  %v31327_v35 = vmul.f32 0.35355338, %v4844_v40  ;;  %v36241_v60 = vld [vmem:[#allocation22_spill] sm:$0xff] }
 0x49f   : > { %26919 = vmatpush3.xpose.msk.msra.mxu1 %vm1581_vm3, %v36239_v38  ;;  %26885 = vmatprep.mubr.msk.f32.mxu0 %vm28751_vm2, %v36084_v48  ;;  %v26642_v10 = vpop.f32.mrf.mxu1 }
 0x4a0   : > { %36238 = vst [vmem:[#allocation135_spill] sm:$0xff] %v31327_v35  ;;  %26920 = vmatprep.mubr.msk.f32.mxu1 %vm28751_vm2, %v36084_v48  ;;  %26893 = vmatprep.subr.mxu0 %v36084_v48  ;;  %v4768_v52 = vpop.f32.mrf.mxu0  ;;  %v11562_v38 = vsel %vm1581_vm3, %v31327_v35, -inf }
 0x4a1   : > { %26886 = vmatmul.mubr.msk.f32.vlgmr.msra.gmra.mxu0 %vm1581_vm3, %v36240_v37  ;;  %26928 = vmatprep.subr.mxu1 %v36084_v48  ;;  %v31343_v40 = vmul.f32 0.35355338, %v4768_v52  ;;  %v36245_v52 = vld [vmem:[#allocation30_spill] sm:$0xff] }
 0x4a2   : > { %26921 = vmatmul.mubr.msk.f32.vlgmr.msra.gmra.mxu1 %vm1581_vm3, %v36241_v60  ;;  %26894 = vmatpush3.xpose.msk.msra.mxu0 %vm1581_vm3, %v31063_v27  ;;  %v26637_v10 = vpop.f32.mrf.mxu0  ;;  %v36244_v60 = vld [vmem:[#allocation129_spill] sm:$0xff]  ;;  %v8801_v27 = vpop.permute.xlu1 %8800 }
 0x4a3   : > { %36242 = vst [vmem:[#allocation137_spill] sm:$0xff] %v31343_v40  ;;  %26929 = vmatpush3.xpose.msk.msra.mxu1 %vm1581_vm3, %v36243_v58  ;;  %26895 = vmatprep.mubr.msk.f32.mxu0 %vm28751_vm2, %v36084_v48  ;;  %v11559_v58 = vsel %vm1581_vm3, %v31343_v40, -inf  ;;  %v36246_v10 = vld [vmem:[#allocation141_spill] sm:$0xff] }
 0x4a4   : > { %26930 = vmatprep.mubr.msk.f32.mxu1 %vm28751_vm2, %v36084_v48  ;;  %26903 = vmatprep.subr.mxu0 %v36084_v48 }
 0x4a5   : > { %26896 = vmatmul.mubr.msk.f32.vlgmr.msra.gmra.mxu0 %vm1581_vm3, %v36244_v60  ;;  %11563 = vmax.xlane.f32.xlu0 %v11562_v38  ;;  %v36248_v60 = vld [vmem:[#allocation40_spill] sm:$0xff] }
 0x4a6   : > { %26931 = vmatmul.mubr.msk.f32.vlgmr.msra.gmra.mxu1 %vm1581_vm3, %v36245_v52  ;;  %26938 = vmatprep.subr.mxu1 %v36084_v48  ;;  %v36247_v52 = vld [vmem:[#allocation134_spill] sm:$0xff]  ;;  %v31513_v43 = vpop.permute.xlu1 %11232 }
 0x4a7   : > { %26904 = vmatpush3.xpose.msk.msra.mxu0 %vm1581_vm3, %v8801_v27  ;;  %26939 = vmatpush3.xpose.msk.msra.mxu1 %vm1581_vm3, %v36246_v10  ;;  %v36249_v27 = vld [vmem:[#allocation138_spill] sm:$0xff] }
 0x4a8   : > { %26905 = vmatprep.mubr.msk.f32.mxu0 %vm28751_vm2, %v36084_v48  ;;  %26940 = vmatprep.mubr.msk.f32.mxu1 %vm28751_vm2, %v36084_v48 }
 0x4a9   : > { %26913 = vmatprep.subr.mxu0 %v36084_v48  ;;  %11560 = vmax.xlane.f32.xlu1 %v11559_v58  ;;  %v4996_v38 = vpop.f32.mrf.mxu1 }
 0x4aa   : > { %26906 = vmatmul.mubr.msk.f32.vlgmr.msra.gmra.mxu0 %vm1581_vm3, %v36247_v52  ;;  %26941 = vmatmul.mubr.msk.f32.vlgmr.msra.gmra.mxu1 %vm1581_vm3, %v36248_v60  ;;  %v31376_v10 = vmul.f32 0.35355338, %v4996_v38  ;;  %v36252_v60 = vld [vmem:[#allocation12_spill] sm:$0xff] }
 0x4ab   : > { %26948 = vmatprep.subr.mxu1 %v36084_v48  ;;  %26914 = vmatpush3.xpose.msk.msra.mxu0 %vm1581_vm3, %v36249_v27  ;;  %v26652_v37 = vpop.f32.mrf.mxu1  ;;  %v36253_v27 = vld [vmem:[#allocation50_spill] sm:$0xff] }
 0x4ac   : > { %36250 = vst [vmem:[#allocation139_spill] sm:$0xff] %v31376_v10  ;;  %26949 = vmatpush3.xpose.msk.msra.mxu1 %vm1581_vm3, %v36251_v56  ;;  %26915 = vmatprep.mubr.msk.f32.mxu0 %vm28751_vm2, %v36084_v48  ;;  %v4920_v58 = vpop.f32.mrf.mxu0  ;;  %v36254_v37 = vld [vmem:[#allocation140_spill] sm:$0xff]  ;;  %v11568_v52 = vsel %vm1581_vm3, %v31376_v10, -inf }
 0x4ad   : > { %26950 = vmatprep.mubr.msk.f32.mxu1 %vm28751_vm2, %v36084_v48  ;;  %26923 = vmatprep.subr.mxu0 %v36084_v48  ;;  %v31392_v56 = vmul.f32 0.35355338, %v4920_v58  ;;  %v36258_v58 = vld [vmem:[#allocation61_spill] sm:$0xff] }
 0x4ae   : > { %26916 = vmatmul.mubr.msk.f32.vlgmr.msra.gmra.mxu0 %vm1581_vm3, %v36252_v60  ;;  %26958 = vmatprep.subr.mxu1 %v36084_v48  ;;  %v26647_v38 = vpop.f32.mrf.mxu0 }
 0x4af   : > { %26951 = vmatmul.mubr.msk.f32.vlgmr.msra.gmra.mxu1 %vm1581_vm3, %v36253_v27  ;;  %26924 = vmatpush3.xpose.msk.msra.mxu0 %vm1581_vm3, %v36254_v37  ;;  %36255 = vst [vmem:[#allocation141_spill] sm:$0xff] %v31392_v56  ;;  %v36257_v38 = vld [vmem:[#allocation21_spill] sm:$0xff]  ;;  %v36259_v37 = vld [vmem:[#allocation142_spill] sm:$0xff]  ;;  %v36260_v27 = vld [vmem:[#allocation147_spill] sm:$0xff] }
 0x4b0   : > { %26959 = vmatpush3.xpose.msk.msra.mxu1 %vm1581_vm3, %v36256_v0  ;;  %26925 = vmatprep.mubr.msk.f32.mxu0 %vm28751_vm2, %v36084_v48  ;;  %v11565_v0 = vsel %vm1581_vm3, %v31392_v56, -inf }
 0x4b1   : > { %26960 = vmatprep.mubr.msk.f32.mxu1 %vm28751_vm2, %v36084_v48  ;;  %26933 = vmatprep.subr.mxu0 %v36084_v48 }
 0x4b2   : > { %26926 = vmatmul.mubr.msk.f32.vlgmr.msra.gmra.mxu0 %vm1581_vm3, %v36257_v38  ;;  %11569 = vmax.xlane.f32.xlu0 %v11568_v52  ;;  %v36262_v38 = vld [vmem:[#allocation69_spill] sm:$0xff] }
 0x4b3   : > { %26961 = vmatmul.mubr.msk.f32.vlgmr.msra.gmra.mxu1 %vm1581_vm3, %v36258_v58  ;;  %26968 = vmatprep.subr.mxu1 %v36084_v48  ;;  %v36261_v58 = vld [vmem:[#allocation37_spill] sm:$0xff] }
 0x4b4   : > { %26934 = vmatpush3.xpose.msk.msra.mxu0 %vm1581_vm3, %v36259_v37  ;;  %26969 = vmatpush3.xpose.msk.msra.mxu1 %vm1581_vm3, %v36260_v27  ;;  %v36263_v27 = vld [vmem:[#allocation144_spill] sm:$0xff] }
 0x4b5   : > { %26935 = vmatprep.mubr.msk.f32.mxu0 %vm28751_vm2, %v36084_v48  ;;  %26970 = vmatprep.mubr.msk.f32.mxu1 %vm28751_vm2, %v36084_v48  ;;  %v5148_v52 = vpop.f32.mrf.mxu1 }
 0x4b6   : > { %26943 = vmatprep.subr.mxu0 %v36084_v48  ;;  %11566 = vmax.xlane.f32.xlu1 %v11565_v0  ;;  %v31426_v60 = vmul.f32 0.35355338, %v5148_v52  ;;  %v36267_v52 = vld [vmem:[#allocation77_spill] sm:$0xff] }
 0x4b7   : > { %26936 = vmatmul.mubr.msk.f32.vlgmr.msra.gmra.mxu0 %vm1581_vm3, %v36261_v58  ;;  %26971 = vmatmul.mubr.msk.f32.vlgmr.msra.gmra.mxu1 %vm1581_vm3, %v36262_v38  ;;  %v26662_v37 = vpop.f32.mrf.mxu1  ;;  %v36270_v58 = vld [vmem:[#allocation152_spill] sm:$0xff] }
 0x4b8   : > { %26978 = vmatprep.subr.mxu1 %v36084_v48  ;;  %26944 = vmatpush3.xpose.msk.msra.mxu0 %vm1581_vm3, %v36263_v27  ;;  %36264 = vst [vmem:[#allocation138_spill] sm:$0xff] %v31426_v60  ;;  %v5072_v12 = vpop.f32.mrf.mxu0  ;;  %v36266_v37 = vld [vmem:[#allocation45_spill] sm:$0xff]  ;;  %v36268_v27 = vld [vmem:[#allocation146_spill] sm:$0xff]  ;;  %v11574_v38 = vsel %vm1581_vm3, %v31426_v60, -inf }
 0x4b9   : > { %26979 = vmatpush3.xpose.msk.msra.mxu1 %vm1581_vm3, %v36265_v62  ;;  %26945 = vmatprep.mubr.msk.f32.mxu0 %vm28751_vm2, %v36084_v48  ;;  %v31442_v62 = vmul.f32 0.35355338, %v5072_v12  ;;  %v36272_v12 = vld [vmem:[#allocation84_spill] sm:$0xff] }
 0x4ba   : > { %26980 = vmatprep.mubr.msk.f32.mxu1 %vm28751_vm2, %v36084_v48  ;;  %26953 = vmatprep.subr.mxu0 %v36084_v48  ;;  %v26657_v0 = vpop.f32.mrf.mxu0 }
 0x4bb   : > { %26946 = vmatmul.mubr.msk.f32.vlgmr.msra.gmra.mxu0 %vm1581_vm3, %v36266_v37  ;;  %26988 = vmatprep.subr.mxu1 %v36084_v48  ;;  %36269 = vst [vmem:[#allocation143_spill] sm:$0xff] %v31442_v62  ;;  %v36271_v0 = vld [vmem:[#allocation57_spill] sm:$0xff] }
 0x4bc   : > { %26981 = vmatmul.mubr.msk.f32.vlgmr.msra.gmra.mxu1 %vm1581_vm3, %v36267_v52  ;;  %26954 = vmatpush3.xpose.msk.msra.mxu0 %vm1581_vm3, %v36268_v27  ;;  %v36273_v27 = vld [vmem:[#allocation148_spill] sm:$0xff]  ;;  %v36274_v52 = vld [vmem:[#allocation154_spill] sm:$0xff] }
 0x4bd   : > { %26989 = vmatpush3.xpose.msk.msra.mxu1 %vm1581_vm3, %v36270_v58  ;;  %26955 = vmatprep.mubr.msk.f32.mxu0 %vm28751_vm2, %v36084_v48  ;;  %v11571_v58 = vsel %vm1581_vm3, %v31442_v62, -inf }
 0x4be   : > { %26990 = vmatprep.mubr.msk.f32.mxu1 %vm28751_vm2, %v36084_v48  ;;  %26963 = vmatprep.subr.mxu0 %v36084_v48 }
 0x4bf   : > { %26956 = vmatmul.mubr.msk.f32.vlgmr.msra.gmra.mxu0 %vm1581_vm3, %v36271_v0  ;;  %11575 = vmax.xlane.f32.xlu0 %v11574_v38  ;;  %v36276_v0 = vld [vmem:[#allocation90_spill] sm:$0xff] }
 0x4c0   : > { %26991 = vmatmul.mubr.msk.f32.vlgmr.msra.gmra.mxu1 %vm1581_vm3, %v36272_v12  ;;  %26998 = vmatprep.subr.mxu1 %v36084_v48  ;;  %v36275_v12 = vld [vmem:[#allocation65_spill] sm:$0xff] }
 0x4c1   : > { %26964 = vmatpush3.xpose.msk.msra.mxu0 %vm1581_vm3, %v36273_v27  ;;  %26999 = vmatpush3.xpose.msk.msra.mxu1 %vm1581_vm3, %v36274_v52  ;;  %v5300_v37 = vpop.f32.mrf.mxu1  ;;  %v36277_v52 = vld [vmem:[#allocation150_spill] sm:$0xff] }
 0x4c2   : > { %26965 = vmatprep.mubr.msk.f32.mxu0 %vm28751_vm2, %v36084_v48  ;;  %27000 = vmatprep.mubr.msk.f32.mxu1 %vm28751_vm2, %v36084_v48  ;;  %v31478_v14 = vmul.f32 0.35355338, %v5300_v37  ;;  %v36280_v37 = vld [vmem:[#allocation96_spill] sm:$0xff] }
 0x4c3   : > { %26973 = vmatprep.subr.mxu0 %v36084_v48  ;;  %11572 = vmax.xlane.f32.xlu1 %v11571_v58  ;;  %v26672_v38 = vpop.f32.mrf.mxu1 }
 0x4c4   : > { %26966 = vmatmul.mubr.msk.f32.vlgmr.msra.gmra.mxu0 %vm1581_vm3, %v36275_v12  ;;  %27001 = vmatmul.mubr.msk.f32.vlgmr.msra.gmra.mxu1 %vm1581_vm3, %v36276_v0  ;;  %v5224_v27 = vpop.f32.mrf.mxu0  ;;  %36278 = vst [vmem:[#allocation140_spill] sm:$0xff] %v31478_v14  ;;  %v36279_v38 = vld [vmem:[#allocation76_spill] sm:$0xff]  ;;  %v36281_v0 = vld [vmem:[#allocation153_spill] sm:$0xff]  ;;  %v36284_v12 = vld [vmem:[#allocation83_spill] sm:$0xff] }
 0x4c5   : > { %27008 = vmatprep.subr.mxu1 %v36084_v48  ;;  %26974 = vmatpush3.xpose.msk.msra.mxu0 %vm1581_vm3, %v36277_v52  ;;  %v11438_v52 = vpop.xlane.xlu0 %11437 }
 0x4c6   : > { %27009 = vmatpush3.xpose.msk.msra.mxu1 %vm1581_vm3, %v30869_v5  ;;  %26975 = vmatprep.mubr.msk.f32.mxu0 %vm28751_vm2, %v36084_v48  ;;  %v26667_v58 = vpop.f32.mrf.mxu0  ;;  %v31494_v5 = vmul.f32 0.35355338, %v5224_v27 }
 0x4c7   : > { %27010 = vmatprep.mubr.msk.f32.mxu1 %vm28751_vm2, %v36084_v48  ;;  %26983 = vmatprep.subr.mxu0 %v36084_v48  ;;  %v11580_v58 = vsel %vm1581_vm3, %v31478_v14, -inf }
 0x4c8   : > { %26976 = vmatmul.mubr.msk.f32.vlgmr.msra.gmra.mxu0 %vm1581_vm3, %v36279_v38  ;;  %27018 = vmatprep.subr.mxu1 %v36084_v48  ;;  %36282 = vst [vmem:[#allocation145_spill] sm:$0xff] %v31494_v5 }
 0x4c9   : > { %27011 = vmatmul.mubr.msk.f32.vlgmr.msra.gmra.mxu1 %vm1581_vm3, %v36280_v37  ;;  %26984 = vmatpush3.xpose.msk.msra.mxu0 %vm1581_vm3, %v36281_v0  ;;  %v36283_v37 = vld [vmem:[#allocation151_spill] sm:$0xff]  ;;  %v36285_v0 = vld [vmem:[#allocation102_spill] sm:$0xff] }
 0x4ca   : > { %27019 = vmatpush3.xpose.msk.msra.mxu1 %vm1581_vm3, %v30919_v23  ;;  %26985 = vmatprep.mubr.msk.f32.mxu0 %vm28751_vm2, %v36084_v48  ;;  %v11820_v38 = vsub.f32 %v36283_v37, %v11438_v52  ;;  %v11577_v23 = vsel %vm1581_vm3, %v31494_v5, -inf }
 0x4cb   : > { %27020 = vmatprep.mubr.msk.f32.mxu1 %vm28751_vm2, %v36084_v48  ;;  %26993 = vmatprep.subr.mxu0 %v36084_v48 }
 0x4cc   : > { %26986 = vmatmul.mubr.msk.f32.vlgmr.msra.gmra.mxu0 %vm1581_vm3, %v36284_v12  ;;  %11581 = vmax.xlane.f32.xlu0 %v11580_v58  ;;  %v11948_v37 = vmul.f32 1.442695, %v11820_v38  ;;  %v36287_v12 = vld [vmem:[#allocation109_spill] sm:$0xff] }
 0x4cd   : > { %27021 = vmatmul.mubr.msk.f32.vlgmr.msra.gmra.mxu1 %vm1581_vm3, %v36285_v0  ;;  %27028 = vmatprep.subr.mxu1 %v36084_v48  ;;  %v5452_v27 = vpop.f32.mrf.mxu1  ;;  %v36286_v0 = vld [vmem:[#allocation89_spill] sm:$0xff] }
 0x4ce   : > { %26994 = vmatpush3.xpose.msk.msra.mxu0 %vm1581_vm3, %v30832_v17  ;;  %27029 = vmatpush3.xpose.msk.msra.mxu1 %vm1581_vm3, %v30967_v36  ;;  %v31528_v17 = vpop.xlane.xlu1 %11440  ;;  %v31533_v36 = vmul.f32 0.35355338, %v5452_v27  ;;  %27990 = vpow2.f32 %v11948_v37  ;;  %v36292_v37 = vld [vmem:[#allocation101_spill] sm:$0xff] }
 0x4cf   : > { %26995 = vmatprep.mubr.msk.f32.mxu0 %vm28751_vm2, %v36084_v48  ;;  %27030 = vmatprep.mubr.msk.f32.mxu1 %vm28751_vm2, %v36084_v48  ;;  %v26682_v52 = vpop.f32.mrf.mxu1 }
 0x4d0   : > { %27003 = vmatprep.subr.mxu0 %v36084_v48  ;;  %11578 = vmax.xlane.f32.xlu1 %v11577_v23  ;;  %v5376_v58 = vpop.f32.mrf.mxu0  ;;  %36288 = vst [vmem:[#allocation142_spill] sm:$0xff] %v31533_v36  ;;  %v36289_v23 = vld [vmem:[#allocation95_spill] sm:$0xff]  ;;  %v11586_v27 = vsel %vm1581_vm3, %v31533_v36, -inf }
 0x4d1   : > { %26996 = vmatmul.mubr.msk.f32.vlgmr.msra.gmra.mxu0 %vm1581_vm3, %v36286_v0  ;;  %27031 = vmatmul.mubr.msk.f32.vlgmr.msra.gmra.mxu1 %vm1581_vm3, %v36287_v12  ;;  %v36299_v0 = vld [vmem:[#allocation14_spill] sm:$0xff] }
 0x4d2   : > { %27038 = vmatprep.subr.mxu1 %v36084_v48  ;;  %27004 = vmatpush3.xpose.msk.msra.mxu0 %vm1581_vm3, %v30880_v26  ;;  %v26677_v38 = vpop.f32.mrf.mxu0  ;;  %v36290_v26 = vld [vmem:[#allocation116_spill] sm:$0xff]  ;;  %v31557_v52 = vpop.xlane.xlu1 %11452 }
 0x4d3   : > { %27039 = vmatpush3.xpose.msk.msra.mxu1 %vm1581_vm3, %v31008_v1  ;;  %27005 = vmatprep.mubr.msk.f32.mxu0 %vm28751_vm2, %v36084_v48  ;;  %v31549_v1 = vmul.f32 0.35355338, %v5376_v58  ;;  %v36293_v58 = vld [vmem:[#allocation125_spill] sm:$0xff]  ;;  %v11825_v6 = vsub.f32 %v36312_v47, %v31557_v52 }
 0x4d4   : > { %27040 = vmatprep.mubr.msk.f32.mxu1 %vm28751_vm2, %v36084_v48  ;;  %27013 = vmatprep.subr.mxu0 %v36084_v48 }
 0x4d5   : > { %27006 = vmatmul.mubr.msk.f32.vlgmr.msra.gmra.mxu0 %vm1581_vm3, %v36289_v23  ;;  %27048 = vmatprep.subr.mxu1 %v36084_v48  ;;  %36291 = vst [vmem:[#allocation147_spill] sm:$0xff] %v31549_v1 }
 0x4d6   : > { %27041 = vmatmul.mubr.msk.f32.vlgmr.msra.gmra.mxu1 %vm1581_vm3, %v36290_v26  ;;  %27014 = vmatpush3.xpose.msk.msra.mxu0 %vm1581_vm3, %v30930_v61  ;;  %v31582_v23 = vpop.xlane.xlu1 %11458 }
 0x4d7   : > { %27049 = vmatpush3.xpose.msk.msra.mxu1 %vm1581_vm3, %v31039_v53  ;;  %27015 = vmatprep.mubr.msk.f32.mxu0 %vm28751_vm2, %v36084_v48  ;;  %v11583_v53 = vsel %vm1581_vm3, %v31549_v1, -inf }
 0x4d8   : > { %27050 = vmatprep.mubr.msk.f32.mxu1 %vm28751_vm2, %v36084_v48  ;;  %27023 = vmatprep.subr.mxu0 %v36084_v48 }
 0x4d9   : > { %27016 = vmatmul.mubr.msk.f32.vlgmr.msra.gmra.mxu0 %vm1581_vm3, %v36292_v37  ;;  %11587 = vmax.xlane.f32.xlu0 %v11586_v27  ;;  %v5604_v61 = vpop.f32.mrf.mxu1 }
 0x4da   : > { %27051 = vmatmul.mubr.msk.f32.vlgmr.msra.gmra.mxu1 %vm1581_vm3, %v36293_v58  ;;  %27058 = vmatprep.subr.mxu1 %v36084_v48  ;;  %v31569_v38 = vmul.f32 0.35355338, %v5604_v61  ;;  %v11444_v58 = vpop.xlane.xlu0 %11443 }
 0x4db   : > { %27024 = vmatpush3.xpose.msk.msra.mxu0 %vm1581_vm3, %v30978_v49  ;;  %27059 = vmatpush3.xpose.msk.msra.mxu1 %vm1581_vm3, %v31473_v55  ;;  %v26692_v26 = vpop.f32.mrf.mxu1  ;;  %v36296_v49 = vld [vmem:[#allocation108_spill] sm:$0xff] }
 0x4dc   : > { %36294 = vst [vmem:[#allocation144_spill] sm:$0xff] %v31569_v38  ;;  %27025 = vmatprep.mubr.msk.f32.mxu0 %vm28751_vm2, %v36084_v48  ;;  %27060 = vmatprep.mubr.msk.f32.mxu1 %vm28751_vm2, %v36084_v48  ;;  %v5528_v27 = vpop.f32.mrf.mxu0  ;;  %v36297_v55 = vld [vmem:[#allocation132_spill] sm:$0xff]  ;;  %v11592_v26 = vsel %vm1581_vm3, %v31569_v38, -inf }
 0x4dd   : > { %27033 = vmatprep.subr.mxu0 %v36084_v48  ;;  %11584 = vmax.xlane.f32.xlu1 %v11583_v53  ;;  %v31580_v61 = vmul.f32 0.35355338, %v5528_v27  ;;  %v36298_v27 = vld [vmem:[#allocation115_spill] sm:$0xff] }
 0x4de   : > { %27026 = vmatmul.mubr.msk.f32.vlgmr.msra.gmra.mxu0 %vm1581_vm3, %v36296_v49  ;;  %27061 = vmatmul.mubr.msk.f32.vlgmr.msra.gmra.mxu1 %vm1581_vm3, %v36297_v55  ;;  %v26687_v12 = vpop.f32.mrf.mxu0  ;;  %v11822_v37 = vsub.f32 %v36298_v27, %v11444_v58  ;;  %v31599_v55 = vpop.eup %27990 }
 0x4df   : > { %36295 = vst [vmem:[#allocation149_spill] sm:$0xff] %v31580_v61  ;;  %27068 = vmatprep.subr.mxu1 %v36084_v48  ;;  %27034 = vmatpush3.xpose.msk.msra.mxu0 %vm1581_vm3, %v31019_v34  ;;  %v11589_v53 = vsel %vm1581_vm3, %v31580_v61, -inf  ;;  %v36300_v12 = vld [vmem:[#allocation114_spill] sm:$0xff]  ;;  %v36301_v34 = vld [vmem:[#allocation103_spill] sm:$0xff]  ;;  %v31610_v58 = vpop.xlane.xlu1 %11488 }
 0x4e0   : > { %27069 = vmatpush3.msra.mxu1 %v36299_v0  ;;  %27035 = vmatprep.mubr.msk.f32.mxu0 %vm28751_vm2, %v36084_v48  ;;  %v11821_v49 = vsub.f32 %v36301_v34, %v31528_v17  ;;  %v11952_v0 = vmul.f32 1.442695, %v11822_v37  ;;  %v36302_v17 = vld [vmem:[#allocation124_spill] sm:$0xff] }
 0x4e1   : > { %27043 = vmatprep.subr.mxu0 %v36084_v48  ;;  %11593 = vmax.xlane.f32.xlu0 %v11592_v26  ;;  %v12204_v26 = vsel %vm1581_vm3, %v31599_v55, 0.0 }
 0x4e2   : > { %27036 = vmatmul.mubr.msk.f32.vlgmr.msra.gmra.mxu0 %vm1581_vm3, %v36300_v12  ;;  %11590 = vmax.xlane.f32.xlu1 %v11589_v53  ;;  %v11950_v37 = vmul.f32 1.442695, %v11821_v49  ;;  %27992 = vpow2.f32 %v11952_v0  ;;  %v11447_v12 = vpop.xlane.xlu0 %11446  ;;  %v36305_v49 = vld [vmem:[#allocation131_spill] sm:$0xff] }
 0x4e3   : > { %27044 = vmatpush3.xpose.msk.msra.mxu0 %vm1581_vm3, %v31043_v57  ;;  %27045 = vmatprep.mubr.msk.f32.mxu0 %vm28751_vm2, %v36084_v48 }
 0x4e4   : > { %27053 = vmatprep.subr.mxu0 %v36084_v48  ;;  %27070 = vmatprep.mubr.msk.f32.mxu1 %vm28751_vm2, %v36084_v48  ;;  %27994 = vpow2.f32 %v11950_v37 }
 0x4e5   : > { %12205 = vadd.xlane.f32.xlu0 %v12204_v26  ;;  %v5756_v53 = vpop.f32.mrf.mxu1  ;;  %27078 = vmatprep.subr.mxu1 %v36084_v48 }
 0x4e6   : > { %27046 = vmatmul.mubr.msk.f32.vlgmr.msra.gmra.mxu0 %vm1581_vm3, %v36302_v17  ;;  %v31620_v57 = vmul.f32 0.35355338, %v5756_v53  ;;  %v31631_v53 = vpop.xlane.xlu1 %11494 }
 0x4e7   : > { %27054 = vmatpush3.xpose.msk.msra.mxu0 %vm1581_vm3, %v31077_v41  ;;  %27055 = vmatprep.mubr.msk.f32.mxu0 %vm28751_vm2, %v36084_v48  ;;  %v26702_v27 = vpop.f32.mrf.mxu1 }
 0x4e8   : > { %36303 = vst [vmem:[#allocation146_spill] sm:$0xff] %v31620_v57  ;;  %27063 = vmatprep.subr.mxu0 %v36084_v48  ;;  %v5680_v34 = vpop.f32.mrf.mxu0  ;;  %v11598_v26 = vsel %vm1581_vm3, %v31620_v57, -inf  ;;  %v36306_v27 = vld [vmem:[#allocation136_spill] sm:$0xff] }
 0x4e9   : > { %v31629_v8 = vmul.f32 0.35355338, %v5680_v34  ;;  %11599 = vmax.xlane.f32.xlu0 %v11598_v26  ;;  %v36307_v34 = vld [vmem:[#allocation117_spill] sm:$0xff] }
 0x4ea   : > { %27056 = vmatmul.mubr.msk.f32.vlgmr.msra.gmra.mxu0 %vm1581_vm3, %v36305_v49  ;;  %v26697_v41 = vpop.f32.mrf.mxu0  ;;  %v11823_v26 = vsub.f32 %v36307_v34, %v11447_v12  ;;  %v11450_v49 = vpop.xlane.xlu0 %11449 }
 0x4eb   : > { %36304 = vst [vmem:[#allocation152_spill] sm:$0xff] %v31629_v8  ;;  %27064 = vmatpush3.xpose.msk.msra.mxu0 %vm1581_vm3, %v31513_v43  ;;  %27065 = vmatprep.mubr.msk.f32.mxu0 %vm28751_vm2, %v36084_v48  ;;  %v11595_v0 = vsel %vm1581_vm3, %v31629_v8, -inf  ;;  %v36308_v41 = vld [vmem:[#allocation6_spill] sm:$0xff]  ;;  %v31648_v43 = vpop.xlane.xlu1 %11464 }
 0x4ec   : > { %27073 = vmatprep.subr.mxu0 %v36084_v48  ;;  %11596 = vmax.xlane.f32.xlu1 %v11595_v0  ;;  %v11954_v25 = vmul.f32 1.442695, %v11823_v26 }
 0x4ee   : > { %27066 = vmatmul.mubr.msk.f32.vlgmr.msra.gmra.mxu0 %vm1581_vm3, %v36306_v27  ;;  %v31657_v34 = vpop.xlane.xlu0 %11455  ;;  %27996 = vpow2.f32 %v11954_v25 }
 0x4ef   : > { %27074 = vmatpush3.msra.mxu0 %v36308_v41  ;;  %27075 = vmatprep.mubr.msk.f32.mxu0 %vm28751_vm2, %v36084_v48  ;;  %v31655_v12 = vpop.eup %27992  ;;  %v31661_v22 = vpop.xlane.xlu1 %11500 }
 0x4f0   : > { %27083 = vmatprep.subr.mxu0 %v36084_v48 }
 0x4f1   : > { %v5908_v37 = vpop.f32.mrf.mxu1  ;;  %v31665_v26 = vpop.eup %27994 }
 0x4f2   : > { %v31651_v17 = vmul.f32 0.35355338, %v5908_v37  ;;  %v31669_v33 = vpop.xlane.xlu0 %11461 }
 0x4f3   : > { %v26712_v0 = vpop.f32.mrf.mxu1 }
 0x4f4   : > { %36309 = vst [vmem:[#allocation148_spill] sm:$0xff] %v31651_v17  ;;  %v5832_v21 = vpop.f32.mrf.mxu0  ;;  %v11604_v27 = vsel %vm1581_vm3, %v31651_v17, -inf  ;;  %v12210_v0 = vsel %vm1581_vm3, %v31655_v12, 0.0 }
 0x4f5   : > { %v31659_v41 = vmul.f32 0.35355338, %v5832_v21  ;;  %11605 = vmax.xlane.f32.xlu0 %v11604_v27  ;;  %v12207_v21 = vsel %vm1581_vm3, %v31665_v26, 0.0  ;;  %v31673_v27 = vpop.xlane.xlu1 %11506 }
 0x4f6   : > { %v26707_v28 = vpop.f32.mrf.mxu0  ;;  %v31675_v9 = vpop.xlane.xlu0 %11467 }
 0x4f7   : > { %36310 = vst [vmem:[#allocation154_spill] sm:$0xff] %v31659_v41  ;;  %v11601_v37 = vsel %vm1581_vm3, %v31659_v41, -inf }
 0x4f8   : > { %11602 = vmax.xlane.f32.xlu1 %v11601_v37 }
 0x4f9   : > { %12211 = vadd.xlane.f32.xlu0 %v12210_v0  ;;  %v11471_v37 = vpop.xlane.xlu1 %11470 }
 0x4fa   : > { %v31687_v7 = vpop.xlane.xlu0 %11473 }
 0x4fb   : > { %v31681_v13 = vpop.eup %27996 }
 0x4fc   : > { %12208 = vadd.xlane.f32.xlu1 %v12207_v21  ;;  %v12213_v21 = vsel %vm1581_vm3, %v31681_v13, 0.0 }
 0x4fd   : > { %v6060_v28 = vpop.f32.mrf.mxu1  ;;  %v31689_v4 = vpop.xlane.xlu1 %11512 }
 0x4fe   : > { %v31696_v47 = vpop.xlane.xlu0 %11479 }
 0x4ff   : > { %v26722_v25 = vpop.f32.mrf.mxu1 }
 0x500   : > { %v5984_v45 = vpop.f32.mrf.mxu0  ;;  %v11958_v25 = vmul.f32 1.442695, %v11825_v6  ;;  %v31698_v6 = vmul.f32 0.35355338, %v6060_v28 }
 0x501   : > { %v31677_v39 = vmul.f32 0.35355338, %v5984_v45 }
 0x502   : > { %v26717_v29 = vpop.f32.mrf.mxu0  ;;  %27998 = vpow2.f32 %v11958_v25  ;;  %36315 = vst [vmem:[#allocation151_spill] sm:$0xff] %v31698_v6  ;;  %v31706_v25 = vpop.xlane.xlu0 %11485 }
 0x503   : > { %36311 = vst [vmem:[#allocation150_spill] sm:$0xff] %v31677_v39  ;;  %v11607_v0 = vsel %vm1581_vm3, %v31677_v39, -inf  ;;  %v36313_v29 = vld [vmem:[#allocation119_spill] sm:$0xff]  ;;  %v31692_v39 = vpop.xlane.xlu1 %11518 }
 0x504   : > { %11608 = vmax.xlane.f32.xlu1 %v11607_v0  ;;  %v11824_v3 = vsub.f32 %v36313_v29, %v11450_v49  ;;  %v11610_v49 = vsel %vm1581_vm3, %v31698_v6, -inf }
 0x506   : > { %v11956_v0 = vmul.f32 1.442695, %v11824_v3  ;;  %v36316_v3 = vld [vmem:[#allocation126_spill] sm:$0xff]  ;;  %v31720_v57 = vpop.xlane.xlu0 %11491 }
 0x507   : > { %v11826_v28 = vsub.f32 %v36316_v3, %v31657_v34 }
 0x508   : > { %12214 = vadd.xlane.f32.xlu1 %v12213_v21  ;;  %v11827_v21 = vsub.f32 %v30878_v30, %v31582_v23  ;;  %28000 = vpow2.f32 %v11956_v0  ;;  %v11829_v30 = vsub.f32 %v30926_v15, %v31648_v43  ;;  %v11831_v15 = vsub.f32 %v30974_v11, %v11471_v37 }
 0x509   : > { %v6212_v45 = vpop.f32.mrf.mxu1  ;;  %v11960_v6 = vmul.f32 1.442695, %v11826_v28 }
 0x50a   : > { %v11966_v3 = vmul.f32 1.442695, %v11829_v30  ;;  %v11837_v30 = vsub.f32 %v30888_v42, %v31610_v58  ;;  %v11970_v11 = vmul.f32 1.442695, %v11831_v15  ;;  %v36322_v42 = vld [vmem:[#allocation155_spill] sm:$0xff] }
 0x50b   : > { %v26732_v54 = vpop.f32.mrf.mxu1  ;;  %v11828_v58 = vsub.f32 %v36322_v42, %v31669_v33 }
 0x50c   : > { %v6136_v41 = vpop.f32.mrf.mxu0  ;;  %v11477_v54 = vpop.xlane.xlu1 %11476 }
 0x50d   : > { %v31694_v17 = vmul.f32 0.35355338, %v6136_v41  ;;  %v11962_v41 = vmul.f32 1.442695, %v11827_v21  ;;  %v11964_v33 = vmul.f32 1.442695, %v11828_v58 }
 0x50e   : > { %v26727_v52 = vpop.f32.mrf.mxu0 }
 0x50f   : > { %36314 = vst [vmem:[#allocation153_spill] sm:$0xff] %v31694_v17  ;;  %v11613_v8 = vsel %vm1581_vm3, %v31694_v17, -inf  ;;  %28002 = vpow2.f32 %v11962_v41  ;;  %v31718_v0 = vpop.eup %27998 }
 0x510   : > { %11614 = vmax.xlane.f32.xlu0 %v11613_v8  ;;  %v31710_v52 = vpop.xlane.xlu1 %11524  ;;  %v12219_v28 = vsel %vm1581_vm3, %v31718_v0, 0.0  ;;  %28004 = vpow2.f32 %v11960_v6 }
 0x511   : > { %28006 = vpow2.f32 %v11966_v3  ;;  %v11982_v3 = vmul.f32 1.442695, %v11837_v30 }
 0x512   : > { %28008 = vpow2.f32 %v11970_v11  ;;  %v36324_v11 = vld [vmem:[#allocation160_spill] sm:$0xff] }
 0x513   : > { %28010 = vpow2.f32 %v11982_v3 }
 0x514   : > { %11611 = vmax.xlane.f32.xlu0 %v11610_v49  ;;  %v31722_v34 = vpop.xlane.xlu1 %11530 }
 0x515   : > { %v6364_v29 = vpop.f32.mrf.mxu1 }
 0x516   : > { %v31712_v17 = vmul.f32 0.35355338, %v6364_v29 }
 0x517   : > { %v26742_v8 = vpop.f32.mrf.mxu1 }
 0x518   : > { %36317 = vst [vmem:[#allocation115_spill] sm:$0xff] %v31712_v17  ;;  %v11622_v23 = vsel %vm1581_vm3, %v31712_v17, -inf  ;;  %v31727_v8 = vmul.f32 0.35355338, %v6212_v45  ;;  %v31737_v45 = vpop.eup %28000  ;;  %v11483_v6 = vpop.xlane.xlu1 %11482 }
 0x519   : > { %v6288_v21 = vpop.f32.mrf.mxu0  ;;  %v6516_v49 = vpop.f32.mrf.mxu1  ;;  %11623 = vmax.xlane.f32.xlu1 %v11622_v23 }
 0x51a   : > { %v31724_v29 = vmul.f32 0.35355338, %v6288_v21  ;;  %36319 = vst [vmem:[#allocation103_spill] sm:$0xff] %v31727_v8  ;;  %v31729_v17 = vmul.f32 0.35355338, %v6516_v49  ;;  %v11498_v21 = vpop.xlane.xlu0 %11497  ;;  %v11833_v49 = vsub.f32 %v31015_v24, %v11477_v54  ;;  %v12216_v24 = vsel %vm1581_vm3, %v31737_v45, 0.0 }
 0x51b   : > { %v26737_v43 = vpop.f32.mrf.mxu0  ;;  %v26752_v41 = vpop.f32.mrf.mxu1 }
 0x51c   : > { %36318 = vst [vmem:[#allocation14_spill] sm:$0xff] %v31724_v29  ;;  %36320 = vst [vmem:[#allocation117_spill] sm:$0xff] %v31729_v17  ;;  %v11619_v61 = vsel %vm1581_vm3, %v31724_v29, -inf  ;;  %v11616_v41 = vsel %vm1581_vm3, %v31727_v8, -inf  ;;  %v11974_v54 = vmul.f32 1.442695, %v11833_v49  ;;  %v31753_v29 = vpop.eup %28002  ;;  %v11839_v49 = vsub.f32 %v36324_v11, %v31631_v53 }
 0x51d   : > { %v6668_v23 = vpop.f32.mrf.mxu1  ;;  %11620 = vmax.xlane.f32.xlu0 %v11619_v61  ;;  %12220 = vadd.xlane.f32.xlu1 %v12219_v28  ;;  %v11628_v61 = vsel %vm1581_vm3, %v31729_v17, -inf  ;;  %v36327_v53 = vld [vmem:[#allocation162_spill] sm:$0xff] }
 0x51e   : > { %v31740_v43 = vmul.f32 0.35355338, %v6668_v23  ;;  %v11835_v23 = vsub.f32 %v31098_v50, %v11483_v6  ;;  %v36325_v50 = vld [vmem:[#allocation161_spill] sm:$0xff]  ;;  %v11504_v42 = vpop.xlane.xlu0 %11503  ;;  %28012 = vpow2.f32 %v11974_v54  ;;  %v11986_v11 = vmul.f32 1.442695, %v11839_v49  ;;  %v36329_v54 = vld [vmem:[#allocation163_spill] sm:$0xff] }
 0x51f   : > { %v26762_v37 = vpop.f32.mrf.mxu1  ;;  %v11838_v6 = vsub.f32 %v36325_v50, %v31720_v57  ;;  %28014 = vpow2.f32 %v11964_v33 }
 0x520   : > { %36321 = vst [vmem:[#allocation6_spill] sm:$0xff] %v31740_v43  ;;  %v11634_v17 = vsel %vm1581_vm3, %v31740_v43, -inf }
 0x521   : > { %v6820_v28 = vpop.f32.mrf.mxu1  ;;  %11617 = vmax.xlane.f32.xlu0 %v11616_v41  ;;  %11629 = vmax.xlane.f32.xlu1 %v11628_v61 }
 0x522   : > { %v31765_v8 = vmul.f32 0.35355338, %v6820_v28  ;;  %v11841_v28 = vsub.f32 %v36329_v54, %v31661_v22  ;;  %v36330_v22 = vld [vmem:[#allocation156_spill] sm:$0xff] }
 0x523   : > { %v26772_v15 = vpop.f32.mrf.mxu1 }
 0x524   : > { %v6440_v37 = vpop.f32.mrf.mxu0  ;;  %36326 = vst [vmem:[#allocation119_spill] sm:$0xff] %v31765_v8  ;;  %v11990_v54 = vmul.f32 1.442695, %v11841_v28 }
 0x525   : > { %v31755_v41 = vmul.f32 0.35355338, %v6440_v37  ;;  %v31757_v61 = vpop.f32.mrf.mxu1  ;;  %11635 = vmax.xlane.f32.xlu1 %v11634_v17  ;;  %12217 = vadd.xlane.f32.xlu0 %v12216_v24  ;;  %v11978_v37 = vmul.f32 1.442695, %v11835_v23  ;;  %v12225_v17 = vsel %vm1581_vm3, %v31753_v29, 0.0  ;;  %v11840_v24 = vsub.f32 %v36327_v53, %v11498_v21 }
 0x526   : > { %v26747_v30 = vpop.f32.mrf.mxu0  ;;  %v11830_v53 = vsub.f32 %v36330_v22, %v31675_v9 }
 0x527   : > { %36323 = vst [vmem:[#allocation122_spill] sm:$0xff] %v31755_v41  ;;  %v26782_v15 = vpop.f32.mrf.mxu1  ;;  %v11625_v43 = vsel %vm1581_vm3, %v31755_v41, -inf  ;;  %v31774_v30 = vpop.eup %28004  ;;  %v11984_v41 = vmul.f32 1.442695, %v11838_v6  ;;  %28016 = vpow2.f32 %v11978_v37  ;;  %v11988_v33 = vmul.f32 1.442695, %v11840_v24 }
 0x528   : > { %v31778_v15 = vpop.eup %28006  ;;  %28018 = vpow2.f32 %v11986_v11  ;;  %v12222_v37 = vsel %vm1581_vm3, %v31774_v30, 0.0  ;;  %v11968_v11 = vmul.f32 1.442695, %v11830_v53 }
 0x529   : > { %v6592_v58 = vpop.f32.mrf.mxu0  ;;  %v31769_v3 = vpop.f32.mrf.mxu1  ;;  %12226 = vadd.xlane.f32.xlu1 %v12225_v17  ;;  %11626 = vmax.xlane.f32.xlu0 %v11625_v43  ;;  %v11640_v43 = vsel %vm1581_vm3, %v31765_v8, -inf  ;;  %28020 = vpow2.f32 %v11984_v41  ;;  %v12231_v24 = vsel %vm1581_vm3, %v31778_v15, 0.0  ;;  %v36333_v41 = vld [vmem:[#allocation165_spill] sm:$0xff] }
 0x52a   : > { %v31772_v57 = vmul.f32 0.35355338, %v6592_v58  ;;  %v11510_v17 = vpop.xlane.xlu0 %11509  ;;  %28022 = vpow2.f32 %v11988_v33 }
 0x52b   : > { %v26757_v23 = vpop.f32.mrf.mxu0  ;;  %v26792_v50 = vpop.f32.mrf.mxu1  ;;  %28024 = vpow2.f32 %v11990_v54 }
 0x52c   : > { %36328 = vst [vmem:[#allocation126_spill] sm:$0xff] %v31772_v57  ;;  %v11631_v21 = vsel %vm1581_vm3, %v31772_v57, -inf  ;;  %v36331_v23 = vld [vmem:[#allocation164_spill] sm:$0xff]  ;;  %28026 = vpow2.f32 %v11968_v11 }
 0x52d   : > { %v6744_v58 = vpop.f32.mrf.mxu0  ;;  %11641 = vmax.xlane.f32.xlu1 %v11640_v43  ;;  %11632 = vmax.xlane.f32.xlu0 %v11631_v21  ;;  %v11842_v50 = vsub.f32 %v36331_v23, %v11504_v42  ;;  %v31795_v43 = vpop.eup %28008  ;;  %v11843_v42 = vsub.f32 %v36333_v41, %v31673_v27 }
 0x52e   : > { %v31784_v49 = vpop.f32.mrf.mxu1  ;;  %v31791_v8 = vmul.f32 0.35355338, %v6744_v58  ;;  %v31803_v28 = vpop.xlane.xlu0 %11515 }
 0x52f   : > { %v26767_v6 = vpop.f32.mrf.mxu0  ;;  %v31805_v58 = vpop.eup %28010  ;;  %v11992_v22 = vmul.f32 1.442695, %v11842_v50 }
 0x530   : > { %36332 = vst [vmem:[#allocation155_spill] sm:$0xff] %v31791_v8  ;;  %v26802_v57 = vpop.f32.mrf.mxu1  ;;  %v36334_v6 = vld [vmem:[#allocation166_spill] sm:$0xff]  ;;  %v11637_v33 = vsel %vm1581_vm3, %v31791_v8, -inf  ;;  %v31812_v53 = vpop.eup %28012 }
 0x531   : > { %v31797_v21 = vpop.f32.mrf.mxu0  ;;  %12232 = vadd.xlane.f32.xlu1 %v12231_v24  ;;  %12223 = vadd.xlane.f32.xlu0 %v12222_v37  ;;  %v11844_v23 = vsub.f32 %v36334_v6, %v11510_v17  ;;  %v12237_v37 = vsel %vm1581_vm3, %v31795_v43, 0.0  ;;  %v11994_v24 = vmul.f32 1.442695, %v11843_v42  ;;  %v31820_v17 = vpop.eup %28014  ;;  %28028 = vpow2.f32 %v11992_v22 }
 0x532   : > { %v31799_v9 = vpop.f32.mrf.mxu1  ;;  %v31818_v50 = vpop.xlane.xlu0 %11521  ;;  %v12243_v6 = vsel %vm1581_vm3, %v31812_v53, 0.0 }
 0x533   : > { %v26777_v57 = vpop.f32.mrf.mxu0  ;;  %28030 = vpow2.f32 %v11994_v24 }
 0x534   : > { %v26812_v38 = vpop.f32.mrf.mxu1 }
 0x535   : > { %12238 = vadd.xlane.f32.xlu1 %v12237_v37  ;;  %11638 = vmax.xlane.f32.xlu0 %v11637_v33  ;;  %v11996_v38 = vmul.f32 1.442695, %v11844_v23  ;;  %v12255_v37 = vsel %vm1581_vm3, %v31805_v58, 0.0  ;;  %v31826_v33 = vpop.eup %28016 }
 0x536   : > { %v31814_v27 = vpop.f32.mrf.mxu0  ;;  %v31816_v54 = vpop.f32.mrf.mxu1 }
 0x537   : > { %v31832_v8 = vpop.eup %28018  ;;  %28032 = vpow2.f32 %v11996_v38  ;;  %v31834_v22 = vpop.xlane.xlu0 %11527 }
 0x538   : > { %v26787_v41 = vpop.f32.mrf.mxu0  ;;  %v26822_v57 = vpop.f32.mrf.mxu1  ;;  %36335 = vst [vmem:[#allocation160_spill] sm:$0xff] %v31832_v8  ;;  %v12261_v14 = vsel %vm1581_vm3, %v31832_v8, 0.0 }
 0x539   : > { %12244 = vadd.xlane.f32.xlu1 %v12243_v6  ;;  %12256 = vadd.xlane.f32.xlu0 %v12255_v37  ;;  %v12249_v41 = vsel %vm1581_vm3, %v31826_v33, 0.0  ;;  %v12228_v57 = vsel %vm1581_vm3, %v31820_v17, 0.0  ;;  %v31840_v1 = vpop.eup %28020 }
 0x53a   : > { %v31828_v11 = vpop.f32.mrf.mxu0  ;;  %36336 = vst [vmem:[#allocation161_spill] sm:$0xff] %v31840_v1  ;;  %v31844_v37 = vpop.eup %28022  ;;  %v12258_v62 = vsel %vm1581_vm3, %v31840_v1, 0.0 }
 0x53b   : > { %v31830_v42 = vpop.f32.mrf.mxu1  ;;  %36337 = vst [vmem:[#allocation162_spill] sm:$0xff] %v31844_v37  ;;  %v31848_v38 = vpop.eup %28024  ;;  %v12264_v10 = vsel %vm1581_vm3, %v31844_v37, 0.0 }
 0x53c   : > { %v26797_v23 = vpop.f32.mrf.mxu0  ;;  %36339 = vst [vmem:[#allocation156_spill] sm:$0xff] %v31848_v38  ;;  %v31860_v60 = vpop.eup %28026 }
 0x53d   : > { %v26832_v6 = vpop.f32.mrf.mxu1  ;;  %12250 = vadd.xlane.f32.xlu1 %v12249_v41  ;;  %12229 = vadd.xlane.f32.xlu0 %v12228_v57  ;;  %v31850_v23 = vpop.xlane.xlu0 %11533  ;;  %v12234_v16 = vsel %vm1581_vm3, %v31860_v60, 0.0 }
 0x53e   : > { %v31842_v24 = vpop.f32.mrf.mxu0  ;;  %v31868_v40 = vpop.eup %28028 }
 0x53f   : > { %v31846_v36 = vpop.f32.mrf.mxu1  ;;  %36341 = vst [vmem:[#allocation165_spill] sm:$0xff] %v31868_v40  ;;  %v12270_v59 = vsel %vm1581_vm3, %v31868_v40, 0.0 }
 0x540   : > { %36338 = vst [vmem:[#allocation163_spill] sm:$0xff] %v31846_v36  ;;  %v26807_v5 = vpop.f32.mrf.mxu0 }
 0x541   : > { %v26842_v6 = vpop.f32.mrf.mxu1  ;;  %12262 = vadd.xlane.f32.xlu0 %v12261_v14  ;;  %12259 = vadd.xlane.f32.xlu1 %v12258_v62  ;;  %v31862_v56 = vpop.xlane.xlu0 %11539  ;;  %v12267_v5 = vsel %vm1581_vm3, %v31848_v38, 0.0 }
 0x542   : > { %v31872_v62 = vpop.eup %28030 }
 0x543   : > { %v31856_v41 = vpop.f32.mrf.mxu0  ;;  %v31858_v57 = vpop.f32.mrf.mxu1  ;;  %36343 = vst [vmem:[#allocation175_spill] sm:$0xff] %v31872_v62 }
 0x544   : > { %36340 = vst [vmem:[#allocation164_spill] sm:$0xff] %v31858_v57  ;;  %v31880_v38 = vpop.eup %28032 }
 0x545   : > { %v26817_v35 = vpop.f32.mrf.mxu0  ;;  %v26852_v6 = vpop.f32.mrf.mxu1  ;;  %12268 = vadd.xlane.f32.xlu0 %v12267_v5  ;;  %12265 = vadd.xlane.f32.xlu1 %v12264_v10  ;;  %36345 = vst [vmem:[#allocation177_spill] sm:$0xff] %v31880_v38  ;;  %v12276_v36 = vsel %vm1581_vm3, %v31880_v38, 0.0 }
 0x546   : > { %v31882_v37 = vpop.xlane.xlu0 %11545 }
 0x547   : > { %v31870_v14 = vpop.f32.mrf.mxu0 }
 0x548   : > { %36342 = vst [vmem:[#allocation166_spill] sm:$0xff] %v31870_v14  ;;  %v31874_v57 = vpop.f32.mrf.mxu1 }
 0x549   : > { %36344 = vst [vmem:[#allocation176_spill] sm:$0xff] %v31874_v57  ;;  %v26827_v35 = vpop.f32.mrf.mxu0  ;;  %12235 = vadd.xlane.f32.xlu0 %v12234_v16  ;;  %12271 = vadd.xlane.f32.xlu1 %v12270_v59  ;;  %v12273_v57 = vsel %vm1581_vm3, %v31872_v62, 0.0  ;;  %v31898_v16 = vpop.xlane.xlu1 %11536 }
 0x54a   : > { %v26862_v10 = vpop.f32.mrf.mxu1  ;;  %v31892_v19 = vpop.xlane.xlu0 %11551 }
 0x54b   : > { %v31884_v5 = vpop.f32.mrf.mxu0  ;;  %36348 = vst [vmem:[#allocation180_spill] sm:$0xff] %v31892_v19 }
 0x54c   : > { %36346 = vst [vmem:[#allocation178_spill] sm:$0xff] %v31884_v5  ;;  %v31886_v6 = vpop.f32.mrf.mxu1 }
 0x54d   : > { %36347 = vst [vmem:[#allocation179_spill] sm:$0xff] %v31886_v6  ;;  %v26837_v40 = vpop.f32.mrf.mxu0  ;;  %12274 = vadd.xlane.f32.xlu0 %v12273_v57  ;;  %12277 = vadd.xlane.f32.xlu1 %v12276_v36  ;;  %v31904_v2 = vpop.xlane.xlu1 %11542 }
 0x54e   : > { %v26872_v1 = vpop.f32.mrf.mxu1  ;;  %v31900_v10 = vpop.xlane.xlu0 %11557 }
 0x54f   : > { %36351 = vst [vmem:[#allocation183_spill] sm:$0xff] %v31900_v10 }
 0x550   : > { %v31894_v35 = vpop.f32.mrf.mxu0  ;;  %v31896_v59 = vpop.f32.mrf.mxu1 }
 0x551   : > { %36349 = vst [vmem:[#allocation181_spill] sm:$0xff] %v31894_v35  ;;  %36350 = vst [vmem:[#allocation182_spill] sm:$0xff] %v31896_v59  ;;  %v31912_v35 = vpop.xlane.xlu1 %11548 }
 0x552   : > { %v26847_v6 = vpop.f32.mrf.mxu0  ;;  %v26882_v5 = vpop.f32.mrf.mxu1  ;;  %36356 = vst [vmem:[#allocation188_spill] sm:$0xff] %v31912_v35 }
 0x553   : > { %v31908_v40 = vpop.xlane.xlu0 %11563 }
 0x554   : > { %v31902_v62 = vpop.f32.mrf.mxu0  ;;  %36354 = vst [vmem:[#allocation186_spill] sm:$0xff] %v31908_v40 }
 0x555   : > { %36352 = vst [vmem:[#allocation184_spill] sm:$0xff] %v31902_v62  ;;  %v31906_v38 = vpop.f32.mrf.mxu1  ;;  %v31922_v8 = vpop.xlane.xlu1 %11554 }
 0x556   : > { %36353 = vst [vmem:[#allocation185_spill] sm:$0xff] %v31906_v38  ;;  %v26857_v36 = vpop.f32.mrf.mxu0  ;;  %36361 = vst [vmem:[#allocation193_spill] sm:$0xff] %v31922_v8 }
 0x557   : > { %v26892_v1 = vpop.f32.mrf.mxu1  ;;  %v31916_v19 = vpop.xlane.xlu0 %11569  ;;  %v36363_v36 = vld [vmem:[#allocation2_spill] sm:$0xff] }
 0x558   : > { %v31910_v57 = vpop.f32.mrf.mxu0  ;;  %36358 = vst [vmem:[#allocation190_spill] sm:$0xff] %v31916_v19 }
 0x559   : > { %36355 = vst [vmem:[#allocation187_spill] sm:$0xff] %v31910_v57  ;;  %v31914_v59 = vpop.f32.mrf.mxu1 }
 0x55a   : > { %36357 = vst [vmem:[#allocation189_spill] sm:$0xff] %v31914_v59  ;;  %v26867_v6 = vpop.f32.mrf.mxu0  ;;  %v31930_v59 = vpop.xlane.xlu1 %11560 }
 0x55b   : > { %v26902_v5 = vpop.f32.mrf.mxu1  ;;  %v31924_v38 = vpop.xlane.xlu0 %11575  ;;  %36365 = vst [vmem:[#allocation195_spill] sm:$0xff] %v31930_v59  ;;  %v36373_v59 = vld [vmem:[#allocation157_spill] sm:$0xff] }
 0x55c   : > { %36362 = vst [vmem:[#allocation194_spill] sm:$0xff] %v31924_v38 }
 0x55d   : > { %v31918_v10 = vpop.f32.mrf.mxu0  ;;  %v31920_v62 = vpop.f32.mrf.mxu1 }
 0x55e   : > { %36359 = vst [vmem:[#allocation191_spill] sm:$0xff] %v31918_v10  ;;  %36360 = vst [vmem:[#allocation192_spill] sm:$0xff] %v31920_v62  ;;  %13808 = vrot.lane.b32.xlu1 %v36363_v36, %s28752_s13  ;;  %v36368_v62 = vld [vmem:[#allocation3_spill] sm:$0xff]  ;;  %v31940_v38 = vpop.xlane.xlu1 %11566 }
 0x55f   : > { %v26877_v1 = vpop.f32.mrf.mxu0  ;;  %v26912_v57 = vpop.f32.mrf.mxu1  ;;  %36370 = vst [vmem:[#allocation198_spill] sm:$0xff] %v31940_v38 }
 0x560   : > { %v31934_v6 = vpop.xlane.xlu0 %11581 }
 0x561   : > { %v31928_v40 = vpop.f32.mrf.mxu0  ;;  %36367 = vst [vmem:[#allocation197_spill] sm:$0xff] %v31934_v6 }
 0x562   : > { %36364 = vst [vmem:[#allocation2_spill] sm:$0xff] %v31928_v40  ;;  %v31932_v19 = vpop.f32.mrf.mxu1  ;;  %v31952_v6 = vpop.xlane.xlu1 %11572 }
 0x563   : > { %36366 = vst [vmem:[#allocation196_spill] sm:$0xff] %v31932_v19  ;;  %v26887_v5 = vpop.f32.mrf.mxu0  ;;  %13732 = vrot.lane.b32.xlu0 %v36368_v62, %s28752_s13  ;;  %v11832_v19 = vsub.f32 %v36373_v59, %v31687_v7  ;;  %36376 = vst [vmem:[#allocation202_spill] sm:$0xff] %v31952_v6 }
 0x564   : > { %v26922_v10 = vpop.f32.mrf.mxu1  ;;  %v31944_v57 = vpop.xlane.xlu0 %11587 }
 0x565   : > { %v31938_v8 = vpop.f32.mrf.mxu0  ;;  %36372 = vst [vmem:[#allocation200_spill] sm:$0xff] %v31944_v57  ;;  %v11972_v38 = vmul.f32 1.442695, %v11832_v19 }
 0x566   : > { %36369 = vst [vmem:[#allocation3_spill] sm:$0xff] %v31938_v8  ;;  %v31942_v36 = vpop.f32.mrf.mxu1 }
 0x567   : > { %36371 = vst [vmem:[#allocation199_spill] sm:$0xff] %v31942_v36  ;;  %v26897_v1 = vpop.f32.mrf.mxu0  ;;  %v36378_v36 = vld [vmem:[#allocation158_spill] sm:$0xff]  ;;  %28034 = vpow2.f32 %v11972_v38 }
 0x568   : > { %v26932_v40 = vpop.f32.mrf.mxu1  ;;  %v11834_v14 = vsub.f32 %v36378_v36, %v31696_v47  ;;  %v36379_v1 = vld [vmem:[#allocation167_spill] sm:$0xff] }
 0x569   : > { %v11846_v40 = vsub.f32 %v36379_v1, %v31803_v28 }
 0x56a   : > { %v31948_v35 = vpop.f32.mrf.mxu0  ;;  %v31950_v5 = vpop.f32.mrf.mxu1  ;;  %v11976_v6 = vmul.f32 1.442695, %v11834_v14 }
 0x56b   : > { %36374 = vst [vmem:[#allocation157_spill] sm:$0xff] %v31948_v35  ;;  %36375 = vst [vmem:[#allocation201_spill] sm:$0xff] %v31950_v5  ;;  %v31954_v62 = vpop.xlane.xlu0 %11593  ;;  %v31964_v35 = vpop.xlane.xlu1 %11578 }
 0x56c   : > { %36377 = vst [vmem:[#allocation203_spill] sm:$0xff] %v31954_v62  ;;  %v26907_v10 = vpop.f32.mrf.mxu0  ;;  %v26942_v8 = vpop.f32.mrf.mxu1  ;;  %v12000_v62 = vmul.f32 1.442695, %v11846_v40 }
 0x56d   : > { %v36382_v10 = vld [vmem:[#allocation159_spill] sm:$0xff] }
 0x56e   : > { %v31960_v57 = vpop.f32.mrf.mxu0  ;;  %v11836_v8 = vsub.f32 %v36382_v10, %v31706_v25  ;;  %v36387_v25 = vld [vmem:[#allocation168_spill] sm:$0xff] }
 0x56f   : > { %36380 = vst [vmem:[#allocation158_spill] sm:$0xff] %v31960_v57  ;;  %v31962_v7 = vpop.f32.mrf.mxu1  ;;  %v12206_v59 = vpop.xlane.xlu0 %12205  ;;  %v11845_v40 = vsub.f32 %v36387_v25, %v31689_v4 }
 0x570   : > { %36381 = vst [vmem:[#allocation167_spill] sm:$0xff] %v31962_v7  ;;  %v26917_v5 = vpop.f32.mrf.mxu0  ;;  %28036 = vrcp.f32 %v12206_v59  ;;  %v31972_v28 = vpop.xlane.xlu1 %11584  ;;  %v11980_v7 = vmul.f32 1.442695, %v11836_v8 }
 0x571   : > { %v26952_v19 = vpop.f32.mrf.mxu1  ;;  %28038 = vpow2.f32 %v11976_v6 }
 0x572   : > { %v31968_v47 = vpop.f32.mrf.mxu0  ;;  %28040 = vpow2.f32 %v12000_v62 }
 0x573   : > { %36383 = vst [vmem:[#allocation159_spill] sm:$0xff] %v31968_v47  ;;  %v31970_v36 = vpop.f32.mrf.mxu1  ;;  %28042 = vpow2.f32 %v11980_v7  ;;  %v31982_v19 = vpop.xlane.xlu0 %11599 }
 0x574   : > { %36384 = vst [vmem:[#allocation204_spill] sm:$0xff] %v31970_v36  ;;  %v26927_v1 = vpop.f32.mrf.mxu0  ;;  %v31978_v14 = vpop.xlane.xlu1 %11590 }
 0x575   : > { %v26962_v57 = vpop.f32.mrf.mxu1  ;;  %v31990_v1 = vpop.eup %28034 }
 0x576   : > { %v11998_v57 = vmul.f32 1.442695, %v11845_v40 }
 0x577   : > { %v31974_v5 = vpop.f32.mrf.mxu0  ;;  %v31976_v38 = vpop.f32.mrf.mxu1 }
 0x578   : > { %36385 = vst [vmem:[#allocation205_spill] sm:$0xff] %v31974_v5  ;;  %36386 = vst [vmem:[#allocation206_spill] sm:$0xff] %v31976_v38  ;;  %v31988_v62 = vpop.xlane.xlu1 %11596  ;;  %v31993_v38 = vmul.f32 0.35355338, %v31757_v61  ;;  %28044 = vpow2.f32 %v11998_v57 }
 0x579   : > { %v26937_v59 = vpop.f32.mrf.mxu0  ;;  %v26972_v10 = vpop.f32.mrf.mxu1 }
 0x57a   : > { %36390 = vst [vmem:[#allocation208_spill] sm:$0xff] %v31993_v38 }
 0x57b   : > { %v31984_v36 = vpop.f32.mrf.mxu0 }
 0x57c   : > { %36388 = vst [vmem:[#allocation168_spill] sm:$0xff] %v31984_v36  ;;  %v31986_v6 = vpop.f32.mrf.mxu1 }
 0x57d   : > { %36389 = vst [vmem:[#allocation207_spill] sm:$0xff] %v31986_v6  ;;  %v26947_v8 = vpop.f32.mrf.mxu0  ;;  %v28037_v4 = vpop.eup %28036 }
 0x57e   : > { %v26982_v7 = vpop.f32.mrf.mxu1  ;;  %v31995_v5 = vpop.xlane.xlu0 %11605  ;;  %v12844_v59 = vmul.f32 %v28037_v4, %v31599_v55  ;;  %v12240_v8 = vsel %vm1581_vm3, %v31990_v1, 0.0  ;;  %v36395_v4 = vld [vmem:[#allocation29_spill] sm:$0xff] }
 0x57f   : > { %36391 = vst [vmem:[#allocation209_spill] sm:$0xff] %v31995_v5  ;;  %v31997_v25 = vpop.f32.mrf.mxu0  ;;  %v32006_v36 = vpop.eup %28038  ;;  %v11646_v7 = vsel %vm1581_vm3, %v31993_v38, -inf }
 0x580   : > { %36392 = vst [vmem:[#allocation210_spill] sm:$0xff] %v31997_v25  ;;  %v32000_v10 = vpop.f32.mrf.mxu1  ;;  %27071 = vmatmul.mubr.msk.f32.vlgmr.msra.gmra.mxu1 %vm1581_vm3, %v12844_v59  ;;  %v32011_v55 = vpop.eup %28040 }
 0x581   : > { %36393 = vst [vmem:[#allocation211_spill] sm:$0xff] %v32000_v10  ;;  %v26957_v40 = vpop.f32.mrf.mxu0  ;;  %v32002_v6 = vpop.xlane.xlu1 %11602  ;;  %27079 = vmatpush3.msra.mxu1 %v36395_v4  ;;  %27080 = vmatprep.mubr.msk.f32.mxu1 %vm28751_vm2, %v36084_v48  ;;  %v32030_v4 = vmul.f32 0.35355338, %v31797_v21 }
 0x582   : > { %36394 = vst [vmem:[#allocation212_spill] sm:$0xff] %v32002_v6  ;;  %v26992_v61 = vpop.f32.mrf.mxu1  ;;  %12241 = vadd.xlane.f32.xlu0 %v12240_v8  ;;  %v12212_v25 = vpop.xlane.xlu0 %12211  ;;  %11647 = vmax.xlane.f32.xlu1 %v11646_v7  ;;  %v12246_v8 = vsel %vm1581_vm3, %v32006_v36, 0.0  ;;  %v12282_v7 = vsel %vm1581_vm3, %v32011_v55, 0.0 }
 0x583   : > { %28046 = vrcp.f32 %v12212_v25  ;;  %27088 = vmatprep.subr.mxu1 %v36084_v48  ;;  %v32023_v61 = vpop.eup %28042  ;;  %36399 = vst [vmem:[#allocation215_spill] sm:$0xff] %v32030_v4 }
 0x584   : > { %v32014_v57 = vpop.f32.mrf.mxu0  ;;  %v32016_v40 = vpop.f32.mrf.mxu1 }
 0x585   : > { %36396 = vst [vmem:[#allocation29_spill] sm:$0xff] %v32014_v57  ;;  %36397 = vst [vmem:[#allocation213_spill] sm:$0xff] %v32016_v40  ;;  %v12209_v59 = vpop.xlane.xlu1 %12208  ;;  %v12252_v57 = vsel %vm1581_vm3, %v32023_v61, 0.0 }
 0x586   : > { %v26967_v38 = vpop.f32.mrf.mxu0  ;;  %v27002_v10 = vpop.f32.mrf.mxu1  ;;  %12247 = vadd.xlane.f32.xlu0 %v12246_v8  ;;  %28048 = vrcp.f32 %v12209_v59  ;;  %12283 = vadd.xlane.f32.xlu1 %v12282_v7  ;;  %v11643_v59 = vsel %vm1581_vm3, %v32030_v4, -inf }
 0x587   : > { %v32044_v7 = vpop.eup %28044 }
 0x588   : > { %v32027_v25 = vpop.f32.mrf.mxu0 }
 0x589   : > { %36398 = vst [vmem:[#allocation214_spill] sm:$0xff] %v32027_v25  ;;  %v32032_v40 = vpop.f32.mrf.mxu1 }
 0x58a   : > { %36400 = vst [vmem:[#allocation216_spill] sm:$0xff] %v32032_v40  ;;  %v26977_v47 = vpop.f32.mrf.mxu0  ;;  %12253 = vadd.xlane.f32.xlu0 %v12252_v57  ;;  %v12279_v57 = vsel %vm1581_vm3, %v32044_v7, 0.0 }
 0x58b   : > { %v27012_v38 = vpop.f32.mrf.mxu1 }
 0x58c   : > { %v32036_v10 = vpop.f32.mrf.mxu0 }
 0x58d   : > { %36401 = vst [vmem:[#allocation217_spill] sm:$0xff] %v32036_v10  ;;  %v32038_v8 = vpop.f32.mrf.mxu1  ;;  %v32040_v6 = vpop.xlane.xlu1 %11608 }
 0x58e   : > { %36402 = vst [vmem:[#allocation218_spill] sm:$0xff] %v32038_v8  ;;  %36403 = vst [vmem:[#allocation219_spill] sm:$0xff] %v32040_v6  ;;  %v26987_v21 = vpop.f32.mrf.mxu0  ;;  %11644 = vmax.xlane.f32.xlu0 %v11643_v59 }
 0x58f   : > { %v27022_v40 = vpop.f32.mrf.mxu1  ;;  %v36407_v21 = vld [vmem:[#allocation31_spill] sm:$0xff] }
 0x590   : > { %v28047_v25 = vpop.eup %28046 }
 0x591   : > { %v32046_v5 = vpop.f32.mrf.mxu0  ;;  %v32048_v47 = vpop.f32.mrf.mxu1  ;;  %v12846_v38 = vmul.f32 %v28047_v25, %v31655_v12  ;;  %v36409_v25 = vld [vmem:[#allocation23_spill] sm:$0xff] }
 0x592   : > { %36404 = vst [vmem:[#allocation220_spill] sm:$0xff] %v32046_v5  ;;  %36405 = vst [vmem:[#allocation221_spill] sm:$0xff] %v32048_v47  ;;  %v12215_v8 = vpop.xlane.xlu1 %12214  ;;  %12280 = vadd.xlane.f32.xlu0 %v12279_v57 }
 0x593   : > { %v26997_v10 = vpop.f32.mrf.mxu0  ;;  %v27032_v6 = vpop.f32.mrf.mxu1  ;;  %28050 = vrcp.f32 %v12215_v8  ;;  %27081 = vmatmul.mubr.msk.f32.vlgmr.msra.gmra.mxu1 %vm1581_vm3, %v12846_v38 }
 0x594   : > { %v28049_v4 = vpop.eup %28048  ;;  %27089 = vmatpush3.msra.mxu1 %v36407_v21  ;;  %27090 = vmatprep.mubr.msk.f32.mxu1 %vm28751_vm2, %v36084_v48  ;;  %v36410_v10 = vld [vmem:[#allocation4_spill] sm:$0xff] }
 0x595   : > { %v12845_v40 = vmul.f32 %v28049_v4, %v31665_v26  ;;  %v32055_v59 = vpop.f32.mrf.mxu0  ;;  %27098 = vmatprep.subr.mxu1 %v36084_v48 }
 0x596   : > { %36406 = vst [vmem:[#allocation222_spill] sm:$0xff] %v32055_v59  ;;  %v32060_v47 = vpop.f32.mrf.mxu1 }
 0x597   : > { %36408 = vst [vmem:[#allocation31_spill] sm:$0xff] %v32060_v47  ;;  %v27007_v12 = vpop.f32.mrf.mxu0  ;;  %27076 = vmatmul.mubr.msk.f32.vlgmr.msra.gmra.mxu0 %vm1581_vm3, %v12845_v40  ;;  %13960 = vrot.lane.b32.xlu1 %v36410_v10, %s28752_s13 }
 0x598   : > { %v27042_v6 = vpop.f32.mrf.mxu1  ;;  %27084 = vmatpush3.msra.mxu0 %v36409_v25  ;;  %27085 = vmatprep.mubr.msk.f32.mxu0 %vm28751_vm2, %v36084_v48 }
 0x599   : > { %v32067_v26 = vpop.f32.mrf.mxu0  ;;  %27093 = vmatprep.subr.mxu0 %v36084_v48  ;;  %v32074_v38 = vpop.xlane.xlu0 %11614 }
 0x59a   : > { %36411 = vst [vmem:[#allocation23_spill] sm:$0xff] %v32067_v26  ;;  %v32072_v4 = vpop.f32.mrf.mxu1 }
 0x59b   : > { %36412 = vst [vmem:[#allocation4_spill] sm:$0xff] %v32072_v4  ;;  %v27017_v8 = vpop.f32.mrf.mxu0 }
 0x59c   : > { %v27052_v57 = vpop.f32.mrf.mxu1 }
 0x59d   : > { %v32085_v59 = vpop.xlane.xlu0 %11611  ;;  %v36417_v57 = vld [vmem:[#allocation39_spill] sm:$0xff] }
 0x59e   : > { %v32076_v40 = vpop.f32.mrf.mxu0  ;;  %v32078_v21 = vpop.f32.mrf.mxu1 }
 0x59f   : > { %36413 = vst [vmem:[#allocation223_spill] sm:$0xff] %v32076_v40  ;;  %36414 = vst [vmem:[#allocation224_spill] sm:$0xff] %v32078_v21 }
 0x5a0   : > { %v28051_v12 = vpop.eup %28050  ;;  %v27027_v6 = vpop.f32.mrf.mxu0 }
 0x5a1   : > { %v27062_v25 = vpop.f32.mrf.mxu1  ;;  %v12847_v10 = vmul.f32 %v28051_v12, %v31681_v13  ;;  %v36419_v13 = vld [vmem:[#allocation170_spill] sm:$0xff] }
 0x5a2   : > { %v32081_v47 = vpop.f32.mrf.mxu0  ;;  %v32083_v26 = vpop.xlane.xlu1 %11623  ;;  %v11848_v12 = vsub.f32 %v36419_v13, %v31818_v50 }
 0x5a3   : > { %36415 = vst [vmem:[#allocation225_spill] sm:$0xff] %v32081_v47  ;;  %36416 = vst [vmem:[#allocation226_spill] sm:$0xff] %v32083_v26  ;;  %27086 = vmatmul.mubr.msk.f32.vlgmr.msra.gmra.mxu0 %vm1581_vm3, %v12847_v10  ;;  %v36421_v10 = vld [vmem:[#allocation5_spill] sm:$0xff] }
 0x5a4   : > { %v27037_v8 = vpop.f32.mrf.mxu0  ;;  %27094 = vmatpush3.msra.mxu0 %v36417_v57  ;;  %27095 = vmatprep.mubr.msk.f32.mxu0 %vm28751_vm2, %v36084_v48  ;;  %v12004_v47 = vmul.f32 1.442695, %v11848_v12 }
 0x5a5   : > { %27103 = vmatprep.subr.mxu0 %v36084_v48 }
 0x5a6   : > { %v32092_v6 = vpop.f32.mrf.mxu0  ;;  %v12221_v25 = vpop.xlane.xlu1 %12220 }
 0x5a7   : > { %36418 = vst [vmem:[#allocation39_spill] sm:$0xff] %v32092_v6  ;;  %v32096_v21 = vpop.xlane.xlu0 %11620  ;;  %28052 = vrcp.f32 %v12221_v25 }
 0x5a8   : > { %36420 = vst [vmem:[#allocation170_spill] sm:$0xff] %v32096_v21  ;;  %v27047_v4 = vpop.f32.mrf.mxu0  ;;  %13884 = vrot.lane.b32.xlu0 %v36421_v10, %s28752_s13  ;;  %28054 = vpow2.f32 %v12004_v47 }
 0x5a9   : > { %v36425_v4 = vld [vmem:[#allocation169_spill] sm:$0xff] }
 0x5aa   : > { %v32100_v8 = vpop.f32.mrf.mxu0  ;;  %v32102_v57 = vpop.xlane.xlu1 %11629  ;;  %v11847_v25 = vsub.f32 %v36425_v4, %v31692_v39 }
 0x5ab   : > { %36422 = vst [vmem:[#allocation5_spill] sm:$0xff] %v32100_v8  ;;  %36423 = vst [vmem:[#allocation227_spill] sm:$0xff] %v32102_v57  ;;  %v32104_v40 = vpop.xlane.xlu0 %11617 }
 0x5ac   : > { %v27057_v5 = vpop.f32.mrf.mxu0  ;;  %v12002_v12 = vmul.f32 1.442695, %v11847_v25 }
 0x5ae   : > { %v32106_v6 = vpop.f32.mrf.mxu0  ;;  %v32108_v26 = vpop.xlane.xlu1 %11635 }
 0x5af   : > { %36424 = vst [vmem:[#allocation228_spill] sm:$0xff] %v32106_v6  ;;  %v12218_v50 = vpop.xlane.xlu0 %12217  ;;  %v32118_v6 = vmul.f32 0.35355338, %v31769_v3 }
 0x5b0   : > { %v27067_v13 = vpop.f32.mrf.mxu0  ;;  %28056 = vrcp.f32 %v12218_v50  ;;  %v36429_v50 = vld [vmem:[#allocation47_spill] sm:$0xff] }
 0x5b1   : > { %36427 = vst [vmem:[#allocation229_spill] sm:$0xff] %v32118_v6 }
 0x5b2   : > { %v12227_v10 = vpop.xlane.xlu1 %12226 }
 0x5b3   : > { %v32112_v21 = vpop.xlane.xlu0 %11626  ;;  %28058 = vrcp.f32 %v12227_v10 }
 0x5b4   : > { %v28053_v8 = vpop.eup %28052  ;;  %28060 = vpow2.f32 %v12002_v12 }
 0x5b5   : > { %v12849_v57 = vmul.f32 %v28053_v8, %v31718_v0  ;;  %v11652_v0 = vsel %vm1581_vm3, %v32118_v6, -inf  ;;  %v32129_v8 = vpop.eup %28054 }
 0x5b6   : > { %v32115_v5 = vpop.xlane.xlu1 %11641  ;;  %v12288_v10 = vsel %vm1581_vm3, %v32129_v8, 0.0 }
 0x5b7   : > { %36426 = vst [vmem:[#allocation169_spill] sm:$0xff] %v32115_v5  ;;  %v32120_v47 = vpop.xlane.xlu0 %11632  ;;  %27096 = vmatmul.mubr.msk.f32.vlgmr.msra.gmra.mxu0 %vm1581_vm3, %v12849_v57 }
 0x5b8   : > { %36428 = vst [vmem:[#allocation230_spill] sm:$0xff] %v32120_v47  ;;  %27104 = vmatpush3.msra.mxu0 %v36429_v50  ;;  %27105 = vmatprep.mubr.msk.f32.mxu0 %vm28751_vm2, %v36084_v48  ;;  %v32138_v50 = vmul.f32 0.35355338, %v31814_v27 }
 0x5b9   : > { %27113 = vmatprep.subr.mxu0 %v36084_v48 }
 0x5ba   : > { %v12233_v39 = vpop.xlane.xlu1 %12232  ;;  %36431 = vst [vmem:[#allocation231_spill] sm:$0xff] %v32138_v50 }
 0x5bb   : > { %v12224_v13 = vpop.xlane.xlu0 %12223  ;;  %11653 = vmax.xlane.f32.xlu1 %v11652_v0  ;;  %28062 = vrcp.f32 %v12233_v39  ;;  %v36432_v39 = vld [vmem:[#allocation41_spill] sm:$0xff] }
 0x5bc   : > { %28064 = vrcp.f32 %v12224_v13 }
 0x5bd   : > { %v28057_v3 = vpop.eup %28056 }
 0x5be   : > { %v12239_v57 = vpop.xlane.xlu1 %12238  ;;  %v12848_v4 = vmul.f32 %v28057_v3, %v31737_v45  ;;  %v36433_v3 = vld [vmem:[#allocation60_spill] sm:$0xff] }
 0x5bf   : > { %v32132_v25 = vpop.xlane.xlu0 %11638  ;;  %12289 = vadd.xlane.f32.xlu1 %v12288_v10 }
 0x5c0   : > { %36430 = vst [vmem:[#allocation47_spill] sm:$0xff] %v32132_v25  ;;  %v28059_v12 = vpop.eup %28058  ;;  %27091 = vmatmul.mubr.msk.f32.vlgmr.msra.gmra.mxu1 %vm1581_vm3, %v12848_v4 }
 0x5c1   : > { %v12851_v0 = vmul.f32 %v28059_v12, %v31753_v29  ;;  %27099 = vmatpush3.msra.mxu1 %v36432_v39  ;;  %27100 = vmatprep.mubr.msk.f32.mxu1 %vm28751_vm2, %v36084_v48  ;;  %v11649_v29 = vsel %vm1581_vm3, %v32138_v50, -inf  ;;  %v32158_v4 = vpop.eup %28060 }
 0x5c2   : > { %v32142_v13 = vpop.xlane.xlu1 %12244  ;;  %27108 = vmatprep.subr.mxu1 %v36084_v48  ;;  %v12285_v39 = vsel %vm1581_vm3, %v32158_v4, 0.0 }
 0x5c3   : > { %v32146_v45 = vpop.xlane.xlu0 %12256  ;;  %27106 = vmatmul.mubr.msk.f32.vlgmr.msra.gmra.mxu0 %vm1581_vm3, %v12851_v0 }
 0x5c4   : > { %27114 = vmatpush3.msra.mxu0 %v36433_v3  ;;  %27115 = vmatprep.mubr.msk.f32.mxu0 %vm28751_vm2, %v36084_v48 }
 0x5c5   : > { %27123 = vmatprep.subr.mxu0 %v36084_v48 }
 0x5c6   : > { %v32153_v27 = vpop.xlane.xlu1 %12250 }
 0x5c7   : > { %v12230_v10 = vpop.xlane.xlu0 %12229  ;;  %11650 = vmax.xlane.f32.xlu0 %v11649_v29 }
 0x5c8   : > { %28066 = vrcp.f32 %v12230_v10  ;;  %v28063_v12 = vpop.eup %28062 }
 0x5c9   : > { %28068 = vrcp.f32 %v12239_v57  ;;  %v28065_v3 = vpop.eup %28064  ;;  %v12853_v6 = vmul.f32 %v28063_v12, %v31778_v15  ;;  %v36434_v57 = vld [vmem:[#allocation52_spill] sm:$0xff] }
 0x5ca   : > { %v32160_v0 = vpop.xlane.xlu1 %12259  ;;  %v12850_v50 = vmul.f32 %v28065_v3, %v31774_v30  ;;  %v36435_v30 = vld [vmem:[#allocation8_spill] sm:$0xff] }
 0x5cb   : > { %v32165_v25 = vpop.xlane.xlu0 %12262  ;;  %12286 = vadd.xlane.f32.xlu0 %v12285_v39  ;;  %27116 = vmatmul.mubr.msk.f32.vlgmr.msra.gmra.mxu0 %vm1581_vm3, %v12853_v6 }
 0x5cc   : > { %27101 = vmatmul.mubr.msk.f32.vlgmr.msra.gmra.mxu1 %vm1581_vm3, %v12850_v50  ;;  %27125 = vmatprep.mubr.msk.f32.mxu0 %vm28751_vm2, %v36084_v48 }
 0x5cd   : > { %27109 = vmatpush3.msra.mxu1 %v36434_v57  ;;  %27110 = vmatprep.mubr.msk.f32.mxu1 %vm28751_vm2, %v36084_v48 }
 0x5ce   : > { %v32170_v29 = vpop.xlane.xlu1 %12265  ;;  %27118 = vmatprep.subr.mxu1 %v36084_v48 }
 0x5cf   : > { %v32175_v10 = vpop.xlane.xlu0 %12268 }
 0x5d0   : > { %14112 = vrot.lane.b32.xlu1 %v36435_v30, %s28752_s13 }
 0x5d2   : > { %v32182_v15 = vpop.xlane.xlu1 %12271 }
 0x5d3   : > { %v12236_v6 = vpop.xlane.xlu0 %12235 }
 0x5d4   : > { %28070 = vrcp.f32 %v12236_v6 }
 0x5d5   : > { %v28067_v50 = vpop.eup %28066 }
 0x5d6   : > { %v12852_v12 = vmul.f32 %v28067_v50, %v31820_v17  ;;  %v32185_v39 = vpop.xlane.xlu1 %12277  ;;  %v28069_v3 = vpop.eup %28068  ;;  %v11850_v17 = vsub.f32 %v31047_v44, %v31834_v22  ;;  %v36436_v50 = vld [vmem:[#allocation11_spill] sm:$0xff] }
 0x5d7   : > { %v32187_v57 = vpop.xlane.xlu0 %12274  ;;  %v12855_v5 = vmul.f32 %v28069_v3, %v31795_v43  ;;  %v32209_v3 = vmul.f32 0.35355338, %v31784_v49 }
 0x5d8   : > { %27111 = vmatmul.mubr.msk.f32.vlgmr.msra.gmra.mxu1 %vm1581_vm3, %v12852_v12  ;;  %v12008_v12 = vmul.f32 1.442695, %v11850_v17  ;;  %v36437_v17 = vld [vmem:[#allocation17_spill] sm:$0xff] }
 0x5d9   : > { %27120 = vmatprep.mubr.msk.f32.mxu1 %vm28751_vm2, %v36084_v48  ;;  %v11658_v44 = vsel %vm1581_vm3, %v32209_v3, -inf }
 0x5da   : > { %v13809_v30 = vpop.permute.xlu1 %13808  ;;  %28072 = vpow2.f32 %v12008_v12 }
 0x5db   : > { %v13733_v47 = vpop.permute.xlu0 %13732  ;;  %27124 = vmatpush3.msra.mxu0 %v13809_v30  ;;  %v32218_v30 = vmul.f32 0.35355338, %v31828_v11 }
 0x5dc   : > { %27119 = vmatpush3.msra.mxu1 %v13733_v47  ;;  %27126 = vmatmul.mubr.msk.f32.vlgmr.msra.gmra.mxu0 %vm1581_vm3, %v12855_v5  ;;  %v11849_v5 = vsub.f32 %v31045_v32, %v31710_v52 }
 0x5dd   : > { %27133 = vmatprep.subr.mxu0 %v36084_v48  ;;  %27135 = vmatprep.mubr.msk.f32.mxu0 %vm28751_vm2, %v36084_v48  ;;  %v11655_v32 = vsel %vm1581_vm3, %v32218_v30, -inf }
 0x5de   : > { %27128 = vmatprep.subr.mxu1 %v36084_v48  ;;  %v12006_v47 = vmul.f32 1.442695, %v11849_v5 }
 0x5e0   : > { %28074 = vpow2.f32 %v12006_v47 }
 0x5e1   : > { %v28071_v6 = vpop.eup %28070  ;;  %14036 = vrot.lane.b32.xlu0 %v36436_v50, %s28752_s13  ;;  %28076 = vrcp.f32 %v32142_v13 }
 0x5e2   : > { %v12854_v43 = vmul.f32 %v28071_v6, %v31860_v60 }
 0x5e4   : > { %27121 = vmatmul.mubr.msk.f32.vlgmr.msra.gmra.mxu1 %vm1581_vm3, %v12854_v43 }
 0x5e5   : > { %27130 = vmatprep.mubr.msk.f32.mxu1 %vm28751_vm2, %v36084_v48 }
 0x5e7   : > { %v32213_v22 = vpop.eup %28072 }
 0x5e8   : > { %v12294_v60 = vsel %vm1581_vm3, %v32213_v22, 0.0 }
 0x5ed   : > { %v32222_v52 = vpop.eup %28074 }
 0x5ee   : > { %v12291_v49 = vsel %vm1581_vm3, %v32222_v52, 0.0  ;;  %v28077_v12 = vpop.eup %28076 }
 0x5ef   : > { %v12857_v47 = vmul.f32 %v28077_v12, %v31812_v53 }
 0x5f4   : > { %11659 = vmax.xlane.f32.xlu1 %v11658_v44 }
 0x5f8   : > { %12295 = vadd.xlane.f32.xlu1 %v12294_v60  ;;  %v11852_v60 = vsub.f32 %v31091_v18, %v31850_v23  ;;  %v11851_v18 = vsub.f32 %v31086_v20, %v31722_v34 }
 0x5fa   : > { %v12010_v23 = vmul.f32 1.442695, %v11851_v18 }
 0x600   : > { %11656 = vmax.xlane.f32.xlu0 %v11655_v32  ;;  %v36438_v32 = vld [vmem:[#allocation20_spill] sm:$0xff] }
 0x604   : > { %12292 = vadd.xlane.f32.xlu0 %v12291_v49 }
 0x609   : > { %14264 = vrot.lane.b32.xlu1 %v36437_v17, %s28752_s13  ;;  %v12012_v17 = vmul.f32 1.442695, %v11852_v60 }
 0x60b   : > { %v12242_v6 = vpop.xlane.xlu0 %12241  ;;  %v32229_v50 = vpop.xlane.xlu1 %11647 }
 0x60c   : > { %28078 = vrcp.f32 %v12242_v6 }
 0x60d   : > { %28080 = vpow2.f32 %v12012_v17  ;;  %v36441_v17 = vld [vmem:[#allocation25_spill] sm:$0xff] }
 0x60e   : > { %28082 = vpow2.f32 %v12010_v23 }
 0x60f   : > { %v12248_v11 = vpop.xlane.xlu0 %12247  ;;  %v32231_v43 = vpop.xlane.xlu1 %12283  ;;  %28084 = vrcp.f32 %v32153_v27 }
 0x610   : > { %28086 = vrcp.f32 %v12248_v11  ;;  %v36442_v11 = vld [vmem:[#allocation28_spill] sm:$0xff] }
 0x613   : > { %v32233_v5 = vpop.xlane.xlu0 %12253  ;;  %v13961_v44 = vpop.permute.xlu1 %13960 }
 0x614   : > { %27134 = vmatpush3.msra.mxu0 %v13961_v44 }
 0x615   : > { %27136 = vmatmul.mubr.msk.f32.vlgmr.msra.gmra.mxu0 %vm1581_vm3, %v12857_v47  ;;  %27143 = vmatprep.subr.mxu0 %v36084_v48  ;;  %v32256_v47 = vmul.f32 0.35355338, %v31799_v9 }
 0x616   : > { %27145 = vmatprep.mubr.msk.f32.mxu0 %vm28751_vm2, %v36084_v48 }
 0x617   : > { %v32238_v13 = vpop.xlane.xlu0 %11644 }
 0x619   : > { %v28079_v53 = vpop.eup %28078 }
 0x61a   : > { %14188 = vrot.lane.b32.xlu0 %v36438_v32, %s28752_s13  ;;  %v12856_v6 = vmul.f32 %v28079_v53, %v31990_v1  ;;  %v11664_v1 = vsel %vm1581_vm3, %v32256_v47, -inf  ;;  %v32260_v44 = vpop.eup %28080  ;;  %v32265_v32 = vmul.f32 0.35355338, %v31842_v24 }
 0x61b   : > { %v32246_v49 = vpop.xlane.xlu0 %12280  ;;  %v12300_v60 = vsel %vm1581_vm3, %v32260_v44, 0.0  ;;  %v32269_v34 = vpop.eup %28082 }
 0x61c   : > { %36439 = vst [vmem:[#allocation41_spill] sm:$0xff] %v32265_v32  ;;  %v11661_v20 = vsel %vm1581_vm3, %v32265_v32, -inf  ;;  %v12297_v9 = vsel %vm1581_vm3, %v32269_v34, 0.0  ;;  %v28085_v18 = vpop.eup %28084 }
 0x61d   : > { %v12859_v23 = vmul.f32 %v28085_v18, %v31826_v33 }
 0x61f   : > { %v13885_v12 = vpop.permute.xlu0 %13884 }
 0x620   : > { %27129 = vmatpush3.msra.mxu1 %v13885_v12 }
 0x621   : > { %27131 = vmatmul.mubr.msk.f32.vlgmr.msra.gmra.mxu1 %vm1581_vm3, %v12856_v6  ;;  %27138 = vmatprep.subr.mxu1 %v36084_v48 }
 0x622   : > { %27140 = vmatprep.mubr.msk.f32.mxu1 %vm28751_vm2, %v36084_v48 }
 0x62d   : > { %11665 = vmax.xlane.f32.xlu1 %v11664_v1 }
 0x631   : > { %12301 = vadd.xlane.f32.xlu1 %v12300_v60  ;;  %v11854_v60 = vsub.f32 %v31138_v31, %v31862_v56  ;;  %v11853_v31 = vsub.f32 %v31153_v51, %v31898_v16  ;;  %v32318_v51 = vmul.f32 0.35355338, %v31856_v41 }
 0x633   : > { %v12014_v56 = vmul.f32 1.442695, %v11853_v31  ;;  %36447 = vst [vmem:[#allocation20_spill] sm:$0xff] %v32318_v51  ;;  %v36449_v31 = vld [vmem:[#allocation34_spill] sm:$0xff] }
 0x639   : > { %11662 = vmax.xlane.f32.xlu0 %v11661_v20 }
 0x63d   : > { %12298 = vadd.xlane.f32.xlu0 %v12297_v9  ;;  %v28087_v9 = vpop.eup %28086 }
 0x640   : > { %v32274_v53 = vpop.f32.mrf.mxu1 }
 0x641   : > { %36440 = vst [vmem:[#allocation60_spill] sm:$0xff] %v32274_v53 }
 0x642   : > { %14416 = vrot.lane.b32.xlu1 %v36441_v17, %s28752_s13  ;;  %v27072_v6 = vpop.f32.mrf.mxu1  ;;  %v12016_v17 = vmul.f32 1.442695, %v11854_v60  ;;  %v32307_v60 = vmul.f32 0.35355338, %v31816_v54  ;;  %v11667_v54 = vsel %vm1581_vm3, %v32318_v51, -inf  ;;  %v36485_v51 = vld [vmem:[#allocation164_spill] sm:$0xff] }
 0x644   : > { %v32278_v24 = vpop.xlane.xlu1 %11653  ;;  %28088 = vpow2.f32 %v12016_v17  ;;  %36445 = vst [vmem:[#allocation11_spill] sm:$0xff] %v32307_v60 }
 0x645   : > { %28090 = vpow2.f32 %v12014_v56 }
 0x646   : > { %28092 = vrcp.f32 %v32146_v45 }
 0x647   : > { %28094 = vrcp.f32 %v32233_v5  ;;  %v11856_v5 = vsub.f32 %v31185_v63, %v31882_v37  ;;  %v11855_v63 = vsub.f32 %v31202_v46, %v31904_v2 }
 0x648   : > { %v32280_v12 = vpop.xlane.xlu1 %12289 }
 0x64c   : > { %v14113_v1 = vpop.permute.xlu1 %14112 }
 0x64d   : > { %27144 = vmatpush3.msra.mxu0 %v14113_v1 }
 0x64e   : > { %27146 = vmatmul.mubr.msk.f32.vlgmr.msra.gmra.mxu0 %vm1581_vm3, %v12859_v23  ;;  %27153 = vmatprep.subr.mxu0 %v36084_v48  ;;  %v12858_v23 = vmul.f32 %v28087_v9, %v32006_v36 }
 0x64f   : > { %27155 = vmatprep.mubr.msk.f32.mxu0 %vm28751_vm2, %v36084_v48 }
 0x650   : > { %v32285_v27 = vpop.xlane.xlu0 %11650 }
 0x651   : > { %v32313_v9 = vpop.eup %28088 }
 0x652   : > { %v12306_v17 = vsel %vm1581_vm3, %v32313_v9, 0.0  ;;  %v32322_v16 = vpop.eup %28090 }
 0x653   : > { %14340 = vrot.lane.b32.xlu0 %v36442_v11, %s28752_s13  ;;  %v32293_v20 = vpop.f32.mrf.mxu1 }
 0x654   : > { %36443 = vst [vmem:[#allocation52_spill] sm:$0xff] %v32293_v20  ;;  %v32295_v33 = vpop.xlane.xlu0 %12286  ;;  %v36469_v20 = vld [vmem:[#allocation163_spill] sm:$0xff] }
 0x655   : > { %v27082_v6 = vpop.f32.mrf.mxu1 }
 0x656   : > { %v12303_v6 = vsel %vm1581_vm3, %v32322_v16, 0.0 }
 0x657   : > { %v32297_v18 = vpop.f32.mrf.mxu0 }
 0x658   : > { %36444 = vst [vmem:[#allocation8_spill] sm:$0xff] %v32297_v18  ;;  %v14037_v1 = vpop.permute.xlu0 %14036  ;;  %v32417_v18 = vmul.f32 0.35355338, %v36469_v20 }
 0x659   : > { %v27077_v53 = vpop.f32.mrf.mxu0  ;;  %27139 = vmatpush3.msra.mxu1 %v14037_v1 }
 0x65a   : > { %27141 = vmatmul.mubr.msk.f32.vlgmr.msra.gmra.mxu1 %vm1581_vm3, %v12858_v23  ;;  %27148 = vmatprep.subr.mxu1 %v36084_v48  ;;  %v11670_v53 = vsel %vm1581_vm3, %v32307_v60, -inf  ;;  %v36501_v60 = vld [vmem:[#allocation176_spill] sm:$0xff] }
 0x65b   : > { %27150 = vmatprep.mubr.msk.f32.mxu1 %vm28751_vm2, %v36084_v48 }
 0x663   : > { %v32309_v11 = vpop.f32.mrf.mxu0 }
 0x664   : > { %36446 = vst [vmem:[#allocation17_spill] sm:$0xff] %v32309_v11 }
 0x665   : > { %v27087_v36 = vpop.f32.mrf.mxu0 }
 0x666   : > { %11671 = vmax.xlane.f32.xlu1 %v11670_v53  ;;  %v28093_v53 = vpop.eup %28092 }
 0x667   : > { %v12861_v45 = vmul.f32 %v28093_v53, %v31805_v58 }
 0x66a   : > { %12307 = vadd.xlane.f32.xlu1 %v12306_v17 }
 0x672   : > { %11668 = vmax.xlane.f32.xlu0 %v11667_v54 }
 0x676   : > { %12304 = vadd.xlane.f32.xlu0 %v12303_v6 }
 0x677   : > { %v32327_v23 = vpop.f32.mrf.mxu0 }
 0x678   : > { %36448 = vst [vmem:[#allocation25_spill] sm:$0xff] %v32327_v23 }
 0x679   : > { %v27097_v1 = vpop.f32.mrf.mxu0 }
 0x67b   : > { %14568 = vrot.lane.b32.xlu1 %v36449_v31, %s28752_s13  ;;  %v36452_v31 = vld [vmem:[#allocation36_spill] sm:$0xff] }
 0x67d   : > { %v32331_v41 = vpop.xlane.xlu1 %11659 }
 0x680   : > { %v32334_v56 = vpop.f32.mrf.mxu1 }
 0x681   : > { %36450 = vst [vmem:[#allocation28_spill] sm:$0xff] %v32334_v56  ;;  %v32336_v36 = vpop.xlane.xlu1 %12295 }
 0x682   : > { %v27092_v17 = vpop.f32.mrf.mxu1 }
 0x683   : > { %v32338_v54 = vpop.f32.mrf.mxu0 }
 0x684   : > { %36451 = vst [vmem:[#allocation34_spill] sm:$0xff] %v32338_v54 }
 0x685   : > { %v27107_v6 = vpop.f32.mrf.mxu0  ;;  %v14265_v23 = vpop.permute.xlu1 %14264 }
 0x686   : > { %27154 = vmatpush3.msra.mxu0 %v14265_v23  ;;  %v28095_v23 = vpop.eup %28094 }
 0x687   : > { %27156 = vmatmul.mubr.msk.f32.vlgmr.msra.gmra.mxu0 %vm1581_vm3, %v12861_v45  ;;  %27163 = vmatprep.subr.mxu0 %v36084_v48  ;;  %v12020_v45 = vmul.f32 1.442695, %v11856_v5  ;;  %v12860_v56 = vmul.f32 %v28095_v23, %v32023_v61  ;;  %v12018_v5 = vmul.f32 1.442695, %v11855_v63 }
 0x688   : > { %27165 = vmatprep.mubr.msk.f32.mxu0 %vm28751_vm2, %v36084_v48 }
 0x689   : > { %v32343_v1 = vpop.xlane.xlu0 %11656  ;;  %28096 = vpow2.f32 %v12020_v45  ;;  %v36459_v45 = vld [vmem:[#allocation166_spill] sm:$0xff] }
 0x68a   : > { %28098 = vpow2.f32 %v12018_v5 }
 0x68b   : > { %v32351_v17 = vpop.f32.mrf.mxu0  ;;  %28100 = vrcp.f32 %v32165_v25 }
 0x68c   : > { %14492 = vrot.lane.b32.xlu0 %v36452_v31, %s28752_s13  ;;  %36453 = vst [vmem:[#allocation36_spill] sm:$0xff] %v32351_v17  ;;  %v32355_v53 = vpop.f32.mrf.mxu1  ;;  %28102 = vrcp.f32 %v32160_v0  ;;  %v36465_v0 = vld [vmem:[#allocation44_spill] sm:$0xff] }
 0x68d   : > { %v32353_v58 = vpop.xlane.xlu0 %12292  ;;  %36454 = vst [vmem:[#allocation232_spill] sm:$0xff] %v32355_v53  ;;  %v27117_v6 = vpop.f32.mrf.mxu0 }
 0x68e   : > { %v27102_v54 = vpop.f32.mrf.mxu1  ;;  %v32380_v6 = vmul.f32 0.35355338, %v36459_v45 }
 0x68f   : > { %v32367_v54 = vmul.f32 0.35355338, %v31830_v42 }
 0x690   : > { %36460 = vst [vmem:[#allocation166_spill] sm:$0xff] %v32380_v6  ;;  %v11673_v63 = vsel %vm1581_vm3, %v32380_v6, -inf }
 0x691   : > { %v14189_v11 = vpop.permute.xlu0 %14188  ;;  %36456 = vst [vmem:[#allocation234_spill] sm:$0xff] %v32367_v54 }
 0x692   : > { %27149 = vmatpush3.msra.mxu1 %v14189_v11 }
 0x693   : > { %27151 = vmatmul.mubr.msk.f32.vlgmr.msra.gmra.mxu1 %vm1581_vm3, %v12860_v56  ;;  %27158 = vmatprep.subr.mxu1 %v36084_v48  ;;  %v11676_v56 = vsel %vm1581_vm3, %v32367_v54, -inf }
 0x694   : > { %27160 = vmatprep.mubr.msk.f32.mxu1 %vm28751_vm2, %v36084_v48 }
 0x696   : > { %v32373_v23 = vpop.eup %28096 }
 0x697   : > { %v12312_v46 = vsel %vm1581_vm3, %v32373_v23, 0.0  ;;  %v32384_v5 = vpop.eup %28098 }
 0x698   : > { %v32364_v37 = vpop.f32.mrf.mxu1  ;;  %v28101_v45 = vpop.eup %28100 }
 0x699   : > { %36455 = vst [vmem:[#allocation233_spill] sm:$0xff] %v32364_v37 }
 0x69a   : > { %v27112_v31 = vpop.f32.mrf.mxu1 }
 0x69b   : > { %v12309_v31 = vsel %vm1581_vm3, %v32384_v5, 0.0 }
 0x69c   : > { %v32369_v61 = vpop.f32.mrf.mxu0 }
 0x69d   : > { %36457 = vst [vmem:[#allocation235_spill] sm:$0xff] %v32369_v61 }
 0x69e   : > { %v27127_v11 = vpop.f32.mrf.mxu0 }
 0x69f   : > { %11677 = vmax.xlane.f32.xlu1 %v11676_v56  ;;  %v36461_v11 = vld [vmem:[#allocation42_spill] sm:$0xff] }
 0x6a0   : > { %36470 = vst [vmem:[#allocation42_spill] sm:$0xff] %v32417_v18 }
 0x6a3   : > { %12313 = vadd.xlane.f32.xlu1 %v12312_v46 }
 0x6a4   : > { %v32377_v2 = vpop.f32.mrf.mxu1 }
 0x6a5   : > { %36458 = vst [vmem:[#allocation236_spill] sm:$0xff] %v32377_v2 }
 0x6a6   : > { %v27122_v42 = vpop.f32.mrf.mxu1 }
 0x6a7   : > { %v36462_v42 = vld [vmem:[#allocation160_spill] sm:$0xff] }
 0x6a8   : > { %v12863_v61 = vmul.f32 %v28101_v45, %v36462_v42  ;;  %v28103_v45 = vpop.eup %28102 }
 0x6ab   : > { %11674 = vmax.xlane.f32.xlu0 %v11673_v63  ;;  %v36463_v63 = vld [vmem:[#allocation180_spill] sm:$0xff] }
 0x6af   : > { %12310 = vadd.xlane.f32.xlu0 %v12309_v31  ;;  %v36464_v31 = vld [vmem:[#allocation171_spill] sm:$0xff] }
 0x6b4   : > { %14720 = vrot.lane.b32.xlu1 %v36461_v11, %s28752_s13  ;;  %v11858_v11 = vsub.f32 %v36464_v31, %v36463_v63  ;;  %v36467_v63 = vld [vmem:[#allocation188_spill] sm:$0xff] }
 0x6b5   : > { %v36468_v31 = vld [vmem:[#allocation172_spill] sm:$0xff] }
 0x6b6   : > { %v32391_v56 = vpop.xlane.xlu1 %11665  ;;  %v12024_v42 = vmul.f32 1.442695, %v11858_v11  ;;  %v11857_v53 = vsub.f32 %v36468_v31, %v36467_v63 }
 0x6b8   : > { %28104 = vpow2.f32 %v12024_v42  ;;  %v11682_v42 = vsel %vm1581_vm3, %v32417_v18, -inf }
 0x6ba   : > { %v32394_v46 = vpop.xlane.xlu1 %12301 }
 0x6be   : > { %v14417_v2 = vpop.permute.xlu1 %14416 }
 0x6bf   : > { %27164 = vmatpush3.msra.mxu0 %v14417_v2  ;;  %v36466_v2 = vld [vmem:[#allocation161_spill] sm:$0xff] }
 0x6c0   : > { %27166 = vmatmul.mubr.msk.f32.vlgmr.msra.gmra.mxu0 %vm1581_vm3, %v12863_v61  ;;  %27173 = vmatprep.subr.mxu0 %v36084_v48  ;;  %v12862_v37 = vmul.f32 %v28103_v45, %v36466_v2 }
 0x6c1   : > { %27175 = vmatprep.mubr.msk.f32.mxu0 %vm28751_vm2, %v36084_v48 }
 0x6c2   : > { %v32399_v25 = vpop.xlane.xlu0 %11662 }
 0x6c5   : > { %14644 = vrot.lane.b32.xlu0 %v36465_v0, %s28752_s13  ;;  %v12022_v0 = vmul.f32 1.442695, %v11857_v53 }
 0x6c6   : > { %v32407_v17 = vpop.xlane.xlu0 %12298 }
 0x6c7   : > { %28106 = vpow2.f32 %v12022_v0 }
 0x6c8   : > { %28108 = vrcp.f32 %v32175_v10 }
 0x6c9   : > { %28110 = vrcp.f32 %v32170_v29  ;;  %v36481_v29 = vld [vmem:[#allocation53_spill] sm:$0xff] }
 0x6ca   : > { %v14341_v61 = vpop.permute.xlu0 %14340 }
 0x6cb   : > { %27159 = vmatpush3.msra.mxu1 %v14341_v61  ;;  %v36472_v61 = vld [vmem:[#allocation178_spill] sm:$0xff] }
 0x6cc   : > { %27161 = vmatmul.mubr.msk.f32.vlgmr.msra.gmra.mxu1 %vm1581_vm3, %v12862_v37  ;;  %27168 = vmatprep.subr.mxu1 %v36084_v48  ;;  %v32423_v37 = vpop.eup %28104  ;;  %v32428_v63 = vmul.f32 0.35355338, %v36472_v61 }
 0x6cd   : > { %27170 = vmatprep.mubr.msk.f32.mxu1 %vm28751_vm2, %v36084_v48  ;;  %v12318_v2 = vsel %vm1581_vm3, %v32423_v37, 0.0 }
 0x6ce   : > { %36473 = vst [vmem:[#allocation180_spill] sm:$0xff] %v32428_v63  ;;  %v11679_v31 = vsel %vm1581_vm3, %v32428_v63, -inf }
 0x6d4   : > { %v32434_v0 = vpop.eup %28106 }
 0x6d5   : > { %v32419_v11 = vpop.f32.mrf.mxu0 }
 0x6d6   : > { %36471 = vst [vmem:[#allocation160_spill] sm:$0xff] %v32419_v11  ;;  %v36477_v11 = vld [vmem:[#allocation156_spill] sm:$0xff] }
 0x6d7   : > { %v27137_v45 = vpop.f32.mrf.mxu0 }
 0x6d8   : > { %11683 = vmax.xlane.f32.xlu1 %v11682_v42  ;;  %v12315_v45 = vsel %vm1581_vm3, %v32434_v0, 0.0  ;;  %v36475_v42 = vld [vmem:[#allocation51_spill] sm:$0xff] }
 0x6dc   : > { %12319 = vadd.xlane.f32.xlu1 %v12318_v2 }
 0x6e1   : > { %v32430_v53 = vpop.f32.mrf.mxu1 }
 0x6e2   : > { %36474 = vst [vmem:[#allocation171_spill] sm:$0xff] %v32430_v53 }
 0x6e3   : > { %v27132_v20 = vpop.f32.mrf.mxu1 }
 0x6e4   : > { %11680 = vmax.xlane.f32.xlu0 %v11679_v31  ;;  %v28109_v20 = vpop.eup %28108  ;;  %v36479_v31 = vld [vmem:[#allocation183_spill] sm:$0xff] }
 0x6e5   : > { %v12865_v53 = vmul.f32 %v28109_v20, %v36477_v11  ;;  %v28111_v11 = vpop.eup %28110 }
 0x6e8   : > { %12316 = vadd.xlane.f32.xlu0 %v12315_v45  ;;  %v36480_v45 = vld [vmem:[#allocation173_spill] sm:$0xff] }
 0x6ed   : > { %14872 = vrot.lane.b32.xlu1 %v36475_v42, %s28752_s13  ;;  %v11860_v42 = vsub.f32 %v36480_v45, %v36479_v31  ;;  %v36483_v31 = vld [vmem:[#allocation193_spill] sm:$0xff]  ;;  %v36484_v45 = vld [vmem:[#allocation174_spill] sm:$0xff] }
 0x6ee   : > { %v11859_v54 = vsub.f32 %v36484_v45, %v36483_v31 }
 0x6ef   : > { %v32441_v2 = vpop.xlane.xlu1 %11671  ;;  %v12028_v20 = vmul.f32 1.442695, %v11860_v42 }
 0x6f0   : > { %36476 = vst [vmem:[#allocation44_spill] sm:$0xff] %v32441_v2  ;;  %v32517_v2 = vmul.f32 0.35355338, %v36501_v60 }
 0x6f1   : > { %28112 = vpow2.f32 %v12028_v20 }
 0x6f2   : > { %36502 = vst [vmem:[#allocation183_spill] sm:$0xff] %v32517_v2 }
 0x6f3   : > { %v32444_v61 = vpop.xlane.xlu1 %12307 }
 0x6f7   : > { %v14569_v63 = vpop.permute.xlu1 %14568 }
 0x6f8   : > { %27174 = vmatpush3.msra.mxu0 %v14569_v63  ;;  %v36482_v63 = vld [vmem:[#allocation162_spill] sm:$0xff] }
 0x6f9   : > { %27176 = vmatmul.mubr.msk.f32.vlgmr.msra.gmra.mxu0 %vm1581_vm3, %v12865_v53  ;;  %27183 = vmatprep.subr.mxu0 %v36084_v48  ;;  %v12864_v6 = vmul.f32 %v28111_v11, %v36482_v63 }
 0x6fa   : > { %27185 = vmatprep.mubr.msk.f32.mxu0 %vm28751_vm2, %v36084_v48 }
 0x6fb   : > { %v32449_v10 = vpop.xlane.xlu0 %11668 }
 0x6fc   : > { %36478 = vst [vmem:[#allocation161_spill] sm:$0xff] %v32449_v10  ;;  %v32467_v10 = vmul.f32 0.35355338, %v36485_v51 }
 0x6fe   : > { %14796 = vrot.lane.b32.xlu0 %v36481_v29, %s28752_s13  ;;  %v12026_v29 = vmul.f32 1.442695, %v11859_v54  ;;  %36486 = vst [vmem:[#allocation188_spill] sm:$0xff] %v32467_v10  ;;  %v11688_v20 = vsel %vm1581_vm3, %v32467_v10, -inf }
 0x6ff   : > { %v32457_v18 = vpop.xlane.xlu0 %12304 }
 0x700   : > { %28114 = vpow2.f32 %v12026_v29 }
 0x701   : > { %28116 = vrcp.f32 %v32187_v57 }
 0x702   : > { %28118 = vrcp.f32 %v32182_v15  ;;  %v36497_v15 = vld [vmem:[#allocation62_spill] sm:$0xff] }
 0x703   : > { %v14493_v53 = vpop.permute.xlu0 %14492 }
 0x704   : > { %27169 = vmatpush3.msra.mxu1 %v14493_v53  ;;  %v36488_v53 = vld [vmem:[#allocation181_spill] sm:$0xff] }
 0x705   : > { %27171 = vmatmul.mubr.msk.f32.vlgmr.msra.gmra.mxu1 %vm1581_vm3, %v12864_v6  ;;  %27178 = vmatprep.subr.mxu1 %v36084_v48  ;;  %v32473_v6 = vpop.eup %28112  ;;  %v32478_v31 = vmul.f32 0.35355338, %v36488_v53 }
 0x706   : > { %27180 = vmatprep.mubr.msk.f32.mxu1 %vm28751_vm2, %v36084_v48  ;;  %v12324_v63 = vsel %vm1581_vm3, %v32473_v6, 0.0 }
 0x707   : > { %36489 = vst [vmem:[#allocation163_spill] sm:$0xff] %v32478_v31  ;;  %v11685_v45 = vsel %vm1581_vm3, %v32478_v31, -inf }
 0x70d   : > { %v32484_v29 = vpop.eup %28114 }
 0x70e   : > { %v32469_v42 = vpop.f32.mrf.mxu0 }
 0x70f   : > { %36487 = vst [vmem:[#allocation172_spill] sm:$0xff] %v32469_v42  ;;  %v36493_v42 = vld [vmem:[#allocation175_spill] sm:$0xff] }
 0x710   : > { %v27147_v11 = vpop.f32.mrf.mxu0 }
 0x711   : > { %11689 = vmax.xlane.f32.xlu1 %v11688_v20  ;;  %v12321_v11 = vsel %vm1581_vm3, %v32484_v29, 0.0  ;;  %v36491_v20 = vld [vmem:[#allocation59_spill] sm:$0xff] }
 0x715   : > { %12325 = vadd.xlane.f32.xlu1 %v12324_v63 }
 0x71a   : > { %v32480_v54 = vpop.f32.mrf.mxu1 }
 0x71b   : > { %36490 = vst [vmem:[#allocation178_spill] sm:$0xff] %v32480_v54 }
 0x71c   : > { %v27142_v51 = vpop.f32.mrf.mxu1 }
 0x71d   : > { %11686 = vmax.xlane.f32.xlu0 %v11685_v45  ;;  %v28117_v51 = vpop.eup %28116  ;;  %v36495_v45 = vld [vmem:[#allocation186_spill] sm:$0xff] }
 0x71e   : > { %v12867_v54 = vmul.f32 %v28117_v51, %v36493_v42  ;;  %v28119_v42 = vpop.eup %28118 }
 0x721   : > { %12322 = vadd.xlane.f32.xlu0 %v12321_v11  ;;  %v36496_v11 = vld [vmem:[#allocation135_spill] sm:$0xff] }
 0x726   : > { %15024 = vrot.lane.b32.xlu1 %v36491_v20, %s28752_s13  ;;  %v11862_v20 = vsub.f32 %v36496_v11, %v36495_v45  ;;  %v36499_v45 = vld [vmem:[#allocation195_spill] sm:$0xff]  ;;  %v36500_v11 = vld [vmem:[#allocation137_spill] sm:$0xff] }
 0x728   : > { %v32491_v63 = vpop.xlane.xlu1 %11677  ;;  %v12032_v51 = vmul.f32 1.442695, %v11862_v20 }
 0x729   : > { %36492 = vst [vmem:[#allocation51_spill] sm:$0xff] %v32491_v63 }
 0x72a   : > { %28120 = vpow2.f32 %v12032_v51  ;;  %v11694_v51 = vsel %vm1581_vm3, %v32517_v2, -inf }
 0x72c   : > { %v32494_v53 = vpop.xlane.xlu1 %12313 }
 0x730   : > { %v14721_v10 = vpop.permute.xlu1 %14720 }
 0x731   : > { %27184 = vmatpush3.msra.mxu0 %v14721_v10  ;;  %v36498_v10 = vld [vmem:[#allocation165_spill] sm:$0xff] }
 0x732   : > { %27186 = vmatmul.mubr.msk.f32.vlgmr.msra.gmra.mxu0 %vm1581_vm3, %v12867_v54  ;;  %27193 = vmatprep.subr.mxu0 %v36084_v48  ;;  %v12866_v63 = vmul.f32 %v28119_v42, %v36498_v10 }
 0x733   : > { %27195 = vmatprep.mubr.msk.f32.mxu0 %vm28751_vm2, %v36084_v48 }
 0x734   : > { %v32499_v57 = vpop.xlane.xlu0 %11674 }
 0x735   : > { %36494 = vst [vmem:[#allocation156_spill] sm:$0xff] %v32499_v57  ;;  %v11861_v57 = vsub.f32 %v36500_v11, %v36499_v45 }
 0x737   : > { %14948 = vrot.lane.b32.xlu0 %v36497_v15, %s28752_s13  ;;  %v12030_v15 = vmul.f32 1.442695, %v11861_v57 }
 0x738   : > { %v32507_v31 = vpop.xlane.xlu0 %12310 }
 0x739   : > { %28122 = vpow2.f32 %v12030_v15 }
 0x73a   : > { %28124 = vrcp.f32 %v32246_v49 }
 0x73b   : > { %28126 = vrcp.f32 %v32185_v39  ;;  %v36512_v39 = vld [vmem:[#allocation70_spill] sm:$0xff] }
 0x73c   : > { %v14645_v54 = vpop.permute.xlu0 %14644 }
 0x73d   : > { %27179 = vmatpush3.msra.mxu1 %v14645_v54  ;;  %v36504_v54 = vld [vmem:[#allocation184_spill] sm:$0xff] }
 0x73e   : > { %27181 = vmatmul.mubr.msk.f32.vlgmr.msra.gmra.mxu1 %vm1581_vm3, %v12866_v63  ;;  %27188 = vmatprep.subr.mxu1 %v36084_v48  ;;  %v32523_v63 = vpop.eup %28120  ;;  %v32528_v45 = vmul.f32 0.35355338, %v36504_v54 }
 0x73f   : > { %27190 = vmatprep.mubr.msk.f32.mxu1 %vm28751_vm2, %v36084_v48  ;;  %v12330_v10 = vsel %vm1581_vm3, %v32523_v63, 0.0 }
 0x740   : > { %36505 = vst [vmem:[#allocation53_spill] sm:$0xff] %v32528_v45  ;;  %v11691_v11 = vsel %vm1581_vm3, %v32528_v45, -inf }
 0x746   : > { %v32534_v15 = vpop.eup %28122 }
 0x747   : > { %v32519_v20 = vpop.f32.mrf.mxu0 }
 0x748   : > { %36503 = vst [vmem:[#allocation173_spill] sm:$0xff] %v32519_v20 }
 0x749   : > { %v27157_v42 = vpop.f32.mrf.mxu0 }
 0x74a   : > { %11695 = vmax.xlane.f32.xlu1 %v11694_v51  ;;  %v12327_v42 = vsel %vm1581_vm3, %v32534_v15, 0.0  ;;  %v36507_v51 = vld [vmem:[#allocation67_spill] sm:$0xff] }
 0x74e   : > { %12331 = vadd.xlane.f32.xlu1 %v12330_v10 }
 0x753   : > { %v32530_v57 = vpop.f32.mrf.mxu1 }
 0x754   : > { %36506 = vst [vmem:[#allocation162_spill] sm:$0xff] %v32530_v57 }
 0x755   : > { %v27152_v60 = vpop.f32.mrf.mxu1 }
 0x756   : > { %11692 = vmax.xlane.f32.xlu0 %v11691_v11  ;;  %v28125_v60 = vpop.eup %28124  ;;  %v36510_v11 = vld [vmem:[#allocation190_spill] sm:$0xff] }
 0x757   : > { %v12869_v20 = vmul.f32 %v28125_v60, %v32044_v7  ;;  %v28127_v7 = vpop.eup %28126 }
 0x75a   : > { %12328 = vadd.xlane.f32.xlu0 %v12327_v42  ;;  %v36511_v42 = vld [vmem:[#allocation139_spill] sm:$0xff] }
 0x75f   : > { %15176 = vrot.lane.b32.xlu1 %v36507_v51, %s28752_s13  ;;  %v11864_v51 = vsub.f32 %v36511_v42, %v36510_v11  ;;  %v36514_v11 = vld [vmem:[#allocation198_spill] sm:$0xff]  ;;  %v36515_v42 = vld [vmem:[#allocation141_spill] sm:$0xff] }
 0x761   : > { %v32541_v10 = vpop.xlane.xlu1 %11683  ;;  %v12036_v60 = vmul.f32 1.442695, %v11864_v51 }
 0x762   : > { %36508 = vst [vmem:[#allocation193_spill] sm:$0xff] %v32541_v10  ;;  %v36516_v10 = vld [vmem:[#allocation179_spill] sm:$0xff] }
 0x763   : > { %28128 = vpow2.f32 %v12036_v60  ;;  %v32567_v32 = vmul.f32 0.35355338, %v36516_v10 }
 0x765   : > { %v32544_v54 = vpop.xlane.xlu1 %12319  ;;  %36517 = vst [vmem:[#allocation164_spill] sm:$0xff] %v32567_v32  ;;  %v11700_v60 = vsel %vm1581_vm3, %v32567_v32, -inf }
 0x769   : > { %v14873_v57 = vpop.permute.xlu1 %14872 }
 0x76a   : > { %27194 = vmatpush3.msra.mxu0 %v14873_v57  ;;  %v36513_v57 = vld [vmem:[#allocation177_spill] sm:$0xff] }
 0x76b   : > { %27196 = vmatmul.mubr.msk.f32.vlgmr.msra.gmra.mxu0 %vm1581_vm3, %v12869_v20  ;;  %27203 = vmatprep.subr.mxu0 %v36084_v48  ;;  %v12868_v45 = vmul.f32 %v28127_v7, %v36513_v57 }
 0x76c   : > { %27205 = vmatprep.mubr.msk.f32.mxu0 %vm28751_vm2, %v36084_v48 }
 0x76d   : > { %v32549_v49 = vpop.xlane.xlu0 %11680 }
 0x76e   : > { %36509 = vst [vmem:[#allocation174_spill] sm:$0xff] %v32549_v49  ;;  %v11863_v49 = vsub.f32 %v36515_v42, %v36514_v11 }
 0x770   : > { %15100 = vrot.lane.b32.xlu0 %v36512_v39, %s28752_s13  ;;  %v12034_v39 = vmul.f32 1.442695, %v11863_v49 }
 0x771   : > { %v32557_v2 = vpop.xlane.xlu0 %12316 }
 0x772   : > { %28130 = vpow2.f32 %v12034_v39 }
 0x773   : > { %28132 = vrcp.f32 %v32295_v33 }
 0x774   : > { %28134 = vrcp.f32 %v32231_v43  ;;  %v36527_v43 = vld [vmem:[#allocation78_spill] sm:$0xff] }
 0x775   : > { %v14797_v20 = vpop.permute.xlu0 %14796 }
 0x776   : > { %27189 = vmatpush3.msra.mxu1 %v14797_v20  ;;  %v36519_v20 = vld [vmem:[#allocation187_spill] sm:$0xff] }
 0x777   : > { %27191 = vmatmul.mubr.msk.f32.vlgmr.msra.gmra.mxu1 %vm1581_vm3, %v12868_v45  ;;  %27198 = vmatprep.subr.mxu1 %v36084_v48  ;;  %v32573_v45 = vpop.eup %28128  ;;  %v32578_v11 = vmul.f32 0.35355338, %v36519_v20 }
 0x778   : > { %27200 = vmatprep.mubr.msk.f32.mxu1 %vm28751_vm2, %v36084_v48  ;;  %v12336_v57 = vsel %vm1581_vm3, %v32573_v45, 0.0 }
 0x779   : > { %36520 = vst [vmem:[#allocation59_spill] sm:$0xff] %v32578_v11  ;;  %v11697_v42 = vsel %vm1581_vm3, %v32578_v11, -inf }
 0x77f   : > { %v32584_v39 = vpop.eup %28130 }
 0x780   : > { %v32569_v51 = vpop.f32.mrf.mxu0 }
 0x781   : > { %36518 = vst [vmem:[#allocation181_spill] sm:$0xff] %v32569_v51 }
 0x782   : > { %v27167_v7 = vpop.f32.mrf.mxu0 }
 0x783   : > { %11701 = vmax.xlane.f32.xlu1 %v11700_v60  ;;  %v12333_v7 = vsel %vm1581_vm3, %v32584_v39, 0.0  ;;  %v36522_v60 = vld [vmem:[#allocation75_spill] sm:$0xff] }
 0x787   : > { %12337 = vadd.xlane.f32.xlu1 %v12336_v57 }
 0x78c   : > { %v32580_v49 = vpop.f32.mrf.mxu1 }
 0x78d   : > { %36521 = vst [vmem:[#allocation175_spill] sm:$0xff] %v32580_v49 }
 0x78e   : > { %v27162_v10 = vpop.f32.mrf.mxu1 }
 0x78f   : > { %11698 = vmax.xlane.f32.xlu0 %v11697_v42  ;;  %v28133_v10 = vpop.eup %28132  ;;  %v36525_v42 = vld [vmem:[#allocation194_spill] sm:$0xff] }
 0x790   : > { %v12871_v51 = vmul.f32 %v28133_v10, %v32158_v4  ;;  %v28135_v4 = vpop.eup %28134 }
 0x793   : > { %12334 = vadd.xlane.f32.xlu0 %v12333_v7  ;;  %v36526_v7 = vld [vmem:[#allocation138_spill] sm:$0xff] }
 0x798   : > { %15328 = vrot.lane.b32.xlu1 %v36522_v60, %s28752_s13  ;;  %v11866_v60 = vsub.f32 %v36526_v7, %v36525_v42  ;;  %v36528_v42 = vld [vmem:[#allocation202_spill] sm:$0xff]  ;;  %v36529_v7 = vld [vmem:[#allocation143_spill] sm:$0xff] }
 0x799   : > { %v11865_v11 = vsub.f32 %v36529_v7, %v36528_v42 }
 0x79a   : > { %v32591_v57 = vpop.xlane.xlu1 %11689  ;;  %v12040_v10 = vmul.f32 1.442695, %v11866_v60 }
 0x79b   : > { %36523 = vst [vmem:[#allocation186_spill] sm:$0xff] %v32591_v57  ;;  %v36530_v57 = vld [vmem:[#allocation182_spill] sm:$0xff] }
 0x79c   : > { %28136 = vpow2.f32 %v12040_v10 }
 0x79e   : > { %v32594_v20 = vpop.xlane.xlu1 %12325 }
 0x7a2   : > { %v15025_v49 = vpop.permute.xlu1 %15024 }
 0x7a3   : > { %27204 = vmatpush3.msra.mxu0 %v15025_v49  ;;  %v12870_v49 = vmul.f32 %v28135_v4, %v32011_v55 }
 0x7a4   : > { %27206 = vmatmul.mubr.msk.f32.vlgmr.msra.gmra.mxu0 %vm1581_vm3, %v12871_v51  ;;  %27213 = vmatprep.subr.mxu0 %v36084_v48 }
 0x7a5   : > { %27215 = vmatprep.mubr.msk.f32.mxu0 %vm28751_vm2, %v36084_v48 }
 0x7a6   : > { %v32599_v33 = vpop.xlane.xlu0 %11686 }
 0x7a7   : > { %36524 = vst [vmem:[#allocation135_spill] sm:$0xff] %v32599_v33  ;;  %v32617_v33 = vmul.f32 0.35355338, %v36530_v57 }
 0x7a9   : > { %15252 = vrot.lane.b32.xlu0 %v36527_v43, %s28752_s13  ;;  %v12038_v43 = vmul.f32 1.442695, %v11865_v11  ;;  %36531 = vst [vmem:[#allocation62_spill] sm:$0xff] %v32617_v33  ;;  %v11706_v4 = vsel %vm1581_vm3, %v32617_v33, -inf  ;;  %v32623_v10 = vpop.eup %28136 }
 0x7aa   : > { %v32607_v32 = vpop.xlane.xlu0 %12322 }
 0x7ab   : > { %28138 = vpow2.f32 %v12038_v43 }
 0x7ac   : > { %28140 = vrcp.f32 %v32353_v58 }
 0x7ad   : > { %28142 = vrcp.f32 %v32280_v12  ;;  %v36540_v12 = vld [vmem:[#allocation10_spill] sm:$0xff] }
 0x7ae   : > { %v14949_v51 = vpop.permute.xlu0 %14948 }
 0x7af   : > { %27199 = vmatpush3.msra.mxu1 %v14949_v51  ;;  %v36533_v51 = vld [vmem:[#allocation191_spill] sm:$0xff] }
 0x7b0   : > { %27201 = vmatmul.mubr.msk.f32.vlgmr.msra.gmra.mxu1 %vm1581_vm3, %v12870_v49  ;;  %27208 = vmatprep.subr.mxu1 %v36084_v48  ;;  %v12342_v49 = vsel %vm1581_vm3, %v32623_v10, 0.0  ;;  %v32628_v42 = vmul.f32 0.35355338, %v36533_v51 }
 0x7b1   : > { %27210 = vmatprep.mubr.msk.f32.mxu1 %vm28751_vm2, %v36084_v48 }
 0x7b2   : > { %36534 = vst [vmem:[#allocation195_spill] sm:$0xff] %v32628_v42  ;;  %v11703_v7 = vsel %vm1581_vm3, %v32628_v42, -inf  ;;  %v36542_v42 = vld [vmem:[#allocation185_spill] sm:$0xff] }
 0x7b8   : > { %v32634_v43 = vpop.eup %28138 }
 0x7b9   : > { %v32619_v60 = vpop.f32.mrf.mxu0 }
 0x7ba   : > { %36532 = vst [vmem:[#allocation165_spill] sm:$0xff] %v32619_v60 }
 0x7bb   : > { %v27177_v55 = vpop.f32.mrf.mxu0 }
 0x7bc   : > { %11707 = vmax.xlane.f32.xlu1 %v11706_v4  ;;  %v12339_v55 = vsel %vm1581_vm3, %v32634_v43, 0.0  ;;  %v36536_v4 = vld [vmem:[#allocation7_spill] sm:$0xff] }
 0x7c0   : > { %12343 = vadd.xlane.f32.xlu1 %v12342_v49 }
 0x7c5   : > { %v32630_v11 = vpop.f32.mrf.mxu1 }
 0x7c6   : > { %36535 = vst [vmem:[#allocation137_spill] sm:$0xff] %v32630_v11 }
 0x7c7   : > { %v27172_v57 = vpop.f32.mrf.mxu1 }
 0x7c8   : > { %11704 = vmax.xlane.f32.xlu0 %v11703_v7  ;;  %v28141_v57 = vpop.eup %28140  ;;  %v36538_v7 = vld [vmem:[#allocation197_spill] sm:$0xff] }
 0x7c9   : > { %v12873_v60 = vmul.f32 %v28141_v57, %v32222_v52  ;;  %v28143_v52 = vpop.eup %28142 }
 0x7cc   : > { %12340 = vadd.xlane.f32.xlu0 %v12339_v55  ;;  %v36539_v55 = vld [vmem:[#allocation140_spill] sm:$0xff] }
 0x7d1   : > { %15480 = vrot.lane.b32.xlu1 %v36536_v4, %s28752_s13  ;;  %v11868_v4 = vsub.f32 %v36539_v55, %v36538_v7  ;;  %v36541_v7 = vld [vmem:[#allocation145_spill] sm:$0xff] }
 0x7d2   : > { %v11867_v55 = vsub.f32 %v36541_v7, %v31964_v35 }
 0x7d3   : > { %v32641_v49 = vpop.xlane.xlu1 %11695  ;;  %v12044_v57 = vmul.f32 1.442695, %v11868_v4 }
 0x7d4   : > { %36537 = vst [vmem:[#allocation176_spill] sm:$0xff] %v32641_v49  ;;  %v32667_v49 = vmul.f32 0.35355338, %v36542_v42 }
 0x7d5   : > { %28144 = vpow2.f32 %v12044_v57 }
 0x7d6   : > { %36543 = vst [vmem:[#allocation184_spill] sm:$0xff] %v32667_v49 }
 0x7d7   : > { %v32644_v51 = vpop.xlane.xlu1 %12331 }
 0x7db   : > { %v15177_v11 = vpop.permute.xlu1 %15176 }
 0x7dc   : > { %27214 = vmatpush3.msra.mxu0 %v15177_v11  ;;  %v12872_v11 = vmul.f32 %v28143_v52, %v32129_v8  ;;  %v11712_v52 = vsel %vm1581_vm3, %v32667_v49, -inf }
 0x7dd   : > { %27216 = vmatmul.mubr.msk.f32.vlgmr.msra.gmra.mxu0 %vm1581_vm3, %v12873_v60  ;;  %27223 = vmatprep.subr.mxu0 %v36084_v48 }
 0x7de   : > { %27225 = vmatprep.mubr.msk.f32.mxu0 %vm28751_vm2, %v36084_v48 }
 0x7df   : > { %v32649_v58 = vpop.xlane.xlu0 %11692 }
 0x7e2   : > { %15404 = vrot.lane.b32.xlu0 %v36540_v12, %s28752_s13  ;;  %v12042_v12 = vmul.f32 1.442695, %v11867_v55  ;;  %v32673_v57 = vpop.eup %28144 }
 0x7e3   : > { %v32657_v33 = vpop.xlane.xlu0 %12328 }
 0x7e4   : > { %28146 = vpow2.f32 %v12042_v12 }
 0x7e5   : > { %28148 = vrcp.f32 %v32407_v17 }
 0x7e6   : > { %28150 = vrcp.f32 %v32336_v36  ;;  %v36552_v36 = vld [vmem:[#allocation26_spill] sm:$0xff] }
 0x7e7   : > { %v15101_v60 = vpop.permute.xlu0 %15100 }
 0x7e8   : > { %27209 = vmatpush3.msra.mxu1 %v15101_v60  ;;  %v36545_v60 = vld [vmem:[#allocation2_spill] sm:$0xff] }
 0x7e9   : > { %27211 = vmatmul.mubr.msk.f32.vlgmr.msra.gmra.mxu1 %vm1581_vm3, %v12872_v11  ;;  %27218 = vmatprep.subr.mxu1 %v36084_v48  ;;  %v12348_v11 = vsel %vm1581_vm3, %v32673_v57, 0.0  ;;  %v32678_v35 = vmul.f32 0.35355338, %v36545_v60 }
 0x7ea   : > { %27220 = vmatprep.mubr.msk.f32.mxu1 %vm28751_vm2, %v36084_v48 }
 0x7eb   : > { %36546 = vst [vmem:[#allocation190_spill] sm:$0xff] %v32678_v35  ;;  %v11709_v55 = vsel %vm1581_vm3, %v32678_v35, -inf  ;;  %v36554_v35 = vld [vmem:[#allocation189_spill] sm:$0xff] }
 0x7f1   : > { %v32684_v12 = vpop.eup %28146 }
 0x7f2   : > { %v32669_v4 = vpop.f32.mrf.mxu0 }
 0x7f3   : > { %36544 = vst [vmem:[#allocation67_spill] sm:$0xff] %v32669_v4 }
 0x7f4   : > { %v27187_v8 = vpop.f32.mrf.mxu0 }
 0x7f5   : > { %11713 = vmax.xlane.f32.xlu1 %v11712_v52  ;;  %v12345_v8 = vsel %vm1581_vm3, %v32684_v12, 0.0  ;;  %v36548_v52 = vld [vmem:[#allocation16_spill] sm:$0xff] }
 0x7f9   : > { %12349 = vadd.xlane.f32.xlu1 %v12348_v11 }
 0x7fe   : > { %v32680_v7 = vpop.f32.mrf.mxu1 }
 0x7ff   : > { %36547 = vst [vmem:[#allocation139_spill] sm:$0xff] %v32680_v7 }
 0x800   : > { %v27182_v42 = vpop.f32.mrf.mxu1 }
 0x801   : > { %11710 = vmax.xlane.f32.xlu0 %v11709_v55  ;;  %v28149_v42 = vpop.eup %28148  ;;  %v36550_v55 = vld [vmem:[#allocation200_spill] sm:$0xff] }
 0x802   : > { %v12875_v4 = vmul.f32 %v28149_v42, %v32269_v34  ;;  %v28151_v34 = vpop.eup %28150 }
 0x805   : > { %12346 = vadd.xlane.f32.xlu0 %v12345_v8  ;;  %v36551_v8 = vld [vmem:[#allocation142_spill] sm:$0xff] }
 0x80a   : > { %15632 = vrot.lane.b32.xlu1 %v36548_v52, %s28752_s13  ;;  %v11870_v52 = vsub.f32 %v36551_v8, %v36550_v55  ;;  %v36553_v55 = vld [vmem:[#allocation147_spill] sm:$0xff] }
 0x80b   : > { %v11869_v8 = vsub.f32 %v36553_v55, %v31972_v28 }
 0x80c   : > { %v32691_v11 = vpop.xlane.xlu1 %11701  ;;  %v12048_v42 = vmul.f32 1.442695, %v11870_v52 }
 0x80d   : > { %36549 = vst [vmem:[#allocation70_spill] sm:$0xff] %v32691_v11  ;;  %v32717_v11 = vmul.f32 0.35355338, %v36554_v35 }
 0x80e   : > { %28152 = vpow2.f32 %v12048_v42 }
 0x80f   : > { %36555 = vst [vmem:[#allocation177_spill] sm:$0xff] %v32717_v11 }
 0x810   : > { %v32694_v60 = vpop.xlane.xlu1 %12337 }
 0x814   : > { %v15329_v7 = vpop.permute.xlu1 %15328 }
 0x815   : > { %27224 = vmatpush3.msra.mxu0 %v15329_v7  ;;  %v12874_v7 = vmul.f32 %v28151_v34, %v32213_v22  ;;  %v11718_v34 = vsel %vm1581_vm3, %v32717_v11, -inf }
 0x816   : > { %27226 = vmatmul.mubr.msk.f32.vlgmr.msra.gmra.mxu0 %vm1581_vm3, %v12875_v4  ;;  %27233 = vmatprep.subr.mxu0 %v36084_v48 }
 0x817   : > { %27235 = vmatprep.mubr.msk.f32.mxu0 %vm28751_vm2, %v36084_v48 }
 0x818   : > { %v32699_v17 = vpop.xlane.xlu0 %11698 }
 0x81b   : > { %15556 = vrot.lane.b32.xlu0 %v36552_v36, %s28752_s13  ;;  %v12046_v36 = vmul.f32 1.442695, %v11869_v8  ;;  %v32723_v42 = vpop.eup %28152 }
 0x81c   : > { %v32707_v49 = vpop.xlane.xlu0 %12334 }
 0x81d   : > { %28154 = vpow2.f32 %v12046_v36 }
 0x81e   : > { %28156 = vrcp.f32 %v32457_v18 }
 0x81f   : > { %28158 = vrcp.f32 %v32394_v46  ;;  %v36564_v46 = vld [vmem:[#allocation24_spill] sm:$0xff] }
 0x820   : > { %v15253_v4 = vpop.permute.xlu0 %15252 }
 0x821   : > { %27219 = vmatpush3.msra.mxu1 %v15253_v4  ;;  %v36557_v4 = vld [vmem:[#allocation3_spill] sm:$0xff] }
 0x822   : > { %27221 = vmatmul.mubr.msk.f32.vlgmr.msra.gmra.mxu1 %vm1581_vm3, %v12874_v7  ;;  %27228 = vmatprep.subr.mxu1 %v36084_v48  ;;  %v12354_v7 = vsel %vm1581_vm3, %v32723_v42, 0.0  ;;  %v32728_v28 = vmul.f32 0.35355338, %v36557_v4 }
 0x823   : > { %27230 = vmatprep.mubr.msk.f32.mxu1 %vm28751_vm2, %v36084_v48 }
 0x824   : > { %36558 = vst [vmem:[#allocation141_spill] sm:$0xff] %v32728_v28  ;;  %v11715_v8 = vsel %vm1581_vm3, %v32728_v28, -inf  ;;  %v36566_v28 = vld [vmem:[#allocation192_spill] sm:$0xff] }
 0x82a   : > { %v32734_v36 = vpop.eup %28154 }
 0x82b   : > { %v32719_v52 = vpop.f32.mrf.mxu0 }
 0x82c   : > { %36556 = vst [vmem:[#allocation198_spill] sm:$0xff] %v32719_v52 }
 0x82d   : > { %v27197_v22 = vpop.f32.mrf.mxu0 }
 0x82e   : > { %11719 = vmax.xlane.f32.xlu1 %v11718_v34  ;;  %v12351_v22 = vsel %vm1581_vm3, %v32734_v36, 0.0  ;;  %v36560_v34 = vld [vmem:[#allocation32_spill] sm:$0xff] }
 0x832   : > { %12355 = vadd.xlane.f32.xlu1 %v12354_v7 }
 0x837   : > { %v32730_v55 = vpop.f32.mrf.mxu1 }
 0x838   : > { %36559 = vst [vmem:[#allocation179_spill] sm:$0xff] %v32730_v55 }
 0x839   : > { %v27192_v35 = vpop.f32.mrf.mxu1 }
 0x83a   : > { %11716 = vmax.xlane.f32.xlu0 %v11715_v8  ;;  %v28157_v35 = vpop.eup %28156  ;;  %v36562_v8 = vld [vmem:[#allocation203_spill] sm:$0xff] }
 0x83b   : > { %v12877_v52 = vmul.f32 %v28157_v35, %v32322_v16  ;;  %v28159_v16 = vpop.eup %28158 }
 0x83e   : > { %12352 = vadd.xlane.f32.xlu0 %v12351_v22  ;;  %v36563_v22 = vld [vmem:[#allocation144_spill] sm:$0xff] }
 0x843   : > { %15784 = vrot.lane.b32.xlu1 %v36560_v34, %s28752_s13  ;;  %v11872_v34 = vsub.f32 %v36563_v22, %v36562_v8  ;;  %v36565_v8 = vld [vmem:[#allocation149_spill] sm:$0xff] }
 0x844   : > { %v11871_v22 = vsub.f32 %v36565_v8, %v31978_v14 }
 0x845   : > { %v32741_v7 = vpop.xlane.xlu1 %11707  ;;  %v12052_v35 = vmul.f32 1.442695, %v11872_v34 }
 0x846   : > { %36561 = vst [vmem:[#allocation187_spill] sm:$0xff] %v32741_v7  ;;  %v32767_v7 = vmul.f32 0.35355338, %v36566_v28 }
 0x847   : > { %28160 = vpow2.f32 %v12052_v35 }
 0x848   : > { %36567 = vst [vmem:[#allocation75_spill] sm:$0xff] %v32767_v7 }
 0x849   : > { %v32744_v4 = vpop.xlane.xlu1 %12343 }
 0x84d   : > { %v15481_v55 = vpop.permute.xlu1 %15480 }
 0x84e   : > { %27234 = vmatpush3.msra.mxu0 %v15481_v55  ;;  %v12876_v55 = vmul.f32 %v28159_v16, %v32260_v44  ;;  %v11724_v16 = vsel %vm1581_vm3, %v32767_v7, -inf  ;;  %v36576_v7 = vld [vmem:[#allocation196_spill] sm:$0xff] }
 0x84f   : > { %27236 = vmatmul.mubr.msk.f32.vlgmr.msra.gmra.mxu0 %vm1581_vm3, %v12877_v52  ;;  %27243 = vmatprep.subr.mxu0 %v36084_v48 }
 0x850   : > { %27245 = vmatprep.mubr.msk.f32.mxu0 %vm28751_vm2, %v36084_v48 }
 0x851   : > { %v32749_v18 = vpop.xlane.xlu0 %11704 }
 0x854   : > { %15708 = vrot.lane.b32.xlu0 %v36564_v46, %s28752_s13  ;;  %v12050_v46 = vmul.f32 1.442695, %v11871_v22  ;;  %v32773_v35 = vpop.eup %28160 }
 0x855   : > { %v32757_v11 = vpop.xlane.xlu0 %12340 }
 0x856   : > { %28162 = vpow2.f32 %v12050_v46 }
 0x857   : > { %28164 = vrcp.f32 %v32507_v31 }
 0x858   : > { %28166 = vrcp.f32 %v32444_v61  ;;  %v36574_v61 = vld [vmem:[#allocation49_spill] sm:$0xff] }
 0x859   : > { %v15405_v52 = vpop.permute.xlu0 %15404 }
 0x85a   : > { %27229 = vmatpush3.msra.mxu1 %v15405_v52  ;;  %v36569_v52 = vld [vmem:[#allocation157_spill] sm:$0xff] }
 0x85b   : > { %27231 = vmatmul.mubr.msk.f32.vlgmr.msra.gmra.mxu1 %vm1581_vm3, %v12876_v55  ;;  %27238 = vmatprep.subr.mxu1 %v36084_v48  ;;  %v12360_v55 = vsel %vm1581_vm3, %v32773_v35, 0.0  ;;  %v32778_v14 = vmul.f32 0.35355338, %v36569_v52 }
 0x85c   : > { %27240 = vmatprep.mubr.msk.f32.mxu1 %vm28751_vm2, %v36084_v48 }
 0x85d   : > { %36570 = vst [vmem:[#allocation138_spill] sm:$0xff] %v32778_v14  ;;  %v11721_v22 = vsel %vm1581_vm3, %v32778_v14, -inf  ;;  %v32817_v14 = vmul.f32 0.35355338, %v36576_v7 }
 0x85f   : > { %36577 = vst [vmem:[#allocation202_spill] sm:$0xff] %v32817_v14 }
 0x863   : > { %v32784_v46 = vpop.eup %28162 }
 0x864   : > { %v32769_v34 = vpop.f32.mrf.mxu0 }
 0x865   : > { %36568 = vst [vmem:[#allocation194_spill] sm:$0xff] %v32769_v34 }
 0x866   : > { %v27207_v44 = vpop.f32.mrf.mxu0 }
 0x867   : > { %11725 = vmax.xlane.f32.xlu1 %v11724_v16  ;;  %v12357_v44 = vsel %vm1581_vm3, %v32784_v46, 0.0  ;;  %v36572_v16 = vld [vmem:[#allocation33_spill] sm:$0xff] }
 0x86b   : > { %12361 = vadd.xlane.f32.xlu1 %v12360_v55 }
 0x870   : > { %v32780_v8 = vpop.f32.mrf.mxu1 }
 0x871   : > { %36571 = vst [vmem:[#allocation78_spill] sm:$0xff] %v32780_v8 }
 0x872   : > { %v27202_v28 = vpop.f32.mrf.mxu1 }
 0x873   : > { %11722 = vmax.xlane.f32.xlu0 %v11721_v22  ;;  %v28165_v28 = vpop.eup %28164  ;;  %v36573_v22 = vld [vmem:[#allocation146_spill] sm:$0xff] }
 0x874   : > { %v12879_v34 = vmul.f32 %v28165_v28, %v32384_v5  ;;  %v28167_v5 = vpop.eup %28166 }
 0x877   : > { %12358 = vadd.xlane.f32.xlu0 %v12357_v44  ;;  %v11874_v44 = vsub.f32 %v36573_v22, %v31982_v19  ;;  %v36575_v19 = vld [vmem:[#allocation152_spill] sm:$0xff] }
 0x878   : > { %v11873_v22 = vsub.f32 %v36575_v19, %v31988_v62 }
 0x879   : > { %v12056_v28 = vmul.f32 1.442695, %v11874_v44 }
 0x87b   : > { %28168 = vpow2.f32 %v12056_v28 }
 0x87c   : > { %15936 = vrot.lane.b32.xlu1 %v36572_v16, %s28752_s13 }
 0x87e   : > { %v32791_v55 = vpop.xlane.xlu1 %11713 }
 0x882   : > { %v32794_v52 = vpop.xlane.xlu1 %12349 }
 0x886   : > { %v15633_v8 = vpop.permute.xlu1 %15632 }
 0x887   : > { %27244 = vmatpush3.msra.mxu0 %v15633_v8  ;;  %v12878_v8 = vmul.f32 %v28167_v5, %v32313_v9  ;;  %v11730_v5 = vsel %vm1581_vm3, %v32817_v14, -inf }
 0x888   : > { %27246 = vmatmul.mubr.msk.f32.vlgmr.msra.gmra.mxu0 %vm1581_vm3, %v12879_v34  ;;  %27253 = vmatprep.subr.mxu0 %v36084_v48  ;;  %v32823_v28 = vpop.eup %28168 }
 0x889   : > { %27255 = vmatprep.mubr.msk.f32.mxu0 %vm28751_vm2, %v36084_v48 }
 0x88a   : > { %v32799_v31 = vpop.xlane.xlu0 %11710 }
 0x88d   : > { %15860 = vrot.lane.b32.xlu0 %v36574_v61, %s28752_s13  ;;  %v12054_v61 = vmul.f32 1.442695, %v11873_v22 }
 0x88e   : > { %v32807_v16 = vpop.xlane.xlu0 %12346 }
 0x88f   : > { %28170 = vpow2.f32 %v12054_v61 }
 0x890   : > { %28172 = vrcp.f32 %v32557_v2 }
 0x891   : > { %28174 = vrcp.f32 %v32494_v53  ;;  %v36587_v53 = vld [vmem:[#allocation46_spill] sm:$0xff] }
 0x892   : > { %v15557_v34 = vpop.permute.xlu0 %15556 }
 0x893   : > { %27239 = vmatpush3.msra.mxu1 %v15557_v34  ;;  %v36579_v34 = vld [vmem:[#allocation158_spill] sm:$0xff] }
 0x894   : > { %27241 = vmatmul.mubr.msk.f32.vlgmr.msra.gmra.mxu1 %vm1581_vm3, %v12878_v8  ;;  %27248 = vmatprep.subr.mxu1 %v36084_v48  ;;  %v12366_v8 = vsel %vm1581_vm3, %v32823_v28, 0.0  ;;  %v32828_v62 = vmul.f32 0.35355338, %v36579_v34 }
 0x895   : > { %27250 = vmatprep.mubr.msk.f32.mxu1 %vm28751_vm2, %v36084_v48 }
 0x896   : > { %36580 = vst [vmem:[#allocation182_spill] sm:$0xff] %v32828_v62  ;;  %v11727_v22 = vsel %vm1581_vm3, %v32828_v62, -inf }
 0x89c   : > { %v32834_v61 = vpop.eup %28170 }
 0x89d   : > { %v32819_v44 = vpop.f32.mrf.mxu0 }
 0x89e   : > { %36578 = vst [vmem:[#allocation143_spill] sm:$0xff] %v32819_v44 }
 0x89f   : > { %v27217_v9 = vpop.f32.mrf.mxu0 }
 0x8a0   : > { %11731 = vmax.xlane.f32.xlu1 %v11730_v5  ;;  %v12363_v9 = vsel %vm1581_vm3, %v32834_v61, 0.0  ;;  %v36582_v5 = vld [vmem:[#allocation54_spill] sm:$0xff] }
 0x8a4   : > { %12367 = vadd.xlane.f32.xlu1 %v12366_v8 }
 0x8a9   : > { %v32830_v19 = vpop.f32.mrf.mxu1 }
 0x8aa   : > { %36581 = vst [vmem:[#allocation191_spill] sm:$0xff] %v32830_v19 }
 0x8ab   : > { %v27212_v7 = vpop.f32.mrf.mxu1 }
 0x8ac   : > { %11728 = vmax.xlane.f32.xlu0 %v11727_v22  ;;  %v28173_v7 = vpop.eup %28172  ;;  %v36585_v22 = vld [vmem:[#allocation209_spill] sm:$0xff] }
 0x8ad   : > { %v12881_v44 = vmul.f32 %v28173_v7, %v32434_v0  ;;  %v28175_v0 = vpop.eup %28174 }
 0x8b0   : > { %12364 = vadd.xlane.f32.xlu0 %v12363_v9  ;;  %v36586_v9 = vld [vmem:[#allocation148_spill] sm:$0xff] }
 0x8b5   : > { %16088 = vrot.lane.b32.xlu1 %v36582_v5, %s28752_s13  ;;  %v11876_v5 = vsub.f32 %v36586_v9, %v36585_v22  ;;  %v36588_v22 = vld [vmem:[#allocation212_spill] sm:$0xff]  ;;  %v36589_v9 = vld [vmem:[#allocation154_spill] sm:$0xff] }
 0x8b6   : > { %v11875_v62 = vsub.f32 %v36589_v9, %v36588_v22 }
 0x8b7   : > { %v32841_v8 = vpop.xlane.xlu1 %11719  ;;  %v12060_v7 = vmul.f32 1.442695, %v11876_v5 }
 0x8b8   : > { %36583 = vst [vmem:[#allocation7_spill] sm:$0xff] %v32841_v8  ;;  %v36590_v8 = vld [vmem:[#allocation199_spill] sm:$0xff] }
 0x8b9   : > { %28176 = vpow2.f32 %v12060_v7 }
 0x8bb   : > { %v32844_v34 = vpop.xlane.xlu1 %12355 }
 0x8bf   : > { %v15785_v19 = vpop.permute.xlu1 %15784 }
 0x8c0   : > { %27254 = vmatpush3.msra.mxu0 %v15785_v19  ;;  %v12880_v19 = vmul.f32 %v28175_v0, %v32373_v23 }
 0x8c1   : > { %27256 = vmatmul.mubr.msk.f32.vlgmr.msra.gmra.mxu0 %vm1581_vm3, %v12881_v44  ;;  %27263 = vmatprep.subr.mxu0 %v36084_v48 }
 0x8c2   : > { %27265 = vmatprep.mubr.msk.f32.mxu0 %vm28751_vm2, %v36084_v48 }
 0x8c3   : > { %v32849_v2 = vpop.xlane.xlu0 %11716 }
 0x8c4   : > { %36584 = vst [vmem:[#allocation197_spill] sm:$0xff] %v32849_v2  ;;  %v32867_v2 = vmul.f32 0.35355338, %v36590_v8 }
 0x8c6   : > { %16012 = vrot.lane.b32.xlu0 %v36587_v53, %s28752_s13  ;;  %v12058_v53 = vmul.f32 1.442695, %v11875_v62  ;;  %36591 = vst [vmem:[#allocation140_spill] sm:$0xff] %v32867_v2  ;;  %v11736_v0 = vsel %vm1581_vm3, %v32867_v2, -inf  ;;  %v32873_v7 = vpop.eup %28176 }
 0x8c7   : > { %v32857_v14 = vpop.xlane.xlu0 %12352 }
 0x8c8   : > { %28178 = vpow2.f32 %v12058_v53 }
 0x8c9   : > { %28180 = vrcp.f32 %v32607_v32 }
 0x8ca   : > { %28182 = vrcp.f32 %v32544_v54  ;;  %v36599_v54 = vld [vmem:[#allocation68_spill] sm:$0xff] }
 0x8cb   : > { %v15709_v44 = vpop.permute.xlu0 %15708 }
 0x8cc   : > { %27249 = vmatpush3.msra.mxu1 %v15709_v44  ;;  %v36593_v44 = vld [vmem:[#allocation159_spill] sm:$0xff] }
 0x8cd   : > { %27251 = vmatmul.mubr.msk.f32.vlgmr.msra.gmra.mxu1 %vm1581_vm3, %v12880_v19  ;;  %27258 = vmatprep.subr.mxu1 %v36084_v48  ;;  %v12372_v19 = vsel %vm1581_vm3, %v32873_v7, 0.0  ;;  %v32878_v22 = vmul.f32 0.35355338, %v36593_v44 }
 0x8ce   : > { %27260 = vmatprep.mubr.msk.f32.mxu1 %vm28751_vm2, %v36084_v48 }
 0x8cf   : > { %36594 = vst [vmem:[#allocation145_spill] sm:$0xff] %v32878_v22  ;;  %v11733_v9 = vsel %vm1581_vm3, %v32878_v22, -inf  ;;  %v36602_v22 = vld [vmem:[#allocation201_spill] sm:$0xff] }
 0x8d5   : > { %v32884_v53 = vpop.eup %28178 }
 0x8d6   : > { %v32869_v5 = vpop.f32.mrf.mxu0 }
 0x8d7   : > { %36592 = vst [vmem:[#allocation10_spill] sm:$0xff] %v32869_v5 }
 0x8d8   : > { %v27227_v23 = vpop.f32.mrf.mxu0 }
 0x8d9   : > { %11737 = vmax.xlane.f32.xlu1 %v11736_v0  ;;  %v12369_v23 = vsel %vm1581_vm3, %v32884_v53, 0.0  ;;  %v36596_v0 = vld [vmem:[#allocation55_spill] sm:$0xff] }
 0x8dd   : > { %12373 = vadd.xlane.f32.xlu1 %v12372_v19 }
 0x8e2   : > { %v32880_v62 = vpop.f32.mrf.mxu1 }
 0x8e3   : > { %36595 = vst [vmem:[#allocation185_spill] sm:$0xff] %v32880_v62 }
 0x8e4   : > { %v27222_v8 = vpop.f32.mrf.mxu1 }
 0x8e5   : > { %11734 = vmax.xlane.f32.xlu0 %v11733_v9  ;;  %v28181_v8 = vpop.eup %28180  ;;  %v36598_v9 = vld [vmem:[#allocation151_spill] sm:$0xff] }
 0x8e6   : > { %v12883_v5 = vmul.f32 %v28181_v8, %v32484_v29  ;;  %v28183_v29 = vpop.eup %28182 }
 0x8e9   : > { %12370 = vadd.xlane.f32.xlu0 %v12369_v23  ;;  %v11878_v23 = vsub.f32 %v36598_v9, %v32085_v59  ;;  %v36600_v59 = vld [vmem:[#allocation219_spill] sm:$0xff]  ;;  %v36601_v9 = vld [vmem:[#allocation150_spill] sm:$0xff] }
 0x8ea   : > { %v11877_v2 = vsub.f32 %v36601_v9, %v36600_v59 }
 0x8eb   : > { %v12064_v8 = vmul.f32 1.442695, %v11878_v23 }
 0x8ed   : > { %28184 = vpow2.f32 %v12064_v8 }
 0x8ee   : > { %16240 = vrot.lane.b32.xlu1 %v36596_v0, %s28752_s13 }
 0x8f0   : > { %v32891_v19 = vpop.xlane.xlu1 %11725 }
 0x8f1   : > { %36597 = vst [vmem:[#allocation2_spill] sm:$0xff] %v32891_v19  ;;  %v32917_v19 = vmul.f32 0.35355338, %v36602_v22 }
 0x8f3   : > { %36603 = vst [vmem:[#allocation16_spill] sm:$0xff] %v32917_v19 }
 0x8f4   : > { %v32894_v44 = vpop.xlane.xlu1 %12361 }
 0x8f8   : > { %v15937_v62 = vpop.permute.xlu1 %15936 }
 0x8f9   : > { %27264 = vmatpush3.msra.mxu0 %v15937_v62  ;;  %v12882_v62 = vmul.f32 %v28183_v29, %v32423_v37  ;;  %v11742_v29 = vsel %vm1581_vm3, %v32917_v19, -inf  ;;  %v36612_v19 = vld [vmem:[#allocation167_spill] sm:$0xff] }
 0x8fa   : > { %27266 = vmatmul.mubr.msk.f32.vlgmr.msra.gmra.mxu0 %vm1581_vm3, %v12883_v5  ;;  %27273 = vmatprep.subr.mxu0 %v36084_v48  ;;  %v32923_v8 = vpop.eup %28184 }
 0x8fb   : > { %27275 = vmatprep.mubr.msk.f32.mxu0 %vm28751_vm2, %v36084_v48 }
 0x8fc   : > { %v32899_v32 = vpop.xlane.xlu0 %11722 }
 0x8ff   : > { %16164 = vrot.lane.b32.xlu0 %v36599_v54, %s28752_s13  ;;  %v12062_v54 = vmul.f32 1.442695, %v11877_v2 }
 0x900   : > { %v32907_v0 = vpop.xlane.xlu0 %12358 }
 0x901   : > { %28186 = vpow2.f32 %v12062_v54 }
 0x902   : > { %28188 = vrcp.f32 %v32657_v33 }
 0x903   : > { %28190 = vrcp.f32 %v32594_v20  ;;  %v36610_v20 = vld [vmem:[#allocation64_spill] sm:$0xff] }
 0x904   : > { %v15861_v5 = vpop.permute.xlu0 %15860 }
 0x905   : > { %27259 = vmatpush3.msra.mxu1 %v15861_v5  ;;  %v36605_v5 = vld [vmem:[#allocation205_spill] sm:$0xff] }
 0x906   : > { %27261 = vmatmul.mubr.msk.f32.vlgmr.msra.gmra.mxu1 %vm1581_vm3, %v12882_v62  ;;  %27268 = vmatprep.subr.mxu1 %v36084_v48  ;;  %v12378_v62 = vsel %vm1581_vm3, %v32923_v8, 0.0  ;;  %v32928_v59 = vmul.f32 0.35355338, %v36605_v5 }
 0x907   : > { %27270 = vmatprep.mubr.msk.f32.mxu1 %vm28751_vm2, %v36084_v48 }
 0x908   : > { %36606 = vst [vmem:[#allocation142_spill] sm:$0xff] %v32928_v59  ;;  %v11739_v9 = vsel %vm1581_vm3, %v32928_v59, -inf  ;;  %v32967_v59 = vmul.f32 0.35355338, %v36612_v19 }
 0x90a   : > { %36613 = vst [vmem:[#allocation147_spill] sm:$0xff] %v32967_v59 }
 0x90e   : > { %v32934_v54 = vpop.eup %28186 }
 0x90f   : > { %v32919_v23 = vpop.f32.mrf.mxu0 }
 0x910   : > { %36604 = vst [vmem:[#allocation200_spill] sm:$0xff] %v32919_v23 }
 0x911   : > { %v27237_v37 = vpop.f32.mrf.mxu0 }
 0x912   : > { %11743 = vmax.xlane.f32.xlu1 %v11742_v29  ;;  %v12375_v37 = vsel %vm1581_vm3, %v32934_v54, 0.0  ;;  %v36608_v29 = vld [vmem:[#allocation71_spill] sm:$0xff] }
 0x916   : > { %12379 = vadd.xlane.f32.xlu1 %v12378_v62 }
 0x91b   : > { %v32930_v2 = vpop.f32.mrf.mxu1 }
 0x91c   : > { %36607 = vst [vmem:[#allocation26_spill] sm:$0xff] %v32930_v2 }
 0x91d   : > { %v27232_v22 = vpop.f32.mrf.mxu1 }
 0x91e   : > { %11740 = vmax.xlane.f32.xlu0 %v11739_v9  ;;  %v28189_v22 = vpop.eup %28188  ;;  %v36609_v9 = vld [vmem:[#allocation103_spill] sm:$0xff] }
 0x91f   : > { %v12885_v2 = vmul.f32 %v28189_v22, %v32534_v15  ;;  %v28191_v15 = vpop.eup %28190 }
 0x922   : > { %12376 = vadd.xlane.f32.xlu0 %v12375_v37  ;;  %v11880_v37 = vsub.f32 %v36609_v9, %v32104_v40  ;;  %v36611_v40 = vld [vmem:[#allocation153_spill] sm:$0xff] }
 0x923   : > { %v11879_v9 = vsub.f32 %v36611_v40, %v32074_v38 }
 0x924   : > { %v12068_v22 = vmul.f32 1.442695, %v11880_v37 }
 0x926   : > { %28192 = vpow2.f32 %v12068_v22 }
 0x927   : > { %16392 = vrot.lane.b32.xlu1 %v36608_v29, %s28752_s13 }
 0x929   : > { %v32941_v62 = vpop.xlane.xlu1 %11731 }
 0x92d   : > { %v32944_v5 = vpop.xlane.xlu1 %12367 }
 0x931   : > { %v16089_v23 = vpop.permute.xlu1 %16088 }
 0x932   : > { %27274 = vmatpush3.msra.mxu0 %v16089_v23  ;;  %v12884_v23 = vmul.f32 %v28191_v15, %v32473_v6  ;;  %v11748_v15 = vsel %vm1581_vm3, %v32967_v59, -inf }
 0x933   : > { %27276 = vmatmul.mubr.msk.f32.vlgmr.msra.gmra.mxu0 %vm1581_vm3, %v12885_v2  ;;  %27283 = vmatprep.subr.mxu0 %v36084_v48  ;;  %v32973_v22 = vpop.eup %28192 }
 0x934   : > { %27285 = vmatprep.mubr.msk.f32.mxu0 %vm28751_vm2, %v36084_v48 }
 0x935   : > { %v32949_v33 = vpop.xlane.xlu0 %11728 }
 0x938   : > { %16316 = vrot.lane.b32.xlu0 %v36610_v20, %s28752_s13  ;;  %v12066_v20 = vmul.f32 1.442695, %v11879_v9 }
 0x939   : > { %v32957_v29 = vpop.xlane.xlu0 %12364 }
 0x93a   : > { %28194 = vpow2.f32 %v12066_v20 }
 0x93b   : > { %28196 = vrcp.f32 %v32707_v49 }
 0x93c   : > { %28198 = vrcp.f32 %v32644_v51  ;;  %v36623_v51 = vld [vmem:[#allocation72_spill] sm:$0xff] }
 0x93d   : > { %v16013_v2 = vpop.permute.xlu0 %16012 }
 0x93e   : > { %27269 = vmatpush3.msra.mxu1 %v16013_v2  ;;  %v36615_v2 = vld [vmem:[#allocation168_spill] sm:$0xff] }
 0x93f   : > { %27271 = vmatmul.mubr.msk.f32.vlgmr.msra.gmra.mxu1 %vm1581_vm3, %v12884_v23  ;;  %27278 = vmatprep.subr.mxu1 %v36084_v48  ;;  %v12384_v23 = vsel %vm1581_vm3, %v32973_v22, 0.0  ;;  %v32978_v38 = vmul.f32 0.35355338, %v36615_v2 }
 0x940   : > { %27280 = vmatprep.mubr.msk.f32.mxu1 %vm28751_vm2, %v36084_v48 }
 0x941   : > { %36616 = vst [vmem:[#allocation3_spill] sm:$0xff] %v32978_v38  ;;  %v11745_v9 = vsel %vm1581_vm3, %v32978_v38, -inf }
 0x947   : > { %v32984_v20 = vpop.eup %28194 }
 0x948   : > { %v32969_v37 = vpop.f32.mrf.mxu0 }
 0x949   : > { %36614 = vst [vmem:[#allocation189_spill] sm:$0xff] %v32969_v37 }
 0x94a   : > { %v27247_v6 = vpop.f32.mrf.mxu0 }
 0x94b   : > { %11749 = vmax.xlane.f32.xlu1 %v11748_v15  ;;  %v12381_v6 = vsel %vm1581_vm3, %v32984_v20, 0.0  ;;  %v36618_v15 = vld [vmem:[#allocation79_spill] sm:$0xff] }
 0x94f   : > { %12385 = vadd.xlane.f32.xlu1 %v12384_v23 }
 0x954   : > { %v32980_v40 = vpop.f32.mrf.mxu1 }
 0x955   : > { %36617 = vst [vmem:[#allocation32_spill] sm:$0xff] %v32980_v40 }
 0x956   : > { %v27242_v19 = vpop.f32.mrf.mxu1 }
 0x957   : > { %11746 = vmax.xlane.f32.xlu0 %v11745_v9  ;;  %v28197_v19 = vpop.eup %28196  ;;  %v36621_v9 = vld [vmem:[#allocation226_spill] sm:$0xff] }
 0x958   : > { %v12887_v37 = vmul.f32 %v28197_v19, %v32584_v39  ;;  %v28199_v39 = vpop.eup %28198 }
 0x95b   : > { %12382 = vadd.xlane.f32.xlu0 %v12381_v6  ;;  %v36622_v6 = vld [vmem:[#allocation115_spill] sm:$0xff] }
 0x960   : > { %16544 = vrot.lane.b32.xlu1 %v36618_v15, %s28752_s13  ;;  %v11882_v15 = vsub.f32 %v36622_v6, %v36621_v9  ;;  %v36624_v9 = vld [vmem:[#allocation170_spill] sm:$0xff] }
 0x961   : > { %v36625_v6 = vld [vmem:[#allocation14_spill] sm:$0xff] }
 0x962   : > { %v32991_v23 = vpop.xlane.xlu1 %11737  ;;  %v12072_v19 = vmul.f32 1.442695, %v11882_v15  ;;  %v11881_v38 = vsub.f32 %v36625_v6, %v36624_v9 }
 0x963   : > { %36619 = vst [vmem:[#allocation203_spill] sm:$0xff] %v32991_v23  ;;  %v36626_v23 = vld [vmem:[#allocation204_spill] sm:$0xff] }
 0x964   : > { %28200 = vpow2.f32 %v12072_v19 }
 0x966   : > { %v32994_v2 = vpop.xlane.xlu1 %12373 }
 0x96a   : > { %v16241_v40 = vpop.permute.xlu1 %16240 }
 0x96b   : > { %27284 = vmatpush3.msra.mxu0 %v16241_v40  ;;  %v12886_v40 = vmul.f32 %v28199_v39, %v32523_v63 }
 0x96c   : > { %27286 = vmatmul.mubr.msk.f32.vlgmr.msra.gmra.mxu0 %vm1581_vm3, %v12887_v37  ;;  %27293 = vmatprep.subr.mxu0 %v36084_v48 }
 0x96d   : > { %27295 = vmatprep.mubr.msk.f32.mxu0 %vm28751_vm2, %v36084_v48 }
 0x96e   : > { %v32999_v49 = vpop.xlane.xlu0 %11734 }
 0x96f   : > { %36620 = vst [vmem:[#allocation144_spill] sm:$0xff] %v32999_v49  ;;  %v33017_v49 = vmul.f32 0.35355338, %v36626_v23 }
 0x971   : > { %16468 = vrot.lane.b32.xlu0 %v36623_v51, %s28752_s13  ;;  %v12070_v51 = vmul.f32 1.442695, %v11881_v38  ;;  %36627 = vst [vmem:[#allocation24_spill] sm:$0xff] %v33017_v49  ;;  %v11754_v39 = vsel %vm1581_vm3, %v33017_v49, -inf  ;;  %v33023_v19 = vpop.eup %28200 }
 0x972   : > { %v33007_v59 = vpop.xlane.xlu0 %12370 }
 0x973   : > { %28202 = vpow2.f32 %v12070_v51 }
 0x974   : > { %28204 = vrcp.f32 %v32757_v11 }
 0x975   : > { %28206 = vrcp.f32 %v32694_v60  ;;  %v36636_v60 = vld [vmem:[#allocation80_spill] sm:$0xff] }
 0x976   : > { %v16165_v37 = vpop.permute.xlu0 %16164 }
 0x977   : > { %27279 = vmatpush3.msra.mxu1 %v16165_v37  ;;  %v36629_v37 = vld [vmem:[#allocation210_spill] sm:$0xff] }
 0x978   : > { %27281 = vmatmul.mubr.msk.f32.vlgmr.msra.gmra.mxu1 %vm1581_vm3, %v12886_v40  ;;  %27288 = vmatprep.subr.mxu1 %v36084_v48  ;;  %v12390_v40 = vsel %vm1581_vm3, %v33023_v19, 0.0  ;;  %v33028_v9 = vmul.f32 0.35355338, %v36629_v37 }
 0x979   : > { %27290 = vmatprep.mubr.msk.f32.mxu1 %vm28751_vm2, %v36084_v48 }
 0x97a   : > { %36630 = vst [vmem:[#allocation192_spill] sm:$0xff] %v33028_v9  ;;  %v11751_v6 = vsel %vm1581_vm3, %v33028_v9, -inf  ;;  %v36638_v9 = vld [vmem:[#allocation206_spill] sm:$0xff] }
 0x980   : > { %v33034_v51 = vpop.eup %28202 }
 0x981   : > { %v33019_v15 = vpop.f32.mrf.mxu0 }
 0x982   : > { %36628 = vst [vmem:[#allocation149_spill] sm:$0xff] %v33019_v15 }
 0x983   : > { %v27257_v63 = vpop.f32.mrf.mxu0 }
 0x984   : > { %11755 = vmax.xlane.f32.xlu1 %v11754_v39  ;;  %v12387_v63 = vsel %vm1581_vm3, %v33034_v51, 0.0  ;;  %v36632_v39 = vld [vmem:[#allocation85_spill] sm:$0xff] }
 0x988   : > { %12391 = vadd.xlane.f32.xlu1 %v12390_v40 }
 0x98d   : > { %v33030_v38 = vpop.f32.mrf.mxu1 }
 0x98e   : > { %36631 = vst [vmem:[#allocation157_spill] sm:$0xff] %v33030_v38 }
 0x98f   : > { %v27252_v23 = vpop.f32.mrf.mxu1 }
 0x990   : > { %11752 = vmax.xlane.f32.xlu0 %v11751_v6  ;;  %v28205_v23 = vpop.eup %28204  ;;  %v36634_v6 = vld [vmem:[#allocation227_spill] sm:$0xff] }
 0x991   : > { %v12889_v15 = vmul.f32 %v28205_v23, %v32634_v43  ;;  %v28207_v43 = vpop.eup %28206 }
 0x994   : > { %12388 = vadd.xlane.f32.xlu0 %v12387_v63  ;;  %v36635_v63 = vld [vmem:[#allocation117_spill] sm:$0xff] }
 0x999   : > { %16696 = vrot.lane.b32.xlu1 %v36632_v39, %s28752_s13  ;;  %v11884_v39 = vsub.f32 %v36635_v63, %v36634_v6  ;;  %v36637_v6 = vld [vmem:[#allocation122_spill] sm:$0xff] }
 0x99a   : > { %v11883_v63 = vsub.f32 %v36637_v6, %v32112_v21 }
 0x99b   : > { %v33041_v40 = vpop.xlane.xlu1 %11743  ;;  %v12076_v23 = vmul.f32 1.442695, %v11884_v39 }
 0x99c   : > { %36633 = vst [vmem:[#allocation33_spill] sm:$0xff] %v33041_v40  ;;  %v33067_v40 = vmul.f32 0.35355338, %v36638_v9 }
 0x99d   : > { %28208 = vpow2.f32 %v12076_v23 }
 0x99e   : > { %36639 = vst [vmem:[#allocation146_spill] sm:$0xff] %v33067_v40 }
 0x99f   : > { %v33044_v37 = vpop.xlane.xlu1 %12379 }
 0x9a3   : > { %v16393_v38 = vpop.permute.xlu1 %16392 }
 0x9a4   : > { %27294 = vmatpush3.msra.mxu0 %v16393_v38  ;;  %v12888_v38 = vmul.f32 %v28207_v43, %v32573_v45  ;;  %v11760_v43 = vsel %vm1581_vm3, %v33067_v40, -inf }
 0x9a5   : > { %27296 = vmatmul.mubr.msk.f32.vlgmr.msra.gmra.mxu0 %vm1581_vm3, %v12889_v15  ;;  %27303 = vmatprep.subr.mxu0 %v36084_v48 }
 0x9a6   : > { %27305 = vmatprep.mubr.msk.f32.mxu0 %vm28751_vm2, %v36084_v48 }
 0x9a7   : > { %v33049_v11 = vpop.xlane.xlu0 %11740 }
 0x9aa   : > { %16620 = vrot.lane.b32.xlu0 %v36636_v60, %s28752_s13  ;;  %v12074_v60 = vmul.f32 1.442695, %v11883_v63  ;;  %v33073_v23 = vpop.eup %28208 }
 0x9ab   : > { %v33057_v49 = vpop.xlane.xlu0 %12376 }
 0x9ac   : > { %28210 = vpow2.f32 %v12074_v60 }
 0x9ad   : > { %28212 = vrcp.f32 %v32807_v16 }
 0x9ae   : > { %28214 = vrcp.f32 %v32744_v4  ;;  %v36647_v4 = vld [vmem:[#allocation86_spill] sm:$0xff] }
 0x9af   : > { %v16317_v15 = vpop.permute.xlu0 %16316 }
 0x9b0   : > { %27289 = vmatpush3.msra.mxu1 %v16317_v15  ;;  %v36641_v15 = vld [vmem:[#allocation29_spill] sm:$0xff] }
 0x9b1   : > { %27291 = vmatmul.mubr.msk.f32.vlgmr.msra.gmra.mxu1 %vm1581_vm3, %v12888_v38  ;;  %27298 = vmatprep.subr.mxu1 %v36084_v48  ;;  %v12396_v38 = vsel %vm1581_vm3, %v33073_v23, 0.0  ;;  %v33078_v21 = vmul.f32 0.35355338, %v36641_v15 }
 0x9b2   : > { %27300 = vmatprep.mubr.msk.f32.mxu1 %vm28751_vm2, %v36084_v48 }
 0x9b3   : > { %36642 = vst [vmem:[#allocation152_spill] sm:$0xff] %v33078_v21  ;;  %v11757_v63 = vsel %vm1581_vm3, %v33078_v21, -inf  ;;  %v36650_v21 = vld [vmem:[#allocation207_spill] sm:$0xff] }
 0x9b9   : > { %v33084_v60 = vpop.eup %28210 }
 0x9ba   : > { %v33069_v39 = vpop.f32.mrf.mxu0 }
 0x9bb   : > { %36640 = vst [vmem:[#allocation49_spill] sm:$0xff] %v33069_v39 }
 0x9bc   : > { %v27267_v45 = vpop.f32.mrf.mxu0 }
 0x9bd   : > { %11761 = vmax.xlane.f32.xlu1 %v11760_v43  ;;  %v12393_v45 = vsel %vm1581_vm3, %v33084_v60, 0.0  ;;  %v36644_v43 = vld [vmem:[#allocation91_spill] sm:$0xff] }
 0x9c1   : > { %12397 = vadd.xlane.f32.xlu1 %v12396_v38 }
 0x9c6   : > { %v33080_v6 = vpop.f32.mrf.mxu1 }
 0x9c7   : > { %36643 = vst [vmem:[#allocation196_spill] sm:$0xff] %v33080_v6 }
 0x9c8   : > { %v27262_v9 = vpop.f32.mrf.mxu1 }
 0x9c9   : > { %11758 = vmax.xlane.f32.xlu0 %v11757_v63  ;;  %v28213_v9 = vpop.eup %28212  ;;  %v36646_v63 = vld [vmem:[#allocation6_spill] sm:$0xff] }
 0x9ca   : > { %v12891_v39 = vmul.f32 %v28213_v9, %v32684_v12  ;;  %v28215_v12 = vpop.eup %28214 }
 0x9cd   : > { %12394 = vadd.xlane.f32.xlu0 %v12393_v45  ;;  %v11886_v45 = vsub.f32 %v36646_v63, %v32108_v26  ;;  %v36648_v26 = vld [vmem:[#allocation230_spill] sm:$0xff] }
 0x9ce   : > { %v36649_v63 = vld [vmem:[#allocation126_spill] sm:$0xff] }
 0x9cf   : > { %v12080_v9 = vmul.f32 1.442695, %v11886_v45  ;;  %v11885_v40 = vsub.f32 %v36649_v63, %v36648_v26 }
 0x9d1   : > { %28216 = vpow2.f32 %v12080_v9 }
 0x9d2   : > { %16848 = vrot.lane.b32.xlu1 %v36644_v43, %s28752_s13 }
 0x9d4   : > { %v33091_v38 = vpop.xlane.xlu1 %11749 }
 0x9d5   : > { %36645 = vst [vmem:[#allocation158_spill] sm:$0xff] %v33091_v38  ;;  %v33117_v38 = vmul.f32 0.35355338, %v36650_v21 }
 0x9d7   : > { %36651 = vst [vmem:[#allocation54_spill] sm:$0xff] %v33117_v38 }
 0x9d8   : > { %v33094_v15 = vpop.xlane.xlu1 %12385 }
 0x9dc   : > { %v16545_v6 = vpop.permute.xlu1 %16544 }
 0x9dd   : > { %27304 = vmatpush3.msra.mxu0 %v16545_v6  ;;  %v12890_v6 = vmul.f32 %v28215_v12, %v32623_v10  ;;  %v11766_v12 = vsel %vm1581_vm3, %v33117_v38, -inf }
 0x9de   : > { %27306 = vmatmul.mubr.msk.f32.vlgmr.msra.gmra.mxu0 %vm1581_vm3, %v12891_v39  ;;  %27313 = vmatprep.subr.mxu0 %v36084_v48  ;;  %v33123_v9 = vpop.eup %28216 }
 0x9df   : > { %27315 = vmatprep.mubr.msk.f32.mxu0 %vm28751_vm2, %v36084_v48 }
 0x9e0   : > { %v33099_v16 = vpop.xlane.xlu0 %11746 }
 0x9e3   : > { %16772 = vrot.lane.b32.xlu0 %v36647_v4, %s28752_s13  ;;  %v12078_v4 = vmul.f32 1.442695, %v11885_v40 }
 0x9e4   : > { %v33107_v43 = vpop.xlane.xlu0 %12382 }
 0x9e5   : > { %28218 = vpow2.f32 %v12078_v4 }
 0x9e6   : > { %28220 = vrcp.f32 %v32857_v14 }
 0x9e7   : > { %28222 = vrcp.f32 %v32794_v52  ;;  %v36661_v52 = vld [vmem:[#allocation92_spill] sm:$0xff] }
 0x9e8   : > { %v16469_v39 = vpop.permute.xlu0 %16468 }
 0x9e9   : > { %27299 = vmatpush3.msra.mxu1 %v16469_v39  ;;  %v36653_v39 = vld [vmem:[#allocation214_spill] sm:$0xff] }
 0x9ea   : > { %27301 = vmatmul.mubr.msk.f32.vlgmr.msra.gmra.mxu1 %vm1581_vm3, %v12890_v6  ;;  %27308 = vmatprep.subr.mxu1 %v36084_v48  ;;  %v12402_v6 = vsel %vm1581_vm3, %v33123_v9, 0.0  ;;  %v33128_v26 = vmul.f32 0.35355338, %v36653_v39 }
 0x9eb   : > { %27310 = vmatprep.mubr.msk.f32.mxu1 %vm28751_vm2, %v36084_v48 }
 0x9ec   : > { %36654 = vst [vmem:[#allocation148_spill] sm:$0xff] %v33128_v26  ;;  %v11763_v63 = vsel %vm1581_vm3, %v33128_v26, -inf }
 0x9f2   : > { %v33134_v4 = vpop.eup %28218 }
 0x9f3   : > { %v33119_v45 = vpop.f32.mrf.mxu0 }
 0x9f4   : > { %36652 = vst [vmem:[#allocation209_spill] sm:$0xff] %v33119_v45 }
 0x9f5   : > { %v27277_v10 = vpop.f32.mrf.mxu0 }
 0x9f6   : > { %11767 = vmax.xlane.f32.xlu1 %v11766_v12  ;;  %v12399_v10 = vsel %vm1581_vm3, %v33134_v4, 0.0  ;;  %v36656_v12 = vld [vmem:[#allocation97_spill] sm:$0xff] }
 0x9fa   : > { %12403 = vadd.xlane.f32.xlu1 %v12402_v6 }
 0x9ff   : > { %v33130_v40 = vpop.f32.mrf.mxu1 }
 0xa00   : > { %36655 = vst [vmem:[#allocation46_spill] sm:$0xff] %v33130_v40 }
 0xa01   : > { %v27272_v21 = vpop.f32.mrf.mxu1 }
 0xa02   : > { %11764 = vmax.xlane.f32.xlu0 %v11763_v63  ;;  %v28221_v21 = vpop.eup %28220  ;;  %v36659_v63 = vld [vmem:[#allocation169_spill] sm:$0xff] }
 0xa03   : > { %v12893_v45 = vmul.f32 %v28221_v21, %v32734_v36  ;;  %v28223_v36 = vpop.eup %28222 }
 0xa06   : > { %12400 = vadd.xlane.f32.xlu0 %v12399_v10  ;;  %v36660_v10 = vld [vmem:[#allocation119_spill] sm:$0xff] }
 0xa0b   : > { %17000 = vrot.lane.b32.xlu1 %v36656_v12, %s28752_s13  ;;  %v11888_v12 = vsub.f32 %v36660_v10, %v36659_v63  ;;  %v36662_v63 = vld [vmem:[#allocation47_spill] sm:$0xff] }
 0xa0c   : > { %v36663_v10 = vld [vmem:[#allocation155_spill] sm:$0xff] }
 0xa0d   : > { %v33141_v6 = vpop.xlane.xlu1 %11755  ;;  %v12084_v21 = vmul.f32 1.442695, %v11888_v12  ;;  %v11887_v26 = vsub.f32 %v36663_v10, %v36662_v63 }
 0xa0e   : > { %36657 = vst [vmem:[#allocation212_spill] sm:$0xff] %v33141_v6  ;;  %v36664_v6 = vld [vmem:[#allocation211_spill] sm:$0xff] }
 0xa0f   : > { %28224 = vpow2.f32 %v12084_v21 }
 0xa11   : > { %v33144_v39 = vpop.xlane.xlu1 %12391 }
 0xa15   : > { %v16697_v40 = vpop.permute.xlu1 %16696 }
 0xa16   : > { %27314 = vmatpush3.msra.mxu0 %v16697_v40  ;;  %v12892_v40 = vmul.f32 %v28223_v36, %v32673_v57 }
 0xa17   : > { %27316 = vmatmul.mubr.msk.f32.vlgmr.msra.gmra.mxu0 %vm1581_vm3, %v12893_v45  ;;  %27323 = vmatprep.subr.mxu0 %v36084_v48 }
 0xa18   : > { %27325 = vmatprep.mubr.msk.f32.mxu0 %vm28751_vm2, %v36084_v48 }
 0xa19   : > { %v33149_v14 = vpop.xlane.xlu0 %11752 }
 0xa1a   : > { %36658 = vst [vmem:[#allocation154_spill] sm:$0xff] %v33149_v14  ;;  %v33167_v14 = vmul.f32 0.35355338, %v36664_v6 }
 0xa1c   : > { %16924 = vrot.lane.b32.xlu0 %v36661_v52, %s28752_s13  ;;  %v12082_v52 = vmul.f32 1.442695, %v11887_v26  ;;  %36665 = vst [vmem:[#allocation199_spill] sm:$0xff] %v33167_v14  ;;  %v11772_v36 = vsel %vm1581_vm3, %v33167_v14, -inf  ;;  %v33173_v21 = vpop.eup %28224  ;;  %v36674_v14 = vld [vmem:[#allocation213_spill] sm:$0xff] }
 0xa1d   : > { %v33157_v38 = vpop.xlane.xlu0 %12388 }
 0xa1e   : > { %28226 = vpow2.f32 %v12082_v52 }
 0xa1f   : > { %28228 = vrcp.f32 %v32907_v0 }
 0xa20   : > { %28230 = vrcp.f32 %v32844_v34  ;;  %v36672_v34 = vld [vmem:[#allocation98_spill] sm:$0xff] }
 0xa21   : > { %v16621_v45 = vpop.permute.xlu0 %16620 }
 0xa22   : > { %27309 = vmatpush3.msra.mxu1 %v16621_v45  ;;  %v36667_v45 = vld [vmem:[#allocation217_spill] sm:$0xff] }
 0xa23   : > { %27311 = vmatmul.mubr.msk.f32.vlgmr.msra.gmra.mxu1 %vm1581_vm3, %v12892_v40  ;;  %27318 = vmatprep.subr.mxu1 %v36084_v48  ;;  %v12408_v40 = vsel %vm1581_vm3, %v33173_v21, 0.0  ;;  %v33178_v63 = vmul.f32 0.35355338, %v36667_v45 }
 0xa24   : > { %27320 = vmatprep.mubr.msk.f32.mxu1 %vm28751_vm2, %v36084_v48 }
 0xa25   : > { %36668 = vst [vmem:[#allocation55_spill] sm:$0xff] %v33178_v63  ;;  %v11769_v10 = vsel %vm1581_vm3, %v33178_v63, -inf  ;;  %v33217_v63 = vmul.f32 0.35355338, %v36674_v14 }
 0xa27   : > { %36675 = vst [vmem:[#allocation68_spill] sm:$0xff] %v33217_v63 }
 0xa2b   : > { %v33184_v52 = vpop.eup %28226 }
 0xa2c   : > { %v33169_v12 = vpop.f32.mrf.mxu0 }
 0xa2d   : > { %36666 = vst [vmem:[#allocation159_spill] sm:$0xff] %v33169_v12 }
 0xa2e   : > { %v27287_v57 = vpop.f32.mrf.mxu0 }
 0xa2f   : > { %11773 = vmax.xlane.f32.xlu1 %v11772_v36  ;;  %v12405_v57 = vsel %vm1581_vm3, %v33184_v52, 0.0  ;;  %v36670_v36 = vld [vmem:[#allocation104_spill] sm:$0xff] }
 0xa33   : > { %12409 = vadd.xlane.f32.xlu1 %v12408_v40 }
 0xa38   : > { %v33180_v26 = vpop.f32.mrf.mxu1 }
 0xa39   : > { %36669 = vst [vmem:[#allocation151_spill] sm:$0xff] %v33180_v26 }
 0xa3a   : > { %v27282_v6 = vpop.f32.mrf.mxu1 }
 0xa3b   : > { %11770 = vmax.xlane.f32.xlu0 %v11769_v10  ;;  %v28229_v6 = vpop.eup %28228  ;;  %v36671_v10 = vld [vmem:[#allocation208_spill] sm:$0xff] }
 0xa3c   : > { %v12895_v12 = vmul.f32 %v28229_v6, %v32784_v46  ;;  %v28231_v46 = vpop.eup %28230 }
 0xa3f   : > { %12406 = vadd.xlane.f32.xlu0 %v12405_v57  ;;  %v11890_v57 = vsub.f32 %v36671_v10, %v32229_v50  ;;  %v36673_v50 = vld [vmem:[#allocation215_spill] sm:$0xff] }
 0xa40   : > { %v11889_v10 = vsub.f32 %v36673_v50, %v32238_v13 }
 0xa41   : > { %v12088_v6 = vmul.f32 1.442695, %v11890_v57 }
 0xa43   : > { %28232 = vpow2.f32 %v12088_v6 }
 0xa44   : > { %17152 = vrot.lane.b32.xlu1 %v36670_v36, %s28752_s13 }
 0xa46   : > { %v33191_v40 = vpop.xlane.xlu1 %11761 }
 0xa4a   : > { %v33194_v45 = vpop.xlane.xlu1 %12397 }
 0xa4e   : > { %v16849_v26 = vpop.permute.xlu1 %16848 }
 0xa4f   : > { %27324 = vmatpush3.msra.mxu0 %v16849_v26  ;;  %v12894_v26 = vmul.f32 %v28231_v46, %v32723_v42  ;;  %v11778_v46 = vsel %vm1581_vm3, %v33217_v63, -inf  ;;  %v36684_v63 = vld [vmem:[#allocation216_spill] sm:$0xff] }
 0xa50   : > { %27326 = vmatmul.mubr.msk.f32.vlgmr.msra.gmra.mxu0 %vm1581_vm3, %v12895_v12  ;;  %27333 = vmatprep.subr.mxu0 %v36084_v48  ;;  %v33223_v6 = vpop.eup %28232 }
 0xa51   : > { %27335 = vmatprep.mubr.msk.f32.mxu0 %vm28751_vm2, %v36084_v48 }
 0xa52   : > { %v33199_v0 = vpop.xlane.xlu0 %11758 }
 0xa55   : > { %17076 = vrot.lane.b32.xlu0 %v36672_v34, %s28752_s13  ;;  %v12086_v34 = vmul.f32 1.442695, %v11889_v10 }
 0xa56   : > { %v33207_v36 = vpop.xlane.xlu0 %12394 }
 0xa57   : > { %28234 = vpow2.f32 %v12086_v34 }
 0xa58   : > { %28236 = vrcp.f32 %v32957_v29 }
 0xa59   : > { %28238 = vrcp.f32 %v32894_v44  ;;  %v36682_v44 = vld [vmem:[#allocation105_spill] sm:$0xff] }
 0xa5a   : > { %v16773_v12 = vpop.permute.xlu0 %16772 }
 0xa5b   : > { %27319 = vmatpush3.msra.mxu1 %v16773_v12  ;;  %v36677_v12 = vld [vmem:[#allocation220_spill] sm:$0xff] }
 0xa5c   : > { %27321 = vmatmul.mubr.msk.f32.vlgmr.msra.gmra.mxu1 %vm1581_vm3, %v12894_v26  ;;  %27328 = vmatprep.subr.mxu1 %v36084_v48  ;;  %v12414_v26 = vsel %vm1581_vm3, %v33223_v6, 0.0  ;;  %v33228_v13 = vmul.f32 0.35355338, %v36677_v12 }
 0xa5d   : > { %27330 = vmatprep.mubr.msk.f32.mxu1 %vm28751_vm2, %v36084_v48 }
 0xa5e   : > { %36678 = vst [vmem:[#allocation150_spill] sm:$0xff] %v33228_v13  ;;  %v11775_v10 = vsel %vm1581_vm3, %v33228_v13, -inf  ;;  %v33267_v13 = vmul.f32 0.35355338, %v36684_v63 }
 0xa60   : > { %36685 = vst [vmem:[#allocation205_spill] sm:$0xff] %v33267_v13 }
 0xa64   : > { %v33234_v34 = vpop.eup %28234 }
 0xa65   : > { %v33219_v57 = vpop.f32.mrf.mxu0 }
 0xa66   : > { %36676 = vst [vmem:[#allocation219_spill] sm:$0xff] %v33219_v57 }
 0xa67   : > { %v27297_v42 = vpop.f32.mrf.mxu0 }
 0xa68   : > { %11779 = vmax.xlane.f32.xlu1 %v11778_v46  ;;  %v12411_v42 = vsel %vm1581_vm3, %v33234_v34, 0.0  ;;  %v36680_v46 = vld [vmem:[#allocation110_spill] sm:$0xff] }
 0xa6c   : > { %12415 = vadd.xlane.f32.xlu1 %v12414_v26 }
 0xa71   : > { %v33230_v50 = vpop.f32.mrf.mxu1 }
 0xa72   : > { %36679 = vst [vmem:[#allocation201_spill] sm:$0xff] %v33230_v50 }
 0xa73   : > { %v27292_v14 = vpop.f32.mrf.mxu1 }
 0xa74   : > { %11776 = vmax.xlane.f32.xlu0 %v11775_v10  ;;  %v28237_v14 = vpop.eup %28236  ;;  %v36681_v10 = vld [vmem:[#allocation229_spill] sm:$0xff] }
 0xa75   : > { %v12897_v57 = vmul.f32 %v28237_v14, %v32834_v61  ;;  %v28239_v61 = vpop.eup %28238 }
 0xa78   : > { %12412 = vadd.xlane.f32.xlu0 %v12411_v42  ;;  %v11892_v42 = vsub.f32 %v36681_v10, %v32278_v24  ;;  %v36683_v24 = vld [vmem:[#allocation231_spill] sm:$0xff] }
 0xa79   : > { %v11891_v10 = vsub.f32 %v36683_v24, %v32285_v27 }
 0xa7a   : > { %v12092_v14 = vmul.f32 1.442695, %v11892_v42 }
 0xa7c   : > { %28240 = vpow2.f32 %v12092_v14 }
 0xa7d   : > { %17304 = vrot.lane.b32.xlu1 %v36680_v46, %s28752_s13 }
 0xa7f   : > { %v33241_v26 = vpop.xlane.xlu1 %11767 }
 0xa83   : > { %v33244_v12 = vpop.xlane.xlu1 %12403 }
 0xa87   : > { %v17001_v50 = vpop.permute.xlu1 %17000 }
 0xa88   : > { %27334 = vmatpush3.msra.mxu0 %v17001_v50  ;;  %v12896_v50 = vmul.f32 %v28239_v61, %v32773_v35  ;;  %v11784_v61 = vsel %vm1581_vm3, %v33267_v13, -inf }
 0xa89   : > { %27336 = vmatmul.mubr.msk.f32.vlgmr.msra.gmra.mxu0 %vm1581_vm3, %v12897_v57  ;;  %27343 = vmatprep.subr.mxu0 %v36084_v48  ;;  %v33273_v14 = vpop.eup %28240 }
 0xa8a   : > { %27345 = vmatprep.mubr.msk.f32.mxu0 %vm28751_vm2, %v36084_v48 }
 0xa8b   : > { %v33249_v29 = vpop.xlane.xlu0 %11764 }
 0xa8e   : > { %17228 = vrot.lane.b32.xlu0 %v36682_v44, %s28752_s13  ;;  %v12090_v44 = vmul.f32 1.442695, %v11891_v10 }
 0xa8f   : > { %v33257_v46 = vpop.xlane.xlu0 %12400 }
 0xa90   : > { %28242 = vpow2.f32 %v12090_v44 }
 0xa91   : > { %28244 = vrcp.f32 %v33007_v59 }
 0xa92   : > { %28246 = vrcp.f32 %v32944_v5  ;;  %v36690_v5 = vld [vmem:[#allocation111_spill] sm:$0xff] }
 0xa93   : > { %v16925_v57 = vpop.permute.xlu0 %16924 }
 0xa94   : > { %27329 = vmatpush3.msra.mxu1 %v16925_v57  ;;  %v36687_v57 = vld [vmem:[#allocation222_spill] sm:$0xff] }
 0xa95   : > { %27331 = vmatmul.mubr.msk.f32.vlgmr.msra.gmra.mxu1 %vm1581_vm3, %v12896_v50  ;;  %27338 = vmatprep.subr.mxu1 %v36084_v48  ;;  %v12420_v50 = vsel %vm1581_vm3, %v33273_v14, 0.0  ;;  %v33278_v27 = vmul.f32 0.35355338, %v36687_v57 }
 0xa96   : > { %27340 = vmatprep.mubr.msk.f32.mxu1 %vm28751_vm2, %v36084_v48 }
 0xa97   : > { %v11781_v10 = vsel %vm1581_vm3, %v33278_v27, -inf }
 0xa9d   : > { %v33284_v44 = vpop.eup %28242 }
 0xa9e   : > { %v33269_v42 = vpop.f32.mrf.mxu0 }
 0xa9f   : > { %36686 = vst [vmem:[#allocation71_spill] sm:$0xff] %v33269_v42 }
 0xaa0   : > { %v27307_v35 = vpop.f32.mrf.mxu0 }
 0xaa1   : > { %11785 = vmax.xlane.f32.xlu1 %v11784_v61  ;;  %v12417_v35 = vsel %vm1581_vm3, %v33284_v44, 0.0  ;;  %v36689_v61 = vld [vmem:[#allocation118_spill] sm:$0xff] }
 0xaa5   : > { %12421 = vadd.xlane.f32.xlu1 %v12420_v50 }
 0xaaa   : > { %v33280_v24 = vpop.f32.mrf.mxu1 }
 0xaab   : > { %36688 = vst [vmem:[#allocation103_spill] sm:$0xff] %v33280_v24 }
 0xaac   : > { %v27302_v63 = vpop.f32.mrf.mxu1 }
 0xaad   : > { %11782 = vmax.xlane.f32.xlu0 %v11781_v10  ;;  %v28245_v63 = vpop.eup %28244  ;;  %v11894_v10 = vsub.f32 %v32209_v3, %v32331_v41  ;;  %v11893_v3 = vsub.f32 %v32218_v30, %v32343_v1 }
 0xaae   : > { %v12899_v42 = vmul.f32 %v28245_v63, %v32884_v53  ;;  %v28247_v53 = vpop.eup %28246  ;;  %v36691_v63 = vld [vmem:[#allocation218_spill] sm:$0xff] }
 0xaaf   : > { %v12094_v41 = vmul.f32 1.442695, %v11893_v3 }
 0xab1   : > { %12418 = vadd.xlane.f32.xlu0 %v12417_v35 }
 0xab6   : > { %17456 = vrot.lane.b32.xlu1 %v36689_v61, %s28752_s13  ;;  %v12096_v61 = vmul.f32 1.442695, %v11894_v10 }
 0xab8   : > { %v33291_v50 = vpop.xlane.xlu1 %11773  ;;  %28248 = vpow2.f32 %v12096_v61 }
 0xab9   : > { %28250 = vpow2.f32 %v12094_v41 }
 0xaba   : > { %28252 = vrcp.f32 %v33057_v49 }
 0xabb   : > { %28254 = vrcp.f32 %v32994_v2  ;;  %v36698_v2 = vld [vmem:[#allocation120_spill] sm:$0xff] }
 0xabc   : > { %v33294_v57 = vpop.xlane.xlu1 %12409 }
 0xac0   : > { %v17153_v24 = vpop.permute.xlu1 %17152 }
 0xac1   : > { %27344 = vmatpush3.msra.mxu0 %v17153_v24  ;;  %v12898_v24 = vmul.f32 %v28247_v53, %v32823_v28 }
 0xac2   : > { %27346 = vmatmul.mubr.msk.f32.vlgmr.msra.gmra.mxu0 %vm1581_vm3, %v12899_v42  ;;  %27353 = vmatprep.subr.mxu0 %v36084_v48 }
 0xac3   : > { %27355 = vmatprep.mubr.msk.f32.mxu0 %vm28751_vm2, %v36084_v48 }
 0xac4   : > { %v33299_v59 = vpop.xlane.xlu0 %11770 }
 0xac5   : > { %v33323_v61 = vpop.eup %28248 }
 0xac7   : > { %17380 = vrot.lane.b32.xlu0 %v36690_v5, %s28752_s13  ;;  %v33317_v5 = vmul.f32 0.35355338, %v36691_v63  ;;  %v33334_v63 = vpop.eup %28250 }
 0xac8   : > { %v33307_v35 = vpop.xlane.xlu0 %12406 }
 0xac9   : > { %36692 = vst [vmem:[#allocation64_spill] sm:$0xff] %v33317_v5  ;;  %v11790_v53 = vsel %vm1581_vm3, %v33317_v5, -inf }
 0xacc   : > { %v17077_v42 = vpop.permute.xlu0 %17076 }
 0xacd   : > { %27339 = vmatpush3.msra.mxu1 %v17077_v42  ;;  %v36694_v42 = vld [vmem:[#allocation23_spill] sm:$0xff] }
 0xace   : > { %27341 = vmatmul.mubr.msk.f32.vlgmr.msra.gmra.mxu1 %vm1581_vm3, %v12898_v24  ;;  %27348 = vmatprep.subr.mxu1 %v36084_v48  ;;  %v12426_v24 = vsel %vm1581_vm3, %v33323_v61, 0.0  ;;  %v33328_v30 = vmul.f32 0.35355338, %v36694_v42 }
 0xacf   : > { %27350 = vmatprep.mubr.msk.f32.mxu1 %vm28751_vm2, %v36084_v48 }
 0xad0   : > { %36695 = vst [vmem:[#allocation167_spill] sm:$0xff] %v33328_v30  ;;  %v11787_v41 = vsel %vm1581_vm3, %v33328_v30, -inf  ;;  %v36712_v30 = vld [vmem:[#allocation31_spill] sm:$0xff] }
 0xad1   : > { %v33417_v13 = vmul.f32 0.35355338, %v36712_v30 }
 0xad3   : > { %36713 = vst [vmem:[#allocation170_spill] sm:$0xff] %v33417_v13 }
 0xad7   : > { %v33319_v10 = vpop.f32.mrf.mxu0 }
 0xad8   : > { %36693 = vst [vmem:[#allocation153_spill] sm:$0xff] %v33319_v10 }
 0xad9   : > { %v27317_v28 = vpop.f32.mrf.mxu0 }
 0xada   : > { %11791 = vmax.xlane.f32.xlu1 %v11790_v53  ;;  %v12423_v28 = vsel %vm1581_vm3, %v33334_v63, 0.0  ;;  %v36697_v53 = vld [vmem:[#allocation127_spill] sm:$0xff] }
 0xade   : > { %12427 = vadd.xlane.f32.xlu1 %v12426_v24 }
 0xae3   : > { %v33330_v1 = vpop.f32.mrf.mxu1 }
 0xae4   : > { %36696 = vst [vmem:[#allocation168_spill] sm:$0xff] %v33330_v1 }
 0xae5   : > { %v27312_v3 = vpop.f32.mrf.mxu1 }
 0xae6   : > { %11788 = vmax.xlane.f32.xlu0 %v11787_v41  ;;  %v28253_v3 = vpop.eup %28252  ;;  %v11896_v41 = vsub.f32 %v32256_v47, %v32391_v56  ;;  %v36699_v47 = vld [vmem:[#allocation41_spill] sm:$0xff] }
 0xae7   : > { %v12901_v10 = vmul.f32 %v28253_v3, %v32934_v54  ;;  %v28255_v54 = vpop.eup %28254  ;;  %v11895_v56 = vsub.f32 %v36699_v47, %v32399_v25 }
 0xae9   : > { %v12098_v3 = vmul.f32 1.442695, %v11895_v56 }
 0xaea   : > { %12424 = vadd.xlane.f32.xlu0 %v12423_v28 }
 0xaef   : > { %17608 = vrot.lane.b32.xlu1 %v36697_v53, %s28752_s13  ;;  %v12100_v53 = vmul.f32 1.442695, %v11896_v41 }
 0xaf1   : > { %v33341_v24 = vpop.xlane.xlu1 %11779  ;;  %28256 = vpow2.f32 %v12100_v53 }
 0xaf2   : > { %28258 = vpow2.f32 %v12098_v3 }
 0xaf3   : > { %28260 = vrcp.f32 %v33107_v43 }
 0xaf4   : > { %28262 = vrcp.f32 %v33044_v37  ;;  %v36709_v37 = vld [vmem:[#allocation128_spill] sm:$0xff] }
 0xaf5   : > { %v33344_v42 = vpop.xlane.xlu1 %12415 }
 0xaf9   : > { %v17305_v1 = vpop.permute.xlu1 %17304 }
 0xafa   : > { %27354 = vmatpush3.msra.mxu0 %v17305_v1  ;;  %v12900_v1 = vmul.f32 %v28255_v54, %v32873_v7 }
 0xafb   : > { %27356 = vmatmul.mubr.msk.f32.vlgmr.msra.gmra.mxu0 %vm1581_vm3, %v12901_v10  ;;  %27363 = vmatprep.subr.mxu0 %v36084_v48 }
 0xafc   : > { %27365 = vmatprep.mubr.msk.f32.mxu0 %vm28751_vm2, %v36084_v48 }
 0xafd   : > { %v33349_v49 = vpop.xlane.xlu0 %11776 }
 0xafe   : > { %v33373_v53 = vpop.eup %28256 }
 0xb00   : > { %17532 = vrot.lane.b32.xlu0 %v36698_v2, %s28752_s13  ;;  %v36700_v2 = vld [vmem:[#allocation221_spill] sm:$0xff] }
 0xb01   : > { %v33357_v28 = vpop.xlane.xlu0 %12412  ;;  %v33367_v5 = vmul.f32 0.35355338, %v36700_v2  ;;  %v33384_v2 = vpop.eup %28258 }
 0xb03   : > { %36701 = vst [vmem:[#allocation79_spill] sm:$0xff] %v33367_v5  ;;  %v11796_v54 = vsel %vm1581_vm3, %v33367_v5, -inf }
 0xb05   : > { %v17229_v10 = vpop.permute.xlu0 %17228 }
 0xb06   : > { %27349 = vmatpush3.msra.mxu1 %v17229_v10  ;;  %v36703_v10 = vld [vmem:[#allocation223_spill] sm:$0xff] }
 0xb07   : > { %27351 = vmatmul.mubr.msk.f32.vlgmr.msra.gmra.mxu1 %vm1581_vm3, %v12900_v1  ;;  %27358 = vmatprep.subr.mxu1 %v36084_v48  ;;  %v12432_v1 = vsel %vm1581_vm3, %v33373_v53, 0.0  ;;  %v33378_v25 = vmul.f32 0.35355338, %v36703_v10 }
 0xb08   : > { %27360 = vmatprep.mubr.msk.f32.mxu1 %vm28751_vm2, %v36084_v48 }
 0xb09   : > { %36704 = vst [vmem:[#allocation115_spill] sm:$0xff] %v33378_v25  ;;  %v11793_v3 = vsel %vm1581_vm3, %v33378_v25, -inf }
 0xb10   : > { %v33369_v41 = vpop.f32.mrf.mxu0 }
 0xb11   : > { %36702 = vst [vmem:[#allocation226_spill] sm:$0xff] %v33369_v41 }
 0xb12   : > { %v27327_v7 = vpop.f32.mrf.mxu0 }
 0xb13   : > { %11797 = vmax.xlane.f32.xlu1 %v11796_v54  ;;  %v12429_v7 = vsel %vm1581_vm3, %v33384_v2, 0.0  ;;  %v36706_v54 = vld [vmem:[#allocation133_spill] sm:$0xff] }
 0xb17   : > { %12433 = vadd.xlane.f32.xlu1 %v12432_v1 }
 0xb1c   : > { %v33380_v47 = vpop.f32.mrf.mxu1 }
 0xb1d   : > { %36705 = vst [vmem:[#allocation72_spill] sm:$0xff] %v33380_v47 }
 0xb1e   : > { %v27322_v56 = vpop.f32.mrf.mxu1 }
 0xb1f   : > { %11794 = vmax.xlane.f32.xlu0 %v11793_v3  ;;  %v28261_v56 = vpop.eup %28260  ;;  %v36707_v3 = vld [vmem:[#allocation44_spill] sm:$0xff] }
 0xb20   : > { %v12903_v41 = vmul.f32 %v28261_v56, %v32984_v20  ;;  %v28263_v20 = vpop.eup %28262 }
 0xb23   : > { %12430 = vadd.xlane.f32.xlu0 %v12429_v7  ;;  %v36708_v7 = vld [vmem:[#allocation11_spill] sm:$0xff] }
 0xb28   : > { %17760 = vrot.lane.b32.xlu1 %v36706_v54, %s28752_s13  ;;  %v11898_v54 = vsub.f32 %v36708_v7, %v36707_v3  ;;  %v36710_v3 = vld [vmem:[#allocation161_spill] sm:$0xff]  ;;  %v36711_v7 = vld [vmem:[#allocation20_spill] sm:$0xff] }
 0xb29   : > { %v11897_v25 = vsub.f32 %v36711_v7, %v36710_v3 }
 0xb2a   : > { %v33391_v1 = vpop.xlane.xlu1 %11785  ;;  %v12104_v56 = vmul.f32 1.442695, %v11898_v54 }
 0xb2c   : > { %28264 = vpow2.f32 %v12104_v56 }
 0xb2e   : > { %v33394_v10 = vpop.xlane.xlu1 %12421 }
 0xb32   : > { %v17457_v47 = vpop.permute.xlu1 %17456 }
 0xb33   : > { %27364 = vmatpush3.msra.mxu0 %v17457_v47  ;;  %v12902_v47 = vmul.f32 %v28263_v20, %v32923_v8  ;;  %v11802_v20 = vsel %vm1581_vm3, %v33417_v13, -inf }
 0xb34   : > { %27366 = vmatmul.mubr.msk.f32.vlgmr.msra.gmra.mxu0 %vm1581_vm3, %v12903_v41  ;;  %27373 = vmatprep.subr.mxu0 %v36084_v48 }
 0xb35   : > { %27375 = vmatprep.mubr.msk.f32.mxu0 %vm28751_vm2, %v36084_v48 }
 0xb36   : > { %v33399_v43 = vpop.xlane.xlu0 %11782 }
 0xb39   : > { %17684 = vrot.lane.b32.xlu0 %v36709_v37, %s28752_s13  ;;  %v12102_v37 = vmul.f32 1.442695, %v11897_v25  ;;  %v33423_v56 = vpop.eup %28264 }
 0xb3a   : > { %v33407_v5 = vpop.xlane.xlu0 %12418 }
 0xb3b   : > { %28266 = vpow2.f32 %v12102_v37 }
 0xb3c   : > { %28268 = vrcp.f32 %v33157_v38 }
 0xb3d   : > { %28270 = vrcp.f32 %v33094_v15  ;;  %v36723_v15 = vld [vmem:[#allocation13_spill] sm:$0xff] }
 0xb3e   : > { %v17381_v41 = vpop.permute.xlu0 %17380 }
 0xb3f   : > { %27359 = vmatpush3.msra.mxu1 %v17381_v41  ;;  %v36715_v41 = vld [vmem:[#allocation225_spill] sm:$0xff] }
 0xb40   : > { %27361 = vmatmul.mubr.msk.f32.vlgmr.msra.gmra.mxu1 %vm1581_vm3, %v12902_v47  ;;  %27368 = vmatprep.subr.mxu1 %v36084_v48  ;;  %v12438_v47 = vsel %vm1581_vm3, %v33423_v56, 0.0  ;;  %v33428_v3 = vmul.f32 0.35355338, %v36715_v41 }
 0xb41   : > { %27370 = vmatprep.mubr.msk.f32.mxu1 %vm28751_vm2, %v36084_v48 }
 0xb42   : > { %36716 = vst [vmem:[#allocation204_spill] sm:$0xff] %v33428_v3  ;;  %v11799_v7 = vsel %vm1581_vm3, %v33428_v3, -inf }
 0xb48   : > { %v33434_v37 = vpop.eup %28266 }
 0xb49   : > { %v33419_v54 = vpop.f32.mrf.mxu0 }
 0xb4a   : > { %36714 = vst [vmem:[#allocation14_spill] sm:$0xff] %v33419_v54 }
 0xb4b   : > { %v27337_v8 = vpop.f32.mrf.mxu0 }
 0xb4c   : > { %11803 = vmax.xlane.f32.xlu1 %v11802_v20  ;;  %v12435_v8 = vsel %vm1581_vm3, %v33434_v37, 0.0  ;;  %v36718_v20 = vld [vmem:[#allocation9_spill] sm:$0xff] }
 0xb50   : > { %12439 = vadd.xlane.f32.xlu1 %v12438_v47 }
 0xb55   : > { %v33430_v25 = vpop.f32.mrf.mxu1 }
 0xb56   : > { %36717 = vst [vmem:[#allocation210_spill] sm:$0xff] %v33430_v25 }
 0xb57   : > { %v27332_v30 = vpop.f32.mrf.mxu1 }
 0xb58   : > { %11800 = vmax.xlane.f32.xlu0 %v11799_v7  ;;  %v28269_v30 = vpop.eup %28268  ;;  %v36721_v7 = vld [vmem:[#allocation51_spill] sm:$0xff] }
 0xb59   : > { %v12905_v54 = vmul.f32 %v28269_v30, %v33034_v51  ;;  %v28271_v51 = vpop.eup %28270 }
 0xb5c   : > { %12436 = vadd.xlane.f32.xlu0 %v12435_v8  ;;  %v36722_v8 = vld [vmem:[#allocation234_spill] sm:$0xff] }
 0xb61   : > { %17912 = vrot.lane.b32.xlu1 %v36718_v20, %s28752_s13  ;;  %v11900_v20 = vsub.f32 %v36722_v8, %v36721_v7  ;;  %v36724_v7 = vld [vmem:[#allocation156_spill] sm:$0xff]  ;;  %v36725_v8 = vld [vmem:[#allocation166_spill] sm:$0xff] }
 0xb62   : > { %v11899_v3 = vsub.f32 %v36725_v8, %v36724_v7 }
 0xb63   : > { %v33441_v47 = vpop.xlane.xlu1 %11791  ;;  %v12108_v30 = vmul.f32 1.442695, %v11900_v20 }
 0xb64   : > { %36719 = vst [vmem:[#allocation85_spill] sm:$0xff] %v33441_v47  ;;  %v36726_v47 = vld [vmem:[#allocation4_spill] sm:$0xff] }
 0xb65   : > { %28272 = vpow2.f32 %v12108_v30 }
 0xb67   : > { %v33444_v41 = vpop.xlane.xlu1 %12427 }
 0xb6b   : > { %v17609_v25 = vpop.permute.xlu1 %17608 }
 0xb6c   : > { %27374 = vmatpush3.msra.mxu0 %v17609_v25  ;;  %v12904_v25 = vmul.f32 %v28271_v51, %v32973_v22 }
 0xb6d   : > { %27376 = vmatmul.mubr.msk.f32.vlgmr.msra.gmra.mxu0 %vm1581_vm3, %v12905_v54  ;;  %27383 = vmatprep.subr.mxu0 %v36084_v48 }
 0xb6e   : > { %27385 = vmatprep.mubr.msk.f32.mxu0 %vm28751_vm2, %v36084_v48 }
 0xb6f   : > { %v33449_v38 = vpop.xlane.xlu0 %11788 }
 0xb70   : > { %36720 = vst [vmem:[#allocation227_spill] sm:$0xff] %v33449_v38  ;;  %v33467_v38 = vmul.f32 0.35355338, %v36726_v47 }
 0xb72   : > { %17836 = vrot.lane.b32.xlu0 %v36723_v15, %s28752_s13  ;;  %v12106_v15 = vmul.f32 1.442695, %v11899_v3  ;;  %36727 = vst [vmem:[#allocation117_spill] sm:$0xff] %v33467_v38  ;;  %v11808_v51 = vsel %vm1581_vm3, %v33467_v38, -inf  ;;  %v33473_v30 = vpop.eup %28272 }
 0xb73   : > { %v33457_v13 = vpop.xlane.xlu0 %12424  ;;  %36729 = vst [vmem:[#allocation122_spill] sm:$0xff] %v33473_v30 }
 0xb74   : > { %28274 = vpow2.f32 %v12106_v15 }
 0xb75   : > { %28276 = vrcp.f32 %v33207_v36 }
 0xb76   : > { %28278 = vrcp.f32 %v33144_v39  ;;  %v36738_v39 = vld [vmem:[#allocation19_spill] sm:$0xff] }
 0xb77   : > { %v17533_v54 = vpop.permute.xlu0 %17532 }
 0xb78   : > { %27369 = vmatpush3.msra.mxu1 %v17533_v54  ;;  %v36730_v54 = vld [vmem:[#allocation39_spill] sm:$0xff] }
 0xb79   : > { %27371 = vmatmul.mubr.msk.f32.vlgmr.msra.gmra.mxu1 %vm1581_vm3, %v12904_v25  ;;  %27378 = vmatprep.subr.mxu1 %v36084_v48  ;;  %v12444_v25 = vsel %vm1581_vm3, %v33473_v30, 0.0  ;;  %v33478_v7 = vmul.f32 0.35355338, %v36730_v54 }
 0xb7a   : > { %27380 = vmatprep.mubr.msk.f32.mxu1 %vm28751_vm2, %v36084_v48 }
 0xb7b   : > { %36731 = vst [vmem:[#allocation206_spill] sm:$0xff] %v33478_v7  ;;  %v11805_v8 = vsel %vm1581_vm3, %v33478_v7, -inf }
 0xb81   : > { %v33484_v15 = vpop.eup %28274 }
 0xb82   : > { %v33469_v20 = vpop.f32.mrf.mxu0 }
 0xb83   : > { %36728 = vst [vmem:[#allocation80_spill] sm:$0xff] %v33469_v20 }
 0xb84   : > { %v27347_v22 = vpop.f32.mrf.mxu0 }
 0xb85   : > { %11809 = vmax.xlane.f32.xlu1 %v11808_v51  ;;  %v12441_v22 = vsel %vm1581_vm3, %v33484_v15, 0.0  ;;  %v36733_v51 = vld [vmem:[#allocation18_spill] sm:$0xff] }
 0xb89   : > { %12445 = vadd.xlane.f32.xlu1 %v12444_v25 }
 0xb8e   : > { %v33480_v3 = vpop.f32.mrf.mxu1 }
 0xb8f   : > { %36732 = vst [vmem:[#allocation29_spill] sm:$0xff] %v33480_v3 }
 0xb90   : > { %v27342_v47 = vpop.f32.mrf.mxu1 }
 0xb91   : > { %11806 = vmax.xlane.f32.xlu0 %v11805_v8  ;;  %v28277_v47 = vpop.eup %28276  ;;  %v36736_v8 = vld [vmem:[#allocation193_spill] sm:$0xff] }
 0xb92   : > { %v12907_v20 = vmul.f32 %v28277_v47, %v33084_v60  ;;  %v28279_v60 = vpop.eup %28278 }
 0xb95   : > { %12442 = vadd.xlane.f32.xlu0 %v12441_v22  ;;  %v36737_v22 = vld [vmem:[#allocation42_spill] sm:$0xff] }
 0xb9a   : > { %18064 = vrot.lane.b32.xlu1 %v36733_v51, %s28752_s13  ;;  %v11902_v51 = vsub.f32 %v36737_v22, %v36736_v8  ;;  %v36739_v8 = vld [vmem:[#allocation174_spill] sm:$0xff]  ;;  %v36740_v22 = vld [vmem:[#allocation180_spill] sm:$0xff] }
 0xb9b   : > { %v11901_v7 = vsub.f32 %v36740_v22, %v36739_v8 }
 0xb9c   : > { %v33491_v25 = vpop.xlane.xlu1 %11797  ;;  %v12112_v47 = vmul.f32 1.442695, %v11902_v51 }
 0xb9d   : > { %36734 = vst [vmem:[#allocation91_spill] sm:$0xff] %v33491_v25  ;;  %v36741_v25 = vld [vmem:[#allocation224_spill] sm:$0xff] }
 0xb9e   : > { %28280 = vpow2.f32 %v12112_v47 }
 0xba0   : > { %v33494_v54 = vpop.xlane.xlu1 %12433 }
 0xba4   : > { %v17761_v3 = vpop.permute.xlu1 %17760 }
 0xba5   : > { %27384 = vmatpush3.msra.mxu0 %v17761_v3  ;;  %v12906_v3 = vmul.f32 %v28279_v60, %v33023_v19 }
 0xba6   : > { %27386 = vmatmul.mubr.msk.f32.vlgmr.msra.gmra.mxu0 %vm1581_vm3, %v12907_v20  ;;  %27393 = vmatprep.subr.mxu0 %v36084_v48 }
 0xba7   : > { %27395 = vmatprep.mubr.msk.f32.mxu0 %vm28751_vm2, %v36084_v48 }
 0xba8   : > { %v33499_v36 = vpop.xlane.xlu0 %11794 }
 0xba9   : > { %36735 = vst [vmem:[#allocation6_spill] sm:$0xff] %v33499_v36  ;;  %v33517_v36 = vmul.f32 0.35355338, %v36741_v25 }
 0xbab   : > { %17988 = vrot.lane.b32.xlu0 %v36738_v39, %s28752_s13  ;;  %v12110_v39 = vmul.f32 1.442695, %v11901_v7  ;;  %36742 = vst [vmem:[#allocation86_spill] sm:$0xff] %v33517_v36  ;;  %v11814_v60 = vsel %vm1581_vm3, %v33517_v36, -inf  ;;  %v33523_v47 = vpop.eup %28280 }
 0xbac   : > { %v33507_v38 = vpop.xlane.xlu0 %12430  ;;  %36744 = vst [vmem:[#allocation126_spill] sm:$0xff] %v33523_v47 }
 0xbad   : > { %28282 = vpow2.f32 %v12110_v39 }
 0xbae   : > { %28284 = vrcp.f32 %v33257_v46 }
 0xbaf   : > { %28286 = vrcp.f32 %v33194_v45  ;;  %v36755_v45 = vld [vmem:[#allocation56_spill] sm:$0xff] }
 0xbb0   : > { %v17685_v20 = vpop.permute.xlu0 %17684 }
 0xbb1   : > { %27379 = vmatpush3.msra.mxu1 %v17685_v20  ;;  %v36745_v20 = vld [vmem:[#allocation5_spill] sm:$0xff] }
 0xbb2   : > { %27381 = vmatmul.mubr.msk.f32.vlgmr.msra.gmra.mxu1 %vm1581_vm3, %v12906_v3  ;;  %27388 = vmatprep.subr.mxu1 %v36084_v48  ;;  %v12450_v3 = vsel %vm1581_vm3, %v33523_v47, 0.0  ;;  %v33528_v8 = vmul.f32 0.35355338, %v36745_v20  ;;  %v36751_v20 = vld [vmem:[#allocation38_spill] sm:$0xff] }
 0xbb3   : > { %27390 = vmatprep.mubr.msk.f32.mxu1 %vm28751_vm2, %v36084_v48 }
 0xbb4   : > { %36746 = vst [vmem:[#allocation207_spill] sm:$0xff] %v33528_v8  ;;  %v11811_v22 = vsel %vm1581_vm3, %v33528_v8, -inf  ;;  %v36761_v8 = vld [vmem:[#allocation66_spill] sm:$0xff] }
 0xbba   : > { %v33534_v39 = vpop.eup %28282 }
 0xbbb   : > { %v33519_v51 = vpop.f32.mrf.mxu0  ;;  %36748 = vst [vmem:[#allocation97_spill] sm:$0xff] %v33534_v39 }
 0xbbc   : > { %36743 = vst [vmem:[#allocation230_spill] sm:$0xff] %v33519_v51  ;;  %v28285_v51 = vpop.eup %28284 }
 0xbbd   : > { %v27357_v19 = vpop.f32.mrf.mxu0 }
 0xbbe   : > { %11815 = vmax.xlane.f32.xlu1 %v11814_v60  ;;  %v12447_v19 = vsel %vm1581_vm3, %v33534_v39, 0.0  ;;  %v36749_v60 = vld [vmem:[#allocation35_spill] sm:$0xff] }
 0xbc2   : > { %12451 = vadd.xlane.f32.xlu1 %v12450_v3 }
 0xbc7   : > { %v33530_v7 = vpop.f32.mrf.mxu1 }
 0xbc8   : > { %36747 = vst [vmem:[#allocation214_spill] sm:$0xff] %v33530_v7  ;;  %v12909_v7 = vmul.f32 %v28285_v51, %v33134_v4  ;;  %v28287_v51 = vpop.eup %28286 }
 0xbc9   : > { %v27352_v25 = vpop.f32.mrf.mxu1 }
 0xbca   : > { %11812 = vmax.xlane.f32.xlu0 %v11811_v22  ;;  %v36752_v22 = vld [vmem:[#allocation43_spill] sm:$0xff] }
 0xbce   : > { %12448 = vadd.xlane.f32.xlu0 %v12447_v19  ;;  %v36753_v19 = vld [vmem:[#allocation48_spill] sm:$0xff] }
 0xbd3   : > { %18216 = vrot.lane.b32.xlu1 %v36749_v60, %s28752_s13 }
 0xbd5   : > { %v33541_v3 = vpop.xlane.xlu1 %11803 }
 0xbd6   : > { %36750 = vst [vmem:[#allocation169_spill] sm:$0xff] %v33541_v3 }
 0xbd7   : > { %18292 = vrot.lane.b32.xlu1 %v36751_v20, %s28752_s13  ;;  %v36756_v20 = vld [vmem:[#allocation27_spill] sm:$0xff] }
 0xbd9   : > { %v33546_v25 = vpop.xlane.xlu1 %12439 }
 0xbdb   : > { %18368 = vrot.lane.b32.xlu1 %v36752_v22, %s28752_s13  ;;  %v36757_v22 = vld [vmem:[#allocation58_spill] sm:$0xff] }
 0xbdd   : > { %v17913_v46 = vpop.permute.xlu1 %17912 }
 0xbde   : > { %27394 = vmatpush3.msra.mxu0 %v17913_v46 }
 0xbdf   : > { %18444 = vrot.lane.b32.xlu1 %v36753_v19, %s28752_s13  ;;  %27396 = vmatmul.mubr.msk.f32.vlgmr.msra.gmra.mxu0 %vm1581_vm3, %v12909_v7  ;;  %v12908_v7 = vmul.f32 %v28287_v51, %v33073_v23  ;;  %v36758_v19 = vld [vmem:[#allocation63_spill] sm:$0xff]  ;;  %v36763_v23 = vld [vmem:[#allocation188_spill] sm:$0xff] }
 0xbe0   : > { %27403 = vmatprep.subr.mxu0 %v36084_v48  ;;  %27405 = vmatprep.mubr.msk.f32.mxu0 %vm28751_vm2, %v36084_v48 }
 0xbe1   : > { %v33554_v60 = vpop.xlane.xlu0 %11800 }
 0xbe2   : > { %36754 = vst [vmem:[#allocation119_spill] sm:$0xff] %v33554_v60 }
 0xbe3   : > { %18520 = vrot.lane.b32.xlu1 %v36755_v45, %s28752_s13  ;;  %v36759_v45 = vld [vmem:[#allocation135_spill] sm:$0xff] }
 0xbe4   : > { %18140 = vrot.lane.b32.xlu0 %v36756_v20, %s28752_s13  ;;  %v36760_v20 = vld [vmem:[#allocation163_spill] sm:$0xff] }
 0xbe5   : > { %v33563_v4 = vpop.xlane.xlu0 %12436  ;;  %v11903_v36 = vsub.f32 %v36760_v20, %v36759_v45  ;;  %v36767_v45 = vld [vmem:[#allocation74_spill] sm:$0xff]  ;;  %v36769_v20 = vld [vmem:[#allocation183_spill] sm:$0xff] }
 0xbe7   : > { %18596 = vrot.lane.b32.xlu1 %v36757_v22, %s28752_s13  ;;  %v36762_v22 = vld [vmem:[#allocation186_spill] sm:$0xff] }
 0xbe8   : > { %v11904_v51 = vsub.f32 %v36763_v23, %v36762_v22  ;;  %v36771_v23 = vld [vmem:[#allocation228_spill] sm:$0xff] }
 0xbe9   : > { %v17837_v46 = vpop.permute.xlu0 %17836 }
 0xbea   : > { %27389 = vmatpush3.msra.mxu1 %v17837_v46  ;;  %v12114_v46 = vmul.f32 1.442695, %v11903_v36  ;;  %v12116_v60 = vmul.f32 1.442695, %v11904_v51  ;;  %v36770_v36 = vld [vmem:[#allocation81_spill] sm:$0xff] }
 0xbeb   : > { %27391 = vmatmul.mubr.msk.f32.vlgmr.msra.gmra.mxu1 %vm1581_vm3, %v12908_v7  ;;  %27398 = vmatprep.subr.mxu1 %v36084_v48  ;;  %v36764_v7 = vld [vmem:[#allocation73_spill] sm:$0xff] }
 0xbec   : > { %18672 = vrot.lane.b32.xlu1 %v36758_v19, %s28752_s13  ;;  %27400 = vmatprep.mubr.msk.f32.mxu1 %vm28751_vm2, %v36084_v48  ;;  %28288 = vpow2.f32 %v12114_v46  ;;  %v36766_v19 = vld [vmem:[#allocation53_spill] sm:$0xff]  ;;  %v36772_v46 = vld [vmem:[#allocation59_spill] sm:$0xff] }
 0xbed   : > { %v11905_v47 = vsub.f32 %v36766_v19, %v32649_v58  ;;  %28290 = vpow2.f32 %v12116_v60  ;;  %v11907_v58 = vsub.f32 %v36772_v46, %v32699_v17  ;;  %v36775_v60 = vld [vmem:[#allocation70_spill] sm:$0xff] }
 0xbef   : > { %v12118_v22 = vmul.f32 1.442695, %v11905_v47 }
 0xbf0   : > { %18748 = vrot.lane.b32.xlu1 %v36761_v8, %s28752_s13  ;;  %v36768_v8 = vld [vmem:[#allocation176_spill] sm:$0xff] }
 0xbf1   : > { %v11906_v30 = vsub.f32 %v36769_v20, %v36768_v8  ;;  %28292 = vpow2.f32 %v12118_v22  ;;  %v12122_v8 = vmul.f32 1.442695, %v11907_v58  ;;  %v36778_v22 = vld [vmem:[#allocation195_spill] sm:$0xff]  ;;  %v36779_v58 = vld [vmem:[#allocation88_spill] sm:$0xff] }
 0xbf2   : > { %v11909_v46 = vsub.f32 %v36778_v22, %v32749_v18 }
 0xbf3   : > { %v12120_v51 = vmul.f32 1.442695, %v11906_v30  ;;  %v36777_v30 = vld [vmem:[#allocation87_spill] sm:$0xff] }
 0xbf4   : > { %18824 = vrot.lane.b32.xlu1 %v36764_v7, %s28752_s13  ;;  %v33582_v3 = vpop.f32.mrf.mxu0  ;;  %v33593_v7 = vmul.f32 0.35355338, %v36771_v23 }
 0xbf5   : > { %36765 = vst [vmem:[#allocation92_spill] sm:$0xff] %v33582_v3  ;;  %28294 = vpow2.f32 %v12120_v51 }
 0xbf6   : > { %v27367_v39 = vpop.f32.mrf.mxu0  ;;  %28296 = vpow2.f32 %v12122_v8 }
 0xbf7   : > { %v36773_v39 = vld [vmem:[#allocation82_spill] sm:$0xff]  ;;  %28298 = vrcp.f32 %v33307_v35 }
 0xbf8   : > { %18900 = vrot.lane.b32.xlu1 %v36767_v45, %s28752_s13  ;;  %v36776_v45 = vld [vmem:[#allocation164_spill] sm:$0xff]  ;;  %v36783_v35 = vld [vmem:[#allocation190_spill] sm:$0xff] }
 0xbf9   : > { %v11908_v47 = vsub.f32 %v36776_v45, %v36775_v60  ;;  %v33605_v23 = vpop.eup %28288  ;;  %v36780_v60 = vld [vmem:[#allocation187_spill] sm:$0xff]  ;;  %v36781_v45 = vld [vmem:[#allocation62_spill] sm:$0xff]  ;;  %v11911_v22 = vsub.f32 %v36783_v35, %v32799_v31 }
 0xbfa   : > { %v12453_v51 = vsel %vm1581_vm3, %v33605_v23, 0.0  ;;  %v36787_v35 = vld [vmem:[#allocation99_spill] sm:$0xff] }
 0xbfb   : > { %v12124_v17 = vmul.f32 1.442695, %v11908_v47  ;;  %v12126_v47 = vmul.f32 1.442695, %v11909_v46  ;;  %v36784_v46 = vld [vmem:[#allocation94_spill] sm:$0xff] }
 0xbfc   : > { %18976 = vrot.lane.b32.xlu1 %v36770_v36, %s28752_s13  ;;  %v11817_v36 = vsel %vm1581_vm3, %v33593_v7, -inf }
 0xbfd   : > { %28300 = vpow2.f32 %v12124_v17 }
 0xbfe   : > { %28302 = vpow2.f32 %v12126_v47 }
 0xc00   : > { %19052 = vrot.lane.b32.xlu1 %v36773_v39, %s28752_s13  ;;  %v33599_v19 = vpop.f32.mrf.mxu1  ;;  %v33613_v39 = vpop.eup %28290 }
 0xc01   : > { %36774 = vst [vmem:[#allocation47_spill] sm:$0xff] %v33599_v19  ;;  %v12456_v8 = vsel %vm1581_vm3, %v33613_v39, 0.0  ;;  %v33622_v18 = vpop.eup %28292  ;;  %v36796_v19 = vld [vmem:[#allocation107_spill] sm:$0xff] }
 0xc02   : > { %v27362_v20 = vpop.f32.mrf.mxu1 }
 0xc03   : > { %11818 = vmax.xlane.f32.xlu0 %v11817_v36  ;;  %v11910_v20 = vsub.f32 %v36781_v45, %v36780_v60  ;;  %v36782_v36 = vld [vmem:[#allocation93_spill] sm:$0xff]  ;;  %v36785_v60 = vld [vmem:[#allocation184_spill] sm:$0xff] }
 0xc04   : > { %19128 = vrot.lane.b32.xlu1 %v36777_v30, %s28752_s13  ;;  %v11912_v45 = vsub.f32 %v36785_v60, %v32791_v55 }
 0xc05   : > { %v12128_v30 = vmul.f32 1.442695, %v11910_v20  ;;  %v12130_v20 = vmul.f32 1.442695, %v11911_v22 }
 0xc07   : > { %12454 = vadd.xlane.f32.xlu0 %v12453_v51  ;;  %v12459_v51 = vsel %vm1581_vm3, %v33622_v18, 0.0  ;;  %28304 = vpow2.f32 %v12128_v30  ;;  %v36788_v30 = vld [vmem:[#allocation197_spill] sm:$0xff] }
 0xc08   : > { %19204 = vrot.lane.b32.xlu1 %v36779_v58, %s28752_s13  ;;  %v33630_v58 = vpop.eup %28294  ;;  %28306 = vrcp.f32 %v33244_v12 }
 0xc09   : > { %v12462_v31 = vsel %vm1581_vm3, %v33630_v58, 0.0  ;;  %v33641_v47 = vpop.eup %28296  ;;  %28308 = vpow2.f32 %v12130_v20  ;;  %v36793_v20 = vld [vmem:[#allocation177_spill] sm:$0xff] }
 0xc0a   : > { %36786 = vst [vmem:[#allocation155_spill] sm:$0xff] %v33641_v47  ;;  %v12465_v12 = vsel %vm1581_vm3, %v33641_v47, 0.0 }
 0xc0b   : > { %12457 = vadd.xlane.f32.xlu0 %v12456_v8 }
 0xc0c   : > { %19280 = vrot.lane.b32.xlu1 %v36782_v36, %s28752_s13  ;;  %v28299_v36 = vpop.eup %28298 }
 0xc0d   : > { %v33651_v22 = vpop.eup %28300  ;;  %v12911_v60 = vmul.f32 %v28299_v36, %v33184_v52 }
 0xc0e   : > { %v33632_v17 = vpop.xlane.xlu1 %11809  ;;  %36790 = vst [vmem:[#allocation211_spill] sm:$0xff] %v33651_v22  ;;  %v12468_v52 = vsel %vm1581_vm3, %v33651_v22, 0.0  ;;  %v33666_v36 = vpop.eup %28302 }
 0xc0f   : > { %12460 = vadd.xlane.f32.xlu0 %v12459_v51  ;;  %v12132_v51 = vmul.f32 1.442695, %v11912_v45  ;;  %v36792_v45 = vld [vmem:[#allocation7_spill] sm:$0xff] }
 0xc10   : > { %19356 = vrot.lane.b32.xlu1 %v36784_v46, %s28752_s13  ;;  %v36789_v46 = vld [vmem:[#allocation141_spill] sm:$0xff] }
 0xc11   : > { %v11913_v55 = vsub.f32 %v36789_v46, %v36788_v30  ;;  %28310 = vpow2.f32 %v12132_v51 }
 0xc12   : > { %v33643_v8 = vpop.xlane.xlu1 %12445 }
 0xc13   : > { %12463 = vadd.xlane.f32.xlu0 %v12462_v31  ;;  %v36791_v31 = vld [vmem:[#allocation100_spill] sm:$0xff]  ;;  %v12134_v30 = vmul.f32 1.442695, %v11913_v55  ;;  %v36795_v55 = vld [vmem:[#allocation138_spill] sm:$0xff] }
 0xc14   : > { %19432 = vrot.lane.b32.xlu1 %v36787_v35, %s28752_s13  ;;  %v11914_v35 = vsub.f32 %v36793_v20, %v36792_v45  ;;  %v12471_v45 = vsel %vm1581_vm3, %v33666_v36, 0.0 }
 0xc15   : > { %28312 = vpow2.f32 %v12134_v30 }
 0xc16   : > { %v18065_v3 = vpop.permute.xlu1 %18064  ;;  %v12136_v51 = vmul.f32 1.442695, %v11914_v35  ;;  %v36798_v35 = vld [vmem:[#allocation75_spill] sm:$0xff] }
 0xc17   : > { %12466 = vadd.xlane.f32.xlu0 %v12465_v12  ;;  %27404 = vmatpush3.msra.mxu0 %v18065_v3  ;;  %v36794_v3 = vld [vmem:[#allocation106_spill] sm:$0xff]  ;;  %v33670_v12 = vpop.eup %28304 }
 0xc18   : > { %19508 = vrot.lane.b32.xlu1 %v36791_v31, %s28752_s13  ;;  %27406 = vmatmul.mubr.msk.f32.vlgmr.msra.gmra.mxu0 %vm1581_vm3, %v12911_v60  ;;  %v11915_v60 = vsub.f32 %v36795_v55, %v32899_v32  ;;  %v28307_v20 = vpop.eup %28306  ;;  %28314 = vpow2.f32 %v12136_v51  ;;  %v36800_v51 = vld [vmem:[#allocation182_spill] sm:$0xff] }
 0xc19   : > { %27413 = vmatprep.subr.mxu0 %v36084_v48  ;;  %27415 = vmatprep.mubr.msk.f32.mxu0 %vm28751_vm2, %v36084_v48  ;;  %v12910_v32 = vmul.f32 %v28307_v20, %v33123_v9  ;;  %v33685_v47 = vpop.eup %28308  ;;  %v11917_v9 = vsub.f32 %v36800_v51, %v32949_v33  ;;  %v36804_v33 = vld [vmem:[#allocation121_spill] sm:$0xff] }
 0xc1a   : > { %v33660_v46 = vpop.xlane.xlu0 %11806  ;;  %v12138_v22 = vmul.f32 1.442695, %v11915_v60  ;;  %v12477_v60 = vsel %vm1581_vm3, %v33685_v47, 0.0  ;;  %v36806_v51 = vld [vmem:[#allocation145_spill] sm:$0xff] }
 0xc1b   : > { %12469 = vadd.xlane.f32.xlu0 %v12468_v52  ;;  %v12474_v52 = vsel %vm1581_vm3, %v33670_v12, 0.0 }
 0xc1c   : > { %19584 = vrot.lane.b32.xlu1 %v36794_v3, %s28752_s13  ;;  %v36797_v3 = vld [vmem:[#allocation2_spill] sm:$0xff]  ;;  %28316 = vpow2.f32 %v12138_v22 }
 0xc1d   : > { %v11916_v30 = vsub.f32 %v36798_v35, %v36797_v3  ;;  %v36802_v3 = vld [vmem:[#allocation202_spill] sm:$0xff] }
 0xc1e   : > { %v33674_v31 = vpop.xlane.xlu0 %12442  ;;  %v33697_v20 = vpop.eup %28310  ;;  %v11918_v35 = vsub.f32 %v36802_v3, %v32941_v62 }
 0xc1f   : > { %12472 = vadd.xlane.f32.xlu0 %v12471_v45  ;;  %v36799_v45 = vld [vmem:[#allocation112_spill] sm:$0xff]  ;;  %v12480_v22 = vsel %vm1581_vm3, %v33697_v20, 0.0 }
 0xc20   : > { %19660 = vrot.lane.b32.xlu1 %v36796_v19, %s28752_s13  ;;  %v12140_v19 = vmul.f32 1.442695, %v11916_v30 }
 0xc22   : > { %v17989_v55 = vpop.permute.xlu0 %17988  ;;  %28318 = vpow2.f32 %v12140_v19  ;;  %v33705_v30 = vpop.eup %28312 }
 0xc23   : > { %12475 = vadd.xlane.f32.xlu0 %v12474_v52  ;;  %27399 = vmatpush3.msra.mxu1 %v17989_v55  ;;  %v36801_v52 = vld [vmem:[#allocation113_spill] sm:$0xff]  ;;  %36803 = vst [vmem:[#allocation217_spill] sm:$0xff] %v33705_v30  ;;  %v12144_v55 = vmul.f32 1.442695, %v11918_v35  ;;  %v12483_v62 = vsel %vm1581_vm3, %v33705_v30, 0.0 }
 0xc24   : > { %19736 = vrot.lane.b32.xlu1 %v36799_v45, %s28752_s13  ;;  %27401 = vmatmul.mubr.msk.f32.vlgmr.msra.gmra.mxu1 %vm1581_vm3, %v12910_v32  ;;  %v12142_v32 = vmul.f32 1.442695, %v11917_v9  ;;  %v36805_v45 = vld [vmem:[#allocation144_spill] sm:$0xff]  ;;  %v36808_v9 = vld [vmem:[#allocation123_spill] sm:$0xff] }
 0xc25   : > { %27408 = vmatprep.subr.mxu1 %v36084_v48  ;;  %27410 = vmatprep.mubr.msk.f32.mxu1 %vm28751_vm2, %v36084_v48  ;;  %v33715_v19 = vpop.eup %28314 }
 0xc26   : > { %28320 = vpow2.f32 %v12142_v32 }
 0xc27   : > { %12478 = vadd.xlane.f32.xlu0 %v12477_v60  ;;  %v11919_v60 = vsub.f32 %v36806_v51, %v36805_v45  ;;  %28322 = vpow2.f32 %v12144_v55  ;;  %v12486_v45 = vsel %vm1581_vm3, %v33715_v19, 0.0 }
 0xc28   : > { %19812 = vrot.lane.b32.xlu1 %v36801_v52, %s28752_s13 }
 0xc29   : > { %v12146_v32 = vmul.f32 1.442695, %v11919_v60  ;;  %v33723_v51 = vpop.eup %28316  ;;  %v36814_v60 = vld [vmem:[#allocation130_spill] sm:$0xff] }
 0xc2a   : > { %36811 = vst [vmem:[#allocation208_spill] sm:$0xff] %v33723_v51  ;;  %v12489_v55 = vsel %vm1581_vm3, %v33723_v51, 0.0  ;;  %v36819_v51 = vld [vmem:[#allocation134_spill] sm:$0xff] }
 0xc2b   : > { %12481 = vadd.xlane.f32.xlu0 %v12480_v22  ;;  %v36809_v22 = vld [vmem:[#allocation203_spill] sm:$0xff]  ;;  %28324 = vpow2.f32 %v12146_v32 }
 0xc2c   : > { %19888 = vrot.lane.b32.xlu1 %v36804_v33, %s28752_s13  ;;  %v36810_v33 = vld [vmem:[#allocation140_spill] sm:$0xff] }
 0xc2d   : > { %v33711_v52 = vpop.f32.mrf.mxu0  ;;  %v11920_v35 = vsub.f32 %v36810_v33, %v36809_v22  ;;  %v36816_v33 = vld [vmem:[#allocation33_spill] sm:$0xff] }
 0xc2e   : > { %36807 = vst [vmem:[#allocation104_spill] sm:$0xff] %v33711_v52  ;;  %v36812_v52 = vld [vmem:[#allocation129_spill] sm:$0xff] }
 0xc2f   : > { %12484 = vadd.xlane.f32.xlu0 %v12483_v62  ;;  %v27377_v3 = vpop.f32.mrf.mxu0  ;;  %v12148_v30 = vmul.f32 1.442695, %v11920_v35  ;;  %v36813_v62 = vld [vmem:[#allocation142_spill] sm:$0xff] }
 0xc30   : > { %19964 = vrot.lane.b32.xlu1 %v36808_v9, %s28752_s13  ;;  %v11921_v9 = vsub.f32 %v36813_v62, %v33049_v11  ;;  %v33731_v3 = vpop.eup %28318 }
 0xc31   : > { %28326 = vpow2.f32 %v12148_v30  ;;  %v12492_v32 = vsel %vm1581_vm3, %v33731_v3, 0.0 }
 0xc32   : > { %v12150_v35 = vmul.f32 1.442695, %v11921_v9  ;;  %v36821_v9 = vld [vmem:[#allocation15_spill] sm:$0xff] }
 0xc33   : > { %12487 = vadd.xlane.f32.xlu0 %v12486_v45  ;;  %v36817_v45 = vld [vmem:[#allocation16_spill] sm:$0xff]  ;;  %v33741_v11 = vpop.eup %28320 }
 0xc34   : > { %20040 = vrot.lane.b32.xlu1 %v36812_v52, %s28752_s13  ;;  %v11922_v52 = vsub.f32 %v36817_v45, %v36816_v33  ;;  %36818 = vst [vmem:[#allocation215_spill] sm:$0xff] %v33741_v11  ;;  %28328 = vpow2.f32 %v12150_v35  ;;  %v12495_v30 = vsel %vm1581_vm3, %v33741_v11, 0.0  ;;  %v33749_v33 = vpop.eup %28322  ;;  %v36822_v45 = vld [vmem:[#allocation158_spill] sm:$0xff] }
 0xc35   : > { %28330 = vrcp.f32 %v33357_v28  ;;  %v12498_v35 = vsel %vm1581_vm3, %v33749_v33, 0.0  ;;  %v36825_v28 = vld [vmem:[#allocation154_spill] sm:$0xff] }
 0xc37   : > { %12490 = vadd.xlane.f32.xlu0 %v12489_v55  ;;  %v12152_v55 = vmul.f32 1.442695, %v11922_v52 }
 0xc38   : > { %20116 = vrot.lane.b32.xlu1 %v36814_v60, %s28752_s13  ;;  %v36820_v60 = vld [vmem:[#allocation3_spill] sm:$0xff] }
 0xc39   : > { %v33735_v22 = vpop.f32.mrf.mxu1  ;;  %28332 = vpow2.f32 %v12152_v55 }
 0xc3a   : > { %36815 = vst [vmem:[#allocation98_spill] sm:$0xff] %v33735_v22  ;;  %v11923_v22 = vsub.f32 %v36820_v60, %v33099_v16  ;;  %v33758_v16 = vpop.eup %28324 }
 0xc3b   : > { %12493 = vadd.xlane.f32.xlu0 %v12492_v32  ;;  %v27372_v62 = vpop.f32.mrf.mxu1  ;;  %v36823_v32 = vld [vmem:[#allocation147_spill] sm:$0xff]  ;;  %v12501_v55 = vsel %vm1581_vm3, %v33758_v16, 0.0 }
 0xc3c   : > { %20192 = vrot.lane.b32.xlu1 %v36819_v51, %s28752_s13  ;;  %v11924_v51 = vsub.f32 %v36823_v32, %v36822_v45  ;;  %v12154_v52 = vmul.f32 1.442695, %v11923_v22  ;;  %v36824_v62 = vld [vmem:[#allocation12_spill] sm:$0xff]  ;;  %v36827_v22 = vld [vmem:[#allocation22_spill] sm:$0xff] }
 0xc3d   : > { %v36828_v32 = vld [vmem:[#allocation212_spill] sm:$0xff] }
 0xc3e   : > { %v12156_v60 = vmul.f32 1.442695, %v11924_v51  ;;  %28334 = vpow2.f32 %v12154_v52  ;;  %v36829_v51 = vld [vmem:[#allocation24_spill] sm:$0xff] }
 0xc3f   : > { %12496 = vadd.xlane.f32.xlu0 %v12495_v30  ;;  %v36826_v30 = vld [vmem:[#allocation192_spill] sm:$0xff]  ;;  %28336 = vrcp.f32 %v33407_v5  ;;  %v11926_v52 = vsub.f32 %v36829_v51, %v36828_v32  ;;  %v36830_v5 = vld [vmem:[#allocation21_spill] sm:$0xff] }
 0xc40   : > { %20268 = vrot.lane.b32.xlu1 %v36821_v9, %s28752_s13  ;;  %v11925_v11 = vsub.f32 %v36826_v30, %v36825_v28  ;;  %v33766_v9 = vpop.eup %28326  ;;  %28338 = vpow2.f32 %v12156_v60  ;;  %v36831_v60 = vld [vmem:[#allocation152_spill] sm:$0xff] }
 0xc41   : > { %v33777_v28 = vpop.eup %28328  ;;  %28340 = vrcp.f32 %v33294_v57  ;;  %v11927_v32 = vsub.f32 %v36831_v60, %v33199_v0  ;;  %v36833_v0 = vld [vmem:[#allocation146_spill] sm:$0xff] }
 0xc43   : > { %12499 = vadd.xlane.f32.xlu0 %v12498_v35  ;;  %v12158_v35 = vmul.f32 1.442695, %v11925_v11  ;;  %v12507_v11 = vsel %vm1581_vm3, %v33777_v28, 0.0 }
 0xc44   : > { %20344 = vrot.lane.b32.xlu1 %v36824_v62, %s28752_s13  ;;  %v12504_v62 = vsel %vm1581_vm3, %v33766_v9, 0.0 }
 0xc45   : > { %28342 = vpow2.f32 %v12158_v35  ;;  %v11928_v35 = vsub.f32 %v36833_v0, %v33191_v40  ;;  %v36834_v40 = vld [vmem:[#allocation37_spill] sm:$0xff] }
 0xc46   : > { %28344 = vrcp.f32 %v33344_v42 }
 0xc47   : > { %12502 = vadd.xlane.f32.xlu0 %v12501_v55  ;;  %v33771_v45 = vpop.xlane.xlu1 %11815  ;;  %v28331_v55 = vpop.eup %28330  ;;  %28346 = vrcp.f32 %v33457_v13  ;;  %v12164_v60 = vmul.f32 1.442695, %v11928_v35  ;;  %v36836_v35 = vld [vmem:[#allocation40_spill] sm:$0xff] }
 0xc48   : > { %20420 = vrot.lane.b32.xlu1 %v36827_v22, %s28752_s13  ;;  %v12160_v22 = vmul.f32 1.442695, %v11926_v52  ;;  %v33788_v51 = vpop.eup %28332  ;;  %v12913_v57 = vmul.f32 %v28331_v55, %v33234_v34 }
 0xc49   : > { %v12510_v42 = vsel %vm1581_vm3, %v33788_v51, 0.0 }
 0xc4a   : > { %28348 = vpow2.f32 %v12160_v22 }
 0xc4b   : > { %12505 = vadd.xlane.f32.xlu0 %v12504_v62  ;;  %v33782_v30 = vpop.xlane.xlu1 %12451  ;;  %v36832_v62 = vld [vmem:[#allocation30_spill] sm:$0xff]  ;;  %v33801_v34 = vpop.eup %28334  ;;  %28350 = vrcp.f32 %v33394_v10 }
 0xc4c   : > { %20496 = vrot.lane.b32.xlu1 %v36830_v5, %s28752_s13  ;;  %v12162_v5 = vmul.f32 1.442695, %v11927_v32  ;;  %v28337_v22 = vpop.eup %28336  ;;  %v36835_v32 = vld [vmem:[#allocation148_spill] sm:$0xff] }
 0xc4d   : > { %v33814_v10 = vpop.eup %28338  ;;  %v12915_v0 = vmul.f32 %v28337_v22, %v33284_v44 }
 0xc4e   : > { %28352 = vpow2.f32 %v12162_v5 }
 0xc4f   : > { %12508 = vadd.xlane.f32.xlu0 %v12507_v11  ;;  %v18217_v52 = vpop.permute.xlu1 %18216  ;;  %v11929_v11 = vsub.f32 %v36835_v32, %v33249_v29  ;;  %28354 = vrcp.f32 %v33444_v41  ;;  %v36837_v29 = vld [vmem:[#allocation54_spill] sm:$0xff]  ;;  %v12516_v41 = vsel %vm1581_vm3, %v33814_v10, 0.0 }
 0xc50   : > { %20572 = vrot.lane.b32.xlu1 %v36832_v62, %s28752_s13  ;;  %27414 = vmatpush3.msra.mxu0 %v18217_v52  ;;  %v28341_v52 = vpop.eup %28340  ;;  %28356 = vrcp.f32 %v33507_v38 }
 0xc51   : > { %27416 = vmatmul.mubr.msk.f32.vlgmr.msra.gmra.mxu0 %vm1581_vm3, %v12913_v57  ;;  %27423 = vmatprep.subr.mxu0 %v36084_v48  ;;  %v12513_v57 = vsel %vm1581_vm3, %v33801_v34, 0.0  ;;  %28358 = vpow2.f32 %v12164_v60  ;;  %v12912_v38 = vmul.f32 %v28341_v52, %v33173_v21  ;;  %v36839_v21 = vld [vmem:[#allocation55_spill] sm:$0xff] }
 0xc52   : > { %27425 = vmatprep.mubr.msk.f32.mxu0 %vm28751_vm2, %v36084_v48  ;;  %v33829_v44 = vpop.eup %28342  ;;  %28360 = vrcp.f32 %v33494_v54  ;;  %v11931_v52 = vsub.f32 %v36839_v21, %v33299_v59  ;;  %v36840_v59 = vld [vmem:[#allocation50_spill] sm:$0xff] }
 0xc53   : > { %12511 = vadd.xlane.f32.xlu0 %v12510_v42  ;;  %v33804_v13 = vpop.xlane.xlu0 %11812  ;;  %v18293_v55 = vpop.permute.xlu1 %18292  ;;  %v11930_v42 = vsub.f32 %v36837_v29, %v33241_v26  ;;  %v36838_v26 = vld [vmem:[#allocation45_spill] sm:$0xff] }
 0xc54   : > { %20648 = vrot.lane.b32.xlu1 %v36834_v40, %s28752_s13  ;;  %v12166_v40 = vmul.f32 1.442695, %v11929_v11  ;;  %v28345_v60 = vpop.eup %28344 }
 0xc55   : > { %v28347_v11 = vpop.eup %28346 }
 0xc56   : > { %28362 = vpow2.f32 %v12166_v40  ;;  %v12917_v29 = vmul.f32 %v28347_v11, %v33334_v63 }
 0xc57   : > { %12514 = vadd.xlane.f32.xlu0 %v12513_v57  ;;  %v33817_v62 = vpop.xlane.xlu0 %12448  ;;  %v18369_v5 = vpop.permute.xlu1 %18368  ;;  %v12168_v57 = vmul.f32 1.442695, %v11930_v42  ;;  %28364 = vrcp.f32 %v33563_v4  ;;  %v36841_v42 = vld [vmem:[#allocation199_spill] sm:$0xff] }
 0xc58   : > { %20724 = vrot.lane.b32.xlu1 %v36836_v35, %s28752_s13  ;;  %27424 = vmatpush3.msra.mxu0 %v18369_v5  ;;  %v33845_v54 = vpop.eup %28348  ;;  %v12914_v35 = vmul.f32 %v28345_v60, %v33223_v6  ;;  %v11932_v40 = vsub.f32 %v36841_v42, %v33291_v50  ;;  %v12170_v6 = vmul.f32 1.442695, %v11931_v52  ;;  %v36842_v50 = vld [vmem:[#allocation57_spill] sm:$0xff] }
 0xc59   : > { %27426 = vmatmul.mubr.msk.f32.vlgmr.msra.gmra.mxu0 %vm1581_vm3, %v12915_v0  ;;  %27433 = vmatprep.subr.mxu0 %v36084_v48  ;;  %v12519_v0 = vsel %vm1581_vm3, %v33829_v44, 0.0  ;;  %v28351_v5 = vpop.eup %28350  ;;  %28366 = vpow2.f32 %v12168_v57  ;;  %v12522_v63 = vsel %vm1581_vm3, %v33845_v54, 0.0 }
 0xc5a   : > { %27435 = vmatprep.mubr.msk.f32.mxu0 %vm28751_vm2, %v36084_v48  ;;  %v12916_v4 = vmul.f32 %v28351_v5, %v33273_v14  ;;  %28368 = vrcp.f32 %v33546_v25  ;;  %v36843_v14 = vld [vmem:[#allocation150_spill] sm:$0xff] }
 0xc5b   : > { %12517 = vadd.xlane.f32.xlu0 %v12516_v41  ;;  %v18141_v22 = vpop.permute.xlu0 %18140  ;;  %v18445_v32 = vpop.permute.xlu1 %18444  ;;  %28370 = vpow2.f32 %v12170_v6 }
 0xc5c   : > { %20800 = vrot.lane.b32.xlu1 %v36838_v26, %s28752_s13  ;;  %27409 = vmatpush3.msra.mxu1 %v18141_v22  ;;  %v33859_v41 = vpop.eup %28352  ;;  %v12172_v26 = vmul.f32 1.442695, %v11932_v40  ;;  %28372 = vrcp.f32 %v33674_v31 }
 0xc5d   : > { %27411 = vmatmul.mubr.msk.f32.vlgmr.msra.gmra.mxu1 %vm1581_vm3, %v12912_v38  ;;  %27418 = vmatprep.subr.mxu1 %v36084_v48  ;;  %v28355_v38 = vpop.eup %28354  ;;  %v12525_v25 = vsel %vm1581_vm3, %v33859_v41, 0.0 }
 0xc5e   : > { %27419 = vmatpush3.msra.mxu1 %v18293_v55  ;;  %27420 = vmatprep.mubr.msk.f32.mxu1 %vm28751_vm2, %v36084_v48  ;;  %v28357_v60 = vpop.eup %28356  ;;  %v12918_v57 = vmul.f32 %v28355_v38, %v33323_v61  ;;  %28374 = vpow2.f32 %v12172_v26  ;;  %v36845_v61 = vld [vmem:[#allocation68_spill] sm:$0xff]  ;;  %v36847_v38 = vld [vmem:[#allocation69_spill] sm:$0xff] }
 0xc5f   : > { %12520 = vadd.xlane.f32.xlu0 %v12519_v0  ;;  %27428 = vmatprep.subr.mxu1 %v36084_v48  ;;  %v18521_v55 = vpop.permute.xlu1 %18520  ;;  %v33876_v11 = vpop.eup %28358  ;;  %v12919_v52 = vmul.f32 %v28357_v60, %v33384_v2  ;;  %28376 = vrcp.f32 %v33643_v8 }
 0xc60   : > { %20876 = vrot.lane.b32.xlu1 %v36840_v59, %s28752_s13  ;;  %27434 = vmatpush3.msra.mxu0 %v18521_v55  ;;  %v12528_v2 = vsel %vm1581_vm3, %v33876_v11, 0.0 }
 0xc61   : > { %27421 = vmatmul.mubr.msk.f32.vlgmr.msra.gmra.mxu1 %vm1581_vm3, %v12914_v35  ;;  %27436 = vmatmul.mubr.msk.f32.vlgmr.msra.gmra.mxu0 %vm1581_vm3, %v12917_v29  ;;  %v28361_v35 = vpop.eup %28360  ;;  %v11934_v29 = vsub.f32 %v36845_v61, %v33341_v24  ;;  %v36846_v24 = vld [vmem:[#allocation65_spill] sm:$0xff] }
 0xc62   : > { %27429 = vmatpush3.msra.mxu1 %v18445_v32  ;;  %27430 = vmatprep.mubr.msk.f32.mxu1 %vm28751_vm2, %v36084_v48  ;;  %v11933_v32 = vsub.f32 %v36843_v14, %v33349_v49  ;;  %v36844_v49 = vld [vmem:[#allocation61_spill] sm:$0xff]  ;;  %v12920_v55 = vmul.f32 %v28361_v35, %v33373_v53 }
 0xc63   : > { %12523 = vadd.xlane.f32.xlu0 %v12522_v63  ;;  %v18597_v22 = vpop.permute.xlu1 %18596  ;;  %27438 = vmatprep.subr.mxu1 %v36084_v48  ;;  %v33896_v31 = vpop.eup %28362  ;;  %v12176_v6 = vmul.f32 1.442695, %v11934_v29  ;;  %v11935_v63 = vsub.f32 %v33278_v27, %v33399_v43  ;;  %v36852_v61 = vld [vmem:[#allocation77_spill] sm:$0xff] }
 0xc64   : > { %20952 = vrot.lane.b32.xlu1 %v36842_v50, %s28752_s13  ;;  %27443 = vmatprep.subr.mxu0 %v36084_v48  ;;  %v12174_v59 = vmul.f32 1.442695, %v11933_v32  ;;  %v28365_v40 = vpop.eup %28364  ;;  %v12531_v53 = vsel %vm1581_vm3, %v33896_v31, 0.0  ;;  %v36848_v50 = vld [vmem:[#allocation205_spill] sm:$0xff] }
 0xc65   : > { %27431 = vmatmul.mubr.msk.f32.vlgmr.msra.gmra.mxu1 %vm1581_vm3, %v12916_v4  ;;  %27445 = vmatprep.mubr.msk.f32.mxu0 %vm28751_vm2, %v36084_v48  ;;  %v12921_v4 = vmul.f32 %v28365_v40, %v33434_v37  ;;  %v12178_v60 = vmul.f32 1.442695, %v11935_v63 }
 0xc66   : > { %27439 = vmatpush3.msra.mxu1 %v18597_v22  ;;  %27440 = vmatprep.mubr.msk.f32.mxu1 %vm28751_vm2, %v36084_v48  ;;  %v33879_v21 = vpop.f32.mrf.mxu0  ;;  %28378 = vpow2.f32 %v12174_v59  ;;  %v33911_v8 = vpop.eup %28366  ;;  %v11936_v22 = vsub.f32 %v36848_v50, %v33391_v1  ;;  %v36849_v1 = vld [vmem:[#allocation76_spill] sm:$0xff]  ;;  %v36858_v50 = vld [vmem:[#allocation115_spill] sm:$0xff] }
 0xc67   : > { %12526 = vadd.xlane.f32.xlu0 %v12525_v25  ;;  %v18673_v0 = vpop.permute.xlu1 %18672  ;;  %27448 = vmatprep.subr.mxu1 %v36084_v48  ;;  %28380 = vrcp.f32 %v33817_v62  ;;  %v28369_v43 = vpop.eup %28368  ;;  %v12534_v37 = vsel %vm1581_vm3, %v33911_v8, 0.0 }
 0xc68   : > { %21028 = vrot.lane.b32.xlu1 %v36844_v49, %s28752_s13  ;;  %v27387_v5 = vpop.f32.mrf.mxu0  ;;  %27444 = vmatpush3.msra.mxu0 %v18673_v0  ;;  %28382 = vpow2.f32 %v12176_v6  ;;  %v33927_v62 = vpop.eup %28370  ;;  %v12922_v14 = vmul.f32 %v28369_v43, %v33423_v56  ;;  %v36850_v49 = vld [vmem:[#allocation227_spill] sm:$0xff]  ;;  %v36857_v43 = vld [vmem:[#allocation6_spill] sm:$0xff] }
 0xc69   : > { %27441 = vmatmul.mubr.msk.f32.vlgmr.msra.gmra.mxu1 %vm1581_vm3, %v12918_v57  ;;  %27446 = vmatmul.mubr.msk.f32.vlgmr.msra.gmra.mxu0 %vm1581_vm3, %v12919_v52  ;;  %28384 = vrcp.f32 %v33782_v30  ;;  %v28373_v57 = vpop.eup %28372  ;;  %v12180_v52 = vmul.f32 1.442695, %v11936_v22  ;;  %v36851_v0 = vld [vmem:[#allocation167_spill] sm:$0xff]  ;;  %v12537_v5 = vsel %vm1581_vm3, %v33927_v62, 0.0  ;;  %v11939_v22 = vsub.f32 %v36858_v50, %v36857_v43 }
 0xc6a   : > { %27450 = vmatprep.mubr.msk.f32.mxu1 %vm28751_vm2, %v36084_v48  ;;  %27453 = vmatprep.subr.mxu0 %v36084_v48  ;;  %28386 = vpow2.f32 %v12178_v60  ;;  %v11937_v35 = vsub.f32 %v36851_v0, %v36850_v49  ;;  %v12923_v30 = vmul.f32 %v28373_v57, %v33484_v15  ;;  %v36855_v15 = vld [vmem:[#allocation122_spill] sm:$0xff]  ;;  %v36862_v49 = vld [vmem:[#allocation79_spill] sm:$0xff] }
 0xc6b   : > { %12529 = vadd.xlane.f32.xlu0 %v12528_v2  ;;  %v18749_v42 = vpop.permute.xlu1 %18748  ;;  %27455 = vmatprep.mubr.msk.f32.mxu0 %vm28751_vm2, %v36084_v48  ;;  %v33941_v56 = vpop.eup %28374  ;;  %28388 = vpow2.f32 %v12180_v52  ;;  %v36853_v2 = vld [vmem:[#allocation85_spill] sm:$0xff]  ;;  %v36861_v52 = vld [vmem:[#allocation91_spill] sm:$0xff] }
 0xc6c   : > { %21104 = vrot.lane.b32.xlu1 %v36846_v24, %s28752_s13  ;;  %27449 = vmatpush3.msra.mxu1 %v18749_v42  ;;  %v28377_v59 = vpop.eup %28376  ;;  %v12182_v42 = vmul.f32 1.442695, %v11937_v35  ;;  %v12540_v40 = vsel %vm1581_vm3, %v33941_v56, 0.0  ;;  %v11940_v0 = vsub.f32 %v36862_v49, %v36861_v52  ;;  %v12186_v35 = vmul.f32 1.442695, %v11939_v22 }
 0xc6d   : > { %27451 = vmatmul.mubr.msk.f32.vlgmr.msra.gmra.mxu1 %vm1581_vm3, %v12920_v55  ;;  %27458 = vmatprep.subr.mxu1 %v36084_v48  ;;  %v36854_v55 = vld [vmem:[#allocation64_spill] sm:$0xff]  ;;  %v12924_v63 = vmul.f32 %v28377_v59, %v36855_v15  ;;  %v36864_v59 = vld [vmem:[#allocation89_spill] sm:$0xff] }
 0xc6e   : > { %27460 = vmatprep.mubr.msk.f32.mxu1 %vm28751_vm2, %v36084_v48  ;;  %v11938_v24 = vsub.f32 %v36854_v55, %v36853_v2  ;;  %28390 = vpow2.f32 %v12182_v42  ;;  %v12188_v55 = vmul.f32 1.442695, %v11940_v0  ;;  %v36866_v42 = vld [vmem:[#allocation204_spill] sm:$0xff] }
 0xc6f   : > { %12532 = vadd.xlane.f32.xlu0 %v12531_v53  ;;  %v18825_v27 = vpop.permute.xlu1 %18824  ;;  %v36856_v53 = vld [vmem:[#allocation83_spill] sm:$0xff] }
 0xc70   : > { %21180 = vrot.lane.b32.xlu1 %v36847_v38, %s28752_s13  ;;  %27454 = vmatpush3.msra.mxu0 %v18825_v27  ;;  %v12184_v27 = vmul.f32 1.442695, %v11938_v24  ;;  %v36865_v24 = vld [vmem:[#allocation119_spill] sm:$0xff] }
 0xc71   : > { %27456 = vmatmul.mubr.msk.f32.vlgmr.msra.gmra.mxu0 %vm1581_vm3, %v12921_v4  ;;  %27463 = vmatprep.subr.mxu0 %v36084_v48 }
 0xc72   : > { %v33922_v26 = vpop.f32.mrf.mxu1  ;;  %27465 = vmatprep.mubr.msk.f32.mxu0 %vm28751_vm2, %v36084_v48  ;;  %28392 = vpow2.f32 %v12184_v27  ;;  %v36869_v27 = vld [vmem:[#allocation170_spill] sm:$0xff] }
 0xc73   : > { %12535 = vadd.xlane.f32.xlu0 %v12534_v37  ;;  %v18901_v32 = vpop.permute.xlu1 %18900  ;;  %v33954_v6 = vpop.eup %28378  ;;  %28394 = vpow2.f32 %v12186_v35  ;;  %v36872_v35 = vld [vmem:[#allocation101_spill] sm:$0xff] }
 0xc74   : > { %21256 = vrot.lane.b32.xlu1 %v36849_v1, %s28752_s13  ;;  %v27382_v25 = vpop.f32.mrf.mxu1  ;;  %27459 = vmatpush3.msra.mxu1 %v18901_v32  ;;  %v28381_v38 = vpop.eup %28380  ;;  %v12543_v60 = vsel %vm1581_vm3, %v33954_v6, 0.0  ;;  %v36860_v32 = vld [vmem:[#allocation84_spill] sm:$0xff]  ;;  %28396 = vpow2.f32 %v12188_v55 }
 0xc75   : > { %27461 = vmatmul.mubr.msk.f32.vlgmr.msra.gmra.mxu1 %vm1581_vm3, %v12922_v14  ;;  %27468 = vmatprep.subr.mxu1 %v36084_v48  ;;  %v33967_v37 = vpop.eup %28382  ;;  %v36859_v14 = vld [vmem:[#allocation97_spill] sm:$0xff] }
 0xc76   : > { %27470 = vmatprep.mubr.msk.f32.mxu1 %vm28751_vm2, %v36084_v48  ;;  %v12925_v1 = vmul.f32 %v28381_v38, %v36859_v14  ;;  %v28385_v57 = vpop.eup %28384  ;;  %v36868_v38 = vld [vmem:[#allocation169_spill] sm:$0xff]  ;;  %v36870_v14 = vld [vmem:[#allocation96_spill] sm:$0xff] }
 0xc77   : > { %12538 = vadd.xlane.f32.xlu0 %v12537_v5  ;;  %v18977_v29 = vpop.permute.xlu1 %18976  ;;  %v12546_v5 = vsel %vm1581_vm3, %v33967_v37, 0.0  ;;  %v11942_v43 = vsub.f32 %v36869_v27, %v36868_v38  ;;  %v36876_v27 = vld [vmem:[#allocation108_spill] sm:$0xff] }
 0xc78   : > { %21332 = vrot.lane.b32.xlu1 %v36852_v61, %s28752_s13  ;;  %27464 = vmatpush3.msra.mxu0 %v18977_v29  ;;  %v36863_v61 = vld [vmem:[#allocation126_spill] sm:$0xff] }
 0xc79   : > { %27466 = vmatmul.mubr.msk.f32.vlgmr.msra.gmra.mxu0 %vm1581_vm3, %v12923_v30  ;;  %27473 = vmatprep.subr.mxu0 %v36084_v48  ;;  %v33980_v30 = vpop.eup %28386  ;;  %v12926_v29 = vmul.f32 %v28385_v57, %v36863_v61  ;;  %v36871_v57 = vld [vmem:[#allocation206_spill] sm:$0xff] }
 0xc7a   : > { %27475 = vmatprep.mubr.msk.f32.mxu0 %vm28751_vm2, %v36084_v48  ;;  %v12549_v15 = vsel %vm1581_vm3, %v33980_v30, 0.0  ;;  %v11943_v52 = vsub.f32 %v36871_v57, %v33660_v46  ;;  %v36878_v57 = vld [vmem:[#allocation109_spill] sm:$0xff] }
 0xc7b   : > { %12541 = vadd.xlane.f32.xlu0 %v12540_v40  ;;  %v19053_v4 = vpop.permute.xlu1 %19052  ;;  %v11941_v40 = vsub.f32 %v36866_v42, %v36865_v24  ;;  %v36874_v24 = vld [vmem:[#allocation102_spill] sm:$0xff] }
 0xc7c   : > { %21408 = vrot.lane.b32.xlu1 %v36856_v53, %s28752_s13  ;;  %27469 = vmatpush3.msra.mxu1 %v19053_v4  ;;  %v36867_v53 = vld [vmem:[#allocation90_spill] sm:$0xff] }
 0xc7d   : > { %27471 = vmatmul.mubr.msk.f32.vlgmr.msra.gmra.mxu1 %vm1581_vm3, %v12924_v63  ;;  %27478 = vmatprep.subr.mxu1 %v36084_v48  ;;  %v33993_v63 = vpop.eup %28388  ;;  %v12190_v50 = vmul.f32 1.442695, %v11941_v40 }
 0xc7e   : > { %27480 = vmatprep.mubr.msk.f32.mxu1 %vm28751_vm2, %v36084_v48  ;;  %v12552_v22 = vsel %vm1581_vm3, %v33993_v63, 0.0 }
 0xc7f   : > { %12544 = vadd.xlane.f32.xlu0 %v12543_v60  ;;  %v19129_v25 = vpop.permute.xlu1 %19128  ;;  %v34004_v60 = vpop.eup %28390  ;;  %28398 = vpow2.f32 %v12190_v50 }
 0xc80   : > { %21484 = vrot.lane.b32.xlu1 %v36860_v32, %s28752_s13  ;;  %27474 = vmatpush3.msra.mxu0 %v19129_v25  ;;  %v12192_v25 = vmul.f32 1.442695, %v11942_v43  ;;  %v12555_v49 = vsel %vm1581_vm3, %v34004_v60, 0.0  ;;  %v34013_v0 = vpop.eup %28392 }
 0xc81   : > { %27476 = vmatmul.mubr.msk.f32.vlgmr.msra.gmra.mxu0 %vm1581_vm3, %v12925_v1  ;;  %27483 = vmatprep.subr.mxu0 %v36084_v48  ;;  %v12558_v46 = vsel %vm1581_vm3, %v34013_v0, 0.0  ;;  %v34021_v55 = vpop.eup %28394 }
 0xc82   : > { %27485 = vmatprep.mubr.msk.f32.mxu0 %vm28751_vm2, %v36084_v48  ;;  %28400 = vpow2.f32 %v12192_v25  ;;  %v34029_v38 = vpop.eup %28396 }
 0xc83   : > { %12547 = vadd.xlane.f32.xlu0 %v12546_v5  ;;  %v19205_v2 = vpop.permute.xlu1 %19204 }
 0xc84   : > { %21560 = vrot.lane.b32.xlu1 %v36864_v59, %s28752_s13  ;;  %27479 = vmatpush3.msra.mxu1 %v19205_v2  ;;  %v12194_v2 = vmul.f32 1.442695, %v11943_v52 }
 0xc85   : > { %27481 = vmatmul.mubr.msk.f32.vlgmr.msra.gmra.mxu1 %vm1581_vm3, %v12926_v29  ;;  %27488 = vmatprep.subr.mxu1 %v36084_v48  ;;  %v36873_v29 = vld [vmem:[#allocation117_spill] sm:$0xff] }
 0xc86   : > { %27490 = vmatprep.mubr.msk.f32.mxu1 %vm28751_vm2, %v36084_v48  ;;  %v11944_v59 = vsub.f32 %v36873_v29, %v33632_v17  ;;  %v12561_v17 = vsel %vm1581_vm3, %v34021_v55, 0.0 }
 0xc87   : > { %12550 = vadd.xlane.f32.xlu0 %v12549_v15  ;;  %v19281_v4 = vpop.permute.xlu1 %19280 }
 0xc88   : > { %21636 = vrot.lane.b32.xlu1 %v36867_v53, %s28752_s13  ;;  %27484 = vmatpush3.msra.mxu0 %v19281_v4  ;;  %v12196_v15 = vmul.f32 1.442695, %v11944_v59  ;;  %v36875_v53 = vld [vmem:[#allocation207_spill] sm:$0xff] }
 0xc89   : > { %27493 = vmatprep.subr.mxu0 %v36084_v48  ;;  %v11945_v4 = vsub.f32 %v36875_v53, %v33804_v13  ;;  %v12564_v13 = vsel %vm1581_vm3, %v34029_v38, 0.0 }
 0xc8b   : > { %12553 = vadd.xlane.f32.xlu0 %v12552_v22  ;;  %v19357_v1 = vpop.permute.xlu1 %19356  ;;  %v36877_v22 = vld [vmem:[#allocation86_spill] sm:$0xff] }
 0xc8c   : > { %21788 = vrot.lane.b32.xlu1 %v36870_v14, %s28752_s13  ;;  %v11819_v32 = vpop.xlane.xlu0 %11818  ;;  %27489 = vmatpush3.msra.mxu1 %v19357_v1  ;;  %v11946_v14 = vsub.f32 %v36877_v22, %v33771_v45  ;;  %v12198_v1 = vmul.f32 1.442695, %v11945_v4  ;;  %v34037_v25 = vpop.eup %28398 }
 0xc8d   : > { %27498 = vmatprep.subr.mxu1 %v36084_v48  ;;  %v12567_v45 = vsel %vm1581_vm3, %v34037_v25, 0.0 }
 0xc8f   : > { %12556 = vadd.xlane.f32.xlu0 %v12555_v49  ;;  %v19433_v5 = vpop.permute.xlu1 %19432  ;;  %v34042_v29 = vpop.eup %28400 }
 0xc90   : > { %21864 = vrot.lane.b32.xlu1 %v36872_v35, %s28752_s13  ;;  %v12455_v61 = vpop.xlane.xlu0 %12454  ;;  %v12200_v35 = vmul.f32 1.442695, %v11946_v14  ;;  %v12570_v4 = vsel %vm1581_vm3, %v34042_v29, 0.0 }
 0xc91   : > { %28402 = vrcp.f32 %v12455_v61  ;;  %v11947_v61 = vsub.f32 %v33593_v7, %v11819_v32 }
 0xc93   : > { %12559 = vadd.xlane.f32.xlu0 %v12558_v46  ;;  %v19509_v42 = vpop.permute.xlu1 %19508  ;;  %v36879_v46 = vld [vmem:[#allocation114_spill] sm:$0xff]  ;;  %v12202_v7 = vmul.f32 1.442695, %v11947_v61 }
 0xc94   : > { %21940 = vrot.lane.b32.xlu1 %v36874_v24, %s28752_s13  ;;  %v12458_v40 = vpop.xlane.xlu0 %12457 }
 0xc95   : > { %28404 = vrcp.f32 %v12458_v40 }
 0xc96   : > { %28406 = vpow2.f32 %v12194_v2 }
 0xc97   : > { %12562 = vadd.xlane.f32.xlu0 %v12561_v17  ;;  %v19585_v43 = vpop.permute.xlu1 %19584 }
 0xc98   : > { %22016 = vrot.lane.b32.xlu1 %v36876_v27, %s28752_s13  ;;  %v12461_v50 = vpop.xlane.xlu0 %12460  ;;  %v36880_v27 = vld [vmem:[#allocation124_spill] sm:$0xff] }
 0xc99   : > { %28408 = vrcp.f32 %v12461_v50 }
 0xc9a   : > { %28410 = vpow2.f32 %v12196_v15 }
 0xc9b   : > { %12565 = vadd.xlane.f32.xlu0 %v12564_v13  ;;  %v19661_v52 = vpop.permute.xlu1 %19660  ;;  %v36881_v13 = vld [vmem:[#allocation131_spill] sm:$0xff] }
 0xc9c   : > { %22092 = vrot.lane.b32.xlu1 %v36878_v57, %s28752_s13  ;;  %v12464_v49 = vpop.xlane.xlu0 %12463 }
 0xc9d   : > { %28412 = vrcp.f32 %v12464_v49 }
 0xc9e   : > { %28414 = vpow2.f32 %v12198_v1  ;;  %v28403_v59 = vpop.eup %28402 }
 0xc9f   : > { %12568 = vadd.xlane.f32.xlu0 %v12567_v45  ;;  %v12927_v2 = vmul.f32 %v28403_v59, %v33605_v23  ;;  %v34049_v24 = vpop.permute.xlu1 %19736  ;;  %v34051_v40 = vpop.f32.mrf.mxu0  ;;  %28416 = vpow2.f32 %v12200_v35  ;;  %v36882_v59 = vld [vmem:[#allocation136_spill] sm:$0xff] }
 0xca0   : > { %22168 = vrot.lane.b32.xlu1 %v36879_v46, %s28752_s13  ;;  %v12467_v32 = vpop.xlane.xlu0 %12466 }
 0xca1   : > { %28418 = vrcp.f32 %v12467_v32  ;;  %v27397_v53 = vpop.f32.mrf.mxu0  ;;  %27486 = vmatmul.mubr.msk.f32.vlgmr.msra.gmra.mxu0 %vm1581_vm3, %v12927_v2 }
 0xca2   : > { %v28405_v15 = vpop.eup %28404  ;;  %27494 = vmatpush3.msra.mxu0 %v19433_v5  ;;  %27495 = vmatprep.mubr.msk.f32.mxu0 %vm28751_vm2, %v36084_v48  ;;  %28420 = vpow2.f32 %v12202_v7 }
 0xca3   : > { %v34056_v17 = vpop.eup %28406  ;;  %v12928_v23 = vmul.f32 %v28405_v15, %v33613_v39  ;;  %12571 = vadd.xlane.f32.xlu0 %v12570_v4  ;;  %v34061_v50 = vpop.permute.xlu1 %19812  ;;  %27503 = vmatprep.subr.mxu0 %v36084_v48  ;;  %v36883_v15 = vld [vmem:[#allocation155_spill] sm:$0xff] }
 0xca4   : > { %22320 = vrot.lane.b32.xlu1 %v36880_v27, %s28752_s13  ;;  %v12470_v22 = vpop.xlane.xlu0 %12469  ;;  %v12573_v39 = vsel %vm1581_vm3, %v34056_v17, 0.0 }
 0xca5   : > { %27491 = vmatmul.mubr.msk.f32.vlgmr.msra.gmra.mxu1 %vm1581_vm3, %v12928_v23  ;;  %28422 = vrcp.f32 %v12470_v22  ;;  %v36884_v23 = vld [vmem:[#allocation200_spill] sm:$0xff] }
 0xca6   : > { %v28409_v14 = vpop.eup %28408  ;;  %27499 = vmatpush3.msra.mxu1 %v19509_v42  ;;  %27500 = vmatprep.mubr.msk.f32.mxu1 %vm28751_vm2, %v36084_v48 }
 0xca7   : > { %v34071_v5 = vpop.eup %28410  ;;  %v12929_v1 = vmul.f32 %v28409_v14, %v33622_v18  ;;  %12574 = vadd.xlane.f32.xlu0 %v12573_v39  ;;  %27508 = vmatprep.subr.mxu1 %v36084_v48  ;;  %v19889_v57 = vpop.permute.xlu1 %19888  ;;  %v36885_v39 = vld [vmem:[#allocation211_spill] sm:$0xff] }
 0xca8   : > { %22472 = vrot.lane.b32.xlu1 %v36881_v13, %s28752_s13  ;;  %v12473_v49 = vpop.xlane.xlu0 %12472  ;;  %v12576_v35 = vsel %vm1581_vm3, %v34071_v5, 0.0 }
 0xca9   : > { %27496 = vmatmul.mubr.msk.f32.vlgmr.msra.gmra.mxu0 %vm1581_vm3, %v12929_v1  ;;  %28424 = vrcp.f32 %v12473_v49 }
 0xcaa   : > { %v28413_v42 = vpop.eup %28412  ;;  %27504 = vmatpush3.msra.mxu0 %v19585_v43  ;;  %27505 = vmatprep.mubr.msk.f32.mxu0 %vm28751_vm2, %v36084_v48 }
 0xcab   : > { %v34082_v18 = vpop.eup %28414  ;;  %v12930_v61 = vmul.f32 %v28413_v42, %v33630_v58  ;;  %v34085_v45 = vpop.f32.mrf.mxu1  ;;  %12577 = vadd.xlane.f32.xlu0 %v12576_v35  ;;  %27513 = vmatprep.subr.mxu0 %v36084_v48 }
 0xcac   : > { %22624 = vrot.lane.b32.xlu1 %v36882_v59, %s28752_s13  ;;  %v19965_v2 = vpop.permute.xlu1 %19964  ;;  %v12476_v43 = vpop.xlane.xlu0 %12475  ;;  %v12579_v58 = vsel %vm1581_vm3, %v34082_v18, 0.0 }
 0xcad   : > { %v27392_v46 = vpop.f32.mrf.mxu1  ;;  %27501 = vmatmul.mubr.msk.f32.vlgmr.msra.gmra.mxu1 %vm1581_vm3, %v12930_v61  ;;  %v34091_v7 = vpop.eup %28416  ;;  %28426 = vrcp.f32 %v12476_v43 }
 0xcae   : > { %27509 = vmatpush3.msra.mxu1 %v19661_v52  ;;  %27510 = vmatprep.mubr.msk.f32.mxu1 %vm28751_vm2, %v36084_v48  ;;  %v28419_v32 = vpop.eup %28418  ;;  %v12582_v52 = vsel %vm1581_vm3, %v34091_v7, 0.0 }
 0xcaf   : > { %12580 = vadd.xlane.f32.xlu0 %v12579_v58  ;;  %27518 = vmatprep.subr.mxu1 %v36084_v48  ;;  %v12931_v53 = vmul.f32 %v28419_v32, %v36883_v15  ;;  %v34101_v22 = vpop.eup %28420 }
 0xcb0   : > { %v20041_v4 = vpop.permute.xlu1 %20040  ;;  %22734 = vrot.lane.b32.xlu1 %v36884_v23, %s28757_s19  ;;  %v12479_v27 = vpop.xlane.xlu0 %12478  ;;  %v36886_v23 = vld [vmem:[#allocation217_spill] sm:$0xff] }
 0xcb1   : > { %28428 = vrcp.f32 %v12479_v27  ;;  %27506 = vmatmul.mubr.msk.f32.vlgmr.msra.gmra.mxu0 %vm1581_vm3, %v12931_v53 }
 0xcb2   : > { %v28423_v14 = vpop.eup %28422  ;;  %27514 = vmatpush3.msra.mxu0 %v34049_v24  ;;  %27515 = vmatprep.mubr.msk.f32.mxu0 %vm28751_vm2, %v36084_v48  ;;  %v12585_v24 = vsel %vm1581_vm3, %v34101_v22, 0.0 }
 0xcb3   : > { %12583 = vadd.xlane.f32.xlu0 %v12582_v52  ;;  %v12932_v1 = vmul.f32 %v28423_v14, %v36885_v39  ;;  %27523 = vmatprep.subr.mxu0 %v36084_v48 }
 0xcb4   : > { %v20117_v13 = vpop.permute.xlu1 %20116  ;;  %22862 = vrot.lane.b32.xlu1 %v34051_v40, %s28758_s20  ;;  %v12482_v49 = vpop.xlane.xlu0 %12481 }
 0xcb5   : > { %28430 = vrcp.f32 %v12482_v49  ;;  %27511 = vmatmul.mubr.msk.f32.vlgmr.msra.gmra.mxu1 %vm1581_vm3, %v12932_v1 }
 0xcb6   : > { %v28425_v42 = vpop.eup %28424  ;;  %27519 = vmatpush3.msra.mxu1 %v34061_v50  ;;  %27520 = vmatprep.mubr.msk.f32.mxu1 %vm28751_vm2, %v36084_v48 }
 0xcb7   : > { %12586 = vadd.xlane.f32.xlu0 %v12585_v24  ;;  %v12933_v35 = vmul.f32 %v28425_v42, %v33666_v36  ;;  %27528 = vmatprep.subr.mxu1 %v36084_v48  ;;  %v36888_v24 = vld [vmem:[#allocation208_spill] sm:$0xff] }
 0xcb8   : > { %v20193_v61 = vpop.permute.xlu1 %20192  ;;  %v12485_v40 = vpop.xlane.xlu0 %12484 }
 0xcb9   : > { %28432 = vrcp.f32 %v12485_v40  ;;  %27516 = vmatmul.mubr.msk.f32.vlgmr.msra.gmra.mxu0 %vm1581_vm3, %v12933_v35 }
 0xcba   : > { %v28427_v59 = vpop.eup %28426  ;;  %27524 = vmatpush3.msra.mxu0 %v19889_v57  ;;  %27525 = vmatprep.mubr.msk.f32.mxu0 %vm28751_vm2, %v36084_v48 }
 0xcbb   : > { %v12934_v50 = vmul.f32 %v28427_v59, %v33670_v12  ;;  %27533 = vmatprep.subr.mxu0 %v36084_v48 }
 0xcbc   : > { %v20269_v43 = vpop.permute.xlu1 %20268  ;;  %v12488_v36 = vpop.xlane.xlu0 %12487 }
 0xcbd   : > { %28434 = vrcp.f32 %v12488_v36  ;;  %27521 = vmatmul.mubr.msk.f32.vlgmr.msra.gmra.mxu1 %vm1581_vm3, %v12934_v50  ;;  %v36890_v36 = vld [vmem:[#allocation125_spill] sm:$0xff] }
 0xcbe   : > { %v28429_v46 = vpop.eup %28428  ;;  %27529 = vmatpush3.msra.mxu1 %v19965_v2  ;;  %27530 = vmatprep.mubr.msk.f32.mxu1 %vm28751_vm2, %v36084_v48 }
 0xcbf   : > { %v12935_v58 = vmul.f32 %v28429_v46, %v33685_v47  ;;  %27538 = vmatprep.subr.mxu1 %v36084_v48 }
 0xcc0   : > { %v20345_v57 = vpop.permute.xlu1 %20344  ;;  %v12491_v32 = vpop.xlane.xlu0 %12490 }
 0xcc1   : > { %28436 = vrcp.f32 %v12491_v32  ;;  %27526 = vmatmul.mubr.msk.f32.vlgmr.msra.gmra.mxu0 %vm1581_vm3, %v12935_v58  ;;  %v36891_v58 = vld [vmem:[#allocation215_spill] sm:$0xff] }
 0xcc2   : > { %v28431_v12 = vpop.eup %28430  ;;  %27534 = vmatpush3.msra.mxu0 %v20041_v4  ;;  %27535 = vmatprep.mubr.msk.f32.mxu0 %vm28751_vm2, %v36084_v48 }
 0xcc3   : > { %v12936_v15 = vmul.f32 %v28431_v12, %v33697_v20  ;;  %27543 = vmatprep.subr.mxu0 %v36084_v48 }
 0xcc4   : > { %v20421_v2 = vpop.permute.xlu1 %20420  ;;  %v12494_v53 = vpop.xlane.xlu0 %12493 }
 0xcc5   : > { %28438 = vrcp.f32 %v12494_v53  ;;  %27531 = vmatmul.mubr.msk.f32.vlgmr.msra.gmra.mxu1 %vm1581_vm3, %v12936_v15  ;;  %v36892_v15 = vld [vmem:[#allocation132_spill] sm:$0xff] }
 0xcc6   : > { %v28433_v47 = vpop.eup %28432  ;;  %27539 = vmatpush3.msra.mxu1 %v20117_v13  ;;  %27540 = vmatprep.mubr.msk.f32.mxu1 %vm28751_vm2, %v36084_v48  ;;  %v36887_v13 = vld [vmem:[#allocation95_spill] sm:$0xff] }
 0xcc7   : > { %v12937_v27 = vmul.f32 %v28433_v47, %v36886_v23  ;;  %27548 = vmatprep.subr.mxu1 %v36084_v48 }
 0xcc8   : > { %v20497_v4 = vpop.permute.xlu1 %20496  ;;  %v12497_v52 = vpop.xlane.xlu0 %12496 }
 0xcc9   : > { %28440 = vrcp.f32 %v12497_v52  ;;  %27536 = vmatmul.mubr.msk.f32.vlgmr.msra.gmra.mxu0 %vm1581_vm3, %v12937_v27  ;;  %v36893_v52 = vld [vmem:[#allocation26_spill] sm:$0xff] }
 0xcca   : > { %v28435_v20 = vpop.eup %28434  ;;  %27544 = vmatpush3.msra.mxu0 %v20193_v61  ;;  %27545 = vmatprep.mubr.msk.f32.mxu0 %vm28751_vm2, %v36084_v48  ;;  %v36889_v61 = vld [vmem:[#allocation116_spill] sm:$0xff] }
 0xccb   : > { %v12938_v14 = vmul.f32 %v28435_v20, %v33715_v19  ;;  %27553 = vmatprep.subr.mxu0 %v36084_v48 }
 0xccc   : > { %v20573_v39 = vpop.permute.xlu1 %20572  ;;  %v12500_v1 = vpop.xlane.xlu0 %12499 }
 0xccd   : > { %21712 = vrot.lane.b32.xlu0 %v36887_v13, %s28752_s13  ;;  %28442 = vrcp.f32 %v12500_v1  ;;  %27541 = vmatmul.mubr.msk.f32.vlgmr.msra.gmra.mxu1 %vm1581_vm3, %v12938_v14 }
 0xcce   : > { %v28437_v49 = vpop.eup %28436  ;;  %27549 = vmatpush3.msra.mxu1 %v20269_v43  ;;  %27550 = vmatprep.mubr.msk.f32.mxu1 %vm28751_vm2, %v36084_v48 }
 0xccf   : > { %v12939_v42 = vmul.f32 %v28437_v49, %v36888_v24  ;;  %27558 = vmatprep.subr.mxu1 %v36084_v48 }
 0xcd0   : > { %v20649_v35 = vpop.permute.xlu1 %20648  ;;  %v12503_v19 = vpop.xlane.xlu0 %12502 }
 0xcd1   : > { %22244 = vrot.lane.b32.xlu0 %v36889_v61, %s28752_s13  ;;  %28444 = vrcp.f32 %v12503_v19  ;;  %27546 = vmatmul.mubr.msk.f32.vlgmr.msra.gmra.mxu0 %vm1581_vm3, %v12939_v42 }
 0xcd2   : > { %v28439_v40 = vpop.eup %28438  ;;  %27554 = vmatpush3.msra.mxu0 %v20345_v57  ;;  %27555 = vmatprep.mubr.msk.f32.mxu0 %vm28751_vm2, %v36084_v48 }
 0xcd3   : > { %v12940_v59 = vmul.f32 %v28439_v40, %v33731_v3  ;;  %27563 = vmatprep.subr.mxu0 %v36084_v48 }
 0xcd4   : > { %v20725_v50 = vpop.permute.xlu1 %20724  ;;  %v12506_v43 = vpop.xlane.xlu0 %12505 }
 0xcd5   : > { %22396 = vrot.lane.b32.xlu0 %v36890_v36, %s28752_s13  ;;  %28446 = vrcp.f32 %v12506_v43  ;;  %27551 = vmatmul.mubr.msk.f32.vlgmr.msra.gmra.mxu1 %vm1581_vm3, %v12940_v59 }
 0xcd6   : > { %v28441_v46 = vpop.eup %28440  ;;  %27559 = vmatpush3.msra.mxu1 %v20421_v2  ;;  %27560 = vmatprep.mubr.msk.f32.mxu1 %vm28751_vm2, %v36084_v48 }
 0xcd7   : > { %v12941_v57 = vmul.f32 %v28441_v46, %v36891_v58  ;;  %27568 = vmatprep.subr.mxu1 %v36084_v48 }
 0xcd8   : > { %v20801_v32 = vpop.permute.xlu1 %20800  ;;  %v34167_v3 = vpop.f32.mrf.mxu0 }
 0xcd9   : > { %v12509_v12 = vpop.xlane.xlu0 %12508  ;;  %22548 = vrot.lane.b32.xlu0 %v36892_v15, %s28752_s13  ;;  %27556 = vmatmul.mubr.msk.f32.vlgmr.msra.gmra.mxu0 %vm1581_vm3, %v12941_v57  ;;  %s23540_s13 = scalar_lea.vmem %s35687_s5, %s28740_s21 }
 0xcda   : > { %28448 = vrcp.f32 %v12509_v12  ;;  %v28443_v53 = vpop.eup %28442  ;;  %27564 = vmatpush3.msra.mxu0 %v20497_v4  ;;  %v27407_v2 = vpop.f32.mrf.mxu0  ;;  %27565 = vmatprep.mubr.msk.f32.mxu0 %vm28751_vm2, %v36084_v48 }
 0xcdb   : > { %v12942_v47 = vmul.f32 %v28443_v53, %v33749_v33  ;;  %27573 = vmatprep.subr.mxu0 %v36084_v48 }
 0xcdc   : > { %v20877_v23 = vpop.permute.xlu1 %20876 }
 0xcdd   : > { %v12512_v27 = vpop.xlane.xlu0 %12511  ;;  %22732 = vrot.lane.b32.xlu0 %v36893_v52, %s28757_s19  ;;  %27561 = vmatmul.mubr.msk.f32.vlgmr.msra.gmra.mxu1 %vm1581_vm3, %v12942_v47 }
 0xcde   : > { %28450 = vrcp.f32 %v12512_v27  ;;  %v28445_v20 = vpop.eup %28444  ;;  %27569 = vmatpush3.msra.mxu1 %v20573_v39  ;;  %27570 = vmatprep.mubr.msk.f32.mxu1 %vm28751_vm2, %v36084_v48 }
 0xcdf   : > { %v12943_v4 = vmul.f32 %v28445_v20, %v33758_v16  ;;  %27578 = vmatprep.subr.mxu1 %v36084_v48 }
 0xce0   : > { %v20953_v14 = vpop.permute.xlu1 %20952 }
 0xce1   : > { %v12515_v33 = vpop.xlane.xlu0 %12514  ;;  %22860 = vrot.lane.b32.xlu0 %v34085_v45, %s28758_s20  ;;  %27566 = vmatmul.mubr.msk.f32.vlgmr.msra.gmra.mxu0 %vm1581_vm3, %v12943_v4 }
 0xce2   : > { %28452 = vrcp.f32 %v12515_v33  ;;  %v28447_v1 = vpop.eup %28446  ;;  %27574 = vmatpush3.msra.mxu0 %v20649_v35  ;;  %27575 = vmatprep.mubr.msk.f32.mxu0 %vm28751_vm2, %v36084_v48 }
 0xce3   : > { %v12944_v39 = vmul.f32 %v28447_v1, %v33766_v9  ;;  %27583 = vmatprep.subr.mxu0 %v36084_v48 }
 0xce4   : > { %v21029_v13 = vpop.permute.xlu1 %21028  ;;  %v34189_v49 = vpop.f32.mrf.mxu1 }
 0xce5   : > { %v12518_v16 = vpop.xlane.xlu0 %12517  ;;  %27571 = vmatmul.mubr.msk.f32.vlgmr.msra.gmra.mxu1 %vm1581_vm3, %v12944_v39 }
 0xce6   : > { %28454 = vrcp.f32 %v12518_v16  ;;  %v27402_v45 = vpop.f32.mrf.mxu1  ;;  %27579 = vmatpush3.msra.mxu1 %v20725_v50  ;;  %27580 = vmatprep.mubr.msk.f32.mxu1 %vm28751_vm2, %v36084_v48 }
 0xce7   : > { %v28449_v24 = vpop.eup %28448  ;;  %27588 = vmatprep.subr.mxu1 %v36084_v48 }
 0xce8   : > { %v12945_v42 = vmul.f32 %v28449_v24, %v33777_v28  ;;  %v21105_v35 = vpop.permute.xlu1 %21104 }
 0xce9   : > { %v12521_v9 = vpop.xlane.xlu0 %12520 }
 0xcea   : > { %28456 = vrcp.f32 %v12521_v9  ;;  %27576 = vmatmul.mubr.msk.f32.vlgmr.msra.gmra.mxu0 %vm1581_vm3, %v12945_v42 }
 0xceb   : > { %v28451_v19 = vpop.eup %28450  ;;  %27584 = vmatpush3.msra.mxu0 %v20801_v32  ;;  %27585 = vmatprep.mubr.msk.f32.mxu0 %vm28751_vm2, %v36084_v48 }
 0xcec   : > { %v12946_v61 = vmul.f32 %v28451_v19, %v33788_v51  ;;  %v21181_v40 = vpop.permute.xlu1 %21180  ;;  %27593 = vmatprep.subr.mxu0 %v36084_v48 }
 0xced   : > { %v12524_v59 = vpop.xlane.xlu0 %12523 }
 0xcee   : > { %28458 = vrcp.f32 %v12524_v59  ;;  %27581 = vmatmul.mubr.msk.f32.vlgmr.msra.gmra.mxu1 %vm1581_vm3, %v12946_v61 }
 0xcef   : > { %v28453_v28 = vpop.eup %28452  ;;  %27589 = vmatpush3.msra.mxu1 %v20877_v23  ;;  %27590 = vmatprep.mubr.msk.f32.mxu1 %vm28751_vm2, %v36084_v48 }
 0xcf0   : > { %v12947_v50 = vmul.f32 %v28453_v28, %v33801_v34  ;;  %27598 = vmatprep.subr.mxu1 %v36084_v48  ;;  %v21257_v36 = vpop.permute.xlu1 %21256 }
 0xcf1   : > { %v12527_v43 = vpop.xlane.xlu0 %12526 }
 0xcf2   : > { %28460 = vrcp.f32 %v12527_v43  ;;  %27586 = vmatmul.mubr.msk.f32.vlgmr.msra.gmra.mxu0 %vm1581_vm3, %v12947_v50 }
 0xcf3   : > { %v28455_v51 = vpop.eup %28454  ;;  %27594 = vmatpush3.msra.mxu0 %v20953_v14  ;;  %27595 = vmatprep.mubr.msk.f32.mxu0 %vm28751_vm2, %v36084_v48 }
 0xcf4   : > { %v12948_v46 = vmul.f32 %v28455_v51, %v33814_v10  ;;  %27603 = vmatprep.subr.mxu0 %v36084_v48  ;;  %v21333_v32 = vpop.permute.xlu1 %21332 }
 0xcf5   : > { %v12530_v58 = vpop.xlane.xlu0 %12529 }
 0xcf6   : > { %28462 = vrcp.f32 %v12530_v58  ;;  %27591 = vmatmul.mubr.msk.f32.vlgmr.msra.gmra.mxu1 %vm1581_vm3, %v12948_v46 }
 0xcf7   : > { %v28457_v34 = vpop.eup %28456  ;;  %27599 = vmatpush3.msra.mxu1 %v21029_v13  ;;  %27600 = vmatprep.mubr.msk.f32.mxu1 %vm28751_vm2, %v36084_v48 }
 0xcf8   : > { %v12949_v57 = vmul.f32 %v28457_v34, %v33829_v44  ;;  %27608 = vmatprep.subr.mxu1 %v36084_v48  ;;  %v21409_v2 = vpop.permute.xlu1 %21408 }
 0xcf9   : > { %v12533_v12 = vpop.xlane.xlu0 %12532 }
 0xcfa   : > { %28464 = vrcp.f32 %v12533_v12  ;;  %27596 = vmatmul.mubr.msk.f32.vlgmr.msra.gmra.mxu0 %vm1581_vm3, %v12949_v57 }
 0xcfb   : > { %v28459_v10 = vpop.eup %28458  ;;  %27604 = vmatpush3.msra.mxu0 %v21105_v35  ;;  %27605 = vmatprep.mubr.msk.f32.mxu0 %vm28751_vm2, %v36084_v48 }
 0xcfc   : > { %v12950_v15 = vmul.f32 %v28459_v10, %v33845_v54  ;;  %27613 = vmatprep.subr.mxu0 %v36084_v48  ;;  %v21485_v52 = vpop.permute.xlu1 %21484 }
 0xcfd   : > { %v12536_v53 = vpop.xlane.xlu0 %12535 }
 0xcfe   : > { %28466 = vrcp.f32 %v12536_v53  ;;  %27601 = vmatmul.mubr.msk.f32.vlgmr.msra.gmra.mxu1 %vm1581_vm3, %v12950_v15 }
 0xcff   : > { %v28461_v44 = vpop.eup %28460  ;;  %27609 = vmatpush3.msra.mxu1 %v21181_v40  ;;  %27610 = vmatprep.mubr.msk.f32.mxu1 %vm28751_vm2, %v36084_v48 }
 0xd00   : > { %v12951_v47 = vmul.f32 %v28461_v44, %v33859_v41  ;;  %27618 = vmatprep.subr.mxu1 %v36084_v48  ;;  %v21561_v33 = vpop.permute.xlu1 %21560 }
 0xd01   : > { %v12539_v23 = vpop.xlane.xlu0 %12538 }
 0xd02   : > { %28468 = vrcp.f32 %v12539_v23  ;;  %27606 = vmatmul.mubr.msk.f32.vlgmr.msra.gmra.mxu0 %vm1581_vm3, %v12951_v47 }
 0xd03   : > { %v28463_v54 = vpop.eup %28462  ;;  %27614 = vmatpush3.msra.mxu0 %v21257_v36  ;;  %27615 = vmatprep.mubr.msk.f32.mxu0 %vm28751_vm2, %v36084_v48 }
 0xd04   : > { %v12952_v27 = vmul.f32 %v28463_v54, %v33876_v11  ;;  %27623 = vmatprep.subr.mxu0 %v36084_v48  ;;  %v21637_v16 = vpop.permute.xlu1 %21636 }
 0xd05   : > { %v12542_v20 = vpop.xlane.xlu0 %12541 }
 0xd06   : > { %28470 = vrcp.f32 %v12542_v20  ;;  %27611 = vmatmul.mubr.msk.f32.vlgmr.msra.gmra.mxu1 %vm1581_vm3, %v12952_v27 }
 0xd07   : > { %v28465_v41 = vpop.eup %28464  ;;  %27619 = vmatpush3.msra.mxu1 %v21333_v32  ;;  %27620 = vmatprep.mubr.msk.f32.mxu1 %vm28751_vm2, %v36084_v48 }
 0xd08   : > { %v12953_v4 = vmul.f32 %v28465_v41, %v33896_v31  ;;  %27628 = vmatprep.subr.mxu1 %v36084_v48  ;;  %v21789_v9 = vpop.permute.xlu1 %21788 }
 0xd09   : > { %v12545_v14 = vpop.xlane.xlu0 %12544 }
 0xd0a   : > { %28472 = vrcp.f32 %v12545_v14  ;;  %27616 = vmatmul.mubr.msk.f32.vlgmr.msra.gmra.mxu0 %vm1581_vm3, %v12953_v4 }
 0xd0b   : > { %v28467_v11 = vpop.eup %28466  ;;  %27624 = vmatpush3.msra.mxu0 %v21409_v2  ;;  %27625 = vmatprep.mubr.msk.f32.mxu0 %vm28751_vm2, %v36084_v48 }
 0xd0c   : > { %v12954_v1 = vmul.f32 %v28467_v11, %v33911_v8  ;;  %27633 = vmatprep.subr.mxu0 %v36084_v48  ;;  %v34266_v28 = vpop.permute.xlu1 %21864 }
 0xd0d   : > { %v12548_v39 = vpop.xlane.xlu0 %12547 }
 0xd0e   : > { %28474 = vrcp.f32 %v12548_v39  ;;  %27621 = vmatmul.mubr.msk.f32.vlgmr.msra.gmra.mxu1 %vm1581_vm3, %v12954_v1 }
 0xd0f   : > { %v28469_v31 = vpop.eup %28468  ;;  %27629 = vmatpush3.msra.mxu1 %v21485_v52  ;;  %27630 = vmatprep.mubr.msk.f32.mxu1 %vm28751_vm2, %v36084_v48 }
 0xd10   : > { %v12955_v13 = vmul.f32 %v28469_v31, %v33927_v62  ;;  %27638 = vmatprep.subr.mxu1 %v36084_v48  ;;  %v21941_v34 = vpop.permute.xlu1 %21940 }
 0xd11   : > { %v34247_v45 = vpop.xlane.xlu0 %12550  ;;  %v34249_v24 = vpop.f32.mrf.mxu0 }
 0xd12   : > { %27626 = vmatmul.mubr.msk.f32.vlgmr.msra.gmra.mxu0 %vm1581_vm3, %v12955_v13 }
 0xd13   : > { %v28471_v8 = vpop.eup %28470  ;;  %27634 = vmatpush3.msra.mxu0 %v21561_v33  ;;  %27635 = vmatprep.mubr.msk.f32.mxu0 %vm28751_vm2, %v36084_v48  ;;  %v27417_v35 = vpop.f32.mrf.mxu0 }
 0xd14   : > { %v12956_v42 = vmul.f32 %v28471_v8, %v33941_v56  ;;  %27643 = vmatprep.subr.mxu0 %v36084_v48  ;;  %v34285_v44 = vpop.permute.xlu1 %22016 }
 0xd15   : > { %v12554_v62 = vpop.xlane.xlu0 %12553 }
 0xd16   : > { %28476 = vrcp.f32 %v12554_v62  ;;  %27631 = vmatmul.mubr.msk.f32.vlgmr.msra.gmra.mxu1 %vm1581_vm3, %v12956_v42 }
 0xd17   : > { %v28473_v19 = vpop.eup %28472  ;;  %27639 = vmatpush3.msra.mxu1 %v21637_v16  ;;  %27640 = vmatprep.mubr.msk.f32.mxu1 %vm28751_vm2, %v36084_v48 }
 0xd18   : > { %v12957_v61 = vmul.f32 %v28473_v19, %v33954_v6  ;;  %27648 = vmatprep.subr.mxu1 %v36084_v48  ;;  %v22093_v4 = vpop.permute.xlu1 %22092 }
 0xd19   : > { %v12557_v40 = vpop.xlane.xlu0 %12556  ;;  %v34261_v59 = vpop.f32.mrf.mxu0 }
 0xd1a   : > { %27636 = vmatmul.mubr.msk.f32.vlgmr.msra.gmra.mxu0 %vm1581_vm3, %v12957_v61 }
 0xd1b   : > { %v28475_v56 = vpop.eup %28474  ;;  %27645 = vmatprep.mubr.msk.f32.mxu0 %vm28751_vm2, %v36084_v48  ;;  %v27427_v43 = vpop.f32.mrf.mxu0 }
 0xd1c   : > { %v12958_v50 = vmul.f32 %v28475_v56, %v33967_v37 }
 0xd1d   : > { %v12560_v36 = vpop.xlane.xlu0 %12559  ;;  %v34269_v51 = vpop.f32.mrf.mxu1 }
 0xd1e   : > { %28478 = vrcp.f32 %v12560_v36  ;;  %27641 = vmatmul.mubr.msk.f32.vlgmr.msra.gmra.mxu1 %vm1581_vm3, %v12958_v50 }
 0xd1f   : > { %27649 = vmatpush3.msra.mxu1 %v21789_v9  ;;  %v27412_v6 = vpop.f32.mrf.mxu1  ;;  %27650 = vmatprep.mubr.msk.f32.mxu1 %vm28751_vm2, %v36084_v48 }
 0xd20   : > { %27658 = vmatprep.subr.mxu1 %v36084_v48 }
 0xd21   : > { %v12563_v46 = vpop.xlane.xlu0 %12562  ;;  %v34275_v58 = vpop.f32.mrf.mxu1 }
 0xd22   : > { %v34277_v57 = vpop.f32.mrf.mxu0 }
 0xd23   : > { %v28477_v37 = vpop.eup %28476  ;;  %v27422_v32 = vpop.f32.mrf.mxu1 }
 0xd24   : > { %v12960_v12 = vmul.f32 %v28477_v37, %v33993_v63  ;;  %v27437_v10 = vpop.f32.mrf.mxu0 }
 0xd25   : > { %v12566_v15 = vpop.xlane.xlu0 %12565  ;;  %v34280_v53 = vpop.f32.mrf.mxu1 }
 0xd26   : > { %28480 = vrcp.f32 %v12566_v15  ;;  %27651 = vmatmul.mubr.msk.f32.vlgmr.msra.gmra.mxu1 %vm1581_vm3, %v12960_v12 }
 0xd27   : > { %27659 = vmatpush3.msra.mxu1 %v21941_v34  ;;  %v27432_v2 = vpop.f32.mrf.mxu1  ;;  %27660 = vmatprep.mubr.msk.f32.mxu1 %vm28751_vm2, %v36084_v48  ;;  %28482 = vrcp.f32 %v34247_v45 }
 0xd28   : > { %27668 = vmatprep.subr.mxu1 %v36084_v48  ;;  %28484 = vrcp.f32 %v12557_v40 }
 0xd29   : > { %v12569_v47 = vpop.xlane.xlu0 %12568  ;;  %v34288_v23 = vpop.f32.mrf.mxu1 }
 0xd2a   : > { %v34290_v63 = vpop.f32.mrf.mxu0 }
 0xd2b   : > { %v28479_v54 = vpop.eup %28478  ;;  %v27442_v27 = vpop.f32.mrf.mxu1 }
 0xd2c   : > { %v12962_v52 = vmul.f32 %v28479_v54, %v34013_v0  ;;  %v27447_v20 = vpop.f32.mrf.mxu0 }
 0xd2d   : > { %v12572_v41 = vpop.xlane.xlu0 %12571  ;;  %v34293_v14 = vpop.f32.mrf.mxu1 }
 0xd2e   : > { %27661 = vmatmul.mubr.msk.f32.vlgmr.msra.gmra.mxu1 %vm1581_vm3, %v12962_v52  ;;  %28486 = vrcp.f32 %v12572_v41 }
 0xd2f   : > { %27669 = vmatpush3.msra.mxu1 %v22093_v4  ;;  %27670 = vmatprep.mubr.msk.f32.mxu1 %vm28751_vm2, %v36084_v48  ;;  %v27452_v33 = vpop.f32.mrf.mxu1  ;;  %28488 = vrcp.f32 %v12563_v46 }
 0xd30   : > { %27678 = vmatprep.subr.mxu1 %v36084_v48 }
 0xd31   : > { %v12575_v11 = vpop.xlane.xlu0 %12574  ;;  %v34299_v1 = vpop.f32.mrf.mxu0 }
 0xd33   : > { %v28481_v39 = vpop.eup %28480  ;;  %v27457_v31 = vpop.f32.mrf.mxu0 }
 0xd34   : > { %v12964_v0 = vmul.f32 %v28481_v39, %v34029_v38  ;;  %v28483_v61 = vpop.eup %28482 }
 0xd35   : > { %v12578_v13 = vpop.xlane.xlu0 %12577  ;;  %v34303_v16 = vpop.f32.mrf.mxu1  ;;  %v12959_v43 = vmul.f32 %v28483_v61, %v33980_v30 }
 0xd36   : > { %27671 = vmatmul.mubr.msk.f32.vlgmr.msra.gmra.mxu1 %vm1581_vm3, %v12964_v0  ;;  %28490 = vrcp.f32 %v12578_v13  ;;  %v28485_v40 = vpop.eup %28484  ;;  %v22169_v30 = vpop.permute.xlu1 %22168 }
 0xd37   : > { %27680 = vmatprep.mubr.msk.f32.mxu1 %vm28751_vm2, %v36084_v48  ;;  %v27462_v8 = vpop.f32.mrf.mxu1  ;;  %28492 = vrcp.f32 %v12569_v47  ;;  %v12961_v32 = vmul.f32 %v28485_v40, %v34004_v60 }
 0xd39   : > { %v12581_v42 = vpop.xlane.xlu0 %12580  ;;  %v34308_v35 = vpop.f32.mrf.mxu0 }
 0xd3b   : > { %v27467_v62 = vpop.f32.mrf.mxu0  ;;  %v28487_v6 = vpop.eup %28486 }
 0xd3c   : > { %v28489_v37 = vpop.eup %28488  ;;  %v12966_v12 = vmul.f32 %v28487_v6, %v34042_v29  ;;  %v23186_v6 = vld [vmem:[%s23182_s27 + $0x18] sm:$0xff] }
 0xd3d   : > { %v12584_v38 = vpop.xlane.xlu0 %12583  ;;  %v34310_v9 = vpop.f32.mrf.mxu1  ;;  %v12963_v60 = vmul.f32 %v28489_v37, %v34021_v55 }
 0xd3e   : > { %28494 = vrcp.f32 %v12584_v38 }
 0xd3f   : > { %v27472_v45 = vpop.f32.mrf.mxu1  ;;  %28496 = vrcp.f32 %v12575_v11 }
 0xd40   : > { %28498 = vrcp.f32 %v12581_v42 }
 0xd41   : > { %v12587_v19 = vpop.xlane.xlu0 %12586  ;;  %v34312_v56 = vpop.f32.mrf.mxu0 }
 0xd42   : > { %28500 = vrcp.f32 %v12587_v19 }
 0xd43   : > { %v27477_v50 = vpop.f32.mrf.mxu0  ;;  %v28491_v15 = vpop.eup %28490 }
 0xd44   : > { %v12968_v2 = vmul.f32 %v28491_v15, %v34071_v5 }
 0xd45   : > { %v21713_v36 = vpop.permute.xlu0 %21712  ;;  %v34315_v46 = vpop.f32.mrf.mxu1 }
 0xd46   : > { %27644 = vmatpush3.msra.mxu0 %v21713_v36 }
 0xd47   : > { %27646 = vmatmul.mubr.msk.f32.vlgmr.msra.gmra.mxu0 %vm1581_vm3, %v12959_v43  ;;  %27653 = vmatprep.subr.mxu0 %v36084_v48  ;;  %v27482_v34 = vpop.f32.mrf.mxu1 }
 0xd48   : > { %27654 = vmatpush3.msra.mxu0 %v34266_v28  ;;  %27655 = vmatprep.mubr.msk.f32.mxu0 %vm28751_vm2, %v36084_v48  ;;  %v28493_v28 = vpop.eup %28492  ;;  %v23185_v34 = vld [vmem:[%s23182_s27 + $0x10] sm:$0xff] }
 0xd49   : > { %v22245_v10 = vpop.permute.xlu0 %22244  ;;  %27663 = vmatprep.subr.mxu0 %v36084_v48  ;;  %v12965_v55 = vmul.f32 %v28493_v28, %v34037_v25 }
 0xd4a   : > { %27679 = vmatpush3.msra.mxu1 %v22245_v10  ;;  %v23183_v10 = vld [vmem:[%s23182_s27] sm:$0xff] }
 0xd4b   : > { %27656 = vmatmul.mubr.msk.f32.vlgmr.msra.gmra.mxu0 %vm1581_vm3, %v12961_v32  ;;  %27681 = vmatmul.mubr.msk.f32.vlgmr.msra.gmra.mxu1 %vm1581_vm3, %v12966_v12  ;;  %v28495_v47 = vpop.eup %28494  ;;  %v23184_v32 = vld [vmem:[%s23182_s27 + $0x8] sm:$0xff] }
 0xd4c   : > { %27664 = vmatpush3.msra.mxu0 %v34285_v44  ;;  %27688 = vmatprep.subr.mxu1 %v36084_v48  ;;  %v22321_v44 = vpop.permute.xlu1 %22320  ;;  %v12970_v5 = vmul.f32 %v28495_v47, %v34091_v7  ;;  %v28497_v27 = vpop.eup %28496 }
 0xd4d   : > { %v22397_v29 = vpop.permute.xlu0 %22396  ;;  %27665 = vmatprep.mubr.msk.f32.mxu0 %vm28751_vm2, %v36084_v48  ;;  %27673 = vmatprep.subr.mxu0 %v36084_v48  ;;  %v12967_v7 = vmul.f32 %v28497_v27, %v34056_v17  ;;  %v28499_v52 = vpop.eup %28498 }
 0xd4e   : > { %27689 = vmatpush3.msra.mxu1 %v22397_v29  ;;  %27690 = vmatprep.mubr.msk.f32.mxu1 %vm28751_vm2, %v36084_v48  ;;  %v12969_v20 = vmul.f32 %v28499_v52, %v34082_v18 }
 0xd4f   : > { %27666 = vmatmul.mubr.msk.f32.vlgmr.msra.gmra.mxu0 %vm1581_vm3, %v12963_v60  ;;  %27691 = vmatmul.mubr.msk.f32.vlgmr.msra.gmra.mxu1 %vm1581_vm3, %v12968_v2  ;;  %v28501_v41 = vpop.eup %28500 }
 0xd50   : > { %27674 = vmatpush3.msra.mxu0 %v22169_v30  ;;  %27698 = vmatprep.subr.mxu1 %v36084_v48  ;;  %v22473_v25 = vpop.permute.xlu1 %22472  ;;  %v12971_v17 = vmul.f32 %v28501_v41, %v34101_v22 }
 0xd51   : > { %v22549_v54 = vpop.permute.xlu0 %22548  ;;  %27675 = vmatprep.mubr.msk.f32.mxu0 %vm28751_vm2, %v36084_v48  ;;  %27683 = vmatprep.subr.mxu0 %v36084_v48 }
 0xd52   : > { %27699 = vmatpush3.msra.mxu1 %v22549_v54  ;;  %27700 = vmatprep.mubr.msk.f32.mxu1 %vm28751_vm2, %v36084_v48  ;;  %v36895_v54 = vld [vmem:[#allocation189_spill] sm:$0xff] }
 0xd53   : > { %27676 = vmatmul.mubr.msk.f32.vlgmr.msra.gmra.mxu0 %vm1581_vm3, %v12965_v55  ;;  %27701 = vmatmul.mubr.msk.f32.vlgmr.msra.gmra.mxu1 %vm1581_vm3, %v12970_v5 }
 0xd54   : > { %27684 = vmatpush3.msra.mxu0 %v22321_v44  ;;  %27685 = vmatprep.mubr.msk.f32.mxu0 %vm28751_vm2, %v36084_v48  ;;  %v22625_v4 = vpop.permute.xlu1 %22624  ;;  %v36894_v44 = vld [vmem:[#allocation32_spill] sm:$0xff] }
 0xd55   : > { %27693 = vmatprep.subr.mxu0 %v36084_v48  ;;  %27884 = vmatprep.subr.mxu1 %v23186_v6 }
 0xd56   : > { %27888 = vmatpush3.msra.mxu1 %v23186_v6 }
 0xd57   : > { %27686 = vmatmul.mubr.msk.f32.vlgmr.msra.gmra.mxu0 %vm1581_vm3, %v12967_v7  ;;  %27885 = vmatprep.subr.mxu1 %v23185_v34 }
 0xd58   : > { %27694 = vmatpush3.msra.mxu0 %v22473_v25  ;;  %27695 = vmatprep.mubr.msk.f32.mxu0 %vm28751_vm2, %v36084_v48 }
 0xd59   : > { %27703 = vmatprep.subr.mxu0 %v36084_v48  ;;  %27889 = vmatpush3.msra.mxu1 %v23185_v34 }
 0xd5a   : > { %27886 = vmatprep.subr.mxu1 %v23184_v32 }
 0xd5b   : > { %27696 = vmatmul.mubr.msk.f32.vlgmr.msra.gmra.mxu0 %vm1581_vm3, %v12969_v20  ;;  %27890 = vmatpush3.msra.mxu1 %v23184_v32  ;;  %v36896_v20 = vld [vmem:[#allocation157_spill] sm:$0xff] }
 0xd5c   : > { %27704 = vmatpush3.msra.mxu0 %v22625_v4  ;;  %27705 = vmatprep.mubr.msk.f32.mxu0 %vm28751_vm2, %v36084_v48 }
 0xd5d   : > { %27708 = vmatprep.subr.mxu0 %v23186_v6  ;;  %27887 = vmatprep.subr.mxu1 %v23183_v10 }
 0xd5e   : > { %27891 = vmatpush3.msra.mxu1 %v23183_v10 }
 0xd5f   : > { %27706 = vmatmul.mubr.msk.f32.vlgmr.msra.gmra.mxu0 %vm1581_vm3, %v12971_v17 }
 0xd60   : > { %27709 = vmatpush3.msra.mxu0 %v23186_v6 }
 0xd61   : > { %v34362_v33 = vpop.f32.mrf.mxu0  ;;  %27710 = vmatprep.subr.mxu0 %v23185_v34 }
 0xd62   : > { %27711 = vmatpush3.msra.mxu0 %v23185_v34 }
 0xd63   : > { %v27487_v11 = vpop.f32.mrf.mxu0  ;;  %27712 = vmatprep.subr.mxu0 %v23184_v32 }
 0xd64   : > { %27713 = vmatpush3.msra.mxu0 %v23184_v32 }
 0xd65   : > { %v34364_v39 = vpop.f32.mrf.mxu1  ;;  %27714 = vmatprep.subr.mxu0 %v23183_v10 }
 0xd66   : > { %27715 = vmatpush3.msra.mxu0 %v23183_v10  ;;  %v36902_v10 = vld [vmem:[#allocation151_spill] sm:$0xff] }
 0xd67   : > { %v27492_v18 = vpop.f32.mrf.mxu1 }
 0xd69   : > { %v34366_v0 = vpop.f32.mrf.mxu0 }
 0xd6b   : > { %v27497_v31 = vpop.f32.mrf.mxu0 }
 0xd6c   : > { %v36898_v31 = vld [vmem:[#allocation196_spill] sm:$0xff] }
 0xd6d   : > { %v34368_v13 = vpop.f32.mrf.mxu1 }
 0xd6f   : > { %v27502_v8 = vpop.f32.mrf.mxu1 }
 0xd71   : > { %v34370_v42 = vpop.f32.mrf.mxu0 }
 0xd73   : > { %v27507_v48 = vpop.f32.mrf.mxu0 }
 0xd75   : > { %v34372_v62 = vpop.f32.mrf.mxu1 }
 0xd77   : > { %v27512_v22 = vpop.f32.mrf.mxu1 }
 0xd79   : > { %v34374_v38 = vpop.f32.mrf.mxu0 }
 0xd7b   : > { %v27517_v45 = vpop.f32.mrf.mxu0 }
 0xd7d   : > { %v34376_v19 = vpop.f32.mrf.mxu1 }
 0xd7f   : > { %v27522_v61 = vpop.f32.mrf.mxu1 }
 0xd81   : > { %v34378_v50 = vpop.f32.mrf.mxu0 }
 0xd83   : > { %v27527_v40 = vpop.f32.mrf.mxu0 }
 0xd84   : > { %v36900_v40 = vld [vmem:[#allocation46_spill] sm:$0xff] }
 0xd85   : > { %v34380_v43 = vpop.f32.mrf.mxu1 }
 0xd87   : > { %v27532_v36 = vpop.f32.mrf.mxu1 }
 0xd89   : > { %v34386_v37 = vpop.f32.mrf.mxu0 }
 0xd8b   : > { %v27537_v30 = vpop.f32.mrf.mxu0 }
 0xd8d   : > { %v34388_v12 = vpop.f32.mrf.mxu1 }
 0xd8f   : > { %v27542_v15 = vpop.f32.mrf.mxu1 }
 0xd91   : > { %v34390_v28 = vpop.f32.mrf.mxu0 }
 0xd93   : > { %v27547_v60 = vpop.f32.mrf.mxu0 }
 0xd95   : > { %v20340_v2 = vpop.f32.mrf.mxu1 }
 0xd96   : > { %22988 = vrot.lane.b32.xlu0 %v20340_v2, %s28759_s28 }
 0xd97   : > { %v27552_v29 = vpop.f32.mrf.mxu1 }
 0xd99   : > { %v20416_v47 = vpop.f32.mrf.mxu0 }
 0xd9a   : > { %22736 = vrot.lane.b32.xlu0 %v36894_v44, %s28757_s19  ;;  %22990 = vrot.lane.b32.xlu1 %v20416_v47, %s28759_s28  ;;  %v36904_v44 = vld [vmem:[#allocation201_spill] sm:$0xff] }
 0xd9b   : > { %v27557_v55 = vpop.f32.mrf.mxu0 }
 0xd9d   : > { %v20492_v5 = vpop.f32.mrf.mxu1 }
 0xd9e   : > { %22864 = vrot.lane.b32.xlu0 %v34189_v49, %s28758_s20  ;;  %22738 = vrot.lane.b32.xlu1 %v36895_v54, %s28757_s19  ;;  %v36897_v49 = vld [vmem:[#allocation149_spill] sm:$0xff] }
 0xd9f   : > { %v27562_v27 = vpop.f32.mrf.mxu1 }
 0xda1   : > { %v20568_v25 = vpop.f32.mrf.mxu0 }
 0xda2   : > { %22866 = vrot.lane.b32.xlu1 %v34167_v3, %s28758_s20  ;;  %22992 = vrot.lane.b32.xlu0 %v20492_v5, %s28759_s28 }
 0xda3   : > { %v27567_v7 = vpop.f32.mrf.mxu0 }
 0xda5   : > { %v20644_v52 = vpop.f32.mrf.mxu1 }
 0xda6   : > { %22740 = vrot.lane.b32.xlu0 %v36896_v20, %s28757_s19  ;;  %22994 = vrot.lane.b32.xlu1 %v20568_v25, %s28759_s28  ;;  %v36906_v25 = vld [vmem:[#allocation103_spill] sm:$0xff]  ;;  %v36908_v20 = vld [vmem:[#allocation168_spill] sm:$0xff] }
 0xda7   : > { %v27572_v41 = vpop.f32.mrf.mxu1 }
 0xdaa   : > { %v20720_v4 = vpop.f32.mrf.mxu0  ;;  %22868 = vrot.lane.b32.xlu0 %v34269_v51, %s28758_s20  ;;  %22742 = vrot.lane.b32.xlu1 %v36897_v49, %s28757_s19  ;;  %v36899_v51 = vld [vmem:[#allocation49_spill] sm:$0xff]  ;;  %v36910_v49 = vld [vmem:[#allocation72_spill] sm:$0xff] }
 0xdac   : > { %v27577_v17 = vpop.f32.mrf.mxu0 }
 0xdad   : > { %v22733_v17 = vpop.permute.xlu0 %22732 }
 0xdae   : > { %v20796_v11 = vpop.f32.mrf.mxu1  ;;  %22870 = vrot.lane.b32.xlu1 %v34249_v24, %s28758_s20  ;;  %22996 = vrot.lane.b32.xlu0 %v20644_v52, %s28759_s28 }
 0xdb0   : > { %v27582_v3 = vpop.f32.mrf.mxu1 }
 0xdb1   : > { %v36912_v3 = vld [vmem:[#allocation210_spill] sm:$0xff] }
 0xdb2   : > { %v20872_v18 = vpop.f32.mrf.mxu0  ;;  %22744 = vrot.lane.b32.xlu0 %v36898_v31, %s28757_s19  ;;  %22998 = vrot.lane.b32.xlu1 %v20720_v4, %s28759_s28 }
 0xdb4   : > { %v27587_v8 = vpop.f32.mrf.mxu0 }
 0xdb5   : > { %v36913_v8 = vld [vmem:[#allocation60_spill] sm:$0xff] }
 0xdb6   : > { %v20948_v48 = vpop.f32.mrf.mxu1  ;;  %22872 = vrot.lane.b32.xlu0 %v34275_v58, %s28758_s20  ;;  %22746 = vrot.lane.b32.xlu1 %v36899_v51, %s28757_s19  ;;  %v36901_v58 = vld [vmem:[#allocation209_spill] sm:$0xff] }
 0xdb8   : > { %v27592_v22 = vpop.f32.mrf.mxu1 }
 0xdba   : > { %v21024_v45 = vpop.f32.mrf.mxu0  ;;  %22874 = vrot.lane.b32.xlu1 %v34261_v59, %s28758_s20  ;;  %23000 = vrot.lane.b32.xlu0 %v20796_v11, %s28759_s28  ;;  %v22735_v11 = vpop.permute.xlu1 %22734 }
 0xdbc   : > { %v27597_v24 = vpop.f32.mrf.mxu0 }
 0xdbe   : > { %v21100_v61 = vpop.f32.mrf.mxu1  ;;  %22748 = vrot.lane.b32.xlu0 %v36900_v40, %s28757_s19  ;;  %23002 = vrot.lane.b32.xlu1 %v20872_v18, %s28759_s28  ;;  %v22863_v31 = vpop.permute.xlu1 %22862 }
 0xdc0   : > { %v27602_v36 = vpop.f32.mrf.mxu1 }
 0xdc1   : > { %v36915_v36 = vld [vmem:[#allocation14_spill] sm:$0xff] }
 0xdc2   : > { %v21176_v6 = vpop.f32.mrf.mxu0  ;;  %22876 = vrot.lane.b32.xlu0 %v34280_v53, %s28758_s20  ;;  %22750 = vrot.lane.b32.xlu1 %v36901_v58, %s28757_s19  ;;  %v36903_v53 = vld [vmem:[#allocation159_spill] sm:$0xff] }
 0xdc4   : > { %v27607_v34 = vpop.f32.mrf.mxu0 }
 0xdc6   : > { %v21252_v32 = vpop.f32.mrf.mxu1  ;;  %22878 = vrot.lane.b32.xlu1 %v34277_v57, %s28758_s20  ;;  %23004 = vrot.lane.b32.xlu0 %v20948_v48, %s28759_s28 }
 0xdc8   : > { %v27612_v59 = vpop.f32.mrf.mxu1 }
 0xdca   : > { %v21328_v30 = vpop.f32.mrf.mxu0  ;;  %22752 = vrot.lane.b32.xlu0 %v36902_v10, %s28757_s19  ;;  %23006 = vrot.lane.b32.xlu1 %v21024_v45, %s28759_s28 }
 0xdcc   : > { %v27617_v15 = vpop.f32.mrf.mxu0 }
 0xdce   : > { %v21404_v60 = vpop.f32.mrf.mxu1  ;;  %22880 = vrot.lane.b32.xlu0 %v34288_v23, %s28758_s20  ;;  %22754 = vrot.lane.b32.xlu1 %v36903_v53, %s28757_s19  ;;  %v36905_v23 = vld [vmem:[#allocation219_spill] sm:$0xff] }
 0xdd0   : > { %v27622_v2 = vpop.f32.mrf.mxu1 }
 0xdd2   : > { %v21480_v29 = vpop.f32.mrf.mxu0  ;;  %22882 = vrot.lane.b32.xlu1 %v34290_v63, %s28758_s20  ;;  %23008 = vrot.lane.b32.xlu0 %v21100_v61, %s28759_s28  ;;  %v36914_v61 = vld [vmem:[#allocation8_spill] sm:$0xff] }
 0xdd3   : > { %v23085_v40 = vsel %vm1581_vm3, %v36914_v61, %v22735_v11 }
 0xdd4   : > { %v27627_v57 = vpop.f32.mrf.mxu0 }
 0xdd6   : > { %v21556_v47 = vpop.f32.mrf.mxu1  ;;  %22756 = vrot.lane.b32.xlu0 %v36904_v44, %s28757_s19  ;;  %23010 = vrot.lane.b32.xlu1 %v21176_v6, %s28759_s28  ;;  %v23118_v6 = vsel %vm23116_vm5, %v23085_v40, %v22863_v31  ;;  %v36917_v44 = vld [vmem:[#allocation52_spill] sm:$0xff] }
 0xdd8   : > { %v27632_v55 = vpop.f32.mrf.mxu1 }
 0xdda   : > { %v21632_v5 = vpop.f32.mrf.mxu0  ;;  %22884 = vrot.lane.b32.xlu0 %v34293_v14, %s28758_s20  ;;  %22758 = vrot.lane.b32.xlu1 %v36905_v23, %s28757_s19  ;;  %v36907_v14 = vld [vmem:[#allocation71_spill] sm:$0xff] }
 0xddc   : > { %v27637_v54 = vpop.f32.mrf.mxu0 }
 0xdde   : > { %v21708_v27 = vpop.f32.mrf.mxu1  ;;  %22886 = vrot.lane.b32.xlu1 %v34299_v1, %s28758_s20  ;;  %23012 = vrot.lane.b32.xlu0 %v21252_v32, %s28759_s28 }
 0xde0   : > { %v27642_v63 = vpop.f32.mrf.mxu1 }
 0xde2   : > { %22760 = vrot.lane.b32.xlu0 %v36906_v25, %s28757_s19  ;;  %23014 = vrot.lane.b32.xlu1 %v21328_v30, %s28759_s28 }
 0xde6   : > { %v21860_v7 = vpop.f32.mrf.mxu1  ;;  %22888 = vrot.lane.b32.xlu0 %v34303_v16, %s28758_s20  ;;  %22762 = vrot.lane.b32.xlu1 %v36907_v14, %s28757_s19  ;;  %v36909_v16 = vld [vmem:[#allocation153_spill] sm:$0xff] }
 0xde8   : > { %v27652_v52 = vpop.f32.mrf.mxu1 }
 0xde9   : > { %v36919_v52 = vld [vmem:[#allocation80_spill] sm:$0xff] }
 0xdea   : > { %22890 = vrot.lane.b32.xlu1 %v34308_v35, %s28758_s20  ;;  %23016 = vrot.lane.b32.xlu0 %v21404_v60, %s28759_s28 }
 0xdee   : > { %v34463_v1 = vpop.f32.mrf.mxu1  ;;  %22764 = vrot.lane.b32.xlu0 %v36908_v20, %s28757_s19  ;;  %23018 = vrot.lane.b32.xlu1 %v21480_v29, %s28759_s28  ;;  %v36916_v29 = vld [vmem:[#allocation29_spill] sm:$0xff] }
 0xdf0   : > { %v27662_v41 = vpop.f32.mrf.mxu1 }
 0xdf2   : > { %22892 = vrot.lane.b32.xlu0 %v34310_v9, %s28758_s20  ;;  %22766 = vrot.lane.b32.xlu1 %v36909_v16, %s28757_s19  ;;  %v36911_v9 = vld [vmem:[#allocation226_spill] sm:$0xff] }
 0xdf6   : > { %v34472_v4 = vpop.f32.mrf.mxu1  ;;  %22894 = vrot.lane.b32.xlu1 %v34312_v56, %s28758_s20  ;;  %23020 = vrot.lane.b32.xlu0 %v21556_v47, %s28759_s28  ;;  %v22861_v56 = vpop.permute.xlu0 %22860 }
 0xdf8   : > { %v27672_v35 = vpop.f32.mrf.mxu1 }
 0xdfa   : > { %22768 = vrot.lane.b32.xlu0 %v36910_v49, %s28757_s19  ;;  %23022 = vrot.lane.b32.xlu1 %v21632_v5, %s28759_s28 }
 0xdfe   : > { %22896 = vrot.lane.b32.xlu0 %v34315_v46, %s28758_s20  ;;  %22770 = vrot.lane.b32.xlu1 %v36911_v9, %s28757_s19  ;;  %v23084_v46 = vsel %vm1581_vm3, %v36913_v8, %v22733_v17 }
 0xdff   : > { %v23117_v48 = vsel %vm23116_vm5, %v23084_v46, %v22861_v56  ;;  %v36920_v56 = vld [vmem:[#allocation214_spill] sm:$0xff] }
 0xe02   : > { %22898 = vrot.lane.b32.xlu1 %v34362_v33, %s28758_s20  ;;  %23024 = vrot.lane.b32.xlu0 %v21708_v27, %s28759_s28 }
 0xe06   : > { %22772 = vrot.lane.b32.xlu0 %v36912_v3, %s28757_s19 }
 0xe07   : > { %v21784_v18 = vpop.f32.mrf.mxu0 }
 0xe08   : > { %23026 = vrot.lane.b32.xlu1 %v21784_v18, %s28759_s28  ;;  %v22989_v22 = vpop.permute.xlu0 %22988  ;;  %v36921_v18 = vld [vmem:[#allocation28_spill] sm:$0xff] }
 0xe09   : > { %v27647_v51 = vpop.f32.mrf.mxu0  ;;  %v23150_v33 = vsel %vm23149_vm4, %v23117_v48, %v22989_v22 }
 0xe0a   : > { %22900 = vrot.lane.b32.xlu0 %v34364_v39, %s28758_s20  ;;  %27716 = vmatprep.mubr.msk.f32.mxu0 %vm534_vm1, %v23150_v33  ;;  %v36922_v51 = vld [vmem:[#allocation25_spill] sm:$0xff]  ;;  %v36923_v33 = vld [vmem:[#allocation230_spill] sm:$0xff] }
 0xe0b   : > { %v21936_v45 = vpop.f32.mrf.mxu0  ;;  %v34496_v24 = vpop.f32.mrf.mxu1 }
 0xe0c   : > { %22774 = vrot.lane.b32.xlu1 %v36915_v36, %s28757_s19  ;;  %v22991_v58 = vpop.permute.xlu1 %22990  ;;  %v22737_v30 = vpop.permute.xlu0 %22736 }
 0xe0d   : > { %v27657_v34 = vpop.f32.mrf.mxu0  ;;  %v23151_v32 = vsel %vm23149_vm4, %v23118_v6, %v22991_v58  ;;  %v27682_v59 = vpop.f32.mrf.mxu1  ;;  %v23086_v55 = vsel %vm1581_vm3, %v36917_v44, %v22737_v30  ;;  %v36924_v58 = vld [vmem:[#allocation47_spill] sm:$0xff] }
 0xe0e   : > { %23028 = vrot.lane.b32.xlu0 %v21860_v7, %s28759_s28  ;;  %27717 = vmatmul.mubr.msk.f32.vlgmr.msra.gmra.mxu0 %vm534_vm1, %v23151_v32  ;;  %v36918_v7 = vld [vmem:[#allocation17_spill] sm:$0xff]  ;;  %v36925_v34 = vld [vmem:[#allocation232_spill] sm:$0xff] }
 0xe0f   : > { %v22088_v39 = vpop.f32.mrf.mxu0  ;;  %v34507_v10 = vpop.f32.mrf.mxu1 }
 0xe10   : > { %22902 = vrot.lane.b32.xlu1 %v34366_v0, %s28758_s20  ;;  %v22739_v15 = vpop.permute.xlu1 %22738  ;;  %v22865_v2 = vpop.permute.xlu0 %22864 }
 0xe11   : > { %v27667_v60 = vpop.f32.mrf.mxu0  ;;  %v27692_v53 = vpop.f32.mrf.mxu1  ;;  %v23119_v54 = vsel %vm23116_vm5, %v23086_v55, %v22865_v2  ;;  %v23087_v14 = vsel %vm1581_vm3, %v36918_v7, %v22739_v15  ;;  %v36928_v55 = vld [vmem:[#allocation98_spill] sm:$0xff]  ;;  %v36931_v7 = vld [vmem:[#allocation104_spill] sm:$0xff] }
 0xe12   : > { %22776 = vrot.lane.b32.xlu0 %v36916_v29, %s28757_s19  ;;  %v36927_v60 = vld [vmem:[#allocation92_spill] sm:$0xff] }
 0xe13   : > { %v22240_v57 = vpop.f32.mrf.mxu0  ;;  %v34513_v47 = vpop.f32.mrf.mxu1 }
 0xe14   : > { %23030 = vrot.lane.b32.xlu1 %v21936_v45, %s28759_s28  ;;  %v22867_v5 = vpop.permute.xlu1 %22866  ;;  %v22993_v27 = vpop.permute.xlu0 %22992 }
 0xe15   : > { %v27677_v23 = vpop.f32.mrf.mxu0  ;;  %v27702_v0 = vpop.f32.mrf.mxu1  ;;  %v23152_v63 = vsel %vm23149_vm4, %v23119_v54, %v22993_v27  ;;  %v23120_v20 = vsel %vm23116_vm5, %v23087_v14, %v22867_v5  ;;  %v36929_v5 = vld [vmem:[#allocation233_spill] sm:$0xff] }
 0xe16   : > { %22904 = vrot.lane.b32.xlu0 %v34368_v13, %s28758_s20  ;;  %27719 = vmatprep.mubr.msk.f32.mxu0 %vm534_vm1, %v23152_v63 }
 0xe17   : > { %v22392_v25 = vpop.f32.mrf.mxu0 }
 0xe18   : > { %22778 = vrot.lane.b32.xlu1 %v36919_v52, %s28757_s19  ;;  %v22995_v41 = vpop.permute.xlu1 %22994  ;;  %v22741_v49 = vpop.permute.xlu0 %22740 }
 0xe19   : > { %v27687_v16 = vpop.f32.mrf.mxu0  ;;  %v23153_v35 = vsel %vm23149_vm4, %v23120_v20, %v22995_v41 }
 0xe1a   : > { %23032 = vrot.lane.b32.xlu0 %v34463_v1, %s28759_s28  ;;  %27720 = vmatmul.mubr.msk.f32.gmra.mxu0 %vm534_vm1, %v23153_v35  ;;  %v23088_v1 = vsel %vm1581_vm3, %v36921_v18, %v22741_v49  ;;  %v36932_v16 = vld [vmem:[#allocation236_spill] sm:$0xff] }
 0xe1b   : > { %v34531_v13 = vpop.f32.mrf.mxu0 }
 0xe1c   : > { %22906 = vrot.lane.b32.xlu1 %v34370_v42, %s28758_s20  ;;  %v22743_v17 = vpop.permute.xlu1 %22742  ;;  %v22869_v11 = vpop.permute.xlu0 %22868 }
 0xe1d   : > { %v27697_v9 = vpop.f32.mrf.mxu0  ;;  %v23121_v46 = vsel %vm23116_vm5, %v23088_v1, %v22869_v11  ;;  %v23089_v22 = vsel %vm1581_vm3, %v36922_v51, %v22743_v17 }
 0xe1e   : > { %22780 = vrot.lane.b32.xlu0 %v36920_v56, %s28757_s19 }
 0xe1f   : > { %v34538_v3 = vpop.f32.mrf.mxu0 }
 0xe20   : > { %23034 = vrot.lane.b32.xlu1 %v22088_v39, %s28759_s28  ;;  %v22871_v31 = vpop.permute.xlu1 %22870  ;;  %v22997_v48 = vpop.permute.xlu0 %22996 }
 0xe21   : > { %v27707_v8 = vpop.f32.mrf.mxu0  ;;  %v23154_v42 = vsel %vm23149_vm4, %v23121_v46, %v22997_v48  ;;  %v23122_v45 = vsel %vm23116_vm5, %v23089_v22, %v22871_v31 }
 0xe22   : > { %22908 = vrot.lane.b32.xlu0 %v34372_v62, %s28758_s20  ;;  %27722 = vmatprep.mubr.msk.f32.mxu0 %vm534_vm1, %v23154_v42 }
 0xe24   : > { %22782 = vrot.lane.b32.xlu1 %v36923_v33, %s28757_s19  ;;  %v22999_v61 = vpop.permute.xlu1 %22998  ;;  %v22745_v36 = vpop.permute.xlu0 %22744 }
 0xe25   : > { %v23155_v40 = vsel %vm23149_vm4, %v23122_v45, %v22999_v61  ;;  %v23090_v32 = vsel %vm1581_vm3, %v36925_v34, %v22745_v36 }
 0xe26   : > { %23036 = vrot.lane.b32.xlu0 %v34472_v4, %s28759_s28  ;;  %27723 = vmatmul.mubr.msk.f32.gmra.mxu0 %vm534_vm1, %v23155_v40  ;;  %v36936_v40 = vld [vmem:[#allocation178_spill] sm:$0xff] }
 0xe28   : > { %22910 = vrot.lane.b32.xlu1 %v34374_v38, %s28758_s20  ;;  %v22747_v62 = vpop.permute.xlu1 %22746  ;;  %v22873_v6 = vpop.permute.xlu0 %22872  ;;  %v36926_v38 = vld [vmem:[#allocation34_spill] sm:$0xff] }
 0xe29   : > { %v23123_v30 = vsel %vm23116_vm5, %v23090_v32, %v22873_v6  ;;  %v23091_v15 = vsel %vm1581_vm3, %v36926_v38, %v22747_v62  ;;  %v36937_v32 = vld [vmem:[#allocation172_spill] sm:$0xff] }
 0xe2a   : > { %22784 = vrot.lane.b32.xlu0 %v36924_v58, %s28757_s19 }
 0xe2c   : > { %23038 = vrot.lane.b32.xlu1 %v22240_v57, %s28759_s28  ;;  %v22875_v59 = vpop.permute.xlu1 %22874  ;;  %v23001_v39 = vpop.permute.xlu0 %23000 }
 0xe2d   : > { %v23156_v4 = vsel %vm23149_vm4, %v23123_v30, %v23001_v39  ;;  %v23124_v53 = vsel %vm23116_vm5, %v23091_v15, %v22875_v59 }
 0xe2e   : > { %22912 = vrot.lane.b32.xlu0 %v34376_v19, %s28758_s20  ;;  %27725 = vmatprep.mubr.msk.f32.mxu0 %vm534_vm1, %v23156_v4 }
 0xe30   : > { %22786 = vrot.lane.b32.xlu1 %v36927_v60, %s28757_s19  ;;  %v23003_v2 = vpop.permute.xlu1 %23002  ;;  %v22749_v57 = vpop.permute.xlu0 %22748 }
 0xe31   : > { %v23157_v29 = vsel %vm23149_vm4, %v23124_v53, %v23003_v2  ;;  %v23092_v23 = vsel %vm1581_vm3, %v36929_v5, %v22749_v57  ;;  %v36938_v53 = vld [vmem:[#allocation162_spill] sm:$0xff] }
 0xe32   : > { %23040 = vrot.lane.b32.xlu0 %v34496_v24, %s28759_s28  ;;  %27726 = vmatmul.mubr.msk.f32.gmra.mxu0 %vm534_vm1, %v23157_v29 }
 0xe34   : > { %22914 = vrot.lane.b32.xlu1 %v34378_v50, %s28758_s20  ;;  %v22751_v19 = vpop.permute.xlu1 %22750  ;;  %v22877_v44 = vpop.permute.xlu0 %22876  ;;  %v36930_v50 = vld [vmem:[#allocation36_spill] sm:$0xff] }
 0xe35   : > { %v23125_v0 = vsel %vm23116_vm5, %v23092_v23, %v22877_v44  ;;  %v23093_v63 = vsel %vm1581_vm3, %v36930_v50, %v22751_v19 }
 0xe36   : > { %22788 = vrot.lane.b32.xlu0 %v36928_v55, %s28757_s19  ;;  %v36939_v55 = vld [vmem:[#allocation173_spill] sm:$0xff] }
 0xe38   : > { %23042 = vrot.lane.b32.xlu1 %v22392_v25, %s28759_s28  ;;  %v22879_v54 = vpop.permute.xlu1 %22878  ;;  %v23005_v27 = vpop.permute.xlu0 %23004 }
 0xe39   : > { %v23158_v24 = vsel %vm23149_vm4, %v23125_v0, %v23005_v27  ;;  %v23126_v25 = vsel %vm23116_vm5, %v23093_v63, %v22879_v54  ;;  %v36940_v63 = vld [vmem:[#allocation175_spill] sm:$0xff] }
 0xe3a   : > { %22916 = vrot.lane.b32.xlu0 %v34380_v43, %s28758_s20  ;;  %27728 = vmatprep.mubr.msk.f32.mxu0 %vm534_vm1, %v23158_v24 }
 0xe3c   : > { %22790 = vrot.lane.b32.xlu1 %v36931_v7, %s28757_s19  ;;  %v23007_v14 = vpop.permute.xlu1 %23006  ;;  %v22753_v20 = vpop.permute.xlu0 %22752 }
 0xe3d   : > { %v23159_v52 = vsel %vm23149_vm4, %v23126_v25, %v23007_v14  ;;  %v23094_v35 = vsel %vm1581_vm3, %v36932_v16, %v22753_v20 }
 0xe3e   : > { %23044 = vrot.lane.b32.xlu0 %v34507_v10, %s28759_s28  ;;  %27729 = vmatmul.mubr.msk.f32.gmra.mxu0 %vm534_vm1, %v23159_v52 }
 0xe40   : > { %22918 = vrot.lane.b32.xlu1 %v34386_v37, %s28758_s20  ;;  %v22755_v43 = vpop.permute.xlu1 %22754  ;;  %v22881_v41 = vpop.permute.xlu0 %22880  ;;  %v36933_v37 = vld [vmem:[#allocation235_spill] sm:$0xff] }
 0xe41   : > { %v23127_v17 = vsel %vm23116_vm5, %v23094_v35, %v22881_v41  ;;  %v23095_v11 = vsel %vm1581_vm3, %v36933_v37, %v22755_v43  ;;  %v36941_v43 = vld [vmem:[#allocation181_spill] sm:$0xff] }
 0xe42   : > { %22792 = vrot.lane.b32.xlu0 %v33922_v26, %s28757_s19  ;;  %v36942_v37 = vld [vmem:[#allocation137_spill] sm:$0xff] }
 0xe44   : > { %23046 = vrot.lane.b32.xlu1 %v34531_v13, %s28759_s28  ;;  %v22883_v49 = vpop.permute.xlu1 %22882  ;;  %v23009_v10 = vpop.permute.xlu0 %23008 }
 0xe45   : > { %v23160_v9 = vsel %vm23149_vm4, %v23127_v17, %v23009_v10  ;;  %v23128_v26 = vsel %vm23116_vm5, %v23095_v11, %v22883_v49 }
 0xe46   : > { %22920 = vrot.lane.b32.xlu0 %v34388_v12, %s28758_s20  ;;  %27731 = vmatprep.mubr.msk.f32.mxu0 %vm534_vm1, %v23160_v9 }
 0xe48   : > { %22794 = vrot.lane.b32.xlu1 %v33879_v21, %s28757_s19  ;;  %v23011_v13 = vpop.permute.xlu1 %23010  ;;  %v22757_v18 = vpop.permute.xlu0 %22756  ;;  %v36934_v21 = vld [vmem:[#allocation171_spill] sm:$0xff] }
 0xe49   : > { %v23161_v56 = vsel %vm23149_vm4, %v23128_v26, %v23011_v13  ;;  %v23096_v31 = vsel %vm1581_vm3, %v36934_v21, %v22757_v18 }
 0xe4a   : > { %23048 = vrot.lane.b32.xlu0 %v34513_v47, %s28759_s28  ;;  %27732 = vmatmul.mubr.msk.f32.gmra.mxu0 %vm534_vm1, %v23161_v56  ;;  %v36935_v47 = vld [vmem:[#allocation160_spill] sm:$0xff] }
 0xe4c   : > { %22922 = vrot.lane.b32.xlu1 %v34390_v28, %s28758_s20  ;;  %v22759_v12 = vpop.permute.xlu1 %22758  ;;  %v22885_v1 = vpop.permute.xlu0 %22884 }
 0xe4d   : > { %v23129_v46 = vsel %vm23116_vm5, %v23096_v31, %v22885_v1  ;;  %v23097_v51 = vsel %vm1581_vm3, %v36935_v47, %v22759_v12  ;;  %v36943_v12 = vld [vmem:[#allocation165_spill] sm:$0xff]  ;;  %v36944_v47 = vld [vmem:[#allocation139_spill] sm:$0xff] }
 0xe50   : > { %23050 = vrot.lane.b32.xlu1 %v34538_v3, %s28759_s28  ;;  %v22887_v8 = vpop.permute.xlu1 %22886  ;;  %v23013_v48 = vpop.permute.xlu0 %23012 }
 0xe51   : > { %v23162_v42 = vsel %vm23149_vm4, %v23129_v46, %v23013_v48  ;;  %v23130_v28 = vsel %vm23116_vm5, %v23097_v51, %v22887_v8 }
 0xe52   : > { %27734 = vmatprep.mubr.msk.f32.mxu0 %vm534_vm1, %v23162_v42 }
 0xe54   : > { %v23015_v22 = vpop.permute.xlu1 %23014  ;;  %v22761_v3 = vpop.permute.xlu0 %22760 }
 0xe55   : > { %v23163_v33 = vsel %vm23149_vm4, %v23130_v28, %v23015_v22  ;;  %v23098_v36 = vsel %vm1581_vm3, %v36936_v40, %v22761_v3 }
 0xe56   : > { %27735 = vmatmul.mubr.msk.f32.gmra.mxu0 %vm534_vm1, %v23163_v33 }
 0xe58   : > { %v22763_v45 = vpop.permute.xlu1 %22762  ;;  %v22889_v61 = vpop.permute.xlu0 %22888 }
 0xe59   : > { %v23131_v6 = vsel %vm23116_vm5, %v23098_v36, %v22889_v61  ;;  %v23099_v59 = vsel %vm1581_vm3, %v36937_v32, %v22763_v45  ;;  %v36945_v45 = vld [vmem:[#allocation67_spill] sm:$0xff] }
 0xe5a   : > { %v36946_v32 = vld [vmem:[#allocation179_spill] sm:$0xff] }
 0xe5c   : > { %v22891_v62 = vpop.permute.xlu1 %22890  ;;  %v23017_v58 = vpop.permute.xlu0 %23016 }
 0xe5d   : > { %v23164_v34 = vsel %vm23149_vm4, %v23131_v6, %v23017_v58  ;;  %v23132_v30 = vsel %vm23116_vm5, %v23099_v59, %v22891_v62 }
 0xe5e   : > { %27737 = vmatprep.mubr.msk.f32.mxu1 %vm534_vm1, %v23164_v34 }
 0xe60   : > { %v23019_v39 = vpop.permute.xlu1 %23018  ;;  %v22765_v38 = vpop.permute.xlu0 %22764 }
 0xe61   : > { %v23165_v4 = vsel %vm23149_vm4, %v23132_v30, %v23019_v39  ;;  %v23100_v2 = vsel %vm1581_vm3, %v36938_v53, %v22765_v38 }
 0xe62   : > { %27738 = vmatmul.mubr.msk.f32.vlgmr.msra.gmra.mxu1 %vm534_vm1, %v23165_v4 }
 0xe64   : > { %v22767_v15 = vpop.permute.xlu1 %22766  ;;  %v22893_v60 = vpop.permute.xlu0 %22892 }
 0xe65   : > { %v23133_v57 = vsel %vm23116_vm5, %v23100_v2, %v22893_v60  ;;  %v23101_v5 = vsel %vm1581_vm3, %v36939_v55, %v22767_v15  ;;  %v36947_v15 = vld [vmem:[#allocation198_spill] sm:$0xff] }
 0xe66   : > { %v36948_v55 = vld [vmem:[#allocation78_spill] sm:$0xff] }
 0xe68   : > { %v22895_v29 = vpop.permute.xlu1 %22894  ;;  %v23021_v19 = vpop.permute.xlu0 %23020 }
 0xe69   : > { %v23166_v44 = vsel %vm23149_vm4, %v23133_v57, %v23021_v19  ;;  %v23134_v23 = vsel %vm23116_vm5, %v23101_v5, %v22895_v29 }
 0xe6a   : > { %27740 = vmatprep.mubr.msk.f32.mxu1 %vm534_vm1, %v23166_v44 }
 0xe6c   : > { %v23023_v54 = vpop.permute.xlu1 %23022  ;;  %v22769_v27 = vpop.permute.xlu0 %22768 }
 0xe6d   : > { %v23167_v0 = vsel %vm23149_vm4, %v23134_v23, %v23023_v54  ;;  %v23102_v7 = vsel %vm1581_vm3, %v36940_v63, %v22769_v27 }
 0xe6e   : > { %27741 = vmatmul.mubr.msk.f32.gmra.mxu1 %vm534_vm1, %v23167_v0 }
 0xe70   : > { %v22771_v24 = vpop.permute.xlu1 %22770  ;;  %v22897_v50 = vpop.permute.xlu0 %22896 }
 0xe71   : > { %v23135_v14 = vsel %vm23116_vm5, %v23102_v7, %v22897_v50  ;;  %v23103_v41 = vsel %vm1581_vm3, %v36941_v43, %v22771_v24  ;;  %v36949_v24 = vld [vmem:[#allocation194_spill] sm:$0xff]  ;;  %v36950_v43 = vld [vmem:[#allocation191_spill] sm:$0xff] }
 0xe74   : > { %v22899_v25 = vpop.permute.xlu1 %22898  ;;  %v23025_v52 = vpop.permute.xlu0 %23024 }
 0xe75   : > { %v23168_v20 = vsel %vm23149_vm4, %v23135_v14, %v23025_v52  ;;  %v23136_v16 = vsel %vm23116_vm5, %v23103_v41, %v22899_v25 }
 0xe76   : > { %27743 = vmatprep.mubr.msk.f32.mxu1 %vm534_vm1, %v23168_v20 }
 0xe78   : > { %v22773_v35 = vpop.permute.xlu0 %22772 }
 0xe79   : > { %v23104_v11 = vsel %vm1581_vm3, %v36942_v37, %v22773_v35 }
 0xe7a   : > { %v23027_v49 = vpop.permute.xlu1 %23026 }
 0xe7b   : > { %v23169_v17 = vsel %vm23149_vm4, %v23136_v16, %v23027_v49 }
 0xe7c   : > { %27744 = vmatmul.mubr.msk.f32.gmra.mxu1 %vm534_vm1, %v23169_v17  ;;  %v22901_v10 = vpop.permute.xlu0 %22900 }
 0xe7d   : > { %v23137_v26 = vsel %vm23116_vm5, %v23104_v11, %v22901_v10  ;;  %v36951_v10 = vld [vmem:[#allocation143_spill] sm:$0xff] }
 0xe7e   : > { %v22775_v9 = vpop.permute.xlu1 %22774 }
 0xe7f   : > { %v23105_v1 = vsel %vm1581_vm3, %v36943_v12, %v22775_v9  ;;  %v36952_v12 = vld [vmem:[#allocation185_spill] sm:$0xff] }
 0xe80   : > { %v23029_v13 = vpop.permute.xlu0 %23028 }
 0xe81   : > { %v23170_v18 = vsel %vm23149_vm4, %v23137_v26, %v23029_v13 }
 0xe82   : > { %v22903_v56 = vpop.permute.xlu1 %22902  ;;  %27746 = vmatprep.mubr.msk.f32.mxu1 %vm534_vm1, %v23170_v18 }
 0xe83   : > { %v23138_v21 = vsel %vm23116_vm5, %v23105_v1, %v22903_v56 }
 0xe84   : > { %v22777_v31 = vpop.permute.xlu0 %22776 }
 0xe85   : > { %v23106_v51 = vsel %vm1581_vm3, %v36944_v47, %v22777_v31 }
 0xe86   : > { %v23031_v8 = vpop.permute.xlu1 %23030 }
 0xe87   : > { %v23171_v46 = vsel %vm23149_vm4, %v23138_v21, %v23031_v8 }
 0xe88   : > { %27747 = vmatmul.mubr.msk.f32.gmra.mxu1 %vm534_vm1, %v23171_v46  ;;  %v22905_v48 = vpop.permute.xlu0 %22904 }
 0xe89   : > { %v23139_v28 = vsel %vm23116_vm5, %v23106_v51, %v22905_v48  ;;  %v36953_v48 = vld [vmem:[#allocation10_spill] sm:$0xff] }
 0xe8a   : > { %v22779_v42 = vpop.permute.xlu1 %22778 }
 0xe8b   : > { %v23107_v61 = vsel %vm1581_vm3, %v36945_v45, %v22779_v42 }
 0xe8c   : > { %v23033_v22 = vpop.permute.xlu0 %23032 }
 0xe8d   : > { %v23172_v3 = vsel %vm23149_vm4, %v23139_v28, %v23033_v22 }
 0xe8e   : > { %v22907_v33 = vpop.permute.xlu1 %22906  ;;  %27749 = vmatprep.mubr.msk.f32.mxu1 %vm534_vm1, %v23172_v3  ;;  %v28694_v3 = vld [vmem:[%s35694_s12 + $0x8] sm:$0xff] }
 0xe8f   : > { %v23140_v40 = vsel %vm23116_vm5, %v23107_v61, %v22907_v33  ;;  %v34729_v33 = vld [vmem:[%s23540_s13] ss:$0 sm:$0xff] }
 0xe90   : > { %v22781_v36 = vpop.permute.xlu0 %22780 }
 0xe91   : > { %v23108_v59 = vsel %vm1581_vm3, %v36946_v32, %v22781_v36  ;;  %v28695_v36 = vld [vmem:[%s35694_s12] sm:$0xff] }
 0xe92   : > { %v23035_v62 = vpop.permute.xlu1 %23034 }
 0xe93   : > { %v23173_v6 = vsel %vm23149_vm4, %v23140_v40, %v23035_v62 }
 0xe94   : > { %27750 = vmatmul.mubr.msk.f32.gmra.mxu1 %vm534_vm1, %v23173_v6  ;;  %v22909_v58 = vpop.permute.xlu0 %22908 }
 0xe95   : > { %v23141_v30 = vsel %vm23116_vm5, %v23108_v59, %v22909_v58 }
 0xe96   : > { %v22783_v34 = vpop.permute.xlu1 %22782 }
 0xe97   : > { %v23109_v60 = vsel %vm1581_vm3, %v36947_v15, %v22783_v34 }
 0xe98   : > { %v23037_v39 = vpop.permute.xlu0 %23036 }
 0xe99   : > { %v23174_v38 = vsel %vm23149_vm4, %v23141_v30, %v23037_v39  ;;  %v28696_v30 = vld [vmem:[%s35694_s12 + $0x18] sm:$0xff] }
 0xe9a   : > { %v22911_v4 = vpop.permute.xlu1 %22910  ;;  %27752 = vmatprep.mubr.msk.f32.mxu1 %vm534_vm1, %v23174_v38 }
 0xe9b   : > { %v23142_v53 = vsel %vm23116_vm5, %v23109_v60, %v22911_v4  ;;  %v28697_v4 = vld [vmem:[%s35694_s12 + $0x10] sm:$0xff] }
 0xe9c   : > { %v22785_v2 = vpop.permute.xlu0 %22784 }
 0xe9d   : > { %v23110_v5 = vsel %vm1581_vm3, %v36948_v55, %v22785_v2 }
 0xe9e   : > { %v23039_v29 = vpop.permute.xlu1 %23038 }
 0xe9f   : > { %v23175_v57 = vsel %vm23149_vm4, %v23142_v53, %v23039_v29 }
 0xea0   : > { %27753 = vmatmul.mubr.msk.f32.gmra.mxu1 %vm534_vm1, %v23175_v57  ;;  %v22913_v19 = vpop.permute.xlu0 %22912  ;;  %v28698_v57 = vld [vmem:[%s35694_s12 + $0x28] sm:$0xff] }
 0xea1   : > { %v23143_v23 = vsel %vm23116_vm5, %v23110_v5, %v22913_v19  ;;  %v28699_v5 = vld [vmem:[%s35694_s12 + $0x20] sm:$0xff] }
 0xea2   : > { %v22787_v44 = vpop.permute.xlu1 %22786 }
 0xea3   : > { %v23111_v50 = vsel %vm1581_vm3, %v36949_v24, %v22787_v44 }
 0xea4   : > { %v23041_v54 = vpop.permute.xlu0 %23040 }
 0xea5   : > { %v23176_v27 = vsel %vm23149_vm4, %v23143_v23, %v23041_v54 }
 0xea6   : > { %v22915_v0 = vpop.permute.xlu1 %22914  ;;  %27755 = vmatprep.mubr.msk.f32.mxu1 %vm534_vm1, %v23176_v27 }
 0xea7   : > { %v23144_v63 = vsel %vm23116_vm5, %v23111_v50, %v22915_v0  ;;  %v28700_v50 = vld [vmem:[%s35694_s12 + $0x38] sm:$0xff] }
 0xea8   : > { %v22789_v7 = vpop.permute.xlu0 %22788 }
 0xea9   : > { %v23112_v41 = vsel %vm1581_vm3, %v36950_v43, %v22789_v7 }
 0xeaa   : > { %v23043_v25 = vpop.permute.xlu1 %23042 }
 0xeab   : > { %v23177_v14 = vsel %vm23149_vm4, %v23144_v63, %v23043_v25 }
 0xeac   : > { %27756 = vmatmul.mubr.msk.f32.gmra.mxu1 %vm534_vm1, %v23177_v14  ;;  %v22917_v52 = vpop.permute.xlu0 %22916  ;;  %v28701_v14 = vld [vmem:[%s35694_s12 + $0x30] sm:$0xff] }
 0xead   : > { %v23145_v16 = vsel %vm23116_vm5, %v23112_v41, %v22917_v52 }
 0xeae   : > { %v22791_v20 = vpop.permute.xlu1 %22790 }
 0xeaf   : > { %v23113_v9 = vsel %vm1581_vm3, %v36951_v10, %v22791_v20 }
 0xeb0   : > { %v23045_v35 = vpop.permute.xlu0 %23044 }
 0xeb1   : > { %v23178_v17 = vsel %vm23149_vm4, %v23145_v16, %v23045_v35  ;;  %v28702_v35 = vld [vmem:[%s35694_s12 + $0x48] sm:$0xff] }
 0xeb2   : > { %v22919_v49 = vpop.permute.xlu1 %22918  ;;  %27758 = vmatprep.mubr.msk.f32.mxu1 %vm534_vm1, %v23178_v17 }
 0xeb3   : > { %v23146_v37 = vsel %vm23116_vm5, %v23113_v9, %v22919_v49  ;;  %v28703_v9 = vld [vmem:[%s35694_s12 + $0x40] sm:$0xff] }
 0xeb4   : > { %v22793_v11 = vpop.permute.xlu0 %22792 }
 0xeb5   : > { %v23114_v1 = vsel %vm1581_vm3, %v36952_v12, %v22793_v11 }
 0xeb6   : > { %v23047_v26 = vpop.permute.xlu1 %23046 }
 0xeb7   : > { %v23179_v13 = vsel %vm23149_vm4, %v23146_v37, %v23047_v26 }
 0xeb8   : > { %27759 = vmatmul.mubr.msk.f32.gmra.mxu1 %vm534_vm1, %v23179_v13  ;;  %v22921_v56 = vpop.permute.xlu0 %22920 }
 0xeb9   : > { %v23147_v21 = vsel %vm23116_vm5, %v23114_v1, %v22921_v56 }
 0xeba   : > { %v22795_v18 = vpop.permute.xlu1 %22794 }
 0xebb   : > { %v23115_v42 = vsel %vm1581_vm3, %v36953_v48, %v22795_v18  ;;  %v28704_v18 = vld [vmem:[%s35694_s12 + $0x58] sm:$0xff] }
 0xebc   : > { %v23049_v31 = vpop.permute.xlu0 %23048 }
 0xebd   : > { %v23180_v46 = vsel %vm23149_vm4, %v23147_v21, %v23049_v31  ;;  %v28705_v31 = vld [vmem:[%s35694_s12 + $0x50] sm:$0xff] }
 0xebe   : > { %v22923_v8 = vpop.permute.xlu1 %22922  ;;  %27761 = vmatprep.mubr.msk.f32.mxu1 %vm534_vm1, %v23180_v46 }
 0xebf   : > { %v23148_v47 = vsel %vm23116_vm5, %v23115_v42, %v22923_v8 }
 0xec2   : > { %v23051_v51 = vpop.permute.xlu1 %23050 }
 0xec3   : > { %v23181_v28 = vsel %vm23149_vm4, %v23148_v47, %v23051_v51  ;;  %v28706_v51 = vld [vmem:[%s35694_s12 + $0x68] sm:$0xff] }
 0xec4   : > { %27762 = vmatmul.mubr.msk.f32.gmra.mxu1 %vm534_vm1, %v23181_v28 }
 0xece   : > { %v27718_v22 = vpop.f32.mrf.mxu0 }
 0xecf   : > { %v23509_v45 = vadd.f32 %v28694_v3, %v27718_v22 }
 0xed0   : > { %v23349_v61 = vpop.f32.mrf.mxu0 }
 0xed1   : > { %v34735_v40 = vadd.f32 %v34729_v33, %v23509_v45  ;;  %v23508_v62 = vadd.f32 %v28695_v36, %v23349_v61  ;;  %v28707_v45 = vld [vmem:[%s35694_s12 + $0x60] sm:$0xff] }
 0xed3   : > { %v34741_v6 = vadd.f32 %v34729_v33, %v23508_v62  ;;  %v23587_v58 = vsel %vm534_vm1, %v34735_v40, 0.0 }
 0xed4   : > { %23588 = vadd.xlane.f32.xlu1 %v23587_v58 }
 0xed5   : > { %v23584_v34 = vsel %vm534_vm1, %v34741_v6, 0.0 }
 0xed6   : > { %23585 = vadd.xlane.f32.xlu0 %v23584_v34 }
 0xeda   : > { %v27721_v32 = vpop.f32.mrf.mxu0 }
 0xedb   : > { %v23511_v39 = vadd.f32 %v28696_v30, %v27721_v32  ;;  %v28708_v32 = vld [vmem:[%s35694_s12 + $0x78] sm:$0xff] }
 0xedc   : > { %v23359_v59 = vpop.f32.mrf.mxu0 }
 0xedd   : > { %v23510_v38 = vadd.f32 %v28697_v4, %v23359_v59  ;;  %v34757_v60 = vadd.f32 %v34729_v33, %v23511_v39  ;;  %v28709_v4 = vld [vmem:[%s35694_s12 + $0x70] sm:$0xff] }
 0xedf   : > { %v34754_v15 = vadd.f32 %v34729_v33, %v23510_v38  ;;  %v23593_v2 = vsel %vm534_vm1, %v34757_v60, 0.0 }
 0xee1   : > { %v23590_v53 = vsel %vm534_vm1, %v34754_v15, 0.0 }
 0xee2   : > { %23591 = vadd.xlane.f32.xlu0 %v23590_v53 }
 0xee6   : > { %23594 = vadd.xlane.f32.xlu0 %v23593_v2  ;;  %v27724_v29 = vpop.f32.mrf.mxu0 }
 0xee7   : > { %v23513_v19 = vadd.f32 %v28698_v57, %v27724_v29 }
 0xee8   : > { %v23369_v44 = vpop.f32.mrf.mxu0 }
 0xee9   : > { %v34767_v55 = vadd.f32 %v34729_v33, %v23513_v19  ;;  %v23512_v23 = vadd.f32 %v28699_v5, %v23369_v44  ;;  %v28710_v19 = vld [vmem:[%s35694_s12 + $0x88] sm:$0xff] }
 0xeeb   : > { %v34773_v54 = vadd.f32 %v34729_v33, %v23512_v23  ;;  %v23599_v0 = vsel %vm534_vm1, %v34767_v55, 0.0 }
 0xeec   : > { %23600 = vadd.xlane.f32.xlu1 %v23599_v0  ;;  %v28711_v0 = vld [vmem:[%s35694_s12 + $0x80] sm:$0xff] }
 0xeed   : > { %v23596_v27 = vsel %vm534_vm1, %v34773_v54, 0.0 }
 0xeee   : > { %23597 = vadd.xlane.f32.xlu0 %v23596_v27 }
 0xef2   : > { %v27727_v24 = vpop.f32.mrf.mxu0 }
 0xef3   : > { %v23515_v63 = vadd.f32 %v28700_v50, %v27727_v24 }
 0xef4   : > { %v23379_v7 = vpop.f32.mrf.mxu0 }
 0xef5   : > { %v34783_v25 = vadd.f32 %v34729_v33, %v23515_v63  ;;  %v23514_v52 = vadd.f32 %v28701_v14, %v23379_v7  ;;  %v28712_v14 = vld [vmem:[%s35694_s12 + $0x98] sm:$0xff] }
 0xef7   : > { %v34789_v20 = vadd.f32 %v34729_v33, %v23514_v52  ;;  %v23605_v43 = vsel %vm534_vm1, %v34783_v25, 0.0 }
 0xef8   : > { %23606 = vadd.xlane.f32.xlu1 %v23605_v43 }
 0xef9   : > { %v23602_v41 = vsel %vm534_vm1, %v34789_v20, 0.0 }
 0xefa   : > { %23603 = vadd.xlane.f32.xlu0 %v23602_v41 }
 0xefe   : > { %v27730_v16 = vpop.f32.mrf.mxu0 }
 0xeff   : > { %v23517_v49 = vadd.f32 %v28702_v35, %v27730_v16  ;;  %v28713_v16 = vld [vmem:[%s35694_s12 + $0x90] sm:$0xff] }
 0xf00   : > { %v23389_v17 = vpop.f32.mrf.mxu0 }
 0xf01   : > { %v34799_v10 = vadd.f32 %v34729_v33, %v23517_v49  ;;  %v23516_v37 = vadd.f32 %v28703_v9, %v23389_v17 }
 0xf03   : > { %v34805_v11 = vadd.f32 %v34729_v33, %v23516_v37  ;;  %v23611_v26 = vsel %vm534_vm1, %v34799_v10, 0.0 }
 0xf04   : > { %23612 = vadd.xlane.f32.xlu1 %v23611_v26  ;;  %v28714_v26 = vld [vmem:[%s35694_s12 + $0xa8] sm:$0xff] }
 0xf05   : > { %v23608_v13 = vsel %vm534_vm1, %v34805_v11, 0.0 }
 0xf06   : > { %23609 = vadd.xlane.f32.xlu0 %v23608_v13 }
 0xf0a   : > { %v27733_v56 = vpop.f32.mrf.mxu0 }
 0xf0b   : > { %v23519_v12 = vadd.f32 %v28704_v18, %v27733_v56 }
 0xf0c   : > { %v23399_v1 = vpop.f32.mrf.mxu0 }
 0xf0d   : > { %v34815_v21 = vadd.f32 %v34729_v33, %v23519_v12  ;;  %v23518_v8 = vadd.f32 %v28705_v31, %v23399_v1  ;;  %v28715_v12 = vld [vmem:[%s35694_s12 + $0xa0] sm:$0xff] }
 0xf0f   : > { %v34821_v46 = vadd.f32 %v34729_v33, %v23518_v8  ;;  %v23617_v48 = vsel %vm534_vm1, %v34815_v21, 0.0 }
 0xf10   : > { %23618 = vadd.xlane.f32.xlu1 %v23617_v48 }
 0xf11   : > { %v23614_v42 = vsel %vm534_vm1, %v34821_v46, 0.0 }
 0xf12   : > { %23615 = vadd.xlane.f32.xlu0 %v23614_v42 }
 0xf16   : > { %v27736_v47 = vpop.f32.mrf.mxu0 }
 0xf17   : > { %v23521_v28 = vadd.f32 %v28706_v51, %v27736_v47  ;;  %v28716_v47 = vld [vmem:[%s35694_s12 + $0xb8] sm:$0xff] }
 0xf18   : > { %v23409_v22 = vpop.f32.mrf.mxu0 }
 0xf19   : > { %v34831_v3 = vadd.f32 %v34729_v33, %v23521_v28  ;;  %v23520_v61 = vadd.f32 %v28707_v45, %v23409_v22  ;;  %v28717_v45 = vld [vmem:[%s35694_s12 + $0xb0] sm:$0xff] }
 0xf1b   : > { %v34837_v36 = vadd.f32 %v34729_v33, %v23520_v61  ;;  %v23623_v62 = vsel %vm534_vm1, %v34831_v3, 0.0 }
 0xf1c   : > { %23624 = vadd.xlane.f32.xlu1 %v23623_v62 }
 0xf1d   : > { %v23620_v58 = vsel %vm534_vm1, %v34837_v36, 0.0 }
 0xf1e   : > { %23621 = vadd.xlane.f32.xlu0 %v23620_v58 }
 0xf22   : > { %v27739_v34 = vpop.f32.mrf.mxu1 }
 0xf23   : > { %v23523_v59 = vadd.f32 %v28708_v32, %v27739_v34 }
 0xf24   : > { %v23419_v30 = vpop.f32.mrf.mxu1 }
 0xf25   : > { %v34847_v39 = vadd.f32 %v34729_v33, %v23523_v59  ;;  %v23522_v38 = vadd.f32 %v28709_v4, %v23419_v30  ;;  %v28718_v59 = vld [vmem:[%s35694_s12 + $0xc8] sm:$0xff] }
 0xf27   : > { %36954 = vst [vmem:[#allocation213_spill] sm:$0xff] %v34847_v39  ;;  %v34853_v53 = vadd.f32 %v34729_v33, %v23522_v38  ;;  %v23629_v2 = vsel %vm534_vm1, %v34847_v39, 0.0 }
 0xf28   : > { %23630 = vadd.xlane.f32.xlu1 %v23629_v2  ;;  %v28719_v2 = vld [vmem:[%s35694_s12 + $0xc0] sm:$0xff] }
 0xf29   : > { %36955 = vst [vmem:[#allocation220_spill] sm:$0xff] %v34853_v53  ;;  %v23626_v29 = vsel %vm534_vm1, %v34853_v53, 0.0 }
 0xf2a   : > { %23627 = vadd.xlane.f32.xlu0 %v23626_v29 }
 0xf2e   : > { %v27742_v57 = vpop.f32.mrf.mxu1 }
 0xf2f   : > { %v23525_v44 = vadd.f32 %v28710_v19, %v27742_v57 }
 0xf30   : > { %v23429_v5 = vpop.f32.mrf.mxu1 }
 0xf31   : > { %v34863_v23 = vadd.f32 %v34729_v33, %v23525_v44  ;;  %v23524_v27 = vadd.f32 %v28711_v0, %v23429_v5  ;;  %v28720_v0 = vld [vmem:[%s35694_s12 + $0xd8] sm:$0xff] }
 0xf33   : > { %36956 = vst [vmem:[#allocation110_spill] sm:$0xff] %v34863_v23  ;;  %v34869_v24 = vadd.f32 %v34729_v33, %v23524_v27  ;;  %v23635_v50 = vsel %vm534_vm1, %v34863_v23, 0.0 }
 0xf34   : > { %23636 = vadd.xlane.f32.xlu1 %v23635_v50 }
 0xf35   : > { %36957 = vst [vmem:[#allocation229_spill] sm:$0xff] %v34869_v24  ;;  %v23632_v63 = vsel %vm534_vm1, %v34869_v24, 0.0 }
 0xf36   : > { %23633 = vadd.xlane.f32.xlu0 %v23632_v63 }
 0xf3c   : > { %v27745_v7 = vpop.f32.mrf.mxu1 }
 0xf3d   : > { %v23527_v52 = vadd.f32 %v28712_v14, %v27745_v7  ;;  %v28721_v7 = vld [vmem:[%s35694_s12 + $0xd0] sm:$0xff] }
 0xf3e   : > { %v23439_v43 = vpop.f32.mrf.mxu1 }
 0xf3f   : > { %v34879_v41 = vadd.f32 %v34729_v33, %v23527_v52  ;;  %v23526_v35 = vadd.f32 %v28713_v16, %v23439_v43 }
 0xf41   : > { %36958 = vst [vmem:[#allocation105_spill] sm:$0xff] %v34879_v41  ;;  %v34885_v49 = vadd.f32 %v34729_v33, %v23526_v35  ;;  %v23641_v17 = vsel %vm534_vm1, %v34879_v41, 0.0 }
 0xf42   : > { %23642 = vadd.xlane.f32.xlu1 %v23641_v17 }
 0xf43   : > { %36959 = vst [vmem:[#allocation231_spill] sm:$0xff] %v34885_v49  ;;  %v23638_v9 = vsel %vm534_vm1, %v34885_v49, 0.0 }
 0xf44   : > { %23639 = vadd.xlane.f32.xlu0 %v23638_v9  ;;  %v28722_v9 = vld [vmem:[%s35694_s12 + $0xe8] sm:$0xff] }
 0xf48   : > { %v27748_v37 = vpop.f32.mrf.mxu1 }
 0xf49   : > { %v23529_v13 = vadd.f32 %v28714_v26, %v27748_v37 }
 0xf4a   : > { %v23449_v56 = vpop.f32.mrf.mxu1 }
 0xf4b   : > { %v34895_v18 = vadd.f32 %v34729_v33, %v23529_v13  ;;  %v23528_v1 = vadd.f32 %v28715_v12, %v23449_v56  ;;  %v28723_v56 = vld [vmem:[%s35694_s12 + $0xe0] sm:$0xff] }
 0xf4d   : > { %36960 = vst [vmem:[#allocation216_spill] sm:$0xff] %v34895_v18  ;;  %v34901_v31 = vadd.f32 %v34729_v33, %v23528_v1  ;;  %v23647_v8 = vsel %vm534_vm1, %v34895_v18, 0.0 }
 0xf4e   : > { %23648 = vadd.xlane.f32.xlu1 %v23647_v8 }
 0xf4f   : > { %36961 = vst [vmem:[#allocation222_spill] sm:$0xff] %v34901_v31  ;;  %v23644_v48 = vsel %vm534_vm1, %v34901_v31, 0.0 }
 0xf50   : > { %23645 = vadd.xlane.f32.xlu0 %v23644_v48 }
 0xf54   : > { %v27751_v42 = vpop.f32.mrf.mxu1 }
 0xf55   : > { %v23531_v51 = vadd.f32 %v28716_v47, %v27751_v42 }
 0xf56   : > { %v23459_v28 = vpop.f32.mrf.mxu1 }
 0xf57   : > { %v34911_v22 = vadd.f32 %v34729_v33, %v23531_v51  ;;  %v23530_v61 = vadd.f32 %v28717_v45, %v23459_v28 }
 0xf59   : > { %36962 = vst [vmem:[#allocation118_spill] sm:$0xff] %v34911_v22  ;;  %v34917_v62 = vadd.f32 %v34729_v33, %v23530_v61  ;;  %v23653_v58 = vsel %vm534_vm1, %v34911_v22, 0.0 }
 0xf5a   : > { %23654 = vadd.xlane.f32.xlu1 %v23653_v58 }
 0xf5b   : > { %36963 = vst [vmem:[#allocation111_spill] sm:$0xff] %v34917_v62  ;;  %v23650_v34 = vsel %vm534_vm1, %v34917_v62, 0.0 }
 0xf5c   : > { %23651 = vadd.xlane.f32.xlu0 %v23650_v34 }
 0xf5d   : > { %v23589_v8 = vpop.xlane.xlu1 %23588 }
 0xf5e   : > { %v23681_v51 = vmul.f32 0.03125, %v23589_v8 }
 0xf5f   : > { %v23586_v35 = vpop.xlane.xlu0 %23585 }
 0xf60   : > { %v27754_v32 = vpop.f32.mrf.mxu1  ;;  %v23680_v45 = vmul.f32 0.03125, %v23586_v35  ;;  %v34972_v61 = vsub.f32 %v34735_v40, %v23681_v51 }
 0xf61   : > { %v23533_v30 = vadd.f32 %v28718_v59, %v27754_v32  ;;  %v28724_v32 = vld [vmem:[%s35694_s12 + $0xf8] sm:$0xff] }
 0xf62   : > { %v23469_v4 = vpop.f32.mrf.mxu1 }
 0xf63   : > { %v34927_v38 = vadd.f32 %v34729_v33, %v23533_v30  ;;  %v23532_v29 = vadd.f32 %v28719_v2, %v23469_v4  ;;  %v34978_v2 = vsub.f32 %v34741_v6, %v23680_v45 }
 0xf65   : > { %36964 = vst [vmem:[#allocation218_spill] sm:$0xff] %v34927_v38  ;;  %v34933_v57 = vadd.f32 %v34729_v33, %v23532_v29  ;;  %v23659_v19 = vsel %vm534_vm1, %v34927_v38, 0.0 }
 0xf66   : > { %23660 = vadd.xlane.f32.xlu1 %v23659_v19 }
 0xf67   : > { %36965 = vst [vmem:[#allocation23_spill] sm:$0xff] %v34933_v57  ;;  %v23656_v44 = vsel %vm534_vm1, %v34933_v57, 0.0 }
 0xf68   : > { %23657 = vadd.xlane.f32.xlu0 %v23656_v44  ;;  %v28725_v44 = vld [vmem:[%s35694_s12 + $0xf0] sm:$0xff] }
 0xf6b   : > { %v23592_v1 = vpop.xlane.xlu0 %23591 }
 0xf6c   : > { %v27757_v5 = vpop.f32.mrf.mxu1  ;;  %v23682_v29 = vmul.f32 0.03125, %v23592_v1 }
 0xf6d   : > { %v23535_v27 = vadd.f32 %v28720_v0, %v27757_v5 }
 0xf6e   : > { %v23479_v50 = vpop.f32.mrf.mxu1  ;;  %v34997_v35 = vsub.f32 %v34754_v15, %v23682_v29 }
 0xf6f   : > { %v34943_v63 = vadd.f32 %v34729_v33, %v23535_v27  ;;  %v23534_v14 = vadd.f32 %v28721_v7, %v23479_v50  ;;  %v23595_v28 = vpop.xlane.xlu0 %23594  ;;  %v23745_v27 = vmul.f32 %v34972_v61, %v34972_v61 }
 0xf70   : > { %v23683_v34 = vmul.f32 0.03125, %v23595_v28  ;;  %v23746_v28 = vmul.f32 %v34997_v35, %v34997_v35 }
 0xf71   : > { %36966 = vst [vmem:[#allocation127_spill] sm:$0xff] %v34943_v63  ;;  %v34949_v52 = vadd.f32 %v34729_v33, %v23534_v14  ;;  %v23665_v43 = vsel %vm534_vm1, %v34943_v63, 0.0 }
 0xf72   : > { %23666 = vadd.xlane.f32.xlu1 %v23665_v43  ;;  %v34989_v50 = vsub.f32 %v34757_v60, %v23683_v34  ;;  %v23782_v29 = vsel %vm534_vm1, %v23746_v28, 0.0 }
 0xf73   : > { %36967 = vst [vmem:[#allocation120_spill] sm:$0xff] %v34949_v52  ;;  %v23662_v16 = vsel %vm534_vm1, %v34949_v52, 0.0 }
 0xf74   : > { %23663 = vadd.xlane.f32.xlu0 %v23662_v16  ;;  %v23747_v1 = vmul.f32 %v34989_v50, %v34989_v50 }
 0xf75   : > { %v23601_v30 = vpop.xlane.xlu1 %23600 }
 0xf76   : > { %v23685_v7 = vmul.f32 0.03125, %v23601_v30 }
 0xf77   : > { %v23598_v0 = vpop.xlane.xlu0 %23597 }
 0xf78   : > { %v27760_v17 = vpop.f32.mrf.mxu1 }
 0xf79   : > { %v23537_v37 = vadd.f32 %v28722_v9, %v27760_v17  ;;  %v23684_v17 = vmul.f32 0.03125, %v23598_v0 }
 0xf7a   : > { %v23489_v26 = vpop.f32.mrf.mxu1 }
 0xf7b   : > { %v34959_v13 = vadd.f32 %v34729_v33, %v23537_v37  ;;  %v23536_v12 = vadd.f32 %v28723_v56, %v23489_v26  ;;  %v23744_v37 = vmul.f32 %v34978_v2, %v34978_v2 }
 0xf7d   : > { %36968 = vst [vmem:[#allocation41_spill] sm:$0xff] %v34959_v13  ;;  %v34965_v48 = vadd.f32 %v34729_v33, %v23536_v12  ;;  %v23671_v42 = vsel %vm534_vm1, %v34959_v13, 0.0  ;;  %v23779_v12 = vsel %vm534_vm1, %v23745_v27, 0.0  ;;  %v23776_v51 = vsel %vm534_vm1, %v23744_v37, 0.0 }
 0xf7e   : > { %23672 = vadd.xlane.f32.xlu1 %v23671_v42  ;;  %v35010_v42 = vsub.f32 %v34773_v54, %v23684_v17 }
 0xf7f   : > { %36969 = vst [vmem:[#allocation221_spill] sm:$0xff] %v34965_v48  ;;  %v23668_v47 = vsel %vm534_vm1, %v34965_v48, 0.0 }
 0xf80   : > { %23669 = vadd.xlane.f32.xlu0 %v23668_v47 }
 0xf81   : > { %v23607_v16 = vpop.xlane.xlu1 %23606 }
 0xf82   : > { %v23687_v56 = vmul.f32 0.03125, %v23607_v16 }
 0xf83   : > { %v23604_v26 = vpop.xlane.xlu0 %23603 }
 0xf84   : > { %v27763_v58 = vpop.f32.mrf.mxu1  ;;  %v23686_v47 = vmul.f32 0.03125, %v23604_v26 }
 0xf85   : > { %v23539_v59 = vadd.f32 %v28724_v32, %v27763_v58  ;;  %v35016_v58 = vsub.f32 %v34783_v25, %v23687_v56  ;;  %v23785_v32 = vsel %vm534_vm1, %v23747_v1, 0.0 }
 0xf86   : > { %v23499_v4 = vpop.f32.mrf.mxu1  ;;  %v35022_v30 = vsub.f32 %v34789_v20, %v23686_v47 }
 0xf87   : > { %v34981_v19 = vadd.f32 %v34729_v33, %v23539_v59  ;;  %v23538_v5 = vadd.f32 %v28725_v44, %v23499_v4  ;;  %v23748_v44 = vmul.f32 %v35010_v42, %v35010_v42  ;;  %v23751_v27 = vmul.f32 %v35016_v58, %v35016_v58 }
 0xf88   : > { %v23750_v16 = vmul.f32 %v35022_v30, %v35022_v30 }
 0xf89   : > { %36970 = vst [vmem:[#allocation223_spill] sm:$0xff] %v34981_v19  ;;  %v34992_v14 = vadd.f32 %v34729_v33, %v23538_v5  ;;  %v23677_v43 = vsel %vm534_vm1, %v34981_v19, 0.0  ;;  %v35004_v33 = vsub.f32 %v34767_v55, %v23685_v7  ;;  %v23797_v17 = vsel %vm534_vm1, %v23751_v27, 0.0 }
 0xf8a   : > { %23678 = vadd.xlane.f32.xlu1 %v23677_v43  ;;  %v23788_v43 = vsel %vm534_vm1, %v23748_v44, 0.0  ;;  %v23794_v56 = vsel %vm534_vm1, %v23750_v16, 0.0 }
 0xf8b   : > { %36971 = vst [vmem:[#allocation133_spill] sm:$0xff] %v34992_v14  ;;  %v23674_v9 = vsel %vm534_vm1, %v34992_v14, 0.0  ;;  %v23749_v59 = vmul.f32 %v35004_v33, %v35004_v33 }
 0xf8c   : > { %23675 = vadd.xlane.f32.xlu0 %v23674_v9 }
 0xf8d   : > { %v23613_v8 = vpop.xlane.xlu1 %23612  ;;  %v23791_v0 = vsel %vm534_vm1, %v23749_v59, 0.0 }
 0xf8e   : > { %23780 = vadd.xlane.f32.xlu1 %v23779_v12  ;;  %v23689_v34 = vmul.f32 0.03125, %v23613_v8 }
 0xf8f   : > { %v23610_v45 = vpop.xlane.xlu0 %23609 }
 0xf90   : > { %23777 = vadd.xlane.f32.xlu0 %v23776_v51  ;;  %v23688_v4 = vmul.f32 0.03125, %v23610_v45  ;;  %v35028_v5 = vsub.f32 %v34799_v10, %v23689_v34 }
 0xf92   : > { %23786 = vadd.xlane.f32.xlu1 %v23785_v32  ;;  %v35034_v7 = vsub.f32 %v34805_v11, %v23688_v4  ;;  %v23753_v9 = vmul.f32 %v35028_v5, %v35028_v5 }
 0xf94   : > { %23783 = vadd.xlane.f32.xlu0 %v23782_v29  ;;  %v23752_v12 = vmul.f32 %v35034_v7, %v35034_v7  ;;  %v23803_v51 = vsel %vm534_vm1, %v23753_v9, 0.0 }
 0xf96   : > { %23792 = vadd.xlane.f32.xlu1 %v23791_v0  ;;  %v23800_v45 = vsel %vm534_vm1, %v23752_v12, 0.0 }
 0xf98   : > { %23789 = vadd.xlane.f32.xlu0 %v23788_v43 }
 0xf99   : > { %v23619_v37 = vpop.xlane.xlu1 %23618 }
 0xf9a   : > { %23798 = vadd.xlane.f32.xlu1 %v23797_v17  ;;  %v23691_v26 = vmul.f32 0.03125, %v23619_v37 }
 0xf9b   : > { %v23616_v1 = vpop.xlane.xlu0 %23615 }
 0xf9c   : > { %23795 = vadd.xlane.f32.xlu0 %v23794_v56  ;;  %v35046_v8 = vsub.f32 %v34815_v21, %v23691_v26  ;;  %v23690_v47 = vmul.f32 0.03125, %v23616_v1  ;;  %v24080_v1 = vld [vmem:[%s24076_s15 + $0x18] sm:$0xff] }
 0xf9d   : > { %27764 = vmatprep.subr.mxu0 %v24080_v1 }
 0xf9e   : > { %23804 = vadd.xlane.f32.xlu1 %v23803_v51  ;;  %v35050_v28 = vsub.f32 %v34821_v46, %v23690_v47  ;;  %v23755_v34 = vmul.f32 %v35046_v8, %v35046_v8  ;;  %27765 = vmatpush3.msra.mxu0 %v24080_v1 }
 0xfa0   : > { %23801 = vadd.xlane.f32.xlu0 %v23800_v45  ;;  %v23809_v32 = vsel %vm534_vm1, %v23755_v34, 0.0  ;;  %v23754_v59 = vmul.f32 %v35050_v28, %v35050_v28  ;;  %v24079_v34 = vld [vmem:[%s24076_s15 + $0x10] sm:$0xff] }
 0xfa1   : > { %27766 = vmatprep.subr.mxu0 %v24079_v34 }
 0xfa2   : > { %23810 = vadd.xlane.f32.xlu1 %v23809_v32  ;;  %v23806_v4 = vsel %vm534_vm1, %v23754_v59, 0.0  ;;  %27767 = vmatpush3.msra.mxu0 %v24079_v34 }
 0xfa4   : > { %23807 = vadd.xlane.f32.xlu0 %v23806_v4  ;;  %v24078_v4 = vld [vmem:[%s24076_s15 + $0x8] sm:$0xff] }
 0xfa5   : > { %v23625_v29 = vpop.xlane.xlu1 %23624  ;;  %27768 = vmatprep.subr.mxu0 %v24078_v4 }
 0xfa6   : > { %v23693_v44 = vmul.f32 0.03125, %v23625_v29  ;;  %27769 = vmatpush3.msra.mxu0 %v24078_v4 }
 0xfa7   : > { %v23622_v0 = vpop.xlane.xlu0 %23621 }
 0xfa8   : > { %v35060_v27 = vsub.f32 %v34831_v3, %v23693_v44  ;;  %v23692_v43 = vmul.f32 0.03125, %v23622_v0  ;;  %v24077_v0 = vld [vmem:[%s24076_s15] sm:$0xff] }
 0xfa9   : > { %27770 = vmatprep.subr.mxu0 %v24077_v0 }
 0xfaa   : > { %v35063_v16 = vsub.f32 %v34837_v36, %v23692_v43  ;;  %v23757_v17 = vmul.f32 %v35060_v27, %v35060_v27  ;;  %27771 = vmatpush3.msra.mxu0 %v24077_v0 }
 0xfac   : > { %v23815_v9 = vsel %vm534_vm1, %v23757_v17, 0.0  ;;  %v23756_v37 = vmul.f32 %v35063_v16, %v35063_v16 }
 0xfad   : > { %23816 = vadd.xlane.f32.xlu1 %v23815_v9 }
 0xfae   : > { %v23812_v26 = vsel %vm534_vm1, %v23756_v37, 0.0 }
 0xfaf   : > { %23813 = vadd.xlane.f32.xlu0 %v23812_v26 }
 0xfb1   : > { %v23631_v56 = vpop.xlane.xlu1 %23630 }
 0xfb2   : > { %v23695_v12 = vmul.f32 0.03125, %v23631_v56 }
 0xfb3   : > { %v23628_v47 = vpop.xlane.xlu0 %23627 }
 0xfb4   : > { %v35076_v51 = vsub.f32 %v34847_v39, %v23695_v12  ;;  %v23694_v45 = vmul.f32 0.03125, %v23628_v47 }
 0xfb6   : > { %v35079_v32 = vsub.f32 %v34853_v53, %v23694_v45  ;;  %v23759_v59 = vmul.f32 %v35076_v51, %v35076_v51 }
 0xfb8   : > { %v23821_v29 = vsel %vm534_vm1, %v23759_v59, 0.0  ;;  %v23758_v44 = vmul.f32 %v35079_v32, %v35079_v32 }
 0xfb9   : > { %23822 = vadd.xlane.f32.xlu1 %v23821_v29 }
 0xfba   : > { %v23818_v43 = vsel %vm534_vm1, %v23758_v44, 0.0 }
 0xfbb   : > { %23819 = vadd.xlane.f32.xlu0 %v23818_v43 }
 0xfbd   : > { %v23637_v17 = vpop.xlane.xlu1 %23636 }
 0xfbe   : > { %v23697_v9 = vmul.f32 0.03125, %v23637_v17 }
 0xfbf   : > { %v23634_v37 = vpop.xlane.xlu0 %23633 }
 0xfc0   : > { %v35088_v26 = vsub.f32 %v34863_v23, %v23697_v9  ;;  %v23696_v56 = vmul.f32 0.03125, %v23634_v37 }
 0xfc2   : > { %v35091_v12 = vsub.f32 %v34869_v24, %v23696_v56  ;;  %v23761_v1 = vmul.f32 %v35088_v26, %v35088_v26 }
 0xfc4   : > { %v23827_v47 = vsel %vm534_vm1, %v23761_v1, 0.0  ;;  %v23760_v45 = vmul.f32 %v35091_v12, %v35091_v12 }
 0xfc5   : > { %23828 = vadd.xlane.f32.xlu1 %v23827_v47 }
 0xfc6   : > { %v23824_v34 = vsel %vm534_vm1, %v23760_v45, 0.0 }
 0xfc7   : > { %23825 = vadd.xlane.f32.xlu0 %v23824_v34 }
 0xfcb   : > { %v23643_v59 = vpop.xlane.xlu1 %23642 }
 0xfcc   : > { %v23699_v4 = vmul.f32 0.03125, %v23643_v59 }
 0xfcd   : > { %v23640_v29 = vpop.xlane.xlu0 %23639 }
 0xfce   : > { %v35100_v44 = vsub.f32 %v34879_v41, %v23699_v4  ;;  %v23698_v0 = vmul.f32 0.03125, %v23640_v29 }
 0xfd0   : > { %v35103_v43 = vsub.f32 %v34885_v49, %v23698_v0  ;;  %v23763_v17 = vmul.f32 %v35100_v44, %v35100_v44 }
 0xfd2   : > { %v23833_v9 = vsel %vm534_vm1, %v23763_v17, 0.0  ;;  %v23762_v37 = vmul.f32 %v35103_v43, %v35103_v43 }
 0xfd3   : > { %23834 = vadd.xlane.f32.xlu1 %v23833_v9 }
 0xfd4   : > { %v23830_v56 = vsel %vm534_vm1, %v23762_v37, 0.0 }
 0xfd5   : > { %23831 = vadd.xlane.f32.xlu0 %v23830_v56 }
 0xfd7   : > { %v23649_v1 = vpop.xlane.xlu1 %23648 }
 0xfd8   : > { %v23701_v47 = vmul.f32 0.03125, %v23649_v1 }
 0xfd9   : > { %v23646_v45 = vpop.xlane.xlu0 %23645 }
 0xfda   : > { %v35112_v34 = vsub.f32 %v34895_v18, %v23701_v47  ;;  %v23700_v59 = vmul.f32 0.03125, %v23646_v45 }
 0xfdc   : > { %v35115_v4 = vsub.f32 %v34901_v31, %v23700_v59  ;;  %v23765_v29 = vmul.f32 %v35112_v34, %v35112_v34 }
 0xfde   : > { %v23839_v0 = vsel %vm534_vm1, %v23765_v29, 0.0  ;;  %v23764_v17 = vmul.f32 %v35115_v4, %v35115_v4 }
 0xfdf   : > { %23840 = vadd.xlane.f32.xlu1 %v23839_v0 }
 0xfe0   : > { %v23836_v9 = vsel %vm534_vm1, %v23764_v17, 0.0 }
 0xfe1   : > { %23837 = vadd.xlane.f32.xlu0 %v23836_v9 }
 0xfe3   : > { %v23655_v37 = vpop.xlane.xlu1 %23654 }
 0xfe4   : > { %v23703_v56 = vmul.f32 0.03125, %v23655_v37 }
 0xfe5   : > { %v23652_v1 = vpop.xlane.xlu0 %23651 }
 0xfe6   : > { %v35124_v47 = vsub.f32 %v34911_v22, %v23703_v56  ;;  %v23702_v45 = vmul.f32 0.03125, %v23652_v1 }
 0xfe8   : > { %v35127_v59 = vsub.f32 %v34917_v62, %v23702_v45  ;;  %v23767_v29 = vmul.f32 %v35124_v47, %v35124_v47 }
 0xfea   : > { %v23845_v31 = vsel %vm534_vm1, %v23767_v29, 0.0  ;;  %v23766_v0 = vmul.f32 %v35127_v59, %v35127_v59 }
 0xfeb   : > { %23846 = vadd.xlane.f32.xlu1 %v23845_v31 }
 0xfec   : > { %v23842_v17 = vsel %vm534_vm1, %v23766_v0, 0.0 }
 0xfed   : > { %23843 = vadd.xlane.f32.xlu0 %v23842_v17 }
 0xfef   : > { %v23661_v9 = vpop.xlane.xlu1 %23660 }
 0xff0   : > { %v23705_v37 = vmul.f32 0.03125, %v23661_v9 }
 0xff1   : > { %v23658_v56 = vpop.xlane.xlu0 %23657 }
 0xff2   : > { %v35136_v1 = vsub.f32 %v34927_v38, %v23705_v37  ;;  %v23704_v45 = vmul.f32 0.03125, %v23658_v56 }
 0xff4   : > { %v35139_v62 = vsub.f32 %v34933_v57, %v23704_v45  ;;  %v23769_v29 = vmul.f32 %v35136_v1, %v35136_v1 }
 0xff6   : > { %v23851_v22 = vsel %vm534_vm1, %v23769_v29, 0.0  ;;  %v23768_v31 = vmul.f32 %v35139_v62, %v35139_v62 }
 0xff7   : > { %23852 = vadd.xlane.f32.xlu1 %v23851_v22 }
 0xff8   : > { %v23848_v0 = vsel %vm534_vm1, %v23768_v31, 0.0 }
 0xff9   : > { %23849 = vadd.xlane.f32.xlu0 %v23848_v0 }
 0xffb   : > { %v23667_v17 = vpop.xlane.xlu1 %23666 }
 0xffc   : > { %v23707_v9 = vmul.f32 0.03125, %v23667_v17 }
 0xffd   : > { %v23664_v37 = vpop.xlane.xlu0 %23663 }
 0xffe   : > { %v35148_v56 = vsub.f32 %v34943_v63, %v23707_v9  ;;  %v23706_v45 = vmul.f32 0.03125, %v23664_v37 }
0x1000   : > { %v35151_v57 = vsub.f32 %v34949_v52, %v23706_v45  ;;  %v23771_v29 = vmul.f32 %v35148_v56, %v35148_v56 }
0x1002   : > { %v23857_v38 = vsel %vm534_vm1, %v23771_v29, 0.0  ;;  %v23770_v22 = vmul.f32 %v35151_v57, %v35151_v57 }
0x1003   : > { %23858 = vadd.xlane.f32.xlu1 %v23857_v38 }
0x1004   : > { %v23854_v31 = vsel %vm534_vm1, %v23770_v22, 0.0 }
0x1005   : > { %23855 = vadd.xlane.f32.xlu0 %v23854_v31 }
0x1007   : > { %v23673_v0 = vpop.xlane.xlu1 %23672 }
0x1008   : > { %v23709_v17 = vmul.f32 0.03125, %v23673_v0 }
0x1009   : > { %v23670_v9 = vpop.xlane.xlu0 %23669 }
0x100a   : > { %v35160_v37 = vsub.f32 %v34959_v13, %v23709_v17  ;;  %v23708_v45 = vmul.f32 0.03125, %v23670_v9 }
0x100c   : > { %v35163_v52 = vsub.f32 %v34965_v48, %v23708_v45  ;;  %v23773_v29 = vmul.f32 %v35160_v37, %v35160_v37 }
0x100e   : > { %v23863_v63 = vsel %vm534_vm1, %v23773_v29, 0.0  ;;  %v23772_v38 = vmul.f32 %v35163_v52, %v35163_v52 }
0x100f   : > { %23864 = vadd.xlane.f32.xlu1 %v23863_v63 }
0x1010   : > { %v23860_v22 = vsel %vm534_vm1, %v23772_v38, 0.0 }
0x1011   : > { %23861 = vadd.xlane.f32.xlu0 %v23860_v22 }
0x1013   : > { %v23679_v31 = vpop.xlane.xlu1 %23678 }
0x1014   : > { %v23711_v0 = vmul.f32 0.03125, %v23679_v31 }
0x1015   : > { %v23676_v17 = vpop.xlane.xlu0 %23675 }
0x1016   : > { %v35172_v9 = vsub.f32 %v34981_v19, %v23711_v0  ;;  %v23710_v45 = vmul.f32 0.03125, %v23676_v17 }
0x1017   : > { %v23781_v48 = vpop.xlane.xlu1 %23780 }
0x1018   : > { %v35175_v13 = vsub.f32 %v34992_v14, %v23710_v45  ;;  %v23873_v18 = vmul.f32 0.03125, %v23781_v48  ;;  %v23775_v29 = vmul.f32 %v35172_v9, %v35172_v9 }
0x1019   : > { %v23778_v49 = vpop.xlane.xlu0 %23777 }
0x101a   : > { %v23905_v63 = vadd.f32 1e-05, %v23873_v18  ;;  %v23872_v41 = vmul.f32 0.03125, %v23778_v49  ;;  %v23869_v38 = vsel %vm534_vm1, %v23775_v29, 0.0  ;;  %v23774_v22 = vmul.f32 %v35175_v13, %v35175_v13 }
0x101b   : > { %23870 = vadd.xlane.f32.xlu1 %v23869_v38  ;;  %v23787_v31 = vpop.xlane.xlu1 %23786 }
0x101c   : > { %28502 = vrsqrt.f32 %v23905_v63  ;;  %v23904_v0 = vadd.f32 1e-05, %v23872_v41  ;;  %v23875_v17 = vmul.f32 0.03125, %v23787_v31  ;;  %v23866_v45 = vsel %vm534_vm1, %v23774_v22, 0.0 }
0x101d   : > { %23867 = vadd.xlane.f32.xlu0 %v23866_v45  ;;  %v23784_v48 = vpop.xlane.xlu0 %23783 }
0x101e   : > { %28504 = vrsqrt.f32 %v23904_v0  ;;  %v23907_v14 = vadd.f32 1e-05, %v23875_v17  ;;  %v23874_v19 = vmul.f32 0.03125, %v23784_v48 }
0x101f   : > { %v23793_v24 = vpop.xlane.xlu1 %23792 }
0x1020   : > { %28506 = vrsqrt.f32 %v23907_v14  ;;  %v23906_v49 = vadd.f32 1e-05, %v23874_v19  ;;  %v23877_v18 = vmul.f32 0.03125, %v23793_v24 }
0x1021   : > { %v23790_v29 = vpop.xlane.xlu0 %23789 }
0x1022   : > { %28508 = vrsqrt.f32 %v23906_v49  ;;  %v23909_v23 = vadd.f32 1e-05, %v23877_v18  ;;  %v23876_v38 = vmul.f32 0.03125, %v23790_v29  ;;  %v35188_v18 = vld [vmem:[%s23580_s18] ss:$0 sm:$0xff] }
0x1023   : > { %v23799_v53 = vpop.xlane.xlu1 %23798 }
0x1024   : > { %28510 = vrsqrt.f32 %v23909_v23  ;;  %v23908_v41 = vadd.f32 1e-05, %v23876_v38  ;;  %v23879_v63 = vmul.f32 0.03125, %v23799_v53 }
0x1025   : > { %v23796_v31 = vpop.xlane.xlu0 %23795 }
0x1026   : > { %28512 = vrsqrt.f32 %v23908_v41  ;;  %v23911_v22 = vadd.f32 1e-05, %v23879_v63  ;;  %v23878_v0 = vmul.f32 0.03125, %v23796_v31 }
0x1027   : > { %v23805_v17 = vpop.xlane.xlu1 %23804 }
0x1028   : > { %28514 = vrsqrt.f32 %v23911_v22  ;;  %v23910_v24 = vadd.f32 1e-05, %v23878_v0  ;;  %v23881_v19 = vmul.f32 0.03125, %v23805_v17 }
0x1029   : > { %v28503_v14 = vpop.eup %28502  ;;  %v23802_v45 = vpop.xlane.xlu0 %23801 }
0x102a   : > { %v23969_v48 = vmul.f32 %v28503_v14, %v34972_v61  ;;  %28516 = vrsqrt.f32 %v23910_v24  ;;  %v23913_v23 = vadd.f32 1e-05, %v23881_v19  ;;  %v23880_v53 = vmul.f32 0.03125, %v23802_v45  ;;  %v35197_v19 = vld [vmem:[%s23582_s25] ss:$0 sm:$0xff] }
0x102b   : > { %v28505_v49 = vpop.eup %28504  ;;  %v23811_v29 = vpop.xlane.xlu1 %23810 }
0x102c   : > { %28518 = vrsqrt.f32 %v23913_v23  ;;  %v23912_v38 = vadd.f32 1e-05, %v23880_v53  ;;  %v23883_v41 = vmul.f32 0.03125, %v23811_v29  ;;  %v23968_v22 = vmul.f32 %v28505_v49, %v34978_v2 }
0x102d   : > { %v28507_v63 = vpop.eup %28506  ;;  %v23808_v31 = vpop.xlane.xlu0 %23807  ;;  %v24007_v61 = vmul.f32 %v35188_v18, %v23969_v48 }
0x102e   : > { %v23971_v0 = vmul.f32 %v28507_v63, %v34989_v50  ;;  %28520 = vrsqrt.f32 %v23912_v38  ;;  %v23915_v17 = vadd.f32 1e-05, %v23883_v41  ;;  %v23882_v14 = vmul.f32 0.03125, %v23808_v31 }
0x102f   : > { %v28509_v24 = vpop.eup %28508  ;;  %v24006_v45 = vmul.f32 %v35188_v18, %v23968_v22  ;;  %v24045_v2 = vadd.f32 %v35197_v19, %v24007_v61 }
0x1030   : > { %28522 = vrsqrt.f32 %v23915_v17  ;;  %v23970_v23 = vmul.f32 %v28509_v24, %v34997_v35  ;;  %v23914_v29 = vadd.f32 1e-05, %v23882_v14  ;;  %v24009_v49 = vmul.f32 %v35188_v18, %v23971_v0 }
0x1031   : > { %v28511_v53 = vpop.eup %28510  ;;  %v24044_v39 = vadd.f32 %v35197_v19, %v24006_v45 }
0x1032   : > { %v23973_v48 = vmul.f32 %v28511_v53, %v35004_v33  ;;  %v24008_v50 = vmul.f32 %v35188_v18, %v23970_v23  ;;  %28524 = vrsqrt.f32 %v23914_v29  ;;  %v24047_v33 = vadd.f32 %v35197_v19, %v24009_v49 }
0x1033   : > { %v28513_v38 = vpop.eup %28512  ;;  %27772 = vmatprep.mubr.msk.f32.mxu0 %vm534_vm1, %v24044_v39 }
0x1034   : > { %27773 = vmatmul.mubr.msk.f32.vlgmr.msra.gmra.mxu0 %vm534_vm1, %v24045_v2  ;;  %v24046_v35 = vadd.f32 %v35197_v19, %v24008_v50  ;;  %v23972_v41 = vmul.f32 %v28513_v38, %v35010_v42  ;;  %v24011_v31 = vmul.f32 %v35188_v18, %v23973_v48 }
0x1035   : > { %v28515_v63 = vpop.eup %28514 }
0x1036   : > { %v23975_v22 = vmul.f32 %v28515_v63, %v35016_v58  ;;  %27775 = vmatprep.mubr.msk.f32.mxu0 %vm534_vm1, %v24046_v35  ;;  %v24010_v61 = vmul.f32 %v35188_v18, %v23972_v41  ;;  %v23817_v17 = vpop.xlane.xlu1 %23816  ;;  %v24049_v23 = vadd.f32 %v35197_v19, %v24011_v31 }
0x1037   : > { %v28517_v0 = vpop.eup %28516  ;;  %v23885_v39 = vmul.f32 0.03125, %v23817_v17 }
0x1038   : > { %27776 = vmatmul.mubr.msk.f32.gmra.mxu0 %vm534_vm1, %v24047_v33  ;;  %v24048_v24 = vadd.f32 %v35197_v19, %v24010_v61  ;;  %v23974_v42 = vmul.f32 %v28517_v0, %v35022_v30  ;;  %v23814_v45 = vpop.xlane.xlu0 %23813  ;;  %v24013_v58 = vmul.f32 %v35188_v18, %v23975_v22 }
0x1039   : > { %v28519_v14 = vpop.eup %28518  ;;  %v23917_v29 = vadd.f32 1e-05, %v23885_v39  ;;  %v23884_v2 = vmul.f32 0.03125, %v23814_v45 }
0x103a   : > { %v23977_v53 = vmul.f32 %v28519_v14, %v35028_v5  ;;  %27778 = vmatprep.mubr.msk.f32.mxu0 %vm534_vm1, %v24048_v24  ;;  %v24012_v48 = vmul.f32 %v35188_v18, %v23974_v42  ;;  %v24051_v41 = vadd.f32 %v35197_v19, %v24013_v58 }
0x103b   : > { %v28521_v50 = vpop.eup %28520  ;;  %28526 = vrsqrt.f32 %v23917_v29  ;;  %v23916_v49 = vadd.f32 1e-05, %v23884_v2 }
0x103c   : > { %27779 = vmatmul.mubr.msk.f32.gmra.mxu0 %vm534_vm1, %v24049_v23  ;;  %v24050_v30 = vadd.f32 %v35197_v19, %v24012_v48  ;;  %v23976_v38 = vmul.f32 %v28521_v50, %v35034_v7  ;;  %v24015_v31 = vmul.f32 %v35188_v18, %v23977_v53 }
0x103d   : > { %v28523_v35 = vpop.eup %28522  ;;  %28528 = vrsqrt.f32 %v23916_v49 }
0x103e   : > { %v23979_v5 = vmul.f32 %v28523_v35, %v35046_v8  ;;  %27781 = vmatprep.mubr.msk.f32.mxu0 %vm534_vm1, %v24050_v30  ;;  %v24014_v63 = vmul.f32 %v35188_v18, %v23976_v38  ;;  %v24053_v7 = vadd.f32 %v35197_v19, %v24015_v31 }
0x103f   : > { %v28525_v22 = vpop.eup %28524 }
0x1040   : > { %27782 = vmatmul.mubr.msk.f32.gmra.mxu0 %vm534_vm1, %v24051_v41  ;;  %v24052_v33 = vadd.f32 %v35197_v19, %v24014_v63  ;;  %v23978_v61 = vmul.f32 %v28525_v22, %v35050_v28  ;;  %v24017_v8 = vmul.f32 %v35188_v18, %v23979_v5 }
0x1042   : > { %27784 = vmatprep.mubr.msk.f32.mxu0 %vm534_vm1, %v24052_v33  ;;  %v23823_v0 = vpop.xlane.xlu1 %23822  ;;  %v24016_v17 = vmul.f32 %v35188_v18, %v23978_v61  ;;  %v24055_v23 = vadd.f32 %v35197_v19, %v24017_v8 }
0x1043   : > { %v23887_v39 = vmul.f32 0.03125, %v23823_v0 }
0x1044   : > { %27785 = vmatmul.mubr.msk.f32.gmra.mxu0 %vm534_vm1, %v24053_v7  ;;  %v23820_v24 = vpop.xlane.xlu0 %23819  ;;  %v24054_v42 = vadd.f32 %v35197_v19, %v24016_v17 }
0x1045   : > { %v23919_v14 = vadd.f32 1e-05, %v23887_v39  ;;  %v23886_v45 = vmul.f32 0.03125, %v23820_v24 }
0x1046   : > { %27787 = vmatprep.mubr.msk.f32.mxu0 %vm534_vm1, %v24054_v42 }
0x1047   : > { %28530 = vrsqrt.f32 %v23919_v14  ;;  %v23918_v28 = vadd.f32 1e-05, %v23886_v45 }
0x1048   : > { %27788 = vmatmul.mubr.msk.f32.gmra.mxu0 %vm534_vm1, %v24055_v23  ;;  %v28527_v58 = vpop.eup %28526 }
0x1049   : > { %v23981_v53 = vmul.f32 %v28527_v58, %v35060_v27  ;;  %28532 = vrsqrt.f32 %v23918_v28 }
0x104a   : > { %v28529_v29 = vpop.eup %28528 }
0x104b   : > { %v23980_v2 = vmul.f32 %v28529_v29, %v35063_v16  ;;  %v24019_v48 = vmul.f32 %v35188_v18, %v23981_v53 }
0x104d   : > { %v24018_v50 = vmul.f32 %v35188_v18, %v23980_v2  ;;  %v24057_v41 = vadd.f32 %v35197_v19, %v24019_v48 }
0x104e   : > { %v23829_v49 = vpop.xlane.xlu1 %23828 }
0x104f   : > { %v23889_v30 = vmul.f32 0.03125, %v23829_v49  ;;  %v24056_v38 = vadd.f32 %v35197_v19, %v24018_v50 }
0x1050   : > { %v23826_v35 = vpop.xlane.xlu0 %23825 }
0x1051   : > { %v23921_v5 = vadd.f32 1e-05, %v23889_v30  ;;  %v23888_v63 = vmul.f32 0.03125, %v23826_v35  ;;  %27790 = vmatprep.mubr.msk.f32.mxu0 %vm534_vm1, %v24056_v38 }
0x1052   : > { %27791 = vmatmul.mubr.msk.f32.gmra.mxu0 %vm534_vm1, %v24057_v41 }
0x1053   : > { %28534 = vrsqrt.f32 %v23921_v5  ;;  %v23920_v27 = vadd.f32 1e-05, %v23888_v63 }
0x1054   : > { %v28531_v16 = vpop.eup %28530 }
0x1055   : > { %v23983_v31 = vmul.f32 %v28531_v16, %v35076_v51  ;;  %28536 = vrsqrt.f32 %v23920_v27 }
0x1056   : > { %v28533_v22 = vpop.eup %28532 }
0x1057   : > { %v23982_v33 = vmul.f32 %v28533_v22, %v35079_v32  ;;  %v24021_v61 = vmul.f32 %v35188_v18, %v23983_v31 }
0x1059   : > { %v24020_v7 = vmul.f32 %v35188_v18, %v23982_v33  ;;  %v24059_v39 = vadd.f32 %v35197_v19, %v24021_v61 }
0x105b   : > { %v24058_v0 = vadd.f32 %v35197_v19, %v24020_v7 }
0x105c   : > { %v23835_v8 = vpop.xlane.xlu1 %23834 }
0x105d   : > { %v23891_v17 = vmul.f32 0.03125, %v23835_v8  ;;  %27793 = vmatprep.mubr.msk.f32.mxu0 %vm534_vm1, %v24058_v0 }
0x105e   : > { %v23832_v24 = vpop.xlane.xlu0 %23831  ;;  %27794 = vmatmul.mubr.msk.f32.gmra.mxu0 %vm534_vm1, %v24059_v39 }
0x105f   : > { %v23923_v42 = vadd.f32 1e-05, %v23891_v17  ;;  %v23890_v14 = vmul.f32 0.03125, %v23832_v24 }
0x1060   : > { %v28535_v51 = vpop.eup %28534 }
0x1061   : > { %28538 = vrsqrt.f32 %v23923_v42  ;;  %v23922_v32 = vadd.f32 1e-05, %v23890_v14  ;;  %v23985_v45 = vmul.f32 %v28535_v51, %v35088_v26 }
0x1062   : > { %v28537_v23 = vpop.eup %28536 }
0x1063   : > { %28540 = vrsqrt.f32 %v23922_v32  ;;  %v23984_v28 = vmul.f32 %v28537_v23, %v35091_v12  ;;  %v24023_v58 = vmul.f32 %v35188_v18, %v23985_v45 }
0x1065   : > { %v24022_v53 = vmul.f32 %v35188_v18, %v23984_v28  ;;  %v24061_v50 = vadd.f32 %v35197_v19, %v24023_v58 }
0x1067   : > { %v24060_v2 = vadd.f32 %v35197_v19, %v24022_v53 }
0x1068   : > { %v23841_v29 = vpop.xlane.xlu1 %23840 }
0x1069   : > { %v23893_v48 = vmul.f32 0.03125, %v23841_v29  ;;  %27796 = vmatprep.mubr.msk.f32.mxu0 %vm534_vm1, %v24060_v2 }
0x106a   : > { %v23838_v49 = vpop.xlane.xlu0 %23837  ;;  %27797 = vmatmul.mubr.msk.f32.gmra.mxu0 %vm534_vm1, %v24061_v50 }
0x106b   : > { %v23925_v30 = vadd.f32 1e-05, %v23893_v48  ;;  %v23892_v38 = vmul.f32 0.03125, %v23838_v49 }
0x106d   : > { %28542 = vrsqrt.f32 %v23925_v30  ;;  %v23924_v26 = vadd.f32 1e-05, %v23892_v38 }
0x106e   : > { %v28539_v12 = vpop.eup %28538 }
0x106f   : > { %v23987_v35 = vmul.f32 %v28539_v12, %v35100_v44  ;;  %28544 = vrsqrt.f32 %v23924_v26 }
0x1070   : > { %v28541_v41 = vpop.eup %28540 }
0x1071   : > { %v23986_v5 = vmul.f32 %v28541_v41, %v35103_v43  ;;  %v24025_v63 = vmul.f32 %v35188_v18, %v23987_v35 }
0x1073   : > { %v24024_v27 = vmul.f32 %v35188_v18, %v23986_v5  ;;  %v24063_v61 = vadd.f32 %v35197_v19, %v24025_v63  ;;  %v24643_v63 = vld [vmem:[%s35295_s29 + $0x38] sm:$0xff] }
0x1074   : > { %v23847_v16 = vpop.xlane.xlu1 %23846  ;;  %27820 = vmatprep.subr.mxu1 %v24643_v63 }
0x1075   : > { %v23895_v31 = vmul.f32 0.03125, %v23847_v16  ;;  %v24062_v22 = vadd.f32 %v35197_v19, %v24024_v27  ;;  %27821 = vmatpush3.msra.mxu1 %v24643_v63 }
0x1076   : > { %v23844_v33 = vpop.xlane.xlu0 %23843 }
0x1077   : > { %v23927_v7 = vadd.f32 1e-05, %v23895_v31  ;;  %v23894_v8 = vmul.f32 0.03125, %v23844_v33  ;;  %27799 = vmatprep.mubr.msk.f32.mxu0 %vm534_vm1, %v24062_v22  ;;  %v24642_v31 = vld [vmem:[%s35295_s29 + $0x30] sm:$0xff] }
0x1078   : > { %27800 = vmatmul.mubr.msk.f32.gmra.mxu0 %vm534_vm1, %v24063_v61  ;;  %27822 = vmatprep.subr.mxu1 %v24642_v31  ;;  %v24641_v61 = vld [vmem:[%s35295_s29 + $0x28] sm:$0xff] }
0x1079   : > { %28546 = vrsqrt.f32 %v23927_v7  ;;  %v23926_v44 = vadd.f32 1e-05, %v23894_v8  ;;  %27823 = vmatpush3.msra.mxu1 %v24642_v31 }
0x107a   : > { %v28543_v43 = vpop.eup %28542  ;;  %27824 = vmatprep.subr.mxu1 %v24641_v61 }
0x107b   : > { %v23989_v0 = vmul.f32 %v28543_v43, %v35112_v34  ;;  %28548 = vrsqrt.f32 %v23926_v44  ;;  %27825 = vmatpush3.msra.mxu1 %v24641_v61  ;;  %v24640_v44 = vld [vmem:[%s35295_s29 + $0x20] sm:$0xff] }
0x107c   : > { %v28545_v17 = vpop.eup %28544  ;;  %27826 = vmatprep.subr.mxu1 %v24640_v44 }
0x107d   : > { %v23988_v39 = vmul.f32 %v28545_v17, %v35115_v4  ;;  %v24027_v24 = vmul.f32 %v35188_v18, %v23989_v0  ;;  %27827 = vmatpush3.msra.mxu1 %v24640_v44 }
0x107f   : > { %v24026_v42 = vmul.f32 %v35188_v18, %v23988_v39  ;;  %v24065_v23 = vadd.f32 %v35197_v19, %v24027_v24  ;;  %v24639_v39 = vld [vmem:[%s35295_s29 + $0x18] sm:$0xff] }
0x1080   : > { %v23853_v14 = vpop.xlane.xlu1 %23852  ;;  %27828 = vmatprep.subr.mxu1 %v24639_v39 }
0x1081   : > { %v23897_v51 = vmul.f32 0.03125, %v23853_v14  ;;  %v24064_v32 = vadd.f32 %v35197_v19, %v24026_v42  ;;  %27829 = vmatpush3.msra.mxu1 %v24639_v39  ;;  %v24638_v42 = vld [vmem:[%s35295_s29 + $0x10] sm:$0xff] }
0x1082   : > { %v23850_v45 = vpop.xlane.xlu0 %23849  ;;  %27830 = vmatprep.subr.mxu1 %v24638_v42 }
0x1083   : > { %v23929_v28 = vadd.f32 1e-05, %v23897_v51  ;;  %v23896_v58 = vmul.f32 0.03125, %v23850_v45  ;;  %27802 = vmatprep.mubr.msk.f32.mxu0 %vm534_vm1, %v24064_v32  ;;  %27831 = vmatpush3.msra.mxu1 %v24638_v42  ;;  %v24637_v32 = vld [vmem:[%s35295_s29 + $0x8] sm:$0xff] }
0x1084   : > { %27803 = vmatmul.mubr.msk.f32.gmra.mxu0 %vm534_vm1, %v24065_v23  ;;  %27832 = vmatprep.subr.mxu1 %v24637_v32 }
0x1085   : > { %28550 = vrsqrt.f32 %v23929_v28  ;;  %v23928_v34 = vadd.f32 1e-05, %v23896_v58  ;;  %27833 = vmatpush3.msra.mxu1 %v24637_v32  ;;  %v24636_v28 = vld [vmem:[%s35295_s29] sm:$0xff] }
0x1086   : > { %v28547_v4 = vpop.eup %28546  ;;  %27834 = vmatprep.subr.mxu1 %v24636_v28 }
0x1087   : > { %v23991_v53 = vmul.f32 %v28547_v4, %v35124_v47  ;;  %28552 = vrsqrt.f32 %v23928_v34  ;;  %27835 = vmatpush3.msra.mxu1 %v24636_v28 }
0x1088   : > { %v28549_v29 = vpop.eup %28548 }
0x1089   : > { %v23990_v2 = vmul.f32 %v28549_v29, %v35127_v59  ;;  %v24029_v48 = vmul.f32 %v35188_v18, %v23991_v53 }
0x108b   : > { %v24028_v50 = vmul.f32 %v35188_v18, %v23990_v2  ;;  %v24067_v12 = vadd.f32 %v35197_v19, %v24029_v48 }
0x108c   : > { %v23859_v49 = vpop.xlane.xlu1 %23858 }
0x108d   : > { %v23899_v30 = vmul.f32 0.03125, %v23859_v49  ;;  %v24066_v38 = vadd.f32 %v35197_v19, %v24028_v50 }
0x108e   : > { %v23856_v26 = vpop.xlane.xlu0 %23855 }
0x108f   : > { %v23931_v35 = vadd.f32 1e-05, %v23899_v30  ;;  %v23898_v41 = vmul.f32 0.03125, %v23856_v26  ;;  %27805 = vmatprep.mubr.msk.f32.mxu0 %vm534_vm1, %v24066_v38 }
0x1090   : > { %27806 = vmatmul.mubr.msk.f32.gmra.mxu0 %vm534_vm1, %v24067_v12 }
0x1091   : > { %28554 = vrsqrt.f32 %v23931_v35  ;;  %v23930_v47 = vadd.f32 1e-05, %v23898_v41 }
0x1092   : > { %v28551_v59 = vpop.eup %28550 }
0x1093   : > { %v23993_v5 = vmul.f32 %v28551_v59, %v35136_v1  ;;  %28556 = vrsqrt.f32 %v23930_v47 }
0x1094   : > { %v28553_v27 = vpop.eup %28552 }
0x1095   : > { %v23992_v16 = vmul.f32 %v28553_v27, %v35139_v62  ;;  %v24031_v22 = vmul.f32 %v35188_v18, %v23993_v5 }
0x1097   : > { %v24030_v33 = vmul.f32 %v35188_v18, %v23992_v16  ;;  %v24069_v62 = vadd.f32 %v35197_v19, %v24031_v22 }
0x1098   : > { %v23865_v7 = vpop.xlane.xlu1 %23864 }
0x1099   : > { %v23901_v1 = vmul.f32 0.03125, %v23865_v7  ;;  %v24068_v8 = vadd.f32 %v35197_v19, %v24030_v33 }
0x109a   : > { %v23862_v43 = vpop.xlane.xlu0 %23861 }
0x109b   : > { %v23933_v0 = vadd.f32 1e-05, %v23901_v1  ;;  %v23900_v17 = vmul.f32 0.03125, %v23862_v43  ;;  %27808 = vmatprep.mubr.msk.f32.mxu0 %vm534_vm1, %v24068_v8 }
0x109c   : > { %27809 = vmatmul.mubr.msk.f32.gmra.mxu0 %vm534_vm1, %v24069_v62 }
0x109d   : > { %28558 = vrsqrt.f32 %v23933_v0  ;;  %v23932_v24 = vadd.f32 1e-05, %v23900_v17 }
0x109e   : > { %v28555_v14 = vpop.eup %28554 }
0x109f   : > { %v23995_v51 = vmul.f32 %v28555_v14, %v35148_v56  ;;  %28560 = vrsqrt.f32 %v23932_v24 }
0x10a0   : > { %v28557_v45 = vpop.eup %28556 }
0x10a1   : > { %v23994_v23 = vmul.f32 %v28557_v45, %v35151_v57  ;;  %v24033_v58 = vmul.f32 %v35188_v18, %v23995_v51 }
0x10a3   : > { %v24032_v34 = vmul.f32 %v35188_v18, %v23994_v23  ;;  %v24071_v2 = vadd.f32 %v35197_v19, %v24033_v58 }
0x10a4   : > { %v23871_v4 = vpop.xlane.xlu1 %23870 }
0x10a5   : > { %v23903_v53 = vmul.f32 0.03125, %v23871_v4  ;;  %v24070_v29 = vadd.f32 %v35197_v19, %v24032_v34 }
0x10a6   : > { %v23868_v56 = vpop.xlane.xlu0 %23867 }
0x10a7   : > { %v23935_v48 = vadd.f32 1e-05, %v23903_v53  ;;  %v23902_v50 = vmul.f32 0.03125, %v23868_v56  ;;  %27811 = vmatprep.mubr.msk.f32.mxu0 %vm534_vm1, %v24070_v29 }
0x10a8   : > { %27812 = vmatmul.mubr.msk.f32.gmra.mxu0 %vm534_vm1, %v24071_v2 }
0x10a9   : > { %28562 = vrsqrt.f32 %v23935_v48  ;;  %v23934_v57 = vadd.f32 1e-05, %v23902_v50 }
0x10aa   : > { %v28559_v49 = vpop.eup %28558 }
0x10ab   : > { %v23997_v30 = vmul.f32 %v28559_v49, %v35160_v37  ;;  %28564 = vrsqrt.f32 %v23934_v57 }
0x10ac   : > { %v28561_v38 = vpop.eup %28560 }
0x10ad   : > { %v23996_v26 = vmul.f32 %v28561_v38, %v35163_v52  ;;  %v24035_v12 = vmul.f32 %v35188_v18, %v23997_v30 }
0x10af   : > { %v24034_v35 = vmul.f32 %v35188_v18, %v23996_v26  ;;  %v24073_v47 = vadd.f32 %v35197_v19, %v24035_v12 }
0x10b1   : > { %v24072_v41 = vadd.f32 %v35197_v19, %v24034_v35 }
0x10b3   : > { %27814 = vmatprep.mubr.msk.f32.mxu0 %vm534_vm1, %v24072_v41 }
0x10b4   : > { %27815 = vmatmul.mubr.msk.f32.gmra.mxu0 %vm534_vm1, %v24073_v47 }
0x10b6   : > { %v28563_v59 = vpop.eup %28562 }
0x10b7   : > { %v23999_v37 = vmul.f32 %v28563_v59, %v35172_v9  ;;  %v35341_v9 = vld [vmem:[%s24081_s14] ss:$0 sm:$0xff] }
0x10b8   : > { %v28565_v5 = vpop.eup %28564 }
0x10b9   : > { %v23998_v63 = vmul.f32 %v28565_v5, %v35175_v13  ;;  %v24037_v52 = vmul.f32 %v35188_v18, %v23999_v37 }
0x10bb   : > { %v24036_v27 = vmul.f32 %v35188_v18, %v23998_v63  ;;  %v24075_v31 = vadd.f32 %v35197_v19, %v24037_v52 }
0x10bd   : > { %v24074_v16 = vadd.f32 %v35197_v19, %v24036_v27 }
0x10bf   : > { %27817 = vmatprep.mubr.msk.f32.mxu0 %vm534_vm1, %v24074_v16 }
0x10c0   : > { %27818 = vmatmul.mubr.msk.f32.gmra.mxu0 %vm534_vm1, %v24075_v31 }
0x10f4   : > { %v27774_v22 = vpop.f32.mrf.mxu0 }
0x10f5   : > { %v35344_v13 = vadd.f32 %v27774_v22, %v35341_v9 }
0x10f6   : > { %v24251_v33 = vpop.f32.mrf.mxu0 }
0x10f7   : > { %v25643_v18 = vmul.f32 -1.442695, %v35344_v13  ;;  %v35348_v61 = vadd.f32 %v35341_v9, %v24251_v33 }
0x10f8   : > { %v27777_v19 = vpop.f32.mrf.mxu0 }
0x10f9   : > { %28566 = vpow2.f32 %v25643_v18  ;;  %v25642_v7 = vmul.f32 -1.442695, %v35348_v61  ;;  %v35352_v1 = vadd.f32 %v27777_v19, %v35341_v9 }
0x10fa   : > { %v24261_v8 = vpop.f32.mrf.mxu0 }
0x10fb   : > { %28568 = vpow2.f32 %v25642_v7  ;;  %v25645_v44 = vmul.f32 -1.442695, %v35352_v1  ;;  %v35356_v43 = vadd.f32 %v35341_v9, %v24261_v8 }
0x10fc   : > { %v27780_v62 = vpop.f32.mrf.mxu0 }
0x10fd   : > { %28570 = vpow2.f32 %v25645_v44  ;;  %v25644_v0 = vmul.f32 -1.442695, %v35356_v43  ;;  %v35360_v17 = vadd.f32 %v27780_v62, %v35341_v9 }
0x10fe   : > { %v24271_v39 = vpop.f32.mrf.mxu0 }
0x10ff   : > { %28572 = vpow2.f32 %v25644_v0  ;;  %v25647_v24 = vmul.f32 -1.442695, %v35360_v17  ;;  %v35364_v42 = vadd.f32 %v35341_v9, %v24271_v39 }
0x1100   : > { %v27783_v14 = vpop.f32.mrf.mxu0 }
0x1101   : > { %28574 = vpow2.f32 %v25647_v24  ;;  %v25646_v51 = vmul.f32 -1.442695, %v35364_v42  ;;  %v35368_v32 = vadd.f32 %v27783_v14, %v35341_v9 }
0x1102   : > { %v24281_v45 = vpop.f32.mrf.mxu0 }
0x1103   : > { %28576 = vpow2.f32 %v25646_v51  ;;  %v25649_v23 = vmul.f32 -1.442695, %v35368_v32  ;;  %v35372_v28 = vadd.f32 %v35341_v9, %v24281_v45 }
0x1104   : > { %v27786_v58 = vpop.f32.mrf.mxu0 }
0x1105   : > { %28578 = vpow2.f32 %v25649_v23  ;;  %v25648_v34 = vmul.f32 -1.442695, %v35372_v28  ;;  %v35376_v4 = vadd.f32 %v27786_v58, %v35341_v9 }
0x1106   : > { %v28567_v53 = vpop.eup %28566  ;;  %v24291_v29 = vpop.f32.mrf.mxu0 }
0x1107   : > { %v24507_v56 = vadd.f32 1.0, %v28567_v53  ;;  %28580 = vpow2.f32 %v25648_v34  ;;  %v25651_v2 = vmul.f32 -1.442695, %v35376_v4  ;;  %v35380_v48 = vadd.f32 %v35341_v9, %v24291_v29 }
0x1108   : > { %v28569_v50 = vpop.eup %28568  ;;  %v27789_v57 = vpop.f32.mrf.mxu0 }
0x1109   : > { %28582 = vrcp.f32 %v24507_v56  ;;  %v24506_v49 = vadd.f32 1.0, %v28569_v50  ;;  %v25650_v30 = vmul.f32 -1.442695, %v35380_v48  ;;  %v35384_v38 = vadd.f32 %v27789_v57, %v35341_v9 }
0x110a   : > { %v28571_v26 = vpop.eup %28570  ;;  %28584 = vpow2.f32 %v25651_v2  ;;  %v24301_v12 = vpop.f32.mrf.mxu0 }
0x110b   : > { %28586 = vrcp.f32 %v24506_v49  ;;  %v24509_v35 = vadd.f32 1.0, %v28571_v26  ;;  %v25653_v41 = vmul.f32 -1.442695, %v35384_v38  ;;  %v35388_v47 = vadd.f32 %v35341_v9, %v24301_v12 }
0x110c   : > { %v28573_v59 = vpop.eup %28572  ;;  %28588 = vpow2.f32 %v25650_v30 }
0x110d   : > { %28590 = vrcp.f32 %v24509_v35  ;;  %v24508_v37 = vadd.f32 1.0, %v28573_v59  ;;  %v25652_v5 = vmul.f32 -1.442695, %v35388_v47 }
0x110e   : > { %v28575_v63 = vpop.eup %28574  ;;  %28592 = vpow2.f32 %v25653_v41 }
0x110f   : > { %28594 = vrcp.f32 %v24508_v37  ;;  %v24511_v52 = vadd.f32 1.0, %v28575_v63 }
0x1110   : > { %v28577_v27 = vpop.eup %28576  ;;  %28596 = vpow2.f32 %v25652_v5 }
0x1111   : > { %v24510_v16 = vadd.f32 1.0, %v28577_v27  ;;  %28598 = vrcp.f32 %v24511_v52 }
0x1112   : > { %v28579_v31 = vpop.eup %28578  ;;  %v27792_v33 = vpop.f32.mrf.mxu0 }
0x1113   : > { %28600 = vrcp.f32 %v24510_v16  ;;  %v24513_v22 = vadd.f32 1.0, %v28579_v31  ;;  %v35392_v19 = vadd.f32 %v27792_v33, %v35341_v9 }
0x1114   : > { %v28581_v18 = vpop.eup %28580  ;;  %v24311_v8 = vpop.f32.mrf.mxu0 }
0x1115   : > { %v24512_v7 = vadd.f32 1.0, %v28581_v18  ;;  %28602 = vrcp.f32 %v24513_v22  ;;  %v25655_v62 = vmul.f32 -1.442695, %v35392_v19  ;;  %v35396_v0 = vadd.f32 %v35341_v9, %v24311_v8 }
0x1116   : > { %v28583_v44 = vpop.eup %28582 }
0x1117   : > { %v28585_v39 = vpop.eup %28584  ;;  %28604 = vrcp.f32 %v24512_v7  ;;  %v25654_v51 = vmul.f32 -1.442695, %v35396_v0  ;;  %v24603_v34 = vmul.f32 %v28583_v44, %v35344_v13 }
0x1118   : > { %v28587_v24 = vpop.eup %28586  ;;  %v24515_v14 = vadd.f32 1.0, %v28585_v39  ;;  %28606 = vpow2.f32 %v25655_v62 }
0x1119   : > { %v28589_v45 = vpop.eup %28588  ;;  %v24602_v23 = vmul.f32 %v28587_v24, %v35348_v61 }
0x111a   : > { %v28591_v58 = vpop.eup %28590  ;;  %28608 = vrcp.f32 %v24515_v14  ;;  %v24514_v53 = vadd.f32 1.0, %v28589_v45 }
0x111b   : > { %v28593_v29 = vpop.eup %28592  ;;  %28610 = vpow2.f32 %v25654_v51  ;;  %27836 = vmatprep.mubr.msk.f32.mxu1 %vm24644_vm6, %v24602_v23  ;;  %v24605_v49 = vmul.f32 %v28591_v58, %v35352_v1 }
0x111c   : > { %v28595_v56 = vpop.eup %28594  ;;  %28612 = vrcp.f32 %v24514_v53  ;;  %v24517_v2 = vadd.f32 1.0, %v28593_v29  ;;  %27837 = vmatmul.mubr.msk.f32.vlgmr.msra.gmra.mxu1 %vm24644_vm6, %v24603_v34 }
0x111d   : > { %v28597_v50 = vpop.eup %28596  ;;  %v24604_v57 = vmul.f32 %v28595_v56, %v35356_v43 }
0x111e   : > { %v24516_v61 = vadd.f32 1.0, %v28597_v50  ;;  %v28599_v30 = vpop.eup %28598  ;;  %28614 = vrcp.f32 %v24517_v2  ;;  %v27795_v13 = vpop.f32.mrf.mxu0 }
0x111f   : > { %27839 = vmatprep.mubr.msk.f32.mxu1 %vm24644_vm6, %v24604_v57  ;;  %v35407_v12 = vadd.f32 %v27795_v13, %v35341_v9  ;;  %v24607_v43 = vmul.f32 %v28599_v30, %v35360_v17 }
0x1120   : > { %v28601_v26 = vpop.eup %28600  ;;  %28616 = vrcp.f32 %v24516_v61  ;;  %27840 = vmatmul.mubr.msk.f32.gmra.mxu1 %vm24644_vm6, %v24605_v49  ;;  %v24321_v41 = vpop.f32.mrf.mxu0 }
0x1121   : > { %v24606_v35 = vmul.f32 %v28601_v26, %v35364_v42  ;;  %v25657_v1 = vmul.f32 -1.442695, %v35407_v12  ;;  %v35414_v59 = vadd.f32 %v35341_v9, %v24321_v41 }
0x1122   : > { %v28603_v37 = vpop.eup %28602 }
0x1123   : > { %27842 = vmatprep.mubr.msk.f32.mxu1 %vm24644_vm6, %v24606_v35  ;;  %28618 = vpow2.f32 %v25657_v1  ;;  %v25656_v63 = vmul.f32 -1.442695, %v35414_v59  ;;  %v24609_v27 = vmul.f32 %v28603_v37, %v35368_v32 }
0x1124   : > { %v28605_v5 = vpop.eup %28604  ;;  %27843 = vmatmul.mubr.msk.f32.gmra.mxu1 %vm24644_vm6, %v24607_v43 }
0x1125   : > { %v28607_v52 = vpop.eup %28606  ;;  %v24608_v42 = vmul.f32 %v28605_v5, %v35372_v28  ;;  %28620 = vpow2.f32 %v25656_v63 }
0x1126   : > { %v24519_v17 = vadd.f32 1.0, %v28607_v52 }
0x1127   : > { %v28609_v16 = vpop.eup %28608  ;;  %27845 = vmatprep.mubr.msk.f32.mxu1 %vm24644_vm6, %v24608_v42 }
0x1128   : > { %v28611_v31 = vpop.eup %28610  ;;  %27846 = vmatmul.mubr.msk.f32.gmra.mxu1 %vm24644_vm6, %v24609_v27  ;;  %28622 = vrcp.f32 %v24519_v17  ;;  %v24611_v7 = vmul.f32 %v28609_v16, %v35376_v4 }
0x1129   : > { %v28613_v22 = vpop.eup %28612  ;;  %v24518_v33 = vadd.f32 1.0, %v28611_v31 }
0x112a   : > { %v24610_v18 = vmul.f32 %v28613_v22, %v35380_v48  ;;  %v27798_v8 = vpop.f32.mrf.mxu0 }
0x112b   : > { %28624 = vrcp.f32 %v24518_v33  ;;  %v28615_v28 = vpop.eup %28614  ;;  %v35427_v32 = vadd.f32 %v27798_v8, %v35341_v9 }
0x112c   : > { %27848 = vmatprep.mubr.msk.f32.mxu1 %vm24644_vm6, %v24610_v18  ;;  %v24331_v62 = vpop.f32.mrf.mxu0  ;;  %v24613_v4 = vmul.f32 %v28615_v28, %v35384_v38 }
0x112d   : > { %v28617_v44 = vpop.eup %28616  ;;  %27849 = vmatmul.mubr.msk.f32.gmra.mxu1 %vm24644_vm6, %v24611_v7  ;;  %v25659_v24 = vmul.f32 -1.442695, %v35427_v32  ;;  %v24332_v48 = vadd.f32 %v35341_v9, %v24331_v62 }
0x112e   : > { %v24612_v39 = vmul.f32 %v28617_v44, %v35388_v47 }
0x112f   : > { %28626 = vpow2.f32 %v25659_v24  ;;  %v25658_v14 = vmul.f32 -1.442695, %v24332_v48 }
0x1130   : > { %27851 = vmatprep.mubr.msk.f32.mxu1 %vm24644_vm6, %v24612_v39  ;;  %v28619_v51 = vpop.eup %28618 }
0x1131   : > { %27852 = vmatmul.mubr.msk.f32.gmra.mxu1 %vm24644_vm6, %v24613_v4  ;;  %v24521_v45 = vadd.f32 1.0, %v28619_v51  ;;  %28628 = vpow2.f32 %v25658_v14 }
0x1132   : > { %v28621_v23 = vpop.eup %28620 }
0x1133   : > { %v24520_v58 = vadd.f32 1.0, %v28621_v23  ;;  %28630 = vrcp.f32 %v24521_v45 }
0x1135   : > { %28632 = vrcp.f32 %v24520_v58  ;;  %v28623_v47 = vpop.eup %28622 }
0x1136   : > { %v24615_v56 = vmul.f32 %v28623_v47, %v35392_v19 }
0x1138   : > { %v28625_v34 = vpop.eup %28624  ;;  %v27801_v53 = vpop.f32.mrf.mxu0 }
0x1139   : > { %v24614_v29 = vmul.f32 %v28625_v34, %v35396_v0  ;;  %v24347_v38 = vadd.f32 %v27801_v53, %v35341_v9 }
0x113a   : > { %v24341_v2 = vpop.f32.mrf.mxu0 }
0x113b   : > { %v25661_v50 = vmul.f32 -1.442695, %v24347_v38  ;;  %v24342_v57 = vadd.f32 %v35341_v9, %v24341_v2  ;;  %27854 = vmatprep.mubr.msk.f32.mxu1 %vm24644_vm6, %v24614_v29 }
0x113c   : > { %27855 = vmatmul.mubr.msk.f32.gmra.mxu1 %vm24644_vm6, %v24615_v56  ;;  %v28627_v49 = vpop.eup %28626 }
0x113d   : > { %28634 = vpow2.f32 %v25661_v50  ;;  %v25660_v61 = vmul.f32 -1.442695, %v24342_v57  ;;  %v24523_v30 = vadd.f32 1.0, %v28627_v49 }
0x113e   : > { %v28629_v13 = vpop.eup %28628 }
0x113f   : > { %28636 = vpow2.f32 %v25660_v61  ;;  %v24522_v26 = vadd.f32 1.0, %v28629_v13 }
0x1140   : > { %28638 = vrcp.f32 %v24523_v30  ;;  %v28631_v0 = vpop.eup %28630 }
0x1141   : > { %28640 = vrcp.f32 %v24522_v26  ;;  %v24617_v43 = vmul.f32 %v28631_v0, %v35407_v12 }
0x1142   : > { %v28633_v35 = vpop.eup %28632 }
0x1143   : > { %v24616_v19 = vmul.f32 %v28633_v35, %v35414_v59 }
0x1144   : > { %v27804_v41 = vpop.f32.mrf.mxu0 }
0x1145   : > { %v24357_v1 = vadd.f32 %v27804_v41, %v35341_v9  ;;  %27857 = vmatprep.mubr.msk.f32.mxu1 %vm24644_vm6, %v24616_v19 }
0x1146   : > { %v24351_v37 = vpop.f32.mrf.mxu0  ;;  %27858 = vmatmul.mubr.msk.f32.gmra.mxu1 %vm24644_vm6, %v24617_v43 }
0x1147   : > { %v25663_v5 = vmul.f32 -1.442695, %v24357_v1  ;;  %v24352_v63 = vadd.f32 %v35341_v9, %v24351_v37 }
0x1149   : > { %28642 = vpow2.f32 %v25663_v5  ;;  %v25662_v52 = vmul.f32 -1.442695, %v24352_v63 }
0x114a   : > { %v28635_v42 = vpop.eup %28634 }
0x114b   : > { %v24525_v27 = vadd.f32 1.0, %v28635_v42  ;;  %28644 = vpow2.f32 %v25662_v52 }
0x114c   : > { %v28637_v17 = vpop.eup %28636 }
0x114d   : > { %v24524_v59 = vadd.f32 1.0, %v28637_v17  ;;  %v28639_v16 = vpop.eup %28638  ;;  %28646 = vrcp.f32 %v24525_v27 }
0x114e   : > { %v28641_v12 = vpop.eup %28640  ;;  %v24619_v33 = vmul.f32 %v28639_v16, %v35427_v32 }
0x114f   : > { %28648 = vrcp.f32 %v24524_v59  ;;  %v24618_v31 = vmul.f32 %v28641_v12, %v24332_v48 }
0x1150   : > { %v27807_v22 = vpop.f32.mrf.mxu0 }
0x1151   : > { %v24367_v18 = vadd.f32 %v27807_v22, %v35341_v9  ;;  %27860 = vmatprep.mubr.msk.f32.mxu1 %vm24644_vm6, %v24618_v31 }
0x1152   : > { %v24361_v7 = vpop.f32.mrf.mxu0  ;;  %27861 = vmatmul.mubr.msk.f32.gmra.mxu1 %vm24644_vm6, %v24619_v33 }
0x1153   : > { %v25665_v8 = vmul.f32 -1.442695, %v24367_v18  ;;  %v24362_v28 = vadd.f32 %v35341_v9, %v24361_v7 }
0x1155   : > { %28650 = vpow2.f32 %v25665_v8  ;;  %v25664_v44 = vmul.f32 -1.442695, %v24362_v28 }
0x1156   : > { %v28643_v62 = vpop.eup %28642 }
0x1157   : > { %v24527_v39 = vadd.f32 1.0, %v28643_v62  ;;  %28652 = vpow2.f32 %v25664_v44 }
0x1158   : > { %v28645_v24 = vpop.eup %28644 }
0x1159   : > { %v24526_v48 = vadd.f32 1.0, %v28645_v24  ;;  %28654 = vrcp.f32 %v24527_v39 }
0x115a   : > { %v28647_v4 = vpop.eup %28646 }
0x115b   : > { %28656 = vrcp.f32 %v24526_v48  ;;  %v24621_v23 = vmul.f32 %v28647_v4, %v24347_v38 }
0x115c   : > { %v28649_v32 = vpop.eup %28648  ;;  %v27810_v14 = vpop.f32.mrf.mxu0 }
0x115d   : > { %v24620_v51 = vmul.f32 %v28649_v32, %v24342_v57  ;;  %v24377_v45 = vadd.f32 %v27810_v14, %v35341_v9 }
0x115e   : > { %v24371_v58 = vpop.f32.mrf.mxu0 }
0x115f   : > { %v25667_v47 = vmul.f32 -1.442695, %v24377_v45  ;;  %v24372_v34 = vadd.f32 %v35341_v9, %v24371_v58  ;;  %27863 = vmatprep.mubr.msk.f32.mxu1 %vm24644_vm6, %v24620_v51 }
0x1160   : > { %27864 = vmatmul.mubr.msk.f32.gmra.mxu1 %vm24644_vm6, %v24621_v23 }
0x1161   : > { %28658 = vpow2.f32 %v25667_v47  ;;  %v25666_v53 = vmul.f32 -1.442695, %v24372_v34 }
0x1162   : > { %v28651_v29 = vpop.eup %28650 }
0x1163   : > { %v24529_v56 = vadd.f32 1.0, %v28651_v29  ;;  %28660 = vpow2.f32 %v25666_v53 }
0x1164   : > { %v28653_v2 = vpop.eup %28652 }
0x1165   : > { %v24528_v50 = vadd.f32 1.0, %v28653_v2  ;;  %28662 = vrcp.f32 %v24529_v56 }
0x1166   : > { %v28655_v57 = vpop.eup %28654 }
0x1167   : > { %28664 = vrcp.f32 %v24528_v50  ;;  %v24623_v13 = vmul.f32 %v28655_v57, %v24357_v1 }
0x1168   : > { %v28657_v49 = vpop.eup %28656  ;;  %v27813_v38 = vpop.f32.mrf.mxu0 }
0x1169   : > { %v24622_v61 = vmul.f32 %v28657_v49, %v24352_v63  ;;  %v24387_v30 = vadd.f32 %v27813_v38, %v35341_v9 }
0x116a   : > { %v24381_v26 = vpop.f32.mrf.mxu0 }
0x116b   : > { %v25669_v0 = vmul.f32 -1.442695, %v24387_v30  ;;  %v24382_v35 = vadd.f32 %v35341_v9, %v24381_v26  ;;  %27866 = vmatprep.mubr.msk.f32.mxu1 %vm24644_vm6, %v24622_v61 }
0x116c   : > { %27867 = vmatmul.mubr.msk.f32.gmra.mxu1 %vm24644_vm6, %v24623_v13 }
0x116d   : > { %28666 = vpow2.f32 %v25669_v0  ;;  %v25668_v19 = vmul.f32 -1.442695, %v24382_v35 }
0x116e   : > { %v28659_v41 = vpop.eup %28658 }
0x116f   : > { %v24531_v43 = vadd.f32 1.0, %v28659_v41  ;;  %28668 = vpow2.f32 %v25668_v19  ;;  %v35479_v19 = vld [vmem:[%s24998_s16] ss:$0 sm:$0xff] }
0x1170   : > { %v28661_v37 = vpop.eup %28660 }
0x1171   : > { %v24530_v5 = vadd.f32 1.0, %v28661_v37  ;;  %28670 = vrcp.f32 %v24531_v43 }
0x1172   : > { %v28663_v63 = vpop.eup %28662 }
0x1173   : > { %28672 = vrcp.f32 %v24530_v5  ;;  %v24625_v17 = vmul.f32 %v28663_v63, %v24367_v18 }
0x1174   : > { %v28665_v52 = vpop.eup %28664  ;;  %v27816_v1 = vpop.f32.mrf.mxu0 }
0x1175   : > { %v24624_v42 = vmul.f32 %v28665_v52, %v24362_v28  ;;  %v24397_v27 = vadd.f32 %v27816_v1, %v35341_v9 }
0x1176   : > { %v24391_v59 = vpop.f32.mrf.mxu0 }
0x1177   : > { %v25671_v16 = vmul.f32 -1.442695, %v24397_v27  ;;  %v24392_v12 = vadd.f32 %v35341_v9, %v24391_v59  ;;  %27869 = vmatprep.mubr.msk.f32.mxu1 %vm24644_vm6, %v24624_v42 }
0x1178   : > { %27870 = vmatmul.mubr.msk.f32.gmra.mxu1 %vm24644_vm6, %v24625_v17 }
0x1179   : > { %28674 = vpow2.f32 %v25671_v16  ;;  %v25670_v31 = vmul.f32 -1.442695, %v24392_v12 }
0x117a   : > { %v28667_v22 = vpop.eup %28666 }
0x117b   : > { %v24533_v33 = vadd.f32 1.0, %v28667_v22  ;;  %28676 = vpow2.f32 %v25670_v31 }
0x117c   : > { %v28669_v7 = vpop.eup %28668 }
0x117d   : > { %v24532_v8 = vadd.f32 1.0, %v28669_v7  ;;  %28678 = vrcp.f32 %v24533_v33 }
0x117e   : > { %v28671_v28 = vpop.eup %28670 }
0x117f   : > { %28680 = vrcp.f32 %v24532_v8  ;;  %v24627_v24 = vmul.f32 %v28671_v28, %v24377_v45 }
0x1180   : > { %v28673_v44 = vpop.eup %28672  ;;  %v27819_v18 = vpop.f32.mrf.mxu0 }
0x1181   : > { %v24626_v62 = vmul.f32 %v28673_v44, %v24372_v34  ;;  %v24407_v39 = vadd.f32 %v27819_v18, %v35341_v9 }
0x1182   : > { %v24401_v48 = vpop.f32.mrf.mxu0 }
0x1183   : > { %v25673_v4 = vmul.f32 -1.442695, %v24407_v39  ;;  %v24402_v32 = vadd.f32 %v35341_v9, %v24401_v48  ;;  %27872 = vmatprep.mubr.msk.f32.mxu1 %vm24644_vm6, %v24626_v62 }
0x1184   : > { %27873 = vmatmul.mubr.msk.f32.gmra.mxu1 %vm24644_vm6, %v24627_v24 }
0x1185   : > { %28682 = vpow2.f32 %v25673_v4  ;;  %v25672_v14 = vmul.f32 -1.442695, %v24402_v32 }
0x1186   : > { %v28675_v51 = vpop.eup %28674 }
0x1187   : > { %v24535_v23 = vadd.f32 1.0, %v28675_v51  ;;  %28684 = vpow2.f32 %v25672_v14 }
0x1188   : > { %v28677_v58 = vpop.eup %28676 }
0x1189   : > { %v24534_v47 = vadd.f32 1.0, %v28677_v58  ;;  %28686 = vrcp.f32 %v24535_v23  ;;  %v36972_v58 = vld [vmem:[#allocation213_spill] sm:$0xff] }
0x118a   : > { %v28679_v34 = vpop.eup %28678 }
0x118b   : > { %28688 = vrcp.f32 %v24534_v47  ;;  %v24629_v29 = vmul.f32 %v28679_v34, %v24387_v30 }
0x118c   : > { %v28681_v53 = vpop.eup %28680 }
0x118d   : > { %v24628_v45 = vmul.f32 %v28681_v53, %v24382_v35  ;;  %v36973_v53 = vld [vmem:[#allocation220_spill] sm:$0xff] }
0x118f   : > { %27875 = vmatprep.mubr.msk.f32.mxu1 %vm24644_vm6, %v24628_v45 }
0x1190   : > { %27876 = vmatmul.mubr.msk.f32.gmra.mxu1 %vm24644_vm6, %v24629_v29 }
0x1192   : > { %v28683_v9 = vpop.eup %28682 }
0x1193   : > { %v24537_v56 = vadd.f32 1.0, %v28683_v9  ;;  %v36974_v9 = vld [vmem:[#allocation110_spill] sm:$0xff] }
0x1194   : > { %v28685_v2 = vpop.eup %28684 }
0x1195   : > { %v24536_v50 = vadd.f32 1.0, %v28685_v2  ;;  %28690 = vrcp.f32 %v24537_v56 }
0x1196   : > { %v28687_v57 = vpop.eup %28686 }
0x1197   : > { %28692 = vrcp.f32 %v24536_v50  ;;  %v24631_v61 = vmul.f32 %v28687_v57, %v24397_v27  ;;  %v36975_v57 = vld [vmem:[#allocation229_spill] sm:$0xff] }
0x1198   : > { %v28689_v49 = vpop.eup %28688 }
0x1199   : > { %v24630_v38 = vmul.f32 %v28689_v49, %v24392_v12 }
0x119b   : > { %27878 = vmatprep.mubr.msk.f32.mxu1 %vm24644_vm6, %v24630_v38 }
0x119c   : > { %27879 = vmatmul.mubr.msk.f32.gmra.mxu1 %vm24644_vm6, %v24631_v61 }
0x11a2   : > { %v28691_v30 = vpop.eup %28690 }
0x11a3   : > { %v24633_v0 = vmul.f32 %v28691_v30, %v24407_v39  ;;  %v36976_v30 = vld [vmem:[#allocation105_spill] sm:$0xff] }
0x11a4   : > { %v28693_v13 = vpop.eup %28692 }
0x11a5   : > { %v24632_v26 = vmul.f32 %v28693_v13, %v24402_v32 }
0x11a7   : > { %27881 = vmatprep.mubr.msk.f32.mxu1 %vm24644_vm6, %v24632_v26 }
0x11a8   : > { %27882 = vmatmul.mubr.msk.f32.gmra.mxu1 %vm24644_vm6, %v24633_v0 }
0x11dc   : > { %v27838_v35 = vpop.f32.mrf.mxu1 }
0x11dd   : > { %v24967_v41 = vadd.f32 %v27838_v35, %v34735_v40  ;;  %v36977_v35 = vld [vmem:[#allocation231_spill] sm:$0xff] }
0x11de   : > { %v24807_v43 = vpop.f32.mrf.mxu1 }
0x11df   : > { %v25007_v37 = vadd.f32 %v35479_v19, %v24967_v41  ;;  %v24966_v5 = vadd.f32 %v24807_v43, %v34741_v6 }
0x11e0   : > { %v27841_v63 = vpop.f32.mrf.mxu1 }
0x11e1   : > { %25039 = vst.msk [vmem:[%s35694_s12 + $0x8] sm:$0xff] %vm534_vm1, %v25007_v37  ;;  %v25006_v52 = vadd.f32 %v35479_v19, %v24966_v5  ;;  %v24969_v1 = vadd.f32 %v27841_v63, %v34757_v60  ;;  %v36978_v5 = vld [vmem:[#allocation216_spill] sm:$0xff] }
0x11e2   : > { %v24817_v42 = vpop.f32.mrf.mxu1 }
0x11e3   : > { %25038 = vst.msk [vmem:[%s35694_s12] sm:$0xff] %vm534_vm1, %v25006_v52  ;;  %v25009_v40 = vadd.f32 %v35479_v19, %v24969_v1  ;;  %v24968_v6 = vadd.f32 %v24817_v42, %v34754_v15  ;;  %v36979_v42 = vld [vmem:[#allocation222_spill] sm:$0xff] }
0x11e4   : > { %v27844_v27 = vpop.f32.mrf.mxu1 }
0x11e5   : > { %25041 = vst.msk [vmem:[%s35694_s12 + $0x18] sm:$0xff] %vm534_vm1, %v25009_v40  ;;  %v25008_v17 = vadd.f32 %v35479_v19, %v24968_v6  ;;  %v24971_v60 = vadd.f32 %v27844_v27, %v34767_v55 }
0x11e6   : > { %v24827_v59 = vpop.f32.mrf.mxu1 }
0x11e7   : > { %25040 = vst.msk [vmem:[%s35694_s12 + $0x10] sm:$0xff] %vm534_vm1, %v25008_v17  ;;  %v25011_v16 = vadd.f32 %v35479_v19, %v24971_v60  ;;  %v24970_v15 = vadd.f32 %v24827_v59, %v34773_v54  ;;  %v36980_v17 = vld [vmem:[#allocation118_spill] sm:$0xff] }
0x11e8   : > { %v27847_v12 = vpop.f32.mrf.mxu1 }
0x11e9   : > { %25043 = vst.msk [vmem:[%s35694_s12 + $0x28] sm:$0xff] %vm534_vm1, %v25011_v16  ;;  %v25010_v31 = vadd.f32 %v35479_v19, %v24970_v15  ;;  %v24973_v55 = vadd.f32 %v27847_v12, %v34783_v25  ;;  %v36981_v15 = vld [vmem:[#allocation111_spill] sm:$0xff] }
0x11ea   : > { %v24837_v22 = vpop.f32.mrf.mxu1 }
0x11eb   : > { %25042 = vst.msk [vmem:[%s35694_s12 + $0x20] sm:$0xff] %vm534_vm1, %v25010_v31  ;;  %v25013_v33 = vadd.f32 %v35479_v19, %v24973_v55  ;;  %v24972_v54 = vadd.f32 %v24837_v22, %v34789_v20  ;;  %v36982_v22 = vld [vmem:[#allocation218_spill] sm:$0xff] }
0x11ed   : > { %25045 = vst.msk [vmem:[%s35694_s12 + $0x38] sm:$0xff] %vm534_vm1, %v25013_v33  ;;  %v25012_v7 = vadd.f32 %v35479_v19, %v24972_v54  ;;  %v27850_v8 = vpop.f32.mrf.mxu1 }
0x11ee   : > { %v24975_v25 = vadd.f32 %v27850_v8, %v34799_v10  ;;  %v36983_v8 = vld [vmem:[#allocation23_spill] sm:$0xff] }
0x11ef   : > { %25044 = vst.msk [vmem:[%s35694_s12 + $0x30] sm:$0xff] %vm534_vm1, %v25012_v7  ;;  %v24847_v28 = vpop.f32.mrf.mxu1 }
0x11f0   : > { %v25015_v44 = vadd.f32 %v35479_v19, %v24975_v25  ;;  %v24974_v20 = vadd.f32 %v24847_v28, %v34805_v11 }
0x11f1   : > { %v27853_v18 = vpop.f32.mrf.mxu1 }
0x11f2   : > { %25047 = vst.msk [vmem:[%s35694_s12 + $0x48] sm:$0xff] %vm534_vm1, %v25015_v44  ;;  %v25014_v62 = vadd.f32 %v35479_v19, %v24974_v20  ;;  %v24977_v10 = vadd.f32 %v27853_v18, %v34815_v21  ;;  %v36984_v20 = vld [vmem:[#allocation127_spill] sm:$0xff] }
0x11f3   : > { %v24857_v39 = vpop.f32.mrf.mxu1 }
0x11f4   : > { %25046 = vst.msk [vmem:[%s35694_s12 + $0x40] sm:$0xff] %vm534_vm1, %v25014_v62  ;;  %v25017_v24 = vadd.f32 %v35479_v19, %v24977_v10  ;;  %v24976_v11 = vadd.f32 %v24857_v39, %v34821_v46  ;;  %v36985_v39 = vld [vmem:[#allocation120_spill] sm:$0xff] }
0x11f6   : > { %25049 = vst.msk [vmem:[%s35694_s12 + $0x58] sm:$0xff] %vm534_vm1, %v25017_v24  ;;  %v25016_v48 = vadd.f32 %v35479_v19, %v24976_v11 }
0x11f8   : > { %25048 = vst.msk [vmem:[%s35694_s12 + $0x50] sm:$0xff] %vm534_vm1, %v25016_v48 }
0x11fc   : > { %v27856_v21 = vpop.f32.mrf.mxu1 }
0x11fd   : > { %v24979_v4 = vadd.f32 %v27856_v21, %v34831_v3  ;;  %v36986_v21 = vld [vmem:[#allocation41_spill] sm:$0xff] }
0x11fe   : > { %v24867_v32 = vpop.f32.mrf.mxu1 }
0x11ff   : > { %v25019_v14 = vadd.f32 %v35479_v19, %v24979_v4  ;;  %v24978_v46 = vadd.f32 %v24867_v32, %v34837_v36 }
0x1201   : > { %25051 = vst.msk [vmem:[%s35694_s12 + $0x68] sm:$0xff] %vm534_vm1, %v25019_v14  ;;  %v25018_v51 = vadd.f32 %v35479_v19, %v24978_v46  ;;  %v36987_v46 = vld [vmem:[#allocation221_spill] sm:$0xff] }
0x1203   : > { %25050 = vst.msk [vmem:[%s35694_s12 + $0x60] sm:$0xff] %vm534_vm1, %v25018_v51 }
0x1206   : > { %v27859_v23 = vpop.f32.mrf.mxu1 }
0x1207   : > { %v24981_v3 = vadd.f32 %v27859_v23, %v36972_v58 }
0x1208   : > { %v24877_v47 = vpop.f32.mrf.mxu1 }
0x1209   : > { %v25021_v34 = vadd.f32 %v35479_v19, %v24981_v3  ;;  %v24980_v36 = vadd.f32 %v24877_v47, %v36973_v53  ;;  %v36988_v3 = vld [vmem:[#allocation223_spill] sm:$0xff] }
0x120b   : > { %25053 = vst.msk [vmem:[%s35694_s12 + $0x78] sm:$0xff] %vm534_vm1, %v25021_v34  ;;  %v25020_v45 = vadd.f32 %v35479_v19, %v24980_v36  ;;  %v36989_v36 = vld [vmem:[#allocation133_spill] sm:$0xff] }
0x120d   : > { %25052 = vst.msk [vmem:[%s35694_s12 + $0x70] sm:$0xff] %vm534_vm1, %v25020_v45 }
0x1212   : > { %v27862_v29 = vpop.f32.mrf.mxu1 }
0x1213   : > { %v24983_v56 = vadd.f32 %v27862_v29, %v36974_v9 }
0x1214   : > { %v24887_v2 = vpop.f32.mrf.mxu1 }
0x1215   : > { %v25023_v50 = vadd.f32 %v35479_v19, %v24983_v56  ;;  %v24982_v49 = vadd.f32 %v24887_v2, %v36975_v57 }
0x1217   : > { %25055 = vst.msk [vmem:[%s35694_s12 + $0x88] sm:$0xff] %vm534_vm1, %v25023_v50  ;;  %v25022_v38 = vadd.f32 %v35479_v19, %v24982_v49 }
0x1219   : > { %25054 = vst.msk [vmem:[%s35694_s12 + $0x80] sm:$0xff] %vm534_vm1, %v25022_v38 }
0x1220   : > { %v27865_v61 = vpop.f32.mrf.mxu1 }
0x1221   : > { %v24985_v13 = vadd.f32 %v27865_v61, %v36976_v30 }
0x1222   : > { %v24897_v26 = vpop.f32.mrf.mxu1 }
0x1223   : > { %v25025_v0 = vadd.f32 %v35479_v19, %v24985_v13  ;;  %v24984_v41 = vadd.f32 %v24897_v26, %v36977_v35 }
0x1225   : > { %25057 = vst.msk [vmem:[%s35694_s12 + $0x98] sm:$0xff] %vm534_vm1, %v25025_v0  ;;  %v25024_v43 = vadd.f32 %v35479_v19, %v24984_v41 }
0x1227   : > { %25056 = vst.msk [vmem:[%s35694_s12 + $0x90] sm:$0xff] %vm534_vm1, %v25024_v43 }
0x122c   : > { %v27868_v37 = vpop.f32.mrf.mxu1 }
0x122d   : > { %v24987_v63 = vadd.f32 %v27868_v37, %v36978_v5 }
0x122e   : > { %v24907_v52 = vpop.f32.mrf.mxu1 }
0x122f   : > { %v25027_v1 = vadd.f32 %v35479_v19, %v24987_v63  ;;  %v24986_v40 = vadd.f32 %v24907_v52, %v36979_v42 }
0x1231   : > { %25059 = vst.msk [vmem:[%s35694_s12 + $0xa8] sm:$0xff] %vm534_vm1, %v25027_v1  ;;  %v25026_v6 = vadd.f32 %v35479_v19, %v24986_v40 }
0x1233   : > { %25058 = vst.msk [vmem:[%s35694_s12 + $0xa0] sm:$0xff] %vm534_vm1, %v25026_v6 }
0x1238   : > { %v27871_v27 = vpop.f32.mrf.mxu1 }
0x1239   : > { %v24989_v60 = vadd.f32 %v27871_v27, %v36980_v17 }
0x123a   : > { %v24917_v59 = vpop.f32.mrf.mxu1 }
0x123b   : > { %v25029_v16 = vadd.f32 %v35479_v19, %v24989_v60  ;;  %v24988_v12 = vadd.f32 %v24917_v59, %v36981_v15 }
0x123d   : > { %25061 = vst.msk [vmem:[%s35694_s12 + $0xb8] sm:$0xff] %vm534_vm1, %v25029_v16  ;;  %v25028_v31 = vadd.f32 %v35479_v19, %v24988_v12 }
0x123f   : > { %25060 = vst.msk [vmem:[%s35694_s12 + $0xb0] sm:$0xff] %vm534_vm1, %v25028_v31 }
0x1244   : > { %v27874_v55 = vpop.f32.mrf.mxu1 }
0x1245   : > { %v24991_v33 = vadd.f32 %v27874_v55, %v36982_v22 }
0x1246   : > { %v24927_v54 = vpop.f32.mrf.mxu1 }
0x1247   : > { %v25031_v7 = vadd.f32 %v35479_v19, %v24991_v33  ;;  %v24990_v25 = vadd.f32 %v24927_v54, %v36983_v8 }
0x1249   : > { %25063 = vst.msk [vmem:[%s35694_s12 + $0xc8] sm:$0xff] %vm534_vm1, %v25031_v7  ;;  %v25030_v28 = vadd.f32 %v35479_v19, %v24990_v25 }
0x124b   : > { %25062 = vst.msk [vmem:[%s35694_s12 + $0xc0] sm:$0xff] %vm534_vm1, %v25030_v28 }
0x1250   : > { %v27877_v44 = vpop.f32.mrf.mxu1 }
0x1251   : > { %v24993_v18 = vadd.f32 %v27877_v44, %v36984_v20 }
0x1252   : > { %v24937_v62 = vpop.f32.mrf.mxu1 }
0x1253   : > { %v25033_v10 = vadd.f32 %v35479_v19, %v24993_v18  ;;  %v24992_v24 = vadd.f32 %v24937_v62, %v36985_v39 }
0x1255   : > { %25065 = vst.msk [vmem:[%s35694_s12 + $0xd8] sm:$0xff] %vm534_vm1, %v25033_v10  ;;  %v25032_v11 = vadd.f32 %v35479_v19, %v24992_v24 }
0x1257   : > { %25064 = vst.msk [vmem:[%s35694_s12 + $0xd0] sm:$0xff] %vm534_vm1, %v25032_v11 }
0x125c   : > { %v27880_v48 = vpop.f32.mrf.mxu1 }
0x125d   : > { %v24995_v4 = vadd.f32 %v27880_v48, %v36986_v21 }
0x125e   : > { %v24947_v32 = vpop.f32.mrf.mxu1 }
0x125f   : > { %v25035_v14 = vadd.f32 %v35479_v19, %v24995_v4  ;;  %v24994_v51 = vadd.f32 %v24947_v32, %v36987_v46 }
0x1261   : > { %25067 = vst.msk [vmem:[%s35694_s12 + $0xe8] sm:$0xff] %vm534_vm1, %v25035_v14  ;;  %v25034_v23 = vadd.f32 %v35479_v19, %v24994_v51 }
0x1263   : > { %25066 = vst.msk [vmem:[%s35694_s12 + $0xe0] sm:$0xff] %vm534_vm1, %v25034_v23 }
0x1268   : > { %v27883_v58 = vpop.f32.mrf.mxu1 }
0x1269   : > { %v24997_v47 = vadd.f32 %v27883_v58, %v36988_v3 }
0x126a   : > { %v24957_v34 = vpop.f32.mrf.mxu1 }
0x126b   : > { %v25037_v53 = vadd.f32 %v35479_v19, %v24997_v47  ;;  %v24996_v45 = vadd.f32 %v24957_v34, %v36989_v36 }
0x126d   : > { %25069 = vst.msk [vmem:[%s35694_s12 + $0xf8] sm:$0xff] %vm534_vm1, %v25037_v53  ;;  %v25036_v29 = vadd.f32 %v35479_v19, %v24996_v45 }
0x126f   : > { %25068 = vst.msk [vmem:[%s35694_s12 + $0xf0] sm:$0xff] %vm534_vm1, %v25036_v29 }
0x1270 PF: > { %s22_s23 = sadd.s32 1, %s28748_s23   ;;  %s36990_s21 = smov %s28744_s22 }
0x1271   : > { %p19_p5 = scmp.ge.s32.totalorder %s22_s23, 4   ;;  %s36991_s22 = smov %s36993_s24 }
0x1273   :  { %21 = sbr.rel (!%p19_p5) target bundleno = 2 (0x2), region = 113 }

</bundles_post_ra>
